<compile_context>
chip_gen: v7x
topology: tpu7x:2x2x1
jax: 0.10.0
libtpu: 0.0.40
codegen_flags: <defaults>
</compile_context>

<pallas_src>
import functools

import jax
import jax.numpy as jnp
from jax import lax
from jax.experimental import pallas as pl
from jax.experimental.pallas import tpu as pltpu

D = 50            # real feature dim (inputDim; Contextualiser hard-codes hidden=50)
H = 50            # real LSTM hidden size
DP = 128          # lane-padded feature dim (one full 128-lane group)
NB_CLASSE = 2
L_BLOCKS = 3
PAD_ID = 0
LN_EPS = 1e-5
NEG_BIG = -1e30   # finite mask for the *seq-padding* key slots we introduce
word2id = {"__PAD__": PAD_ID}


# ----------------------------------------------------------------------------
# Fused kernel: LSTM + 3 AttentionBlocks + classifier, one batch tile per step.
# ----------------------------------------------------------------------------
def _masked_layer_norm(x2d, gamma, beta, fmask):
    """LayerNorm over the real D=50 columns of a lane-padded (N, DP) array.

    Relies on the invariant that padded columns of `x2d` are exactly zero, so a
    sum over all 128 lanes equals the sum over the real 50 columns.  gamma/beta
    are zero-padded, so the output keeps zero padded columns (biased variance
    and eps=1e-5 match nn.LayerNorm)."""
    mean = jnp.sum(x2d, axis=-1, keepdims=True) * (1.0 / D)
    cen = (x2d - mean) * fmask
    var = jnp.sum(cen * cen, axis=-1, keepdims=True) * (1.0 / D)
    return cen * lax.rsqrt(var + LN_EPS) * gamma + beta


def transformer_kernel(x_ref, mask_ref,
                       wih_ref, whh_ref, blstm_ref,
                       wqkv_ref, bqkv_ref, wm_ref, vecs_ref,
                       wclf_ref, bclf_ref,
                       out_ref, ctx_ref, *, s_real):
    f32, bf16 = jnp.float32, jnp.bfloat16
    sp, bt, _ = x_ref.shape          # time-major input block (SP, bt, DP)

    # 1.0 in the real 50 feature columns, 0.0 in the padded lanes.
    fmask = (lax.broadcasted_iota(jnp.int32, (1, DP), 1) < D).astype(f32)

    # ---------------- LSTM (Contextualiser), time-major ---------------------
    # Input projection hoisted out of the recurrence: ONE (sp*bt, DP)x(DP, 4DP)
    # bf16 MXU call with f32 accumulation.  bt % 8 == 0 and sp % 8 == 0, so the
    # reshapes below are zero-cost views, and gates_x[t] is a contiguous slab.
    x2d = x_ref[...].reshape(sp * bt, DP)
    gates_x = (jnp.dot(x2d, wih_ref[...], preferred_element_type=f32)
               + blstm_ref[...]).reshape(sp, bt, 4 * DP)
    whh = whh_ref[...]

    # ctx scratch holds the LSTM outputs already in the attention (batch-major)
    # layout.  Padded time rows stay exactly zero -> padded keys are finite and
    # the zero-lane-padding invariant holds everywhere downstream.
    ctx_ref[...] = jnp.zeros_like(ctx_ref)
    h = jnp.zeros((bt, DP), f32)
    c = jnp.zeros((bt, DP), f32)
    for t in range(s_real):          # tiny static trip count; h_t goes to scratch
        gates = gates_x[t] + jnp.dot(h.astype(bf16), whh, preferred_element_type=f32)
        i_g = jax.nn.sigmoid(gates[:, 0 * DP:1 * DP])   # torch gate order i,f,g,o
        f_g = jax.nn.sigmoid(gates[:, 1 * DP:2 * DP])
        g_g = jnp.tanh(gates[:, 2 * DP:3 * DP])
        o_g = jax.nn.sigmoid(gates[:, 3 * DP:4 * DP])
        c = f_g * c + i_g * g_g
        h = o_g * jnp.tanh(c)
        ctx_ref[:, t, :] = h         # strided sublane store (one row per batch)

    # ---------------- 3 fused AttentionBlocks (batch-major) -----------------
    xa = ctx_ref[...].reshape(bt * sp, DP)       # free view (sp % 8 == 0)
    m = mask_ref[...]                # (bt, sp, sp) additive: per-QUERY torch mask
                                     # (faithful to mask.unsqueeze(2).repeat)
                                     # + finite key mask for the sp padding slots
    inv_sqrt_d = f32(1.0 / (D ** 0.5))           # scale uses the REAL feature dim

    for blk in range(L_BLOCKS):
        # Fused q|k|v projection: one bf16 matmul, 128-lane-aligned output slabs.
        qkv = (jnp.dot(xa.astype(bf16), wqkv_ref[blk], preferred_element_type=f32)
               + bqkv_ref[blk])
        q = qkv[:, 0 * DP:1 * DP].reshape(bt, sp, DP).astype(bf16)
        k = qkv[:, 1 * DP:2 * DP].reshape(bt, sp, DP).astype(bf16)
        v = qkv[:, 2 * DP:3 * DP].reshape(bt, sp, DP).astype(bf16)

        logits = jnp.einsum('bqd,bkd->bqk', q, k,
                            preferred_element_type=f32) * inv_sqrt_d + m
        logits = logits - jnp.max(logits, axis=-1, keepdims=True)
        e = jnp.exp(logits)
        probas = e * pl.reciprocal(jnp.sum(e, axis=-1, keepdims=True), approx=True)
        y = jnp.einsum('bqk,bkd->bqd', probas.astype(bf16), v,
                       preferred_element_type=f32).reshape(bt * sp, DP)

        vecs = vecs_ref[blk]                     # rows: bm, g1, be1, g2, be2 (f32)
        out1 = _masked_layer_norm(xa + y, vecs[1:2], vecs[2:3], fmask)
        out2 = (jnp.dot(out1.astype(bf16), wm_ref[blk], preferred_element_type=f32)
                + vecs[0:1])
        xa = _masked_layer_norm(out1 + out2, vecs[3:4], vecs[4:5], fmask)

    # ---------------- classifier head on the CLS row -------------------------
    cls = xa.reshape(bt, sp, DP)[:, 0, :]                        # (bt, DP)
    h1 = jnp.maximum(
        jnp.dot(cls.astype(bf16), wclf_ref[0], preferred_element_type=f32)
        + bclf_ref[0], 0.0)
    out_ref[...] = (jnp.dot(h1.astype(bf16), wclf_ref[1], preferred_element_type=f32)
                    + bclf_ref[1])                               # (bt, DP) lane-dense


# ----------------------------------------------------------------------------
# Parameter packing: pad torch-layout weights into 128-lane-aligned slabs.
# Matmul operands are stored in bf16 (f32 accumulation happens in-kernel);
# biases / LayerNorm vectors stay f32 (added post-accumulation).
# ----------------------------------------------------------------------------
def pack_params(p):
    f32, bf16 = jnp.float32, jnp.bfloat16

    def pad_vec(v):
        return jnp.zeros((DP,), f32).at[:v.shape[0]].set(v.astype(f32))

    def pad_mat(w):  # w is already in (in, out) orientation used by `x @ w`
        return jnp.zeros((DP, DP), f32).at[:w.shape[0], :w.shape[1]].set(w.astype(f32))

    # LSTM: torch gate order (i, f, g, o) stacked along dim 0 of (4H, in).
    # Each gate gets its own 128-lane slab -> in-kernel gate slicing is free.
    wih = jnp.zeros((DP, 4 * DP), f32)
    whh = jnp.zeros((DP, 4 * DP), f32)
    blstm = jnp.zeros((1, 4 * DP), f32)
    bsum = (p["lstm_b_ih"] + p["lstm_b_hh"]).astype(f32)
    for g in range(4):
        wih = wih.at[:D, g * DP:g * DP + H].set(p["lstm_w_ih"][g * H:(g + 1) * H, :].T)
        whh = whh.at[:H, g * DP:g * DP + H].set(p["lstm_w_hh"][g * H:(g + 1) * H, :].T)
        blstm = blstm.at[0, g * DP:g * DP + H].set(bsum[g * H:(g + 1) * H])

    wqkv, bqkv, wm, vecs = [], [], [], []
    for blk in p["blocks"]:
        wqkv.append(jnp.concatenate(
            [pad_mat(blk["wq"].T), pad_mat(blk["wk"].T), pad_mat(blk["wv"].T)], axis=1))
        bqkv.append(jnp.concatenate(
            [pad_vec(blk["bq"]), pad_vec(blk["bk"]), pad_vec(blk["bv"])])[None, :])
        wm.append(pad_mat(blk["wm"].T))
        vecs.append(jnp.stack([pad_vec(blk["bm"]), pad_vec(blk["g1"]), pad_vec(blk["be1"]),
                               pad_vec(blk["g2"]), pad_vec(blk["be2"])], axis=0))

    wclf = jnp.stack([pad_mat(p["w_clf1"].T), pad_mat(p["w_clf2"].T)], axis=0)
    bclf = jnp.stack([pad_vec(p["b_clf1"])[None, :], pad_vec(p["b_clf2"])[None, :]], axis=0)

    return {"wih": wih.astype(bf16), "whh": whh.astype(bf16), "blstm": blstm,
            "wqkv": jnp.stack(wqkv).astype(bf16), "bqkv": jnp.stack(bqkv),
            "wm": jnp.stack(wm).astype(bf16), "vecs": jnp.stack(vecs),
            "wclf": wclf.astype(bf16), "bclf": bclf}


def _const_spec(arr):
    nd = arr.ndim
    return pl.BlockSpec(arr.shape, lambda b, _nd=nd: (0,) * _nd)


def _round_up(x, m):
    return ((x + m - 1) // m) * m


# ----------------------------------------------------------------------------
# Full forward pass (plain-JAX glue: gather, CLS prepend, mask build, padding).
# ----------------------------------------------------------------------------
def transformer_forward(x_ids, params, packed):
    f32, bf16 = jnp.float32, jnp.bfloat16
    B, T = x_ids.shape
    S = T + 1                               # CLS + tokens (real sequence length)
    SP = _round_up(S, 8)                    # tile-aligned sequence length

    # Batch tiling: largest tile (cap 128 rows) -> big MXU M-dim and few grid
    # steps; for large B, nb > 1 shards across v7x's 2 TCs ("parallel" axis).
    nb = max(1, -(-B // 128))
    bt = _round_up(-(-B // nb), 8)
    BP = nb * bt

    # ---- embedding gather, CLS prepend (plain XLA) --------------------------
    emb_x = params["embeddings"][x_ids]                              # (B, T, D)
    # PositionalEncoding: max_len=0 default in the module -> nn.Identity()
    cls_vec = params["w_cls"][:, 0] * 1.0 + params["b_cls"]          # Linear(1, D)([1.0])
    emb = jnp.concatenate([jnp.broadcast_to(cls_vec, (B, 1, D)), emb_x], axis=1)

    # time-major, lane-padded 50->128, seq-padded S->SP, batch-padded B->BP, bf16
    x_tm = jnp.zeros((SP, BP, DP), f32)
    x_tm = x_tm.at[:S, :B, :D].set(jnp.transpose(emb.astype(f32), (1, 0, 2)))
    x_tm = x_tm.astype(bf16)

    # Additive attention mask (BP, SP, SP):
    #  * per-QUERY torch mask (-inf for pad-token queries, faithful to the
    #    reference's mask.unsqueeze(2).repeat; pad tokens are NOT masked as keys),
    #  * finite -1e30 key mask for the SP-padding slots we introduce.
    qmask = jnp.concatenate(
        [jnp.zeros((B, 1), f32),
         jnp.where(x_ids == word2id["__PAD__"], -jnp.inf, 0.0).astype(f32)], axis=1)
    qmask = jnp.zeros((BP, SP), f32).at[:B, :S].set(qmask)           # pad queries: 0
    kmask = jnp.where(jnp.arange(SP) < S, 0.0, NEG_BIG).astype(f32)  # pad keys: finite
    mask_full = qmask[:, :, None] + kmask[None, None, :]             # (BP, SP, SP)

    # ---- advisory cost estimate (helps XLA schedule surrounding ops) --------
    n_rows = BP * SP
    flops = (2 * n_rows * DP * 4 * DP + 2 * S * BP * DP * 4 * DP
             + L_BLOCKS * (2 * n_rows * DP * 3 * DP + 4 * BP * SP * SP * DP
                           + 2 * n_rows * DP * DP)
             + 4 * BP * DP * DP)
    transcendentals = 5 * S * BP * DP + L_BLOCKS * BP * SP * SP
    w_bytes = sum(int(v.size) * v.dtype.itemsize for v in packed.values())
    bytes_accessed = int(x_tm.size) * 2 + int(mask_full.size) * 4 + BP * DP * 4 + w_bytes

    def kernel(*refs):                      # bind the static real sequence length
        return transformer_kernel(*refs, s_real=S)

    out = pl.pallas_call(
        kernel,
        grid=(nb,),
        out_shape=jax.ShapeDtypeStruct((BP, DP), f32),
        in_specs=[
            pl.BlockSpec((SP, bt, DP), lambda b: (0, b, 0)),     # x, time-major
            pl.BlockSpec((bt, SP, SP), lambda b: (b, 0, 0)),     # additive mask
            _const_spec(packed["wih"]), _const_spec(packed["whh"]),
            _const_spec(packed["blstm"]),
            _const_spec(packed["wqkv"]), _const_spec(packed["bqkv"]),
            _const_spec(packed["wm"]), _const_spec(packed["vecs"]),
            _const_spec(packed["wclf"]), _const_spec(packed["bclf"]),
        ],
        out_specs=pl.BlockSpec((bt, DP), lambda b: (b, 0)),
        scratch_shapes=[pltpu.VMEM((bt, SP, DP), jnp.float32)],   # LSTM context
        compiler_params=pltpu.CompilerParams(
            dimension_semantics=("parallel",),
            vmem_limit_bytes=32 * 1024 * 1024),
        cost_estimate=pl.CostEstimate(
            flops=int(flops), transcendentals=int(transcendentals),
            bytes_accessed=int(bytes_accessed)),
    )(x_tm, mask_full, packed["wih"], packed["whh"], packed["blstm"],
      packed["wqkv"], packed["bqkv"], packed["wm"], packed["vecs"],
      packed["wclf"], packed["bclf"])

    return out[:B, :NB_CLASSE]


# ----------------------------------------------------------------------------
# Deterministic parameter init (shapes follow the module's __init__).
# ----------------------------------------------------------------------------
def _uniform(key, shape, scale=0.1):
    return jax.random.uniform(key, shape, jnp.float32, -scale, scale)


def init_params(key, vocab_size):
    ks = iter(jax.random.split(key, 64))
    p = {}
    p["embeddings"] = _uniform(next(ks), (vocab_size, D), 1.0)
    p["w_cls"] = _uniform(next(ks), (D, 1))          # nn.Linear(1, D).weight
    p["b_cls"] = _uniform(next(ks), (D,))
    p["lstm_w_ih"] = _uniform(next(ks), (4 * H, D))
    p["lstm_w_hh"] = _uniform(next(ks), (4 * H, H))
    p["lstm_b_ih"] = _uniform(next(ks), (4 * H,))
    p["lstm_b_hh"] = _uniform(next(ks), (4 * H,))
    blocks = []
    for _ in range(L_BLOCKS):
        blocks.append({
            "wq": _uniform(next(ks), (D, D)), "bq": _uniform(next(ks), (D,)),
            "wk": _uniform(next(ks), (D, D)), "bk": _uniform(next(ks), (D,)),
            "wv": _uniform(next(ks), (D, D)), "bv": _uniform(next(ks), (D,)),
            "wm": _uniform(next(ks), (D, D)), "bm": _uniform(next(ks), (D,)),
            "g1": jnp.ones((D,), jnp.float32), "be1": jnp.zeros((D,), jnp.float32),
            "g2": jnp.ones((D,), jnp.float32), "be2": jnp.zeros((D,), jnp.float32),
        })
    p["blocks"] = blocks
    p["w_clf1"] = _uniform(next(ks), (10, D)); p["b_clf1"] = _uniform(next(ks), (10,))
    p["w_clf2"] = _uniform(next(ks), (NB_CLASSE, 10)); p["b_clf2"] = _uniform(next(ks), (NB_CLASSE,))
    # TODO(synk): `norm_layers` Linear(1, D) exists in __init__ but is unused in forward — omitted.
    return p


if __name__ == "__main__":
    key = jax.random.PRNGKey(0)
    pkey, xkey = jax.random.split(key)
    vocab = 20
    params = init_params(pkey, vocab)
    packed = pack_params(params)

    B, T = 2, 8
    # token ids in [1, vocab): no __PAD__ (=0) tokens, so outputs stay finite
    # (with pads the reference module itself produces NaNs via all -inf softmax rows).
    x_ids = jax.random.randint(xkey, (B, T), 1, vocab, dtype=jnp.int32)

    y_hat = transformer_forward(x_ids, params, packed)
    y_hat = jax.block_until_ready(y_hat)
    assert y_hat.shape == (B, NB_CLASSE)
    assert bool(jnp.all(jnp.isfinite(y_hat)))
    print("KERNEL_OK")
</pallas_src>

<mosaic_0001>
module attributes {stable_mosaic.version = 11 : i64} {
  func.func @kernel(%arg0: i32, %arg1: memref<16x8x128xbf16, #tpu.memory_space<vmem>>, %arg2: memref<8x16x16xf32, #tpu.memory_space<vmem>>, %arg3: memref<128x512xbf16, #tpu.memory_space<vmem>>, %arg4: memref<128x512xbf16, #tpu.memory_space<vmem>>, %arg5: memref<1x512xf32, #tpu.memory_space<vmem>>, %arg6: memref<3x128x384xbf16, #tpu.memory_space<vmem>>, %arg7: memref<3x1x384xf32, #tpu.memory_space<vmem>>, %arg8: memref<3x128x128xbf16, #tpu.memory_space<vmem>>, %arg9: memref<3x5x128xf32, #tpu.memory_space<vmem>>, %arg10: memref<2x128x128xbf16, #tpu.memory_space<vmem>>, %arg11: memref<2x1x128xf32, #tpu.memory_space<vmem>>, %arg12: memref<8x128xf32, #tpu.memory_space<vmem>>, %arg13: memref<8x16x128xf32, #tpu.memory_space<vmem>>) attributes {dimension_semantics = [#tpu.dimension_semantics<parallel>], iteration_bounds = array<i64: 1>, scalar_prefetch = 0 : i64, scratch_operands = 1 : i64, tpu.core_type = #tpu.core_type<tc>, window_params = [{transform_indices = @transform_0, window_bounds = array<i64: 16, 8, 128>}, {transform_indices = @transform_1, window_bounds = array<i64: 8, 16, 16>}, {pipeline_mode = #tpu.pipeline_mode<synchronous>, transform_indices = @transform_2, window_bounds = array<i64: 128, 512>}, {pipeline_mode = #tpu.pipeline_mode<synchronous>, transform_indices = @transform_3, window_bounds = array<i64: 128, 512>}, {pipeline_mode = #tpu.pipeline_mode<synchronous>, transform_indices = @transform_4, window_bounds = array<i64: 1, 512>}, {pipeline_mode = #tpu.pipeline_mode<synchronous>, transform_indices = @transform_5, window_bounds = array<i64: 3, 128, 384>}, {pipeline_mode = #tpu.pipeline_mode<synchronous>, transform_indices = @transform_6, window_bounds = array<i64: 3, 1, 384>}, {pipeline_mode = #tpu.pipeline_mode<synchronous>, transform_indices = @transform_7, window_bounds = array<i64: 3, 128, 128>}, {pipeline_mode = #tpu.pipeline_mode<synchronous>, transform_indices = @transform_8, window_bounds = array<i64: 3, 5, 128>}, {pipeline_mode = #tpu.pipeline_mode<synchronous>, transform_indices = @transform_9, window_bounds = array<i64: 2, 128, 128>}, {pipeline_mode = #tpu.pipeline_mode<synchronous>, transform_indices = @transform_10, window_bounds = array<i64: 2, 1, 128>}, {transform_indices = @transform_11, window_bounds = array<i64: 8, 128>}]} {
    %0 = tpu.iota {dimensions = array<i32: 1>} : vector<1x128xi32>
    %c50_i32 = arith.constant 50 : i32
    %1 = vector.broadcast %c50_i32 : i32 to vector<1x128xi32>
    %2 = arith.cmpi slt, %0, %1 : vector<1x128xi32>
    %3 = arith.extui %2 : vector<1x128xi1> to vector<1x128xi32>
    %4 = arith.sitofp %3 : vector<1x128xi32> to vector<1x128xf32>
    %c0 = arith.constant 0 : index
    %c0_0 = arith.constant 0 : index
    %c0_1 = arith.constant 0 : index
    %5 = vector.load %arg1[%c0, %c0_0, %c0_1] : memref<16x8x128xbf16, #tpu.memory_space<vmem>>, vector<16x8x128xbf16>
    %6 = vector.shape_cast %5 : vector<16x8x128xbf16> to vector<128x128xbf16>
    %c0_2 = arith.constant 0 : index
    %c0_3 = arith.constant 0 : index
    %7 = vector.load %arg3[%c0_2, %c0_3] : memref<128x512xbf16, #tpu.memory_space<vmem>>, vector<128x512xbf16>
    %cst = arith.constant dense<0.000000e+00> : vector<128x512xf32>
    %8 = tpu.matmul %6, %7, %cst {dimension_numbers = #tpu.dot_dimension_numbers<[1], [0], [0], [1], [0, 0, 1, 1], [], []>} : vector<128x128xbf16>, vector<128x512xbf16>, vector<128x512xf32> -> vector<128x512xf32>
    %c0_4 = arith.constant 0 : index
    %c0_5 = arith.constant 0 : index
    %9 = vector.load %arg5[%c0_4, %c0_5] : memref<1x512xf32, #tpu.memory_space<vmem>>, vector<1x512xf32>
    %10 = vector.broadcast %9 : vector<1x512xf32> to vector<128x512xf32>
    %11 = arith.addf %8, %10 : vector<128x512xf32>
    %12 = vector.shape_cast %11 : vector<128x512xf32> to vector<16x8x512xf32>
    %c0_6 = arith.constant 0 : index
    %c0_7 = arith.constant 0 : index
    %13 = vector.load %arg4[%c0_6, %c0_7] : memref<128x512xbf16, #tpu.memory_space<vmem>>, vector<128x512xbf16>
    %cst_8 = arith.constant 0.000000e+00 : f32
    %14 = vector.broadcast %cst_8 : f32 to vector<8x16x128xf32>
    %c0_9 = arith.constant 0 : index
    %c0_10 = arith.constant 0 : index
    %c0_11 = arith.constant 0 : index
    %15 = vector.load %arg13[%c0_9, %c0_10, %c0_11] : memref<8x16x128xf32, #tpu.memory_space<vmem>>, vector<8x16x128xf32>
    tpu.vector_store %arg13[%c0_9, %c0_10, %c0_11], %14 {strides = array<i32>} : memref<8x16x128xf32, #tpu.memory_space<vmem>>, vector<8x16x128xf32>,
    %cst_12 = arith.constant 0.000000e+00 : f32
    %16 = vector.broadcast %cst_12 : f32 to vector<8x128xf32>
    %cst_13 = arith.constant 0.000000e+00 : f32
    %17 = vector.broadcast %cst_13 : f32 to vector<8x128xf32>
    %18 = vector.extract_strided_slice %12 {offsets = [0, 0, 0], sizes = [1, 8, 512], strides = [1, 1, 1]} : vector<16x8x512xf32> to vector<1x8x512xf32>
    %19 = vector.shape_cast %18 : vector<1x8x512xf32> to vector<8x512xf32>
    %20 = arith.truncf %16 : vector<8x128xf32> to vector<8x128xbf16>
    %cst_14 = arith.constant dense<0.000000e+00> : vector<8x512xf32>
    %21 = tpu.matmul %20, %13, %cst_14 {dimension_numbers = #tpu.dot_dimension_numbers<[1], [0], [0], [1], [0, 0, 1, 1], [], []>} : vector<8x128xbf16>, vector<128x512xbf16>, vector<8x512xf32> -> vector<8x512xf32>
    %22 = arith.addf %19, %21 : vector<8x512xf32>
    %23 = vector.extract_strided_slice %22 {offsets = [0, 0], sizes = [8, 128], strides = [1, 1]} : vector<8x512xf32> to vector<8x128xf32>
    %24 = arith.negf %23 : vector<8x128xf32>
    %25 = math.exp %24 : vector<8x128xf32>
    %cst_15 = arith.constant 1.000000e+00 : f32
    %26 = vector.broadcast %cst_15 : f32 to vector<8x128xf32>
    %27 = arith.addf %26, %25 : vector<8x128xf32>
    %28 = arith.divf %26, %27 : vector<8x128xf32>
    %29 = vector.extract_strided_slice %22 {offsets = [0, 128], sizes = [8, 128], strides = [1, 1]} : vector<8x512xf32> to vector<8x128xf32>
    %30 = arith.negf %29 : vector<8x128xf32>
    %31 = math.exp %30 : vector<8x128xf32>
    %cst_16 = arith.constant 1.000000e+00 : f32
    %32 = vector.broadcast %cst_16 : f32 to vector<8x128xf32>
    %33 = arith.addf %32, %31 : vector<8x128xf32>
    %34 = arith.divf %32, %33 : vector<8x128xf32>
    %35 = vector.extract_strided_slice %22 {offsets = [0, 256], sizes = [8, 128], strides = [1, 1]} : vector<8x512xf32> to vector<8x128xf32>
    %36 = math.tanh %35 : vector<8x128xf32>
    %37 = vector.extract_strided_slice %22 {offsets = [0, 384], sizes = [8, 128], strides = [1, 1]} : vector<8x512xf32> to vector<8x128xf32>
    %38 = arith.negf %37 : vector<8x128xf32>
    %39 = math.exp %38 : vector<8x128xf32>
    %cst_17 = arith.constant 1.000000e+00 : f32
    %40 = vector.broadcast %cst_17 : f32 to vector<8x128xf32>
    %41 = arith.addf %40, %39 : vector<8x128xf32>
    %42 = arith.divf %40, %41 : vector<8x128xf32>
    %43 = arith.mulf %34, %17 : vector<8x128xf32>
    %44 = arith.mulf %28, %36 : vector<8x128xf32>
    %45 = arith.addf %43, %44 : vector<8x128xf32>
    %46 = math.tanh %45 : vector<8x128xf32>
    %47 = arith.mulf %42, %46 : vector<8x128xf32>
    %c0_18 = arith.constant 0 : index
    %c0_19 = arith.constant 0 : index
    %c0_20 = arith.constant 0 : index
    %48 = vector.load %arg13[%c0_18, %c0_19, %c0_20] : memref<8x16x128xf32, #tpu.memory_space<vmem>>, vector<8x1x128xf32>
    %49 = vector.shape_cast %48 : vector<8x1x128xf32> to vector<8x128xf32>
    %50 = vector.shape_cast %47 : vector<8x128xf32> to vector<8x1x128xf32>
    tpu.vector_store %arg13[%c0_18, %c0_19, %c0_20], %50 {strides = array<i32>} : memref<8x16x128xf32, #tpu.memory_space<vmem>>, vector<8x1x128xf32>,
    %51 = vector.extract_strided_slice %12 {offsets = [1, 0, 0], sizes = [1, 8, 512], strides = [1, 1, 1]} : vector<16x8x512xf32> to vector<1x8x512xf32>
    %52 = vector.shape_cast %51 : vector<1x8x512xf32> to vector<8x512xf32>
    %53 = arith.truncf %47 : vector<8x128xf32> to vector<8x128xbf16>
    %cst_21 = arith.constant dense<0.000000e+00> : vector<8x512xf32>
    %54 = tpu.matmul %53, %13, %cst_21 {dimension_numbers = #tpu.dot_dimension_numbers<[1], [0], [0], [1], [0, 0, 1, 1], [], []>} : vector<8x128xbf16>, vector<128x512xbf16>, vector<8x512xf32> -> vector<8x512xf32>
    %55 = arith.addf %52, %54 : vector<8x512xf32>
    %56 = vector.extract_strided_slice %55 {offsets = [0, 0], sizes = [8, 128], strides = [1, 1]} : vector<8x512xf32> to vector<8x128xf32>
    %57 = arith.negf %56 : vector<8x128xf32>
    %58 = math.exp %57 : vector<8x128xf32>
    %cst_22 = arith.constant 1.000000e+00 : f32
    %59 = vector.broadcast %cst_22 : f32 to vector<8x128xf32>
    %60 = arith.addf %59, %58 : vector<8x128xf32>
    %61 = arith.divf %59, %60 : vector<8x128xf32>
    %62 = vector.extract_strided_slice %55 {offsets = [0, 128], sizes = [8, 128], strides = [1, 1]} : vector<8x512xf32> to vector<8x128xf32>
    %63 = arith.negf %62 : vector<8x128xf32>
    %64 = math.exp %63 : vector<8x128xf32>
    %cst_23 = arith.constant 1.000000e+00 : f32
    %65 = vector.broadcast %cst_23 : f32 to vector<8x128xf32>
    %66 = arith.addf %65, %64 : vector<8x128xf32>
    %67 = arith.divf %65, %66 : vector<8x128xf32>
    %68 = vector.extract_strided_slice %55 {offsets = [0, 256], sizes = [8, 128], strides = [1, 1]} : vector<8x512xf32> to vector<8x128xf32>
    %69 = math.tanh %68 : vector<8x128xf32>
    %70 = vector.extract_strided_slice %55 {offsets = [0, 384], sizes = [8, 128], strides = [1, 1]} : vector<8x512xf32> to vector<8x128xf32>
    %71 = arith.negf %70 : vector<8x128xf32>
    %72 = math.exp %71 : vector<8x128xf32>
    %cst_24 = arith.constant 1.000000e+00 : f32
    %73 = vector.broadcast %cst_24 : f32 to vector<8x128xf32>
    %74 = arith.addf %73, %72 : vector<8x128xf32>
    %75 = arith.divf %73, %74 : vector<8x128xf32>
    %76 = arith.mulf %67, %45 : vector<8x128xf32>
    %77 = arith.mulf %61, %69 : vector<8x128xf32>
    %78 = arith.addf %76, %77 : vector<8x128xf32>
    %79 = math.tanh %78 : vector<8x128xf32>
    %80 = arith.mulf %75, %79 : vector<8x128xf32>
    %c0_25 = arith.constant 0 : index
    %c1 = arith.constant 1 : index
    %c0_26 = arith.constant 0 : index
    %81 = vector.load %arg13[%c0_25, %c1, %c0_26] : memref<8x16x128xf32, #tpu.memory_space<vmem>>, vector<8x1x128xf32>
    %82 = vector.shape_cast %81 : vector<8x1x128xf32> to vector<8x128xf32>
    %83 = vector.shape_cast %80 : vector<8x128xf32> to vector<8x1x128xf32>
    tpu.vector_store %arg13[%c0_25, %c1, %c0_26], %83 {strides = array<i32>} : memref<8x16x128xf32, #tpu.memory_space<vmem>>, vector<8x1x128xf32>,
    %84 = vector.extract_strided_slice %12 {offsets = [2, 0, 0], sizes = [1, 8, 512], strides = [1, 1, 1]} : vector<16x8x512xf32> to vector<1x8x512xf32>
    %85 = vector.shape_cast %84 : vector<1x8x512xf32> to vector<8x512xf32>
    %86 = arith.truncf %80 : vector<8x128xf32> to vector<8x128xbf16>
    %cst_27 = arith.constant dense<0.000000e+00> : vector<8x512xf32>
    %87 = tpu.matmul %86, %13, %cst_27 {dimension_numbers = #tpu.dot_dimension_numbers<[1], [0], [0], [1], [0, 0, 1, 1], [], []>} : vector<8x128xbf16>, vector<128x512xbf16>, vector<8x512xf32> -> vector<8x512xf32>
    %88 = arith.addf %85, %87 : vector<8x512xf32>
    %89 = vector.extract_strided_slice %88 {offsets = [0, 0], sizes = [8, 128], strides = [1, 1]} : vector<8x512xf32> to vector<8x128xf32>
    %90 = arith.negf %89 : vector<8x128xf32>
    %91 = math.exp %90 : vector<8x128xf32>
    %cst_28 = arith.constant 1.000000e+00 : f32
    %92 = vector.broadcast %cst_28 : f32 to vector<8x128xf32>
    %93 = arith.addf %92, %91 : vector<8x128xf32>
    %94 = arith.divf %92, %93 : vector<8x128xf32>
    %95 = vector.extract_strided_slice %88 {offsets = [0, 128], sizes = [8, 128], strides = [1, 1]} : vector<8x512xf32> to vector<8x128xf32>
    %96 = arith.negf %95 : vector<8x128xf32>
    %97 = math.exp %96 : vector<8x128xf32>
    %cst_29 = arith.constant 1.000000e+00 : f32
    %98 = vector.broadcast %cst_29 : f32 to vector<8x128xf32>
    %99 = arith.addf %98, %97 : vector<8x128xf32>
    %100 = arith.divf %98, %99 : vector<8x128xf32>
    %101 = vector.extract_strided_slice %88 {offsets = [0, 256], sizes = [8, 128], strides = [1, 1]} : vector<8x512xf32> to vector<8x128xf32>
    %102 = math.tanh %101 : vector<8x128xf32>
    %103 = vector.extract_strided_slice %88 {offsets = [0, 384], sizes = [8, 128], strides = [1, 1]} : vector<8x512xf32> to vector<8x128xf32>
    %104 = arith.negf %103 : vector<8x128xf32>
    %105 = math.exp %104 : vector<8x128xf32>
    %cst_30 = arith.constant 1.000000e+00 : f32
    %106 = vector.broadcast %cst_30 : f32 to vector<8x128xf32>
    %107 = arith.addf %106, %105 : vector<8x128xf32>
    %108 = arith.divf %106, %107 : vector<8x128xf32>
    %109 = arith.mulf %100, %78 : vector<8x128xf32>
    %110 = arith.mulf %94, %102 : vector<8x128xf32>
    %111 = arith.addf %109, %110 : vector<8x128xf32>
    %112 = math.tanh %111 : vector<8x128xf32>
    %113 = arith.mulf %108, %112 : vector<8x128xf32>
    %c0_31 = arith.constant 0 : index
    %c2 = arith.constant 2 : index
    %c0_32 = arith.constant 0 : index
    %114 = vector.load %arg13[%c0_31, %c2, %c0_32] : memref<8x16x128xf32, #tpu.memory_space<vmem>>, vector<8x1x128xf32>
    %115 = vector.shape_cast %114 : vector<8x1x128xf32> to vector<8x128xf32>
    %116 = vector.shape_cast %113 : vector<8x128xf32> to vector<8x1x128xf32>
    tpu.vector_store %arg13[%c0_31, %c2, %c0_32], %116 {strides = array<i32>} : memref<8x16x128xf32, #tpu.memory_space<vmem>>, vector<8x1x128xf32>,
    %117 = vector.extract_strided_slice %12 {offsets = [3, 0, 0], sizes = [1, 8, 512], strides = [1, 1, 1]} : vector<16x8x512xf32> to vector<1x8x512xf32>
    %118 = vector.shape_cast %117 : vector<1x8x512xf32> to vector<8x512xf32>
    %119 = arith.truncf %113 : vector<8x128xf32> to vector<8x128xbf16>
    %cst_33 = arith.constant dense<0.000000e+00> : vector<8x512xf32>
    %120 = tpu.matmul %119, %13, %cst_33 {dimension_numbers = #tpu.dot_dimension_numbers<[1], [0], [0], [1], [0, 0, 1, 1], [], []>} : vector<8x128xbf16>, vector<128x512xbf16>, vector<8x512xf32> -> vector<8x512xf32>
    %121 = arith.addf %118, %120 : vector<8x512xf32>
    %122 = vector.extract_strided_slice %121 {offsets = [0, 0], sizes = [8, 128], strides = [1, 1]} : vector<8x512xf32> to vector<8x128xf32>
    %123 = arith.negf %122 : vector<8x128xf32>
    %124 = math.exp %123 : vector<8x128xf32>
    %cst_34 = arith.constant 1.000000e+00 : f32
    %125 = vector.broadcast %cst_34 : f32 to vector<8x128xf32>
    %126 = arith.addf %125, %124 : vector<8x128xf32>
    %127 = arith.divf %125, %126 : vector<8x128xf32>
    %128 = vector.extract_strided_slice %121 {offsets = [0, 128], sizes = [8, 128], strides = [1, 1]} : vector<8x512xf32> to vector<8x128xf32>
    %129 = arith.negf %128 : vector<8x128xf32>
    %130 = math.exp %129 : vector<8x128xf32>
    %cst_35 = arith.constant 1.000000e+00 : f32
    %131 = vector.broadcast %cst_35 : f32 to vector<8x128xf32>
    %132 = arith.addf %131, %130 : vector<8x128xf32>
    %133 = arith.divf %131, %132 : vector<8x128xf32>
    %134 = vector.extract_strided_slice %121 {offsets = [0, 256], sizes = [8, 128], strides = [1, 1]} : vector<8x512xf32> to vector<8x128xf32>
    %135 = math.tanh %134 : vector<8x128xf32>
    %136 = vector.extract_strided_slice %121 {offsets = [0, 384], sizes = [8, 128], strides = [1, 1]} : vector<8x512xf32> to vector<8x128xf32>
    %137 = arith.negf %136 : vector<8x128xf32>
    %138 = math.exp %137 : vector<8x128xf32>
    %cst_36 = arith.constant 1.000000e+00 : f32
    %139 = vector.broadcast %cst_36 : f32 to vector<8x128xf32>
    %140 = arith.addf %139, %138 : vector<8x128xf32>
    %141 = arith.divf %139, %140 : vector<8x128xf32>
    %142 = arith.mulf %133, %111 : vector<8x128xf32>
    %143 = arith.mulf %127, %135 : vector<8x128xf32>
    %144 = arith.addf %142, %143 : vector<8x128xf32>
    %145 = math.tanh %144 : vector<8x128xf32>
    %146 = arith.mulf %141, %145 : vector<8x128xf32>
    %c0_37 = arith.constant 0 : index
    %c3 = arith.constant 3 : index
    %c0_38 = arith.constant 0 : index
    %147 = vector.load %arg13[%c0_37, %c3, %c0_38] : memref<8x16x128xf32, #tpu.memory_space<vmem>>, vector<8x1x128xf32>
    %148 = vector.shape_cast %147 : vector<8x1x128xf32> to vector<8x128xf32>
    %149 = vector.shape_cast %146 : vector<8x128xf32> to vector<8x1x128xf32>
    tpu.vector_store %arg13[%c0_37, %c3, %c0_38], %149 {strides = array<i32>} : memref<8x16x128xf32, #tpu.memory_space<vmem>>, vector<8x1x128xf32>,
    %150 = vector.extract_strided_slice %12 {offsets = [4, 0, 0], sizes = [1, 8, 512], strides = [1, 1, 1]} : vector<16x8x512xf32> to vector<1x8x512xf32>
    %151 = vector.shape_cast %150 : vector<1x8x512xf32> to vector<8x512xf32>
    %152 = arith.truncf %146 : vector<8x128xf32> to vector<8x128xbf16>
    %cst_39 = arith.constant dense<0.000000e+00> : vector<8x512xf32>
    %153 = tpu.matmul %152, %13, %cst_39 {dimension_numbers = #tpu.dot_dimension_numbers<[1], [0], [0], [1], [0, 0, 1, 1], [], []>} : vector<8x128xbf16>, vector<128x512xbf16>, vector<8x512xf32> -> vector<8x512xf32>
    %154 = arith.addf %151, %153 : vector<8x512xf32>
    %155 = vector.extract_strided_slice %154 {offsets = [0, 0], sizes = [8, 128], strides = [1, 1]} : vector<8x512xf32> to vector<8x128xf32>
    %156 = arith.negf %155 : vector<8x128xf32>
    %157 = math.exp %156 : vector<8x128xf32>
    %cst_40 = arith.constant 1.000000e+00 : f32
    %158 = vector.broadcast %cst_40 : f32 to vector<8x128xf32>
    %159 = arith.addf %158, %157 : vector<8x128xf32>
    %160 = arith.divf %158, %159 : vector<8x128xf32>
    %161 = vector.extract_strided_slice %154 {offsets = [0, 128], sizes = [8, 128], strides = [1, 1]} : vector<8x512xf32> to vector<8x128xf32>
    %162 = arith.negf %161 : vector<8x128xf32>
    %163 = math.exp %162 : vector<8x128xf32>
    %cst_41 = arith.constant 1.000000e+00 : f32
    %164 = vector.broadcast %cst_41 : f32 to vector<8x128xf32>
    %165 = arith.addf %164, %163 : vector<8x128xf32>
    %166 = arith.divf %164, %165 : vector<8x128xf32>
    %167 = vector.extract_strided_slice %154 {offsets = [0, 256], sizes = [8, 128], strides = [1, 1]} : vector<8x512xf32> to vector<8x128xf32>
    %168 = math.tanh %167 : vector<8x128xf32>
    %169 = vector.extract_strided_slice %154 {offsets = [0, 384], sizes = [8, 128], strides = [1, 1]} : vector<8x512xf32> to vector<8x128xf32>
    %170 = arith.negf %169 : vector<8x128xf32>
    %171 = math.exp %170 : vector<8x128xf32>
    %cst_42 = arith.constant 1.000000e+00 : f32
    %172 = vector.broadcast %cst_42 : f32 to vector<8x128xf32>
    %173 = arith.addf %172, %171 : vector<8x128xf32>
    %174 = arith.divf %172, %173 : vector<8x128xf32>
    %175 = arith.mulf %166, %144 : vector<8x128xf32>
    %176 = arith.mulf %160, %168 : vector<8x128xf32>
    %177 = arith.addf %175, %176 : vector<8x128xf32>
    %178 = math.tanh %177 : vector<8x128xf32>
    %179 = arith.mulf %174, %178 : vector<8x128xf32>
    %c0_43 = arith.constant 0 : index
    %c4 = arith.constant 4 : index
    %c0_44 = arith.constant 0 : index
    %180 = vector.load %arg13[%c0_43, %c4, %c0_44] : memref<8x16x128xf32, #tpu.memory_space<vmem>>, vector<8x1x128xf32>
    %181 = vector.shape_cast %180 : vector<8x1x128xf32> to vector<8x128xf32>
    %182 = vector.shape_cast %179 : vector<8x128xf32> to vector<8x1x128xf32>
    tpu.vector_store %arg13[%c0_43, %c4, %c0_44], %182 {strides = array<i32>} : memref<8x16x128xf32, #tpu.memory_space<vmem>>, vector<8x1x128xf32>,
    %183 = vector.extract_strided_slice %12 {offsets = [5, 0, 0], sizes = [1, 8, 512], strides = [1, 1, 1]} : vector<16x8x512xf32> to vector<1x8x512xf32>
    %184 = vector.shape_cast %183 : vector<1x8x512xf32> to vector<8x512xf32>
    %185 = arith.truncf %179 : vector<8x128xf32> to vector<8x128xbf16>
    %cst_45 = arith.constant dense<0.000000e+00> : vector<8x512xf32>
    %186 = tpu.matmul %185, %13, %cst_45 {dimension_numbers = #tpu.dot_dimension_numbers<[1], [0], [0], [1], [0, 0, 1, 1], [], []>} : vector<8x128xbf16>, vector<128x512xbf16>, vector<8x512xf32> -> vector<8x512xf32>
    %187 = arith.addf %184, %186 : vector<8x512xf32>
    %188 = vector.extract_strided_slice %187 {offsets = [0, 0], sizes = [8, 128], strides = [1, 1]} : vector<8x512xf32> to vector<8x128xf32>
    %189 = arith.negf %188 : vector<8x128xf32>
    %190 = math.exp %189 : vector<8x128xf32>
    %cst_46 = arith.constant 1.000000e+00 : f32
    %191 = vector.broadcast %cst_46 : f32 to vector<8x128xf32>
    %192 = arith.addf %191, %190 : vector<8x128xf32>
    %193 = arith.divf %191, %192 : vector<8x128xf32>
    %194 = vector.extract_strided_slice %187 {offsets = [0, 128], sizes = [8, 128], strides = [1, 1]} : vector<8x512xf32> to vector<8x128xf32>
    %195 = arith.negf %194 : vector<8x128xf32>
    %196 = math.exp %195 : vector<8x128xf32>
    %cst_47 = arith.constant 1.000000e+00 : f32
    %197 = vector.broadcast %cst_47 : f32 to vector<8x128xf32>
    %198 = arith.addf %197, %196 : vector<8x128xf32>
    %199 = arith.divf %197, %198 : vector<8x128xf32>
    %200 = vector.extract_strided_slice %187 {offsets = [0, 256], sizes = [8, 128], strides = [1, 1]} : vector<8x512xf32> to vector<8x128xf32>
    %201 = math.tanh %200 : vector<8x128xf32>
    %202 = vector.extract_strided_slice %187 {offsets = [0, 384], sizes = [8, 128], strides = [1, 1]} : vector<8x512xf32> to vector<8x128xf32>
    %203 = arith.negf %202 : vector<8x128xf32>
    %204 = math.exp %203 : vector<8x128xf32>
    %cst_48 = arith.constant 1.000000e+00 : f32
    %205 = vector.broadcast %cst_48 : f32 to vector<8x128xf32>
    %206 = arith.addf %205, %204 : vector<8x128xf32>
    %207 = arith.divf %205, %206 : vector<8x128xf32>
    %208 = arith.mulf %199, %177 : vector<8x128xf32>
    %209 = arith.mulf %193, %201 : vector<8x128xf32>
    %210 = arith.addf %208, %209 : vector<8x128xf32>
    %211 = math.tanh %210 : vector<8x128xf32>
    %212 = arith.mulf %207, %211 : vector<8x128xf32>
    %c0_49 = arith.constant 0 : index
    %c5 = arith.constant 5 : index
    %c0_50 = arith.constant 0 : index
    %213 = vector.load %arg13[%c0_49, %c5, %c0_50] : memref<8x16x128xf32, #tpu.memory_space<vmem>>, vector<8x1x128xf32>
    %214 = vector.shape_cast %213 : vector<8x1x128xf32> to vector<8x128xf32>
    %215 = vector.shape_cast %212 : vector<8x128xf32> to vector<8x1x128xf32>
    tpu.vector_store %arg13[%c0_49, %c5, %c0_50], %215 {strides = array<i32>} : memref<8x16x128xf32, #tpu.memory_space<vmem>>, vector<8x1x128xf32>,
    %216 = vector.extract_strided_slice %12 {offsets = [6, 0, 0], sizes = [1, 8, 512], strides = [1, 1, 1]} : vector<16x8x512xf32> to vector<1x8x512xf32>
    %217 = vector.shape_cast %216 : vector<1x8x512xf32> to vector<8x512xf32>
    %218 = arith.truncf %212 : vector<8x128xf32> to vector<8x128xbf16>
    %cst_51 = arith.constant dense<0.000000e+00> : vector<8x512xf32>
    %219 = tpu.matmul %218, %13, %cst_51 {dimension_numbers = #tpu.dot_dimension_numbers<[1], [0], [0], [1], [0, 0, 1, 1], [], []>} : vector<8x128xbf16>, vector<128x512xbf16>, vector<8x512xf32> -> vector<8x512xf32>
    %220 = arith.addf %217, %219 : vector<8x512xf32>
    %221 = vector.extract_strided_slice %220 {offsets = [0, 0], sizes = [8, 128], strides = [1, 1]} : vector<8x512xf32> to vector<8x128xf32>
    %222 = arith.negf %221 : vector<8x128xf32>
    %223 = math.exp %222 : vector<8x128xf32>
    %cst_52 = arith.constant 1.000000e+00 : f32
    %224 = vector.broadcast %cst_52 : f32 to vector<8x128xf32>
    %225 = arith.addf %224, %223 : vector<8x128xf32>
    %226 = arith.divf %224, %225 : vector<8x128xf32>
    %227 = vector.extract_strided_slice %220 {offsets = [0, 128], sizes = [8, 128], strides = [1, 1]} : vector<8x512xf32> to vector<8x128xf32>
    %228 = arith.negf %227 : vector<8x128xf32>
    %229 = math.exp %228 : vector<8x128xf32>
    %cst_53 = arith.constant 1.000000e+00 : f32
    %230 = vector.broadcast %cst_53 : f32 to vector<8x128xf32>
    %231 = arith.addf %230, %229 : vector<8x128xf32>
    %232 = arith.divf %230, %231 : vector<8x128xf32>
    %233 = vector.extract_strided_slice %220 {offsets = [0, 256], sizes = [8, 128], strides = [1, 1]} : vector<8x512xf32> to vector<8x128xf32>
    %234 = math.tanh %233 : vector<8x128xf32>
    %235 = vector.extract_strided_slice %220 {offsets = [0, 384], sizes = [8, 128], strides = [1, 1]} : vector<8x512xf32> to vector<8x128xf32>
    %236 = arith.negf %235 : vector<8x128xf32>
    %237 = math.exp %236 : vector<8x128xf32>
    %cst_54 = arith.constant 1.000000e+00 : f32
    %238 = vector.broadcast %cst_54 : f32 to vector<8x128xf32>
    %239 = arith.addf %238, %237 : vector<8x128xf32>
    %240 = arith.divf %238, %239 : vector<8x128xf32>
    %241 = arith.mulf %232, %210 : vector<8x128xf32>
    %242 = arith.mulf %226, %234 : vector<8x128xf32>
    %243 = arith.addf %241, %242 : vector<8x128xf32>
    %244 = math.tanh %243 : vector<8x128xf32>
    %245 = arith.mulf %240, %244 : vector<8x128xf32>
    %c0_55 = arith.constant 0 : index
    %c6 = arith.constant 6 : index
    %c0_56 = arith.constant 0 : index
    %246 = vector.load %arg13[%c0_55, %c6, %c0_56] : memref<8x16x128xf32, #tpu.memory_space<vmem>>, vector<8x1x128xf32>
    %247 = vector.shape_cast %246 : vector<8x1x128xf32> to vector<8x128xf32>
    %248 = vector.shape_cast %245 : vector<8x128xf32> to vector<8x1x128xf32>
    tpu.vector_store %arg13[%c0_55, %c6, %c0_56], %248 {strides = array<i32>} : memref<8x16x128xf32, #tpu.memory_space<vmem>>, vector<8x1x128xf32>,
    %249 = vector.extract_strided_slice %12 {offsets = [7, 0, 0], sizes = [1, 8, 512], strides = [1, 1, 1]} : vector<16x8x512xf32> to vector<1x8x512xf32>
    %250 = vector.shape_cast %249 : vector<1x8x512xf32> to vector<8x512xf32>
    %251 = arith.truncf %245 : vector<8x128xf32> to vector<8x128xbf16>
    %cst_57 = arith.constant dense<0.000000e+00> : vector<8x512xf32>
    %252 = tpu.matmul %251, %13, %cst_57 {dimension_numbers = #tpu.dot_dimension_numbers<[1], [0], [0], [1], [0, 0, 1, 1], [], []>} : vector<8x128xbf16>, vector<128x512xbf16>, vector<8x512xf32> -> vector<8x512xf32>
    %253 = arith.addf %250, %252 : vector<8x512xf32>
    %254 = vector.extract_strided_slice %253 {offsets = [0, 0], sizes = [8, 128], strides = [1, 1]} : vector<8x512xf32> to vector<8x128xf32>
    %255 = arith.negf %254 : vector<8x128xf32>
    %256 = math.exp %255 : vector<8x128xf32>
    %cst_58 = arith.constant 1.000000e+00 : f32
    %257 = vector.broadcast %cst_58 : f32 to vector<8x128xf32>
    %258 = arith.addf %257, %256 : vector<8x128xf32>
    %259 = arith.divf %257, %258 : vector<8x128xf32>
    %260 = vector.extract_strided_slice %253 {offsets = [0, 128], sizes = [8, 128], strides = [1, 1]} : vector<8x512xf32> to vector<8x128xf32>
    %261 = arith.negf %260 : vector<8x128xf32>
    %262 = math.exp %261 : vector<8x128xf32>
    %cst_59 = arith.constant 1.000000e+00 : f32
    %263 = vector.broadcast %cst_59 : f32 to vector<8x128xf32>
    %264 = arith.addf %263, %262 : vector<8x128xf32>
    %265 = arith.divf %263, %264 : vector<8x128xf32>
    %266 = vector.extract_strided_slice %253 {offsets = [0, 256], sizes = [8, 128], strides = [1, 1]} : vector<8x512xf32> to vector<8x128xf32>
    %267 = math.tanh %266 : vector<8x128xf32>
    %268 = vector.extract_strided_slice %253 {offsets = [0, 384], sizes = [8, 128], strides = [1, 1]} : vector<8x512xf32> to vector<8x128xf32>
    %269 = arith.negf %268 : vector<8x128xf32>
    %270 = math.exp %269 : vector<8x128xf32>
    %cst_60 = arith.constant 1.000000e+00 : f32
    %271 = vector.broadcast %cst_60 : f32 to vector<8x128xf32>
    %272 = arith.addf %271, %270 : vector<8x128xf32>
    %273 = arith.divf %271, %272 : vector<8x128xf32>
    %274 = arith.mulf %265, %243 : vector<8x128xf32>
    %275 = arith.mulf %259, %267 : vector<8x128xf32>
    %276 = arith.addf %274, %275 : vector<8x128xf32>
    %277 = math.tanh %276 : vector<8x128xf32>
    %278 = arith.mulf %273, %277 : vector<8x128xf32>
    %c0_61 = arith.constant 0 : index
    %c7 = arith.constant 7 : index
    %c0_62 = arith.constant 0 : index
    %279 = vector.load %arg13[%c0_61, %c7, %c0_62] : memref<8x16x128xf32, #tpu.memory_space<vmem>>, vector<8x1x128xf32>
    %280 = vector.shape_cast %279 : vector<8x1x128xf32> to vector<8x128xf32>
    %281 = vector.shape_cast %278 : vector<8x128xf32> to vector<8x1x128xf32>
    tpu.vector_store %arg13[%c0_61, %c7, %c0_62], %281 {strides = array<i32>} : memref<8x16x128xf32, #tpu.memory_space<vmem>>, vector<8x1x128xf32>,
    %282 = vector.extract_strided_slice %12 {offsets = [8, 0, 0], sizes = [1, 8, 512], strides = [1, 1, 1]} : vector<16x8x512xf32> to vector<1x8x512xf32>
    %283 = vector.shape_cast %282 : vector<1x8x512xf32> to vector<8x512xf32>
    %284 = arith.truncf %278 : vector<8x128xf32> to vector<8x128xbf16>
    %cst_63 = arith.constant dense<0.000000e+00> : vector<8x512xf32>
    %285 = tpu.matmul %284, %13, %cst_63 {dimension_numbers = #tpu.dot_dimension_numbers<[1], [0], [0], [1], [0, 0, 1, 1], [], []>} : vector<8x128xbf16>, vector<128x512xbf16>, vector<8x512xf32> -> vector<8x512xf32>
    %286 = arith.addf %283, %285 : vector<8x512xf32>
    %287 = vector.extract_strided_slice %286 {offsets = [0, 0], sizes = [8, 128], strides = [1, 1]} : vector<8x512xf32> to vector<8x128xf32>
    %288 = arith.negf %287 : vector<8x128xf32>
    %289 = math.exp %288 : vector<8x128xf32>
    %cst_64 = arith.constant 1.000000e+00 : f32
    %290 = vector.broadcast %cst_64 : f32 to vector<8x128xf32>
    %291 = arith.addf %290, %289 : vector<8x128xf32>
    %292 = arith.divf %290, %291 : vector<8x128xf32>
    %293 = vector.extract_strided_slice %286 {offsets = [0, 128], sizes = [8, 128], strides = [1, 1]} : vector<8x512xf32> to vector<8x128xf32>
    %294 = arith.negf %293 : vector<8x128xf32>
    %295 = math.exp %294 : vector<8x128xf32>
    %cst_65 = arith.constant 1.000000e+00 : f32
    %296 = vector.broadcast %cst_65 : f32 to vector<8x128xf32>
    %297 = arith.addf %296, %295 : vector<8x128xf32>
    %298 = arith.divf %296, %297 : vector<8x128xf32>
    %299 = vector.extract_strided_slice %286 {offsets = [0, 256], sizes = [8, 128], strides = [1, 1]} : vector<8x512xf32> to vector<8x128xf32>
    %300 = math.tanh %299 : vector<8x128xf32>
    %301 = vector.extract_strided_slice %286 {offsets = [0, 384], sizes = [8, 128], strides = [1, 1]} : vector<8x512xf32> to vector<8x128xf32>
    %302 = arith.negf %301 : vector<8x128xf32>
    %303 = math.exp %302 : vector<8x128xf32>
    %cst_66 = arith.constant 1.000000e+00 : f32
    %304 = vector.broadcast %cst_66 : f32 to vector<8x128xf32>
    %305 = arith.addf %304, %303 : vector<8x128xf32>
    %306 = arith.divf %304, %305 : vector<8x128xf32>
    %307 = arith.mulf %298, %276 : vector<8x128xf32>
    %308 = arith.mulf %292, %300 : vector<8x128xf32>
    %309 = arith.addf %307, %308 : vector<8x128xf32>
    %310 = math.tanh %309 : vector<8x128xf32>
    %311 = arith.mulf %306, %310 : vector<8x128xf32>
    %c0_67 = arith.constant 0 : index
    %c8 = arith.constant 8 : index
    %c0_68 = arith.constant 0 : index
    %312 = vector.load %arg13[%c0_67, %c8, %c0_68] : memref<8x16x128xf32, #tpu.memory_space<vmem>>, vector<8x1x128xf32>
    %313 = vector.shape_cast %312 : vector<8x1x128xf32> to vector<8x128xf32>
    %314 = vector.shape_cast %311 : vector<8x128xf32> to vector<8x1x128xf32>
    tpu.vector_store %arg13[%c0_67, %c8, %c0_68], %314 {strides = array<i32>} : memref<8x16x128xf32, #tpu.memory_space<vmem>>, vector<8x1x128xf32>,
    %c0_69 = arith.constant 0 : index
    %c0_70 = arith.constant 0 : index
    %c0_71 = arith.constant 0 : index
    %315 = vector.load %arg13[%c0_69, %c0_70, %c0_71] : memref<8x16x128xf32, #tpu.memory_space<vmem>>, vector<8x16x128xf32>
    %316 = vector.shape_cast %315 : vector<8x16x128xf32> to vector<128x128xf32>
    %c0_72 = arith.constant 0 : index
    %c0_73 = arith.constant 0 : index
    %c0_74 = arith.constant 0 : index
    %317 = vector.load %arg2[%c0_72, %c0_73, %c0_74] : memref<8x16x16xf32, #tpu.memory_space<vmem>>, vector<8x16x16xf32>
    %318 = arith.truncf %316 : vector<128x128xf32> to vector<128x128xbf16>
    %c0_75 = arith.constant 0 : index
    %c0_76 = arith.constant 0 : index
    %c0_77 = arith.constant 0 : index
    %319 = vector.load %arg6[%c0_75, %c0_76, %c0_77] : memref<3x128x384xbf16, #tpu.memory_space<vmem>>, vector<1x128x384xbf16>
    %320 = vector.shape_cast %319 : vector<1x128x384xbf16> to vector<128x384xbf16>
    %cst_78 = arith.constant dense<0.000000e+00> : vector<128x384xf32>
    %321 = tpu.matmul %318, %320, %cst_78 {dimension_numbers = #tpu.dot_dimension_numbers<[1], [0], [0], [1], [0, 0, 1, 1], [], []>} : vector<128x128xbf16>, vector<128x384xbf16>, vector<128x384xf32> -> vector<128x384xf32>
    %c0_79 = arith.constant 0 : index
    %c0_80 = arith.constant 0 : index
    %c0_81 = arith.constant 0 : index
    %322 = vector.load %arg7[%c0_79, %c0_80, %c0_81] : memref<3x1x384xf32, #tpu.memory_space<vmem>>, vector<1x1x384xf32>
    %323 = vector.shape_cast %322 : vector<1x1x384xf32> to vector<1x384xf32>
    %324 = vector.broadcast %323 : vector<1x384xf32> to vector<128x384xf32>
    %325 = arith.addf %321, %324 : vector<128x384xf32>
    %326 = vector.extract_strided_slice %325 {offsets = [0, 0], sizes = [128, 128], strides = [1, 1]} : vector<128x384xf32> to vector<128x128xf32>
    %327 = vector.shape_cast %326 : vector<128x128xf32> to vector<8x16x128xf32>
    %328 = arith.truncf %327 : vector<8x16x128xf32> to vector<8x16x128xbf16>
    %329 = vector.extract_strided_slice %325 {offsets = [0, 128], sizes = [128, 128], strides = [1, 1]} : vector<128x384xf32> to vector<128x128xf32>
    %330 = vector.shape_cast %329 : vector<128x128xf32> to vector<8x16x128xf32>
    %331 = arith.truncf %330 : vector<8x16x128xf32> to vector<8x16x128xbf16>
    %332 = vector.extract_strided_slice %325 {offsets = [0, 256], sizes = [128, 128], strides = [1, 1]} : vector<128x384xf32> to vector<128x128xf32>
    %333 = vector.shape_cast %332 : vector<128x128xf32> to vector<8x16x128xf32>
    %334 = arith.truncf %333 : vector<8x16x128xf32> to vector<8x16x128xbf16>
    "tpu.trace_start"() <{level = 10 : i32, message = "bqd,bkd->bqk"}> : () -> ()
    %cst_82 = arith.constant dense<0.000000e+00> : vector<8x16x16xf32>
    %335 = tpu.matmul %328, %331, %cst_82 {dimension_numbers = #tpu.dot_dimension_numbers<[2], [2], [1], [1], [0, 0, 0, 1, 1, 1], [0], [0]>} : vector<8x16x128xbf16>, vector<8x16x128xbf16>, vector<8x16x16xf32> -> vector<8x16x16xf32>
    "tpu.trace_stop"() : () -> ()
    %cst_83 = arith.constant 0.141421363 : f32
    %336 = vector.broadcast %cst_83 : f32 to vector<8x16x16xf32>
    %337 = arith.mulf %335, %336 : vector<8x16x16xf32>
    %338 = arith.addf %337, %317 : vector<8x16x16xf32>
    %cst_84 = arith.constant dense<0xFF800000> : vector<8x16xf32>
    %339 = vector.multi_reduction <maximumf>, %338, %cst_84 [2] : vector<8x16x16xf32> to vector<8x16xf32>
    %340 = vector.shape_cast %339 : vector<8x16xf32> to vector<8x16x1xf32>
    %341 = vector.broadcast %340 : vector<8x16x1xf32> to vector<8x16x16xf32>
    %342 = arith.subf %338, %341 : vector<8x16x16xf32>
    %343 = math.exp %342 : vector<8x16x16xf32>
    %cst_85 = arith.constant dense<0.000000e+00> : vector<8x16xf32>
    %344 = vector.multi_reduction <add>, %343, %cst_85 [2] : vector<8x16x16xf32> to vector<8x16xf32>
    %345 = vector.shape_cast %344 : vector<8x16xf32> to vector<8x16x1xf32>
    %346 = tpu.reciprocal %345 {approx = true} : vector<8x16x1xf32> -> vector<8x16x1xf32>
    %347 = vector.broadcast %346 : vector<8x16x1xf32> to vector<8x16x16xf32>
    %348 = arith.mulf %343, %347 : vector<8x16x16xf32>
    %349 = arith.truncf %348 : vector<8x16x16xf32> to vector<8x16x16xbf16>
    "tpu.trace_start"() <{level = 10 : i32, message = "bqk,bkd->bqd"}> : () -> ()
    %cst_86 = arith.constant dense<0.000000e+00> : vector<8x16x128xf32>
    %350 = tpu.matmul %349, %334, %cst_86 {dimension_numbers = #tpu.dot_dimension_numbers<[2], [1], [1], [2], [0, 0, 0, 1, 1, 2], [0], [0]>} : vector<8x16x16xbf16>, vector<8x16x128xbf16>, vector<8x16x128xf32> -> vector<8x16x128xf32>
    "tpu.trace_stop"() : () -> ()
    %351 = vector.shape_cast %350 : vector<8x16x128xf32> to vector<128x128xf32>
    %c0_87 = arith.constant 0 : index
    %c0_88 = arith.constant 0 : index
    %c0_89 = arith.constant 0 : index
    %352 = vector.load %arg9[%c0_87, %c0_88, %c0_89] : memref<3x5x128xf32, #tpu.memory_space<vmem>>, vector<1x5x128xf32>
    %353 = vector.shape_cast %352 : vector<1x5x128xf32> to vector<5x128xf32>
    %354 = arith.addf %316, %351 : vector<128x128xf32>
    %355 = vector.extract_strided_slice %353 {offsets = [1, 0], sizes = [1, 128], strides = [1, 1]} : vector<5x128xf32> to vector<1x128xf32>
    %356 = vector.extract_strided_slice %353 {offsets = [2, 0], sizes = [1, 128], strides = [1, 1]} : vector<5x128xf32> to vector<1x128xf32>
    %cst_90 = arith.constant dense<0.000000e+00> : vector<128xf32>
    %357 = vector.multi_reduction <add>, %354, %cst_90 [1] : vector<128x128xf32> to vector<128xf32>
    %358 = vector.shape_cast %357 : vector<128xf32> to vector<128x1xf32>
    %cst_91 = arith.constant 2.000000e-02 : f32
    %359 = vector.broadcast %cst_91 : f32 to vector<128x1xf32>
    %360 = arith.mulf %358, %359 : vector<128x1xf32>
    %361 = vector.broadcast %360 : vector<128x1xf32> to vector<128x128xf32>
    %362 = arith.subf %354, %361 : vector<128x128xf32>
    %363 = vector.broadcast %4 : vector<1x128xf32> to vector<128x128xf32>
    %364 = arith.mulf %362, %363 : vector<128x128xf32>
    %365 = arith.mulf %364, %364 : vector<128x128xf32>
    %cst_92 = arith.constant dense<0.000000e+00> : vector<128xf32>
    %366 = vector.multi_reduction <add>, %365, %cst_92 [1] : vector<128x128xf32> to vector<128xf32>
    %367 = vector.shape_cast %366 : vector<128xf32> to vector<128x1xf32>
    %cst_93 = arith.constant 2.000000e-02 : f32
    %368 = vector.broadcast %cst_93 : f32 to vector<128x1xf32>
    %369 = arith.mulf %367, %368 : vector<128x1xf32>
    %cst_94 = arith.constant 9.99999974E-6 : f32
    %370 = vector.broadcast %cst_94 : f32 to vector<128x1xf32>
    %371 = arith.addf %369, %370 : vector<128x1xf32>
    %372 = math.rsqrt %371 : vector<128x1xf32>
    %373 = vector.broadcast %372 : vector<128x1xf32> to vector<128x128xf32>
    %374 = arith.mulf %364, %373 : vector<128x128xf32>
    %375 = vector.broadcast %355 : vector<1x128xf32> to vector<128x128xf32>
    %376 = arith.mulf %374, %375 : vector<128x128xf32>
    %377 = vector.broadcast %356 : vector<1x128xf32> to vector<128x128xf32>
    %378 = arith.addf %376, %377 : vector<128x128xf32>
    %379 = arith.truncf %378 : vector<128x128xf32> to vector<128x128xbf16>
    %c0_95 = arith.constant 0 : index
    %c0_96 = arith.constant 0 : index
    %c0_97 = arith.constant 0 : index
    %380 = vector.load %arg8[%c0_95, %c0_96, %c0_97] : memref<3x128x128xbf16, #tpu.memory_space<vmem>>, vector<1x128x128xbf16>
    %381 = vector.shape_cast %380 : vector<1x128x128xbf16> to vector<128x128xbf16>
    %cst_98 = arith.constant dense<0.000000e+00> : vector<128x128xf32>
    %382 = tpu.matmul %379, %381, %cst_98 {dimension_numbers = #tpu.dot_dimension_numbers<[1], [0], [0], [1], [0, 0, 1, 1], [], []>} : vector<128x128xbf16>, vector<128x128xbf16>, vector<128x128xf32> -> vector<128x128xf32>
    %383 = vector.extract_strided_slice %353 {offsets = [0, 0], sizes = [1, 128], strides = [1, 1]} : vector<5x128xf32> to vector<1x128xf32>
    %384 = vector.broadcast %383 : vector<1x128xf32> to vector<128x128xf32>
    %385 = arith.addf %382, %384 : vector<128x128xf32>
    %386 = arith.addf %378, %385 : vector<128x128xf32>
    %387 = vector.extract_strided_slice %353 {offsets = [3, 0], sizes = [1, 128], strides = [1, 1]} : vector<5x128xf32> to vector<1x128xf32>
    %388 = vector.extract_strided_slice %353 {offsets = [4, 0], sizes = [1, 128], strides = [1, 1]} : vector<5x128xf32> to vector<1x128xf32>
    %cst_99 = arith.constant dense<0.000000e+00> : vector<128xf32>
    %389 = vector.multi_reduction <add>, %386, %cst_99 [1] : vector<128x128xf32> to vector<128xf32>
    %390 = vector.shape_cast %389 : vector<128xf32> to vector<128x1xf32>
    %cst_100 = arith.constant 2.000000e-02 : f32
    %391 = vector.broadcast %cst_100 : f32 to vector<128x1xf32>
    %392 = arith.mulf %390, %391 : vector<128x1xf32>
    %393 = vector.broadcast %392 : vector<128x1xf32> to vector<128x128xf32>
    %394 = arith.subf %386, %393 : vector<128x128xf32>
    %395 = vector.broadcast %4 : vector<1x128xf32> to vector<128x128xf32>
    %396 = arith.mulf %394, %395 : vector<128x128xf32>
    %397 = arith.mulf %396, %396 : vector<128x128xf32>
    %cst_101 = arith.constant dense<0.000000e+00> : vector<128xf32>
    %398 = vector.multi_reduction <add>, %397, %cst_101 [1] : vector<128x128xf32> to vector<128xf32>
    %399 = vector.shape_cast %398 : vector<128xf32> to vector<128x1xf32>
    %cst_102 = arith.constant 2.000000e-02 : f32
    %400 = vector.broadcast %cst_102 : f32 to vector<128x1xf32>
    %401 = arith.mulf %399, %400 : vector<128x1xf32>
    %cst_103 = arith.constant 9.99999974E-6 : f32
    %402 = vector.broadcast %cst_103 : f32 to vector<128x1xf32>
    %403 = arith.addf %401, %402 : vector<128x1xf32>
    %404 = math.rsqrt %403 : vector<128x1xf32>
    %405 = vector.broadcast %404 : vector<128x1xf32> to vector<128x128xf32>
    %406 = arith.mulf %396, %405 : vector<128x128xf32>
    %407 = vector.broadcast %387 : vector<1x128xf32> to vector<128x128xf32>
    %408 = arith.mulf %406, %407 : vector<128x128xf32>
    %409 = vector.broadcast %388 : vector<1x128xf32> to vector<128x128xf32>
    %410 = arith.addf %408, %409 : vector<128x128xf32>
    %411 = arith.truncf %410 : vector<128x128xf32> to vector<128x128xbf16>
    %c1_104 = arith.constant 1 : index
    %c0_105 = arith.constant 0 : index
    %c0_106 = arith.constant 0 : index
    %412 = vector.load %arg6[%c1_104, %c0_105, %c0_106] : memref<3x128x384xbf16, #tpu.memory_space<vmem>>, vector<1x128x384xbf16>
    %413 = vector.shape_cast %412 : vector<1x128x384xbf16> to vector<128x384xbf16>
    %cst_107 = arith.constant dense<0.000000e+00> : vector<128x384xf32>
    %414 = tpu.matmul %411, %413, %cst_107 {dimension_numbers = #tpu.dot_dimension_numbers<[1], [0], [0], [1], [0, 0, 1, 1], [], []>} : vector<128x128xbf16>, vector<128x384xbf16>, vector<128x384xf32> -> vector<128x384xf32>
    %c1_108 = arith.constant 1 : index
    %c0_109 = arith.constant 0 : index
    %c0_110 = arith.constant 0 : index
    %415 = vector.load %arg7[%c1_108, %c0_109, %c0_110] : memref<3x1x384xf32, #tpu.memory_space<vmem>>, vector<1x1x384xf32>
    %416 = vector.shape_cast %415 : vector<1x1x384xf32> to vector<1x384xf32>
    %417 = vector.broadcast %416 : vector<1x384xf32> to vector<128x384xf32>
    %418 = arith.addf %414, %417 : vector<128x384xf32>
    %419 = vector.extract_strided_slice %418 {offsets = [0, 0], sizes = [128, 128], strides = [1, 1]} : vector<128x384xf32> to vector<128x128xf32>
    %420 = vector.shape_cast %419 : vector<128x128xf32> to vector<8x16x128xf32>
    %421 = arith.truncf %420 : vector<8x16x128xf32> to vector<8x16x128xbf16>
    %422 = vector.extract_strided_slice %418 {offsets = [0, 128], sizes = [128, 128], strides = [1, 1]} : vector<128x384xf32> to vector<128x128xf32>
    %423 = vector.shape_cast %422 : vector<128x128xf32> to vector<8x16x128xf32>
    %424 = arith.truncf %423 : vector<8x16x128xf32> to vector<8x16x128xbf16>
    %425 = vector.extract_strided_slice %418 {offsets = [0, 256], sizes = [128, 128], strides = [1, 1]} : vector<128x384xf32> to vector<128x128xf32>
    %426 = vector.shape_cast %425 : vector<128x128xf32> to vector<8x16x128xf32>
    %427 = arith.truncf %426 : vector<8x16x128xf32> to vector<8x16x128xbf16>
    "tpu.trace_start"() <{level = 10 : i32, message = "bqd,bkd->bqk"}> : () -> ()
    %cst_111 = arith.constant dense<0.000000e+00> : vector<8x16x16xf32>
    %428 = tpu.matmul %421, %424, %cst_111 {dimension_numbers = #tpu.dot_dimension_numbers<[2], [2], [1], [1], [0, 0, 0, 1, 1, 1], [0], [0]>} : vector<8x16x128xbf16>, vector<8x16x128xbf16>, vector<8x16x16xf32> -> vector<8x16x16xf32>
    "tpu.trace_stop"() : () -> ()
    %cst_112 = arith.constant 0.141421363 : f32
    %429 = vector.broadcast %cst_112 : f32 to vector<8x16x16xf32>
    %430 = arith.mulf %428, %429 : vector<8x16x16xf32>
    %431 = arith.addf %430, %317 : vector<8x16x16xf32>
    %cst_113 = arith.constant dense<0xFF800000> : vector<8x16xf32>
    %432 = vector.multi_reduction <maximumf>, %431, %cst_113 [2] : vector<8x16x16xf32> to vector<8x16xf32>
    %433 = vector.shape_cast %432 : vector<8x16xf32> to vector<8x16x1xf32>
    %434 = vector.broadcast %433 : vector<8x16x1xf32> to vector<8x16x16xf32>
    %435 = arith.subf %431, %434 : vector<8x16x16xf32>
    %436 = math.exp %435 : vector<8x16x16xf32>
    %cst_114 = arith.constant dense<0.000000e+00> : vector<8x16xf32>
    %437 = vector.multi_reduction <add>, %436, %cst_114 [2] : vector<8x16x16xf32> to vector<8x16xf32>
    %438 = vector.shape_cast %437 : vector<8x16xf32> to vector<8x16x1xf32>
    %439 = tpu.reciprocal %438 {approx = true} : vector<8x16x1xf32> -> vector<8x16x1xf32>
    %440 = vector.broadcast %439 : vector<8x16x1xf32> to vector<8x16x16xf32>
    %441 = arith.mulf %436, %440 : vector<8x16x16xf32>
    %442 = arith.truncf %441 : vector<8x16x16xf32> to vector<8x16x16xbf16>
    "tpu.trace_start"() <{level = 10 : i32, message = "bqk,bkd->bqd"}> : () -> ()
    %cst_115 = arith.constant dense<0.000000e+00> : vector<8x16x128xf32>
    %443 = tpu.matmul %442, %427, %cst_115 {dimension_numbers = #tpu.dot_dimension_numbers<[2], [1], [1], [2], [0, 0, 0, 1, 1, 2], [0], [0]>} : vector<8x16x16xbf16>, vector<8x16x128xbf16>, vector<8x16x128xf32> -> vector<8x16x128xf32>
    "tpu.trace_stop"() : () -> ()
    %444 = vector.shape_cast %443 : vector<8x16x128xf32> to vector<128x128xf32>
    %c1_116 = arith.constant 1 : index
    %c0_117 = arith.constant 0 : index
    %c0_118 = arith.constant 0 : index
    %445 = vector.load %arg9[%c1_116, %c0_117, %c0_118] : memref<3x5x128xf32, #tpu.memory_space<vmem>>, vector<1x5x128xf32>
    %446 = vector.shape_cast %445 : vector<1x5x128xf32> to vector<5x128xf32>
    %447 = arith.addf %410, %444 : vector<128x128xf32>
    %448 = vector.extract_strided_slice %446 {offsets = [1, 0], sizes = [1, 128], strides = [1, 1]} : vector<5x128xf32> to vector<1x128xf32>
    %449 = vector.extract_strided_slice %446 {offsets = [2, 0], sizes = [1, 128], strides = [1, 1]} : vector<5x128xf32> to vector<1x128xf32>
    %cst_119 = arith.constant dense<0.000000e+00> : vector<128xf32>
    %450 = vector.multi_reduction <add>, %447, %cst_119 [1] : vector<128x128xf32> to vector<128xf32>
    %451 = vector.shape_cast %450 : vector<128xf32> to vector<128x1xf32>
    %cst_120 = arith.constant 2.000000e-02 : f32
    %452 = vector.broadcast %cst_120 : f32 to vector<128x1xf32>
    %453 = arith.mulf %451, %452 : vector<128x1xf32>
    %454 = vector.broadcast %453 : vector<128x1xf32> to vector<128x128xf32>
    %455 = arith.subf %447, %454 : vector<128x128xf32>
    %456 = vector.broadcast %4 : vector<1x128xf32> to vector<128x128xf32>
    %457 = arith.mulf %455, %456 : vector<128x128xf32>
    %458 = arith.mulf %457, %457 : vector<128x128xf32>
    %cst_121 = arith.constant dense<0.000000e+00> : vector<128xf32>
    %459 = vector.multi_reduction <add>, %458, %cst_121 [1] : vector<128x128xf32> to vector<128xf32>
    %460 = vector.shape_cast %459 : vector<128xf32> to vector<128x1xf32>
    %cst_122 = arith.constant 2.000000e-02 : f32
    %461 = vector.broadcast %cst_122 : f32 to vector<128x1xf32>
    %462 = arith.mulf %460, %461 : vector<128x1xf32>
    %cst_123 = arith.constant 9.99999974E-6 : f32
    %463 = vector.broadcast %cst_123 : f32 to vector<128x1xf32>
    %464 = arith.addf %462, %463 : vector<128x1xf32>
    %465 = math.rsqrt %464 : vector<128x1xf32>
    %466 = vector.broadcast %465 : vector<128x1xf32> to vector<128x128xf32>
    %467 = arith.mulf %457, %466 : vector<128x128xf32>
    %468 = vector.broadcast %448 : vector<1x128xf32> to vector<128x128xf32>
    %469 = arith.mulf %467, %468 : vector<128x128xf32>
    %470 = vector.broadcast %449 : vector<1x128xf32> to vector<128x128xf32>
    %471 = arith.addf %469, %470 : vector<128x128xf32>
    %472 = arith.truncf %471 : vector<128x128xf32> to vector<128x128xbf16>
    %c1_124 = arith.constant 1 : index
    %c0_125 = arith.constant 0 : index
    %c0_126 = arith.constant 0 : index
    %473 = vector.load %arg8[%c1_124, %c0_125, %c0_126] : memref<3x128x128xbf16, #tpu.memory_space<vmem>>, vector<1x128x128xbf16>
    %474 = vector.shape_cast %473 : vector<1x128x128xbf16> to vector<128x128xbf16>
    %cst_127 = arith.constant dense<0.000000e+00> : vector<128x128xf32>
    %475 = tpu.matmul %472, %474, %cst_127 {dimension_numbers = #tpu.dot_dimension_numbers<[1], [0], [0], [1], [0, 0, 1, 1], [], []>} : vector<128x128xbf16>, vector<128x128xbf16>, vector<128x128xf32> -> vector<128x128xf32>
    %476 = vector.extract_strided_slice %446 {offsets = [0, 0], sizes = [1, 128], strides = [1, 1]} : vector<5x128xf32> to vector<1x128xf32>
    %477 = vector.broadcast %476 : vector<1x128xf32> to vector<128x128xf32>
    %478 = arith.addf %475, %477 : vector<128x128xf32>
    %479 = arith.addf %471, %478 : vector<128x128xf32>
    %480 = vector.extract_strided_slice %446 {offsets = [3, 0], sizes = [1, 128], strides = [1, 1]} : vector<5x128xf32> to vector<1x128xf32>
    %481 = vector.extract_strided_slice %446 {offsets = [4, 0], sizes = [1, 128], strides = [1, 1]} : vector<5x128xf32> to vector<1x128xf32>
    %cst_128 = arith.constant dense<0.000000e+00> : vector<128xf32>
    %482 = vector.multi_reduction <add>, %479, %cst_128 [1] : vector<128x128xf32> to vector<128xf32>
    %483 = vector.shape_cast %482 : vector<128xf32> to vector<128x1xf32>
    %cst_129 = arith.constant 2.000000e-02 : f32
    %484 = vector.broadcast %cst_129 : f32 to vector<128x1xf32>
    %485 = arith.mulf %483, %484 : vector<128x1xf32>
    %486 = vector.broadcast %485 : vector<128x1xf32> to vector<128x128xf32>
    %487 = arith.subf %479, %486 : vector<128x128xf32>
    %488 = vector.broadcast %4 : vector<1x128xf32> to vector<128x128xf32>
    %489 = arith.mulf %487, %488 : vector<128x128xf32>
    %490 = arith.mulf %489, %489 : vector<128x128xf32>
    %cst_130 = arith.constant dense<0.000000e+00> : vector<128xf32>
    %491 = vector.multi_reduction <add>, %490, %cst_130 [1] : vector<128x128xf32> to vector<128xf32>
    %492 = vector.shape_cast %491 : vector<128xf32> to vector<128x1xf32>
    %cst_131 = arith.constant 2.000000e-02 : f32
    %493 = vector.broadcast %cst_131 : f32 to vector<128x1xf32>
    %494 = arith.mulf %492, %493 : vector<128x1xf32>
    %cst_132 = arith.constant 9.99999974E-6 : f32
    %495 = vector.broadcast %cst_132 : f32 to vector<128x1xf32>
    %496 = arith.addf %494, %495 : vector<128x1xf32>
    %497 = math.rsqrt %496 : vector<128x1xf32>
    %498 = vector.broadcast %497 : vector<128x1xf32> to vector<128x128xf32>
    %499 = arith.mulf %489, %498 : vector<128x128xf32>
    %500 = vector.broadcast %480 : vector<1x128xf32> to vector<128x128xf32>
    %501 = arith.mulf %499, %500 : vector<128x128xf32>
    %502 = vector.broadcast %481 : vector<1x128xf32> to vector<128x128xf32>
    %503 = arith.addf %501, %502 : vector<128x128xf32>
    %504 = arith.truncf %503 : vector<128x128xf32> to vector<128x128xbf16>
    %c2_133 = arith.constant 2 : index
    %c0_134 = arith.constant 0 : index
    %c0_135 = arith.constant 0 : index
    %505 = vector.load %arg6[%c2_133, %c0_134, %c0_135] : memref<3x128x384xbf16, #tpu.memory_space<vmem>>, vector<1x128x384xbf16>
    %506 = vector.shape_cast %505 : vector<1x128x384xbf16> to vector<128x384xbf16>
    %cst_136 = arith.constant dense<0.000000e+00> : vector<128x384xf32>
    %507 = tpu.matmul %504, %506, %cst_136 {dimension_numbers = #tpu.dot_dimension_numbers<[1], [0], [0], [1], [0, 0, 1, 1], [], []>} : vector<128x128xbf16>, vector<128x384xbf16>, vector<128x384xf32> -> vector<128x384xf32>
    %c2_137 = arith.constant 2 : index
    %c0_138 = arith.constant 0 : index
    %c0_139 = arith.constant 0 : index
    %508 = vector.load %arg7[%c2_137, %c0_138, %c0_139] : memref<3x1x384xf32, #tpu.memory_space<vmem>>, vector<1x1x384xf32>
    %509 = vector.shape_cast %508 : vector<1x1x384xf32> to vector<1x384xf32>
    %510 = vector.broadcast %509 : vector<1x384xf32> to vector<128x384xf32>
    %511 = arith.addf %507, %510 : vector<128x384xf32>
    %512 = vector.extract_strided_slice %511 {offsets = [0, 0], sizes = [128, 128], strides = [1, 1]} : vector<128x384xf32> to vector<128x128xf32>
    %513 = vector.shape_cast %512 : vector<128x128xf32> to vector<8x16x128xf32>
    %514 = arith.truncf %513 : vector<8x16x128xf32> to vector<8x16x128xbf16>
    %515 = vector.extract_strided_slice %511 {offsets = [0, 128], sizes = [128, 128], strides = [1, 1]} : vector<128x384xf32> to vector<128x128xf32>
    %516 = vector.shape_cast %515 : vector<128x128xf32> to vector<8x16x128xf32>
    %517 = arith.truncf %516 : vector<8x16x128xf32> to vector<8x16x128xbf16>
    %518 = vector.extract_strided_slice %511 {offsets = [0, 256], sizes = [128, 128], strides = [1, 1]} : vector<128x384xf32> to vector<128x128xf32>
    %519 = vector.shape_cast %518 : vector<128x128xf32> to vector<8x16x128xf32>
    %520 = arith.truncf %519 : vector<8x16x128xf32> to vector<8x16x128xbf16>
    "tpu.trace_start"() <{level = 10 : i32, message = "bqd,bkd->bqk"}> : () -> ()
    %cst_140 = arith.constant dense<0.000000e+00> : vector<8x16x16xf32>
    %521 = tpu.matmul %514, %517, %cst_140 {dimension_numbers = #tpu.dot_dimension_numbers<[2], [2], [1], [1], [0, 0, 0, 1, 1, 1], [0], [0]>} : vector<8x16x128xbf16>, vector<8x16x128xbf16>, vector<8x16x16xf32> -> vector<8x16x16xf32>
    "tpu.trace_stop"() : () -> ()
    %cst_141 = arith.constant 0.141421363 : f32
    %522 = vector.broadcast %cst_141 : f32 to vector<8x16x16xf32>
    %523 = arith.mulf %521, %522 : vector<8x16x16xf32>
    %524 = arith.addf %523, %317 : vector<8x16x16xf32>
    %cst_142 = arith.constant dense<0xFF800000> : vector<8x16xf32>
    %525 = vector.multi_reduction <maximumf>, %524, %cst_142 [2] : vector<8x16x16xf32> to vector<8x16xf32>
    %526 = vector.shape_cast %525 : vector<8x16xf32> to vector<8x16x1xf32>
    %527 = vector.broadcast %526 : vector<8x16x1xf32> to vector<8x16x16xf32>
    %528 = arith.subf %524, %527 : vector<8x16x16xf32>
    %529 = math.exp %528 : vector<8x16x16xf32>
    %cst_143 = arith.constant dense<0.000000e+00> : vector<8x16xf32>
    %530 = vector.multi_reduction <add>, %529, %cst_143 [2] : vector<8x16x16xf32> to vector<8x16xf32>
    %531 = vector.shape_cast %530 : vector<8x16xf32> to vector<8x16x1xf32>
    %532 = tpu.reciprocal %531 {approx = true} : vector<8x16x1xf32> -> vector<8x16x1xf32>
    %533 = vector.broadcast %532 : vector<8x16x1xf32> to vector<8x16x16xf32>
    %534 = arith.mulf %529, %533 : vector<8x16x16xf32>
    %535 = arith.truncf %534 : vector<8x16x16xf32> to vector<8x16x16xbf16>
    "tpu.trace_start"() <{level = 10 : i32, message = "bqk,bkd->bqd"}> : () -> ()
    %cst_144 = arith.constant dense<0.000000e+00> : vector<8x16x128xf32>
    %536 = tpu.matmul %535, %520, %cst_144 {dimension_numbers = #tpu.dot_dimension_numbers<[2], [1], [1], [2], [0, 0, 0, 1, 1, 2], [0], [0]>} : vector<8x16x16xbf16>, vector<8x16x128xbf16>, vector<8x16x128xf32> -> vector<8x16x128xf32>
    "tpu.trace_stop"() : () -> ()
    %537 = vector.shape_cast %536 : vector<8x16x128xf32> to vector<128x128xf32>
    %c2_145 = arith.constant 2 : index
    %c0_146 = arith.constant 0 : index
    %c0_147 = arith.constant 0 : index
    %538 = vector.load %arg9[%c2_145, %c0_146, %c0_147] : memref<3x5x128xf32, #tpu.memory_space<vmem>>, vector<1x5x128xf32>
    %539 = vector.shape_cast %538 : vector<1x5x128xf32> to vector<5x128xf32>
    %540 = arith.addf %503, %537 : vector<128x128xf32>
    %541 = vector.extract_strided_slice %539 {offsets = [1, 0], sizes = [1, 128], strides = [1, 1]} : vector<5x128xf32> to vector<1x128xf32>
    %542 = vector.extract_strided_slice %539 {offsets = [2, 0], sizes = [1, 128], strides = [1, 1]} : vector<5x128xf32> to vector<1x128xf32>
    %cst_148 = arith.constant dense<0.000000e+00> : vector<128xf32>
    %543 = vector.multi_reduction <add>, %540, %cst_148 [1] : vector<128x128xf32> to vector<128xf32>
    %544 = vector.shape_cast %543 : vector<128xf32> to vector<128x1xf32>
    %cst_149 = arith.constant 2.000000e-02 : f32
    %545 = vector.broadcast %cst_149 : f32 to vector<128x1xf32>
    %546 = arith.mulf %544, %545 : vector<128x1xf32>
    %547 = vector.broadcast %546 : vector<128x1xf32> to vector<128x128xf32>
    %548 = arith.subf %540, %547 : vector<128x128xf32>
    %549 = vector.broadcast %4 : vector<1x128xf32> to vector<128x128xf32>
    %550 = arith.mulf %548, %549 : vector<128x128xf32>
    %551 = arith.mulf %550, %550 : vector<128x128xf32>
    %cst_150 = arith.constant dense<0.000000e+00> : vector<128xf32>
    %552 = vector.multi_reduction <add>, %551, %cst_150 [1] : vector<128x128xf32> to vector<128xf32>
    %553 = vector.shape_cast %552 : vector<128xf32> to vector<128x1xf32>
    %cst_151 = arith.constant 2.000000e-02 : f32
    %554 = vector.broadcast %cst_151 : f32 to vector<128x1xf32>
    %555 = arith.mulf %553, %554 : vector<128x1xf32>
    %cst_152 = arith.constant 9.99999974E-6 : f32
    %556 = vector.broadcast %cst_152 : f32 to vector<128x1xf32>
    %557 = arith.addf %555, %556 : vector<128x1xf32>
    %558 = math.rsqrt %557 : vector<128x1xf32>
    %559 = vector.broadcast %558 : vector<128x1xf32> to vector<128x128xf32>
    %560 = arith.mulf %550, %559 : vector<128x128xf32>
    %561 = vector.broadcast %541 : vector<1x128xf32> to vector<128x128xf32>
    %562 = arith.mulf %560, %561 : vector<128x128xf32>
    %563 = vector.broadcast %542 : vector<1x128xf32> to vector<128x128xf32>
    %564 = arith.addf %562, %563 : vector<128x128xf32>
    %565 = arith.truncf %564 : vector<128x128xf32> to vector<128x128xbf16>
    %c2_153 = arith.constant 2 : index
    %c0_154 = arith.constant 0 : index
    %c0_155 = arith.constant 0 : index
    %566 = vector.load %arg8[%c2_153, %c0_154, %c0_155] : memref<3x128x128xbf16, #tpu.memory_space<vmem>>, vector<1x128x128xbf16>
    %567 = vector.shape_cast %566 : vector<1x128x128xbf16> to vector<128x128xbf16>
    %cst_156 = arith.constant dense<0.000000e+00> : vector<128x128xf32>
    %568 = tpu.matmul %565, %567, %cst_156 {dimension_numbers = #tpu.dot_dimension_numbers<[1], [0], [0], [1], [0, 0, 1, 1], [], []>} : vector<128x128xbf16>, vector<128x128xbf16>, vector<128x128xf32> -> vector<128x128xf32>
    %569 = vector.extract_strided_slice %539 {offsets = [0, 0], sizes = [1, 128], strides = [1, 1]} : vector<5x128xf32> to vector<1x128xf32>
    %570 = vector.broadcast %569 : vector<1x128xf32> to vector<128x128xf32>
    %571 = arith.addf %568, %570 : vector<128x128xf32>
    %572 = arith.addf %564, %571 : vector<128x128xf32>
    %573 = vector.extract_strided_slice %539 {offsets = [3, 0], sizes = [1, 128], strides = [1, 1]} : vector<5x128xf32> to vector<1x128xf32>
    %574 = vector.extract_strided_slice %539 {offsets = [4, 0], sizes = [1, 128], strides = [1, 1]} : vector<5x128xf32> to vector<1x128xf32>
    %cst_157 = arith.constant dense<0.000000e+00> : vector<128xf32>
    %575 = vector.multi_reduction <add>, %572, %cst_157 [1] : vector<128x128xf32> to vector<128xf32>
    %576 = vector.shape_cast %575 : vector<128xf32> to vector<128x1xf32>
    %cst_158 = arith.constant 2.000000e-02 : f32
    %577 = vector.broadcast %cst_158 : f32 to vector<128x1xf32>
    %578 = arith.mulf %576, %577 : vector<128x1xf32>
    %579 = vector.broadcast %578 : vector<128x1xf32> to vector<128x128xf32>
    %580 = arith.subf %572, %579 : vector<128x128xf32>
    %581 = vector.broadcast %4 : vector<1x128xf32> to vector<128x128xf32>
    %582 = arith.mulf %580, %581 : vector<128x128xf32>
    %583 = arith.mulf %582, %582 : vector<128x128xf32>
    %cst_159 = arith.constant dense<0.000000e+00> : vector<128xf32>
    %584 = vector.multi_reduction <add>, %583, %cst_159 [1] : vector<128x128xf32> to vector<128xf32>
    %585 = vector.shape_cast %584 : vector<128xf32> to vector<128x1xf32>
    %cst_160 = arith.constant 2.000000e-02 : f32
    %586 = vector.broadcast %cst_160 : f32 to vector<128x1xf32>
    %587 = arith.mulf %585, %586 : vector<128x1xf32>
    %cst_161 = arith.constant 9.99999974E-6 : f32
    %588 = vector.broadcast %cst_161 : f32 to vector<128x1xf32>
    %589 = arith.addf %587, %588 : vector<128x1xf32>
    %590 = math.rsqrt %589 : vector<128x1xf32>
    %591 = vector.broadcast %590 : vector<128x1xf32> to vector<128x128xf32>
    %592 = arith.mulf %582, %591 : vector<128x128xf32>
    %593 = vector.broadcast %573 : vector<1x128xf32> to vector<128x128xf32>
    %594 = arith.mulf %592, %593 : vector<128x128xf32>
    %595 = vector.broadcast %574 : vector<1x128xf32> to vector<128x128xf32>
    %596 = arith.addf %594, %595 : vector<128x128xf32>
    %597 = vector.shape_cast %596 : vector<128x128xf32> to vector<8x16x128xf32>
    %598 = vector.extract_strided_slice %597 {offsets = [0, 0, 0], sizes = [8, 1, 128], strides = [1, 1, 1]} : vector<8x16x128xf32> to vector<8x1x128xf32>
    %599 = vector.shape_cast %598 : vector<8x1x128xf32> to vector<8x128xf32>
    %600 = arith.truncf %599 : vector<8x128xf32> to vector<8x128xbf16>
    %c0_162 = arith.constant 0 : index
    %c0_163 = arith.constant 0 : index
    %c0_164 = arith.constant 0 : index
    %601 = vector.load %arg10[%c0_162, %c0_163, %c0_164] : memref<2x128x128xbf16, #tpu.memory_space<vmem>>, vector<1x128x128xbf16>
    %602 = vector.shape_cast %601 : vector<1x128x128xbf16> to vector<128x128xbf16>
    %cst_165 = arith.constant dense<0.000000e+00> : vector<8x128xf32>
    %603 = tpu.matmul %600, %602, %cst_165 {dimension_numbers = #tpu.dot_dimension_numbers<[1], [0], [0], [1], [0, 0, 1, 1], [], []>} : vector<8x128xbf16>, vector<128x128xbf16>, vector<8x128xf32> -> vector<8x128xf32>
    %c0_166 = arith.constant 0 : index
    %c0_167 = arith.constant 0 : index
    %c0_168 = arith.constant 0 : index
    %604 = vector.load %arg11[%c0_166, %c0_167, %c0_168] : memref<2x1x128xf32, #tpu.memory_space<vmem>>, vector<1x1x128xf32>
    %605 = vector.shape_cast %604 : vector<1x1x128xf32> to vector<1x128xf32>
    %606 = vector.broadcast %605 : vector<1x128xf32> to vector<8x128xf32>
    %607 = arith.addf %603, %606 : vector<8x128xf32>
    %cst_169 = arith.constant 0.000000e+00 : f32
    %608 = vector.broadcast %cst_169 : f32 to vector<8x128xf32>
    %609 = arith.maximumf %607, %608 : vector<8x128xf32>
    %610 = arith.truncf %609 : vector<8x128xf32> to vector<8x128xbf16>
    %c1_170 = arith.constant 1 : index
    %c0_171 = arith.constant 0 : index
    %c0_172 = arith.constant 0 : index
    %611 = vector.load %arg10[%c1_170, %c0_171, %c0_172] : memref<2x128x128xbf16, #tpu.memory_space<vmem>>, vector<1x128x128xbf16>
    %612 = vector.shape_cast %611 : vector<1x128x128xbf16> to vector<128x128xbf16>
    %cst_173 = arith.constant dense<0.000000e+00> : vector<8x128xf32>
    %613 = tpu.matmul %610, %612, %cst_173 {dimension_numbers = #tpu.dot_dimension_numbers<[1], [0], [0], [1], [0, 0, 1, 1], [], []>} : vector<8x128xbf16>, vector<128x128xbf16>, vector<8x128xf32> -> vector<8x128xf32>
    %c1_174 = arith.constant 1 : index
    %c0_175 = arith.constant 0 : index
    %c0_176 = arith.constant 0 : index
    %614 = vector.load %arg11[%c1_174, %c0_175, %c0_176] : memref<2x1x128xf32, #tpu.memory_space<vmem>>, vector<1x1x128xf32>
    %615 = vector.shape_cast %614 : vector<1x1x128xf32> to vector<1x128xf32>
    %616 = vector.broadcast %615 : vector<1x128xf32> to vector<8x128xf32>
    %617 = arith.addf %613, %616 : vector<8x128xf32>
    %c0_177 = arith.constant 0 : index
    %c0_178 = arith.constant 0 : index
    %618 = vector.load %arg12[%c0_177, %c0_178] : memref<8x128xf32, #tpu.memory_space<vmem>>, vector<8x128xf32>
    tpu.vector_store %arg12[%c0_177, %c0_178], %617 {strides = array<i32>} : memref<8x128xf32, #tpu.memory_space<vmem>>, vector<8x128xf32>,
    return
  }
  func.func @transform_0(%arg0: i32) -> (i32, i32, i32) {
    %c0_i32 = arith.constant 0 : i32
    %c0_i32_0 = arith.constant 0 : i32
    %c0_i32_1 = arith.constant 0 : i32
    return %c0_i32, %arg0, %c0_i32_0 : i32, i32, i32
  }
  func.func @transform_1(%arg0: i32) -> (i32, i32, i32) {
    %c0_i32 = arith.constant 0 : i32
    %c0_i32_0 = arith.constant 0 : i32
    %c0_i32_1 = arith.constant 0 : i32
    return %arg0, %c0_i32, %c0_i32_0 : i32, i32, i32
  }
  func.func @transform_2(%arg0: i32) -> (i32, i32) {
    %c0_i32 = arith.constant 0 : i32
    %c0_i32_0 = arith.constant 0 : i32
    %c0_i32_1 = arith.constant 0 : i32
    return %c0_i32, %c0_i32_0 : i32, i32
  }
  func.func @transform_3(%arg0: i32) -> (i32, i32) {
    %c0_i32 = arith.constant 0 : i32
    %c0_i32_0 = arith.constant 0 : i32
    %c0_i32_1 = arith.constant 0 : i32
    return %c0_i32, %c0_i32_0 : i32, i32
  }
  func.func @transform_4(%arg0: i32) -> (i32, i32) {
    %c0_i32 = arith.constant 0 : i32
    %c0_i32_0 = arith.constant 0 : i32
    %c0_i32_1 = arith.constant 0 : i32
    return %c0_i32, %c0_i32_0 : i32, i32
  }
  func.func @transform_5(%arg0: i32) -> (i32, i32, i32) {
    %c0_i32 = arith.constant 0 : i32
    %c0_i32_0 = arith.constant 0 : i32
    %c0_i32_1 = arith.constant 0 : i32
    %c0_i32_2 = arith.constant 0 : i32
    return %c0_i32, %c0_i32_0, %c0_i32_1 : i32, i32, i32
  }
  func.func @transform_6(%arg0: i32) -> (i32, i32, i32) {
    %c0_i32 = arith.constant 0 : i32
    %c0_i32_0 = arith.constant 0 : i32
    %c0_i32_1 = arith.constant 0 : i32
    %c0_i32_2 = arith.constant 0 : i32
    return %c0_i32, %c0_i32_0, %c0_i32_1 : i32, i32, i32
  }
  func.func @transform_7(%arg0: i32) -> (i32, i32, i32) {
    %c0_i32 = arith.constant 0 : i32
    %c0_i32_0 = arith.constant 0 : i32
    %c0_i32_1 = arith.constant 0 : i32
    %c0_i32_2 = arith.constant 0 : i32
    return %c0_i32, %c0_i32_0, %c0_i32_1 : i32, i32, i32
  }
  func.func @transform_8(%arg0: i32) -> (i32, i32, i32) {
    %c0_i32 = arith.constant 0 : i32
    %c0_i32_0 = arith.constant 0 : i32
    %c0_i32_1 = arith.constant 0 : i32
    %c0_i32_2 = arith.constant 0 : i32
    return %c0_i32, %c0_i32_0, %c0_i32_1 : i32, i32, i32
  }
  func.func @transform_9(%arg0: i32) -> (i32, i32, i32) {
    %c0_i32 = arith.constant 0 : i32
    %c0_i32_0 = arith.constant 0 : i32
    %c0_i32_1 = arith.constant 0 : i32
    %c0_i32_2 = arith.constant 0 : i32
    return %c0_i32, %c0_i32_0, %c0_i32_1 : i32, i32, i32
  }
  func.func @transform_10(%arg0: i32) -> (i32, i32, i32) {
    %c0_i32 = arith.constant 0 : i32
    %c0_i32_0 = arith.constant 0 : i32
    %c0_i32_1 = arith.constant 0 : i32
    %c0_i32_2 = arith.constant 0 : i32
    return %c0_i32, %c0_i32_0, %c0_i32_1 : i32, i32, i32
  }
  func.func @transform_11(%arg0: i32) -> (i32, i32) {
    %c0_i32 = arith.constant 0 : i32
    %c0_i32_0 = arith.constant 0 : i32
    return %arg0, %c0_i32 : i32, i32
  }
}

</mosaic_0001>

<bundles_post_ra>
// kernel: tpu_custom_call.1
= control target key start
LH: loop header
LB: loop body
LE: loop exit
PB: predicated region body
PF: predicated region fallthrough
CT: control target
= control target key end

     0   :  { %16 = vsyncpa [#allocation4], 0  ;;  %s14060_s0 = inlined_call_operand.hbm [shape: bf16[16,8,128], index: 0, kind: input, shape index: {}]   ;;  %s14061_s1 = inlined_call_operand.hbm [shape: f32[8,16,16], index: 1, kind: input, shape index: {}]   ;;  %s14062_s2 = inlined_call_operand.hbm [shape: bf16[128,512], index: 2, kind: input, shape index: {}]   ;;  %s14063_s3 = inlined_call_operand.hbm [shape: bf16[128,512], index: 3, kind: input, shape index: {}]   ;;  %s14064_s4 = inlined_call_operand.vmem [shape: f32[1,512], index: 4, kind: input, shape index: {}]   ;;  %s14065_s5 = inlined_call_operand.hbm [shape: bf16[3,128,384], index: 5, kind: input, shape index: {}]   ;;  %s14066_s6 = inlined_call_operand.vmem [shape: f32[3,1,384], index: 6, kind: input, shape index: {}]   ;;  %s14067_s7 = inlined_call_operand.hbm [shape: bf16[3,128,128], index: 7, kind: input, shape index: {}]   ;;  %s14068_s8 = inlined_call_operand.vmem [shape: f32[3,5,128], index: 8, kind: input, shape index: {}]   ;;  %s14069_s9 = inlined_call_operand.hbm [shape: bf16[2,128,128], index: 9, kind: input, shape index: {}]   ;;  %s14070_s10 = inlined_call_operand.vmem [shape: f32[2,1,128], index: 10, kind: input, shape index: {}]   ;;  %s14071_s11 = inlined_call_operand.hbm [shape: f32[8,128], index: 11, kind: output, shape index: {}]  }
   0x1   :  { %17 = vsyncpa [#allocation7], 0 }
   0x2   :  { %18 = vsyncpa [#allocation10], 0 }
   0x3   :  { %19 = vsyncpa [#allocation13], 0 }
   0x4   :  { %20 = vsyncpa [#allocation5], 0  ;;  %s10652_s17 = smov [#allocation6]   ;;  %s10466_s21 = scalar_lea.hbm %s14061_s1, 2048 }
   0x5   :  { %s38_s18 = sshll.u32 %s10652_s17, 4  ;;  %p10467_p0 = scmp.ne.s32.totalorder %s14061_s1, %s10466_s21  ;;  %s39_s18 = int_to_ptr.vmem [resolvable:$true] %s38_s18 }
   0x6   :  { %p10470_p1 = scmp.lt.u32.totalorder %s10466_s21, %s14061_s1 }
   0x8   :  { %p10472_p2 = pnand %p10470_p1, %p10467_p0 }
   0xa   :  { %10475 = shalt.err (!%p10472_p2)
}
   0xb   :  { %s10476_s26 = scalar_lea.vmem %s39_s18, 2048  ;;  %p10481_p4 = scmp.lt.s32.totalorder %s39_s18, %s39_s18 }
   0xc   :  { %p10477_p3 = scmp.ne.s32.totalorder %s39_s18, %s10476_s26  ;;  %p10482_p5 = scmp.lt.s32.totalorder %s10476_s26, %s10476_s26 }
   0xe   :  { %p10483_p6 = por %p10482_p5, %p10481_p4 }
  0x10   :  { %p10484_p7 = pnand %p10483_p6, %p10477_p3 }
  0x12   :  { %10487 = shalt.err (!%p10484_p7)
}
  0x13   :  { %s10653_s27 = smov 128   ;;  %s10654_s28 = smov 8  }
  0x14   :  { %44 = dma.hbm_to_vmem [thread:$0]  %s14061_s1, 2048, %s39_s18, [#allocation7], %s10653_s27, %s10653_s27, %s10654_s28  }
  0x15   :  { %s10655_s12 = smov [#allocation9]   ;;  %s10488_s16 = scalar_lea.hbm %s14063_s3, 4096 }
  0x16   :  { %s62_s13 = sshll.u32 %s10655_s12, 4  ;;  %p10489_p8 = scmp.ne.s32.totalorder %s14063_s3, %s10488_s16  ;;  %s63_s13 = int_to_ptr.vmem [resolvable:$true] %s62_s13 }
  0x17   :  { %p10492_p9 = scmp.lt.u32.totalorder %s10488_s16, %s14063_s3 }
  0x19   :  { %p10494_p10 = pnand %p10492_p9, %p10489_p8 }
  0x1b   :  { %10497 = shalt.err (!%p10494_p10)
}
  0x1c   :  { %s10498_s22 = scalar_lea.vmem %s63_s13, 4096  ;;  %p10503_p12 = scmp.lt.s32.totalorder %s63_s13, %s63_s13 }
  0x1d   :  { %p10499_p11 = scmp.ne.s32.totalorder %s63_s13, %s10498_s22  ;;  %p10504_p13 = scmp.lt.s32.totalorder %s10498_s22, %s10498_s22 }
  0x1f   :  { %p10505_p0 = por %p10504_p13, %p10503_p12 }
  0x21   :  { %p10506_p1 = pnand %p10505_p0, %p10499_p11 }
  0x23   :  { %10509 = shalt.err (!%p10506_p1)
}
  0x24   :  { %s10656_s1 = smov 256   ;;  %s10657_s18 = smov 16  }
  0x25   :  { %68 = dma.hbm_to_vmem [thread:$0]  %s14063_s3, 4096, %s63_s13, [#allocation10], %s10656_s1, %s10656_s1, %s10657_s18  }
  0x26   :  { %s10658_s25 = smov [#allocation12]   ;;  %s10659_s27 = smov [#allocation3]  }
  0x27   :  { %s90_s26 = sshll.u32 %s10658_s25, 4  ;;  %s26_s28 = sshll.u32 %s10659_s27, 4  ;;  %s91_s26 = int_to_ptr.vmem [resolvable:$true] %s90_s26  ;;  %s10759_s28 = int_to_ptr.vmem [resolvable:$true] %s26_s28 }
  0x28   :  { %s10510_s12 = scalar_lea.hbm %s14067_s7, 3072 }
  0x29   :  { %p10511_p2 = scmp.ne.s32.totalorder %s14067_s7, %s10510_s12  ;;  %p10514_p3 = scmp.lt.u32.totalorder %s10510_s12, %s14067_s7 }
  0x2b   :  { %p10516_p4 = pnand %p10514_p3, %p10511_p2 }
  0x2d   :  { %10519 = shalt.err (!%p10516_p4)
}
  0x2e   :  { %s10520_s3 = scalar_lea.vmem %s91_s26, 3072  ;;  %p10525_p6 = scmp.lt.s32.totalorder %s91_s26, %s91_s26 }
  0x2f   :  { %p10521_p5 = scmp.ne.s32.totalorder %s91_s26, %s10520_s3  ;;  %p10526_p7 = scmp.lt.s32.totalorder %s10520_s3, %s10520_s3 }
  0x31   :  { %p10527_p8 = por %p10526_p7, %p10525_p6 }
  0x33   :  { %p10528_p9 = pnand %p10527_p8, %p10521_p5 }
  0x35   :  { %10531 = shalt.err (!%p10528_p9)
}
  0x36   :  { %s10660_s13 = smov 64   ;;  %s10661_s19 = smov 4  }
  0x37   :  { %96 = dma.hbm_to_vmem [thread:$0]  %s14067_s7, 3072, %s91_s26, [#allocation13], %s10660_s13, %s10660_s13, %s10661_s19  }
  0x38   :  { %s10532_s24 = scalar_lea.hbm %s14060_s0, 1024 }
  0x39   :  { %p10533_p10 = scmp.ne.s32.totalorder %s14060_s0, %s10532_s24  ;;  %p10536_p11 = scmp.lt.u32.totalorder %s10532_s24, %s14060_s0 }
  0x3b   :  { %p10538_p12 = pnand %p10536_p11, %p10533_p10 }
  0x3d   :  { %10541 = shalt.err (!%p10538_p12)
}
  0x3e   :  { %s10542_s12 = scalar_lea.vmem %s10759_s28, 1024  ;;  %p10547_p0 = scmp.lt.s32.totalorder %s10759_s28, %s10759_s28 }
  0x3f   :  { %p10543_p13 = scmp.ne.s32.totalorder %s10759_s28, %s10542_s12  ;;  %p10548_p1 = scmp.lt.s32.totalorder %s10542_s12, %s10542_s12 }
  0x41   :  { %p10549_p2 = por %p10548_p1, %p10547_p0 }
  0x43   :  { %p10550_p3 = pnand %p10549_p2, %p10543_p13 }
  0x45   :  { %10553 = shalt.err (!%p10550_p3)
}
  0x46   :  { %32 = dma.hbm_to_vmem [thread:$0]  %s14060_s0, 1024, %s10759_s28, [#allocation4], %s10660_s13, %s10660_s13, %s10661_s19  }
  0x47   :  { %s10662_s14 = smov [#allocation8]   ;;  %s10663_s16 = smov [#allocation11]  }
  0x48   :  { %s50_s15 = sshll.u32 %s10662_s14, 4  ;;  %s76_s17 = sshll.u32 %s10663_s16, 4  ;;  %s51_s15 = int_to_ptr.vmem [resolvable:$true] %s50_s15  ;;  %s10796_s17 = int_to_ptr.vmem [resolvable:$true] %s76_s17 }
  0x49   :  { %s10554_s21 = scalar_lea.hbm %s14062_s2, 4096 }
  0x4a   :  { %p10555_p4 = scmp.ne.s32.totalorder %s14062_s2, %s10554_s21  ;;  %p10558_p5 = scmp.lt.u32.totalorder %s10554_s21, %s14062_s2 }
  0x4c   :  { %p10560_p6 = pnand %p10558_p5, %p10555_p4 }
  0x4e   :  { %10563 = shalt.err (!%p10560_p6)
}
  0x4f   :  { %s10564_s0 = scalar_lea.vmem %s51_s15, 4096  ;;  %p10569_p8 = scmp.lt.s32.totalorder %s51_s15, %s51_s15 }
  0x50   :  { %p10565_p7 = scmp.ne.s32.totalorder %s51_s15, %s10564_s0  ;;  %p10570_p9 = scmp.lt.s32.totalorder %s10564_s0, %s10564_s0 }
  0x52   :  { %p10571_p10 = por %p10570_p9, %p10569_p8 }
  0x54   :  { %p10572_p11 = pnand %p10571_p10, %p10565_p7 }
  0x56   :  { %10575 = shalt.err (!%p10572_p11)
}
  0x57   :  { %56 = dma.hbm_to_vmem [thread:$0]  %s14062_s2, 4096, %s51_s15, [#allocation7], %s10656_s1, %s10656_s1, %s10657_s18  }
  0x58   :  { %s10576_s12 = scalar_lea.hbm %s14065_s5, 9216 }
  0x59   :  { %p10577_p12 = scmp.ne.s32.totalorder %s14065_s5, %s10576_s12  ;;  %p10580_p13 = scmp.lt.u32.totalorder %s10576_s12, %s14065_s5 }
  0x5b   :  { %p10582_p0 = pnand %p10580_p13, %p10577_p12 }
  0x5d   :  { %10585 = shalt.err (!%p10582_p0)
}
  0x5e   :  { %s10586_s3 = scalar_lea.vmem %s10796_s17, 9216  ;;  %p10591_p2 = scmp.lt.s32.totalorder %s10796_s17, %s10796_s17 }
  0x5f   :  { %p10587_p1 = scmp.ne.s32.totalorder %s10796_s17, %s10586_s3  ;;  %p10592_p3 = scmp.lt.s32.totalorder %s10586_s3, %s10586_s3 }
  0x61   :  { %p10593_p4 = por %p10592_p3, %p10591_p2 }
  0x63   :  { %p10594_p5 = pnand %p10593_p4, %p10587_p1 }
  0x65   :  { %10597 = shalt.err (!%p10594_p5)
}
  0x66   :  { %s10664_s2 = smov 192   ;;  %s10665_s1 = smov 12  }
  0x67   :  { %82 = dma.hbm_to_vmem [thread:$0]  %s14065_s5, 9216, %s10796_s17, [#allocation10], %s10664_s2, %s10664_s2, %s10665_s1  }
  0x68   :  { %s10666_s20 = smov [#allocation14]   ;;  %s10598_s24 = scalar_lea.hbm %s14069_s9, 2048 }
  0x69   :  { %s104_s21 = sshll.u32 %s10666_s20, 4  ;;  %p10599_p6 = scmp.ne.s32.totalorder %s14069_s9, %s10598_s24  ;;  %s105_s21 = int_to_ptr.vmem [resolvable:$true] %s104_s21 }
  0x6a   :  { %p10602_p7 = scmp.lt.u32.totalorder %s10598_s24, %s14069_s9 }
  0x6c   :  { %p10604_p8 = pnand %p10602_p7, %p10599_p6 }
  0x6e   :  { %10607 = shalt.err (!%p10604_p8)
}
  0x6f   :  { %s10608_s29 = scalar_lea.vmem %s105_s21, 2048  ;;  %p10613_p10 = scmp.lt.s32.totalorder %s105_s21, %s105_s21 }
  0x70   :  { %p10609_p9 = scmp.ne.s32.totalorder %s105_s21, %s10608_s29  ;;  %p10614_p11 = scmp.lt.s32.totalorder %s10608_s29, %s10608_s29 }
  0x72   :  { %p10615_p12 = por %p10614_p11, %p10613_p10 }
  0x74   :  { %p10616_p13 = pnand %p10615_p12, %p10609_p9 }
  0x76   :  { %10619 = shalt.err (!%p10616_p13)
}
  0x77   :  { %110 = dma.hbm_to_vmem [thread:$0]  %s14069_s9, 2048, %s105_s21, [#allocation13], %s10660_s13, %s10660_s13, %s10661_s19  }
  0x78   :  { %10642 = dma.done.wait [#allocation4], 1024  }
  0x79   :  { %10643 = vsyncadd [#allocation4], 4294966272 }
  0x7a   :  { %10644 = dma.done.wait [#allocation7], 6144  }
  0x7b   :  { %10645 = vsyncadd [#allocation7], 4294961152 }
  0x7c   :  { %10646 = dma.done.wait [#allocation10], 13312  }
  0x7d   :  { %10647 = vsyncadd [#allocation10], 4294953984 }
  0x7e   :  { %10648 = dma.done.wait [#allocation13], 5120  }
  0x7f   :  { %10649 = vsyncadd [#allocation13], 4294962176  ;;  %v14072_v0 = vmov 0   ;;  %v9633_v1 = vld [vmem:[#allocation8 + $0x4] ss:$16 sps:$4 sm:$0xff]   ;;  %v9682_v44 = vld [vmem:[#allocation3 + $0x8] sm:$0xff]  }
  0x80   :  { %450 = vmatprep.mubr.bf16.mxu0 %v14072_v0  ;;  %549 = vmatprep.mubr.bf16.mxu1 %v14072_v0  ;;  %v9635_v2 = vld [vmem:[#allocation8 + $0xc] ss:$16 sps:$4 sm:$0xff]   ;;  %v9637_v3 = vld [vmem:[#allocation8] ss:$16 sps:$4 sm:$0xff]   ;;  %v9638_v4 = vld [vmem:[#allocation8 + $0x8] ss:$16 sps:$4 sm:$0xff]  }
  0x81   :  { %418 = vmatprep.subr.bf16.mxu0 %v9633_v1  ;;  %517 = vmatprep.subr.bf16.mxu1 %v9635_v2  ;;  %v9639_v5 = vld [vmem:[#allocation8 + $0x24] ss:$16 sps:$4 sm:$0xff]   ;;  %v9641_v6 = vld [vmem:[#allocation8 + $0x2c] ss:$16 sps:$4 sm:$0xff]   ;;  %v9643_v7 = vld [vmem:[#allocation8 + $0x20] ss:$16 sps:$4 sm:$0xff]  }
  0x82   :  { %419 = vmatpush1.bf16.msra.mxu0 %v9637_v3  ;;  %518 = vmatpush1.bf16.msra.mxu1 %v9638_v4  ;;  %v9644_v8 = vld [vmem:[#allocation8 + $0x28] ss:$16 sps:$4 sm:$0xff]   ;;  %v9645_v9 = vld [vmem:[#allocation8 + $0x44] ss:$16 sps:$4 sm:$0xff]   ;;  %v9647_v10 = vld [vmem:[#allocation8 + $0x4c] ss:$16 sps:$4 sm:$0xff]  }
  0x83   :  { %420 = vmatprep.subr.bf16.mxu0 %v9639_v5  ;;  %519 = vmatprep.subr.bf16.mxu1 %v9641_v6  ;;  %v9649_v11 = vld [vmem:[#allocation8 + $0x40] ss:$16 sps:$4 sm:$0xff]   ;;  %v9650_v12 = vld [vmem:[#allocation8 + $0x48] ss:$16 sps:$4 sm:$0xff]   ;;  %v9651_v13 = vld [vmem:[#allocation8 + $0x64] ss:$16 sps:$4 sm:$0xff]  }
  0x84   :  { %v9653_v14 = vld [vmem:[#allocation8 + $0x6c] ss:$16 sps:$4 sm:$0xff]   ;;  %v9655_v15 = vld [vmem:[#allocation8 + $0x60] ss:$16 sps:$4 sm:$0xff]   ;;  %v9656_v16 = vld [vmem:[#allocation8 + $0x68] ss:$16 sps:$4 sm:$0xff]  }
  0x85   :  { %v9657_v17 = vld [vmem:[#allocation8 + $0x84] ss:$16 sps:$4 sm:$0xff]   ;;  %v9659_v18 = vld [vmem:[#allocation8 + $0x8c] ss:$16 sps:$4 sm:$0xff]   ;;  %v9661_v19 = vld [vmem:[#allocation8 + $0x80] ss:$16 sps:$4 sm:$0xff]  }
  0x86   :  { %421 = vmatpush1.bf16.msra.mxu0 %v9643_v7  ;;  %520 = vmatpush1.bf16.msra.mxu1 %v9644_v8  ;;  %v9662_v20 = vld [vmem:[#allocation8 + $0x88] ss:$16 sps:$4 sm:$0xff]   ;;  %v9663_v21 = vld [vmem:[#allocation8 + $0xa4] ss:$16 sps:$4 sm:$0xff]   ;;  %v9665_v22 = vld [vmem:[#allocation8 + $0xac] ss:$16 sps:$4 sm:$0xff]  }
  0x87   :  { %422 = vmatprep.subr.bf16.mxu0 %v9645_v9  ;;  %521 = vmatprep.subr.bf16.mxu1 %v9647_v10  ;;  %v9667_v23 = vld [vmem:[#allocation8 + $0xa0] ss:$16 sps:$4 sm:$0xff]   ;;  %v9668_v24 = vld [vmem:[#allocation8 + $0xa8] ss:$16 sps:$4 sm:$0xff]   ;;  %v9669_v25 = vld [vmem:[#allocation8 + $0xc4] ss:$16 sps:$4 sm:$0xff]  }
  0x88   :  { %v9671_v26 = vld [vmem:[#allocation8 + $0xcc] ss:$16 sps:$4 sm:$0xff]   ;;  %v9673_v27 = vld [vmem:[#allocation8 + $0xc0] ss:$16 sps:$4 sm:$0xff]   ;;  %v9674_v28 = vld [vmem:[#allocation8 + $0xc8] ss:$16 sps:$4 sm:$0xff]  }
  0x89   :  { %v9675_v29 = vld [vmem:[#allocation8 + $0xe4] ss:$16 sps:$4 sm:$0xff]   ;;  %v9677_v30 = vld [vmem:[#allocation8 + $0xec] ss:$16 sps:$4 sm:$0xff]   ;;  %v9679_v31 = vld [vmem:[#allocation8 + $0xe0] ss:$16 sps:$4 sm:$0xff]  }
  0x8a   :  { %423 = vmatpush1.bf16.msra.mxu0 %v9649_v11  ;;  %522 = vmatpush1.bf16.msra.mxu1 %v9650_v12  ;;  %v9680_v32 = vld [vmem:[#allocation8 + $0xe8] ss:$16 sps:$4 sm:$0xff]   ;;  %v10847_v33 = vld [vmem:[#allocation9 + $0x4] ss:$16 sps:$4 sm:$0xff]   ;;  %v10849_v34 = vld [vmem:[#allocation9 + $0xc] ss:$16 sps:$4 sm:$0xff]  }
  0x8b   :  { %424 = vmatprep.subr.bf16.mxu0 %v9651_v13  ;;  %523 = vmatprep.subr.bf16.mxu1 %v9653_v14  ;;  %v9681_v35 = vld [vmem:[#allocation3] sm:$0xff]   ;;  %v10855_v37 = vld [vmem:[#allocation9 + $0x8] ss:$16 sps:$4 sm:$0xff]   ;;  %v10859_v39 = vld [vmem:[#allocation9 + $0x2c] ss:$16 sps:$4 sm:$0xff]   ;;  %v10668_v10 = vmov 0.0  }
  0x8c   :  { %v10851_v36 = vld [vmem:[#allocation9] ss:$16 sps:$4 sm:$0xff]   ;;  %v10857_v38 = vld [vmem:[#allocation9 + $0x24] ss:$16 sps:$4 sm:$0xff]   ;;  %v10867_v41 = vld [vmem:[#allocation9 + $0x28] ss:$16 sps:$4 sm:$0xff]  }
  0x8d   :  { %v10865_v40 = vld [vmem:[#allocation9 + $0x20] ss:$16 sps:$4 sm:$0xff]   ;;  %v10869_v42 = vld [vmem:[#allocation9 + $0x44] ss:$16 sps:$4 sm:$0xff]   ;;  %v10873_v43 = vld [vmem:[#allocation9 + $0x4c] ss:$16 sps:$4 sm:$0xff]  }
  0x8e   :  { %425 = vmatpush1.bf16.msra.mxu0 %v9655_v15  ;;  %524 = vmatpush1.bf16.msra.mxu1 %v9656_v16  ;;  %v10875_v45 = vld [vmem:[#allocation9 + $0x40] ss:$16 sps:$4 sm:$0xff]   ;;  %v10879_v46 = vld [vmem:[#allocation9 + $0x48] ss:$16 sps:$4 sm:$0xff]   ;;  %v10881_v47 = vld [vmem:[#allocation9 + $0x64] ss:$16 sps:$4 sm:$0xff]  }
  0x8f   :  { %426 = vmatprep.subr.bf16.mxu0 %v9657_v17  ;;  %525 = vmatprep.subr.bf16.mxu1 %v9659_v18  ;;  %v10885_v48 = vld [vmem:[#allocation9 + $0x6c] ss:$16 sps:$4 sm:$0xff]   ;;  %v10887_v49 = vld [vmem:[#allocation9 + $0x60] ss:$16 sps:$4 sm:$0xff]   ;;  %v10891_v50 = vld [vmem:[#allocation9 + $0x68] ss:$16 sps:$4 sm:$0xff]  }
  0x90   :  { %v10895_v51 = vld [vmem:[#allocation9 + $0x84] ss:$16 sps:$4 sm:$0xff]   ;;  %v10899_v52 = vld [vmem:[#allocation9 + $0x8c] ss:$16 sps:$4 sm:$0xff]   ;;  %v10901_v54 = vld [vmem:[#allocation9 + $0x80] ss:$16 sps:$4 sm:$0xff]  }
  0x91   :  { %v9683_v53 = vld [vmem:[#allocation3 + $0x10] sm:$0xff]   ;;  %v10905_v55 = vld [vmem:[#allocation9 + $0x88] ss:$16 sps:$4 sm:$0xff]   ;;  %v10911_v57 = vld [vmem:[#allocation9 + $0xac] ss:$16 sps:$4 sm:$0xff]   ;;  %648 = vst [vmem:[#allocation2] sm:$0xff] %v10668_v10 }
  0x92   :  { %427 = vmatpush1.bf16.msra.mxu0 %v9661_v19  ;;  %526 = vmatpush1.bf16.msra.mxu1 %v9662_v20  ;;  %v10909_v56 = vld [vmem:[#allocation9 + $0xa4] ss:$16 sps:$4 sm:$0xff]   ;;  %v10913_v58 = vld [vmem:[#allocation9 + $0xa0] ss:$16 sps:$4 sm:$0xff]   ;;  %v10915_v59 = vld [vmem:[#allocation9 + $0xa8] ss:$16 sps:$4 sm:$0xff]  }
  0x93   :  { %428 = vmatprep.subr.bf16.mxu0 %v9663_v21  ;;  %527 = vmatprep.subr.bf16.mxu1 %v9665_v22  ;;  %v10919_v60 = vld [vmem:[#allocation9 + $0xc4] ss:$16 sps:$4 sm:$0xff]   ;;  %v10921_v61 = vld [vmem:[#allocation9 + $0xcc] ss:$16 sps:$4 sm:$0xff]   ;;  %v10927_v63 = vld [vmem:[#allocation9 + $0xc0] ss:$16 sps:$4 sm:$0xff]  }
  0x94   :  { %v9684_v62 = vld [vmem:[#allocation3 + $0x18] sm:$0xff]   ;;  %v10931_v2 = vld [vmem:[#allocation9 + $0xe4] ss:$16 sps:$4 sm:$0xff]   ;;  %v10939_v4 = vld [vmem:[#allocation9 + $0xe0] ss:$16 sps:$4 sm:$0xff]   ;;  %649 = vst [vmem:[#allocation2 + $0x8] sm:$0xff] %v10668_v10 }
  0x95   :  { %v10929_v1 = vld [vmem:[#allocation9 + $0xc8] ss:$16 sps:$4 sm:$0xff]   ;;  %v10933_v3 = vld [vmem:[#allocation9 + $0xec] ss:$16 sps:$4 sm:$0xff]   ;;  %v9685_v6 = vld [vmem:[#allocation3 + $0x20] sm:$0xff]   ;;  %650 = vst [vmem:[#allocation2 + $0x10] sm:$0xff] %v10668_v10 }
  0x96   :  { %429 = vmatpush1.bf16.msra.mxu0 %v9667_v23  ;;  %528 = vmatpush1.bf16.msra.mxu1 %v9668_v24  ;;  %v10941_v5 = vld [vmem:[#allocation9 + $0xe8] ss:$16 sps:$4 sm:$0xff]   ;;  %v9711_v8 = vld [vmem:[#allocation3 + $0x30] sm:$0xff]   ;;  %651 = vst [vmem:[#allocation2 + $0x18] sm:$0xff] %v10668_v10  ;;  %652 = vst [vmem:[#allocation2 + $0x20] sm:$0xff] %v10668_v10  ;;  %vm10670_vm0 = vmmov 0  }
  0x97   :  { %430 = vmatprep.subr.bf16.mxu0 %v9669_v25  ;;  %529 = vmatprep.subr.bf16.mxu1 %v9671_v26  ;;  %v9698_v7 = vld [vmem:[#allocation3 + $0x28] sm:$0xff]   ;;  %v9724_v9 = vld [vmem:[#allocation3 + $0x38] sm:$0xff]   ;;  %653 = vst [vmem:[#allocation2 + $0x28] sm:$0xff] %v10668_v10  ;;  %654 = vst [vmem:[#allocation2 + $0x30] sm:$0xff] %v10668_v10  ;;  %vm3227_vm1 = vcmask 130048   ;;  %vm8332_vm3 = vcmask 1041409  }
  0x98   :  { %655 = vst [vmem:[#allocation2 + $0x38] sm:$0xff] %v10668_v10  ;;  %656 = vst [vmem:[#allocation2 + $0x40] sm:$0xff] %v10668_v10  ;;  %vm8335_vm4 = vcmask 1042434   ;;  %vm8338_vm5 = vcmask 1043459   ;;  %vm8341_vm6 = vcmask 1044484   ;;  %vm8344_vm7 = vcmask 1045509  }
  0x99   :  { %657 = vst [vmem:[#allocation2 + $0x48] sm:$0xff] %v10668_v10  ;;  %658 = vst [vmem:[#allocation2 + $0x50] sm:$0xff] %v10668_v10  ;;  %vm8347_vm8 = vcmask 1046534   ;;  %vm8350_vm9 = vcmask 1047559   ;;  %s10671_s21 = smov [#allocation15]  }
  0x9a   :  { %431 = vmatpush1.bf16.msra.mxu0 %v9673_v27  ;;  %530 = vmatpush1.bf16.msra.mxu1 %v9674_v28  ;;  %659 = vst [vmem:[#allocation2 + $0x58] sm:$0xff] %v10668_v10  ;;  %660 = vst [vmem:[#allocation2 + $0x60] sm:$0xff] %v10668_v10  ;;  %s8564_s22 = sshll.u32 %s10671_s21, 4  ;;  %s8565_s22 = int_to_ptr.vmem [resolvable:$true] %s8564_s22 }
  0x9b   :  { %432 = vmatprep.subr.bf16.mxu0 %v9675_v29  ;;  %531 = vmatprep.subr.bf16.mxu1 %v9677_v30  ;;  %661 = vst [vmem:[#allocation2 + $0x68] sm:$0xff] %v10668_v10  ;;  %662 = vst [vmem:[#allocation2 + $0x70] sm:$0xff] %v10668_v10  ;;  %s10620_s23 = scalar_lea.vmem %s8565_s22, 128  ;;  %p10625_p1 = scmp.lt.s32.totalorder %s8565_s22, %s8565_s22 }
  0x9c   :  { %663 = vst [vmem:[#allocation2 + $0x78] sm:$0xff] %v10668_v10  ;;  %p10621_p0 = scmp.ne.s32.totalorder %s8565_s22, %s10620_s23  ;;  %p10626_p2 = scmp.lt.s32.totalorder %s10620_s23, %s10620_s23 }
  0x9e   :  { %433 = vmatpush1.bf16.msra.mxu0 %v9679_v31  ;;  %532 = vmatpush1.bf16.msra.mxu1 %v9680_v32  ;;  %p10627_p3 = por %p10626_p2, %p10625_p1 }
  0x9f   :  { %824 = vmatprep.subr.bf16.mxu0 %v10847_v33  ;;  %865 = vmatprep.subr.bf16.mxu1 %v10849_v34 }
  0xa0   :  { %p10628_p4 = pnand %p10627_p3, %p10621_p0 }
  0xa1   :  { %451 = vmatmul.mubr.bf16.vlgmr.msra.gmra.mrb[0].mxu0 %v9681_v35  ;;  %550 = vmatmul.mubr.bf16.vlgmr.msra.gmra.mrb[0].mxu1 %v9681_v35 }
  0xa2   :  { %460 = vmatprep.mubr.bf16.mxu0 %v14072_v0  ;;  %559 = vmatprep.mubr.bf16.mxu1 %v14072_v0 }
  0xa3   :  { %825 = vmatpush1.bf16.msra.mxu0 %v10851_v36  ;;  %866 = vmatpush1.bf16.msra.mxu1 %v10855_v37 }
  0xa4   :  { %826 = vmatprep.subr.bf16.mxu0 %v10857_v38  ;;  %867 = vmatprep.subr.bf16.mxu1 %v10859_v39 }
  0xa7   :  { %827 = vmatpush1.bf16.msra.mxu0 %v10865_v40  ;;  %868 = vmatpush1.bf16.msra.mxu1 %v10867_v41 }
  0xa8   :  { %828 = vmatprep.subr.bf16.mxu0 %v10869_v42  ;;  %869 = vmatprep.subr.bf16.mxu1 %v10873_v43 }
  0xa9   :  { %461 = vmatmul.mubr.bf16.gmra.mrb[4].mxu0 %v9682_v44  ;;  %560 = vmatmul.mubr.bf16.gmra.mrb[4].mxu1 %v9682_v44 }
  0xaa   :  { %470 = vmatprep.mubr.bf16.mxu0 %v14072_v0  ;;  %569 = vmatprep.mubr.bf16.mxu1 %v14072_v0 }
  0xab   :  { %829 = vmatpush1.bf16.msra.mxu0 %v10875_v45  ;;  %870 = vmatpush1.bf16.msra.mxu1 %v10879_v46 }
  0xac   :  { %830 = vmatprep.subr.bf16.mxu0 %v10881_v47  ;;  %871 = vmatprep.subr.bf16.mxu1 %v10885_v48 }
  0xaf   :  { %831 = vmatpush1.bf16.msra.mxu0 %v10887_v49  ;;  %872 = vmatpush1.bf16.msra.mxu1 %v10891_v50 }
  0xb0   :  { %832 = vmatprep.subr.bf16.mxu0 %v10895_v51  ;;  %873 = vmatprep.subr.bf16.mxu1 %v10899_v52 }
  0xb1   :  { %471 = vmatmul.mubr.bf16.gmra.mrb[8].mxu0 %v9683_v53  ;;  %570 = vmatmul.mubr.bf16.gmra.mrb[8].mxu1 %v9683_v53 }
  0xb2   :  { %480 = vmatprep.mubr.bf16.mxu0 %v14072_v0  ;;  %579 = vmatprep.mubr.bf16.mxu1 %v14072_v0 }
  0xb3   :  { %833 = vmatpush1.bf16.msra.mxu0 %v10901_v54  ;;  %874 = vmatpush1.bf16.msra.mxu1 %v10905_v55 }
  0xb4   :  { %834 = vmatprep.subr.bf16.mxu0 %v10909_v56  ;;  %875 = vmatprep.subr.bf16.mxu1 %v10911_v57 }
  0xb7   :  { %835 = vmatpush1.bf16.msra.mxu0 %v10913_v58  ;;  %876 = vmatpush1.bf16.msra.mxu1 %v10915_v59 }
  0xb8   :  { %836 = vmatprep.subr.bf16.mxu0 %v10919_v60  ;;  %877 = vmatprep.subr.bf16.mxu1 %v10921_v61 }
  0xb9   :  { %481 = vmatmul.mubr.bf16.gmra.mrb[12].mxu0 %v9684_v62  ;;  %580 = vmatmul.mubr.bf16.gmra.mrb[12].mxu1 %v9684_v62 }
  0xba   :  { %490 = vmatprep.mubr.bf16.mxu0 %v14072_v0  ;;  %589 = vmatprep.mubr.bf16.mxu1 %v14072_v0 }
  0xbb   :  { %837 = vmatpush1.bf16.msra.mxu0 %v10927_v63  ;;  %878 = vmatpush1.bf16.msra.mxu1 %v10929_v1 }
  0xbc   :  { %838 = vmatprep.subr.bf16.mxu0 %v10931_v2  ;;  %879 = vmatprep.subr.bf16.mxu1 %v10933_v3 }
  0xbf   :  { %839 = vmatpush1.bf16.msra.mxu0 %v10939_v4  ;;  %880 = vmatpush1.bf16.msra.mxu1 %v10941_v5 }
  0xc0   :  { %1001 = vmatprep.subr.bf16.mxu0 %v10847_v33  ;;  %1042 = vmatprep.subr.bf16.mxu1 %v10849_v34 }
  0xc1   :  { %491 = vmatmul.mubr.bf16.gmra.mrb[16].mxu0 %v9685_v6  ;;  %590 = vmatmul.mubr.bf16.gmra.mrb[16].mxu1 %v9685_v6 }
  0xc2   :  { %498 = vmatprep.mubr.bf16.mxu0 %v14072_v0  ;;  %597 = vmatprep.mubr.bf16.mxu1 %v14072_v0 }
  0xc9   :  { %499 = vmatmul.mubr.bf16.gmra.mrb[20].mxu0 %v9698_v7  ;;  %598 = vmatmul.mubr.bf16.gmra.mrb[20].mxu1 %v9698_v7 }
  0xca   :  { %504 = vmatprep.mubr.bf16.mxu0 %v14072_v0  ;;  %603 = vmatprep.mubr.bf16.mxu1 %v14072_v0 }
  0xd1   :  { %505 = vmatmul.mubr.bf16.gmra.mrb[24].mxu0 %v9711_v8  ;;  %604 = vmatmul.mubr.bf16.gmra.mrb[24].mxu1 %v9711_v8 }
  0xd2   :  { %510 = vmatprep.mubr.bf16.mxu0 %v14072_v0  ;;  %609 = vmatprep.mubr.bf16.mxu1 %v14072_v0 }
  0xd9   :  { %511 = vmatmul.mubr.bf16.gmra.mrb[28].mxu0 %v9724_v9  ;;  %610 = vmatmul.mubr.bf16.gmra.mrb[28].mxu1 %v9724_v9 }
  0xda   :  { %856 = vmatprep.mubr.bf16.mxu0 %v14072_v0  ;;  %897 = vmatprep.mubr.bf16.mxu1 %v14072_v0 }
  0xe1   :  { %857 = vmatmul.mubr.bf16.vlgmr.msra.gmra.mrb[32].mxu0 %v14072_v0  ;;  %898 = vmatmul.mubr.bf16.vlgmr.msra.gmra.mrb[32].mxu1 %v14072_v0 }
  0xe2   :  { %1002 = vmatpush1.bf16.msra.mxu0 %v10851_v36  ;;  %1043 = vmatpush1.bf16.msra.mxu1 %v10855_v37 }
  0xe3   :  { %1003 = vmatprep.subr.bf16.mxu0 %v10857_v38  ;;  %1044 = vmatprep.subr.bf16.mxu1 %v10859_v39 }
  0xe4   :  { %1033 = vmatprep.mubr.bf16.mxu0 %v14072_v0  ;;  %1074 = vmatprep.mubr.bf16.mxu1 %v14072_v0 }
  0xe6   :  { %1004 = vmatpush1.bf16.msra.mxu0 %v10865_v40  ;;  %1045 = vmatpush1.bf16.msra.mxu1 %v10867_v41 }
  0xe7   :  { %1005 = vmatprep.subr.bf16.mxu0 %v10869_v42  ;;  %1046 = vmatprep.subr.bf16.mxu1 %v10873_v43 }
  0xea   :  { %1006 = vmatpush1.bf16.msra.mxu0 %v10875_v45  ;;  %1047 = vmatpush1.bf16.msra.mxu1 %v10879_v46 }
  0xeb   :  { %1007 = vmatprep.subr.bf16.mxu0 %v10881_v47  ;;  %1048 = vmatprep.subr.bf16.mxu1 %v10885_v48 }
  0xee   :  { %1008 = vmatpush1.bf16.msra.mxu0 %v10887_v49  ;;  %1049 = vmatpush1.bf16.msra.mxu1 %v10891_v50 }
  0xef   :  { %1009 = vmatprep.subr.bf16.mxu0 %v10895_v51  ;;  %1050 = vmatprep.subr.bf16.mxu1 %v10899_v52 }
  0xf2   :  { %1010 = vmatpush1.bf16.msra.mxu0 %v10901_v54  ;;  %1051 = vmatpush1.bf16.msra.mxu1 %v10905_v55 }
  0xf3   :  { %1011 = vmatprep.subr.bf16.mxu0 %v10909_v56  ;;  %1052 = vmatprep.subr.bf16.mxu1 %v10911_v57 }
  0xf6   :  { %1012 = vmatpush1.bf16.msra.mxu0 %v10913_v58  ;;  %1053 = vmatpush1.bf16.msra.mxu1 %v10915_v59 }
  0xf7   :  { %1013 = vmatprep.subr.bf16.mxu0 %v10919_v60  ;;  %1054 = vmatprep.subr.bf16.mxu1 %v10921_v61 }
  0xfa   :  { %1014 = vmatpush1.bf16.msra.mxu0 %v10927_v63  ;;  %1055 = vmatpush1.bf16.msra.mxu1 %v10929_v1 }
  0xfb   :  { %1015 = vmatprep.subr.bf16.mxu0 %v10931_v2  ;;  %1056 = vmatprep.subr.bf16.mxu1 %v10933_v3 }
  0xfe   :  { %1016 = vmatpush1.bf16.msra.mxu0 %v10939_v4  ;;  %1057 = vmatpush1.bf16.msra.mxu1 %v10941_v5 }
  0xff   :  { %1178 = vmatprep.subr.bf16.mxu0 %v10847_v33  ;;  %1219 = vmatprep.subr.bf16.mxu1 %v10849_v34 }
 0x174   :  { %v10997_v11 = vpop.f32.mrb[0].mxu0  ;;  %v10999_v12 = vpop.f32.mrb[0].mxu1 }
 0x175   :  { %v11001_v13 = vpop.f32.mrb[1].mxu0  ;;  %v11003_v14 = vpop.f32.mrb[1].mxu1 }
 0x176   :  { %v11005_v15 = vpop.f32.mrb[2].mxu0  ;;  %v11007_v16 = vpop.f32.mrb[2].mxu1 }
 0x177   :  { %v11009_v17 = vpop.f32.mrb[3].mxu0  ;;  %v11011_v18 = vpop.f32.mrb[3].mxu1 }
 0x17c   :  { %v11013_v19 = vpop.f32.mrb[4].mxu0  ;;  %v11015_v20 = vpop.f32.mrb[4].mxu1 }
 0x17d   :  { %v11017_v21 = vpop.f32.mrb[5].mxu0  ;;  %v11019_v22 = vpop.f32.mrb[5].mxu1 }
 0x17e   :  { %14085 = vst [vmem:[#allocation21_spill] sm:$0xff] %v11017_v21  ;;  %14086 = vst [vmem:[#allocation22_spill] sm:$0xff] %v11019_v22  ;;  %v11021_v23 = vpop.f32.mrb[6].mxu0  ;;  %v11023_v24 = vpop.f32.mrb[6].mxu1 }
 0x17f   :  { %14087 = vst [vmem:[#allocation23_spill] sm:$0xff] %v11021_v23  ;;  %14088 = vst [vmem:[#allocation24_spill] sm:$0xff] %v11023_v24  ;;  %v11025_v25 = vpop.f32.mrb[7].mxu0  ;;  %v11027_v26 = vpop.f32.mrb[7].mxu1 }
 0x180   :  { %14089 = vst [vmem:[#allocation25_spill] sm:$0xff] %v11025_v25  ;;  %14090 = vst [vmem:[#allocation26_spill] sm:$0xff] %v11027_v26 }
 0x184   :  { %v11029_v27 = vpop.f32.mrb[8].mxu0  ;;  %v11031_v28 = vpop.f32.mrb[8].mxu1 }
 0x185   :  { %14091 = vst [vmem:[#allocation27_spill] sm:$0xff] %v11029_v27  ;;  %14092 = vst [vmem:[#allocation28_spill] sm:$0xff] %v11031_v28  ;;  %v11033_v29 = vpop.f32.mrb[9].mxu0  ;;  %v11035_v30 = vpop.f32.mrb[9].mxu1 }
 0x186   :  { %14093 = vst [vmem:[#allocation29_spill] sm:$0xff] %v11033_v29  ;;  %14094 = vst [vmem:[#allocation30_spill] sm:$0xff] %v11035_v30  ;;  %v11037_v31 = vpop.f32.mrb[10].mxu0  ;;  %v11039_v32 = vpop.f32.mrb[10].mxu1  ;;  %v14074_v30 = vlaneseq }
 0x187   :  { %14095 = vst [vmem:[#allocation31_spill] sm:$0xff] %v11037_v31  ;;  %14096 = vst [vmem:[#allocation32_spill] sm:$0xff] %v11039_v32  ;;  %v11041_v33 = vpop.f32.mrb[11].mxu0  ;;  %v11043_v34 = vpop.f32.mrb[11].mxu1 }
 0x188   :  { %14097 = vst [vmem:[#allocation33_spill] sm:$0xff] %v11041_v33  ;;  %14098 = vst [vmem:[#allocation34_spill] sm:$0xff] %v11043_v34 }
 0x18c   :  { %v11045_v35 = vpop.f32.mrb[12].mxu0  ;;  %v11047_v44 = vpop.f32.mrb[12].mxu1 }
 0x18d   :  { %14099 = vst [vmem:[#allocation35_spill] sm:$0xff] %v11045_v35  ;;  %14100 = vst [vmem:[#allocation36_spill] sm:$0xff] %v11047_v44  ;;  %v11049_v53 = vpop.f32.mrb[13].mxu0  ;;  %v11051_v62 = vpop.f32.mrb[13].mxu1 }
 0x18e   :  { %14101 = vst [vmem:[#allocation37_spill] sm:$0xff] %v11049_v53  ;;  %14102 = vst [vmem:[#allocation38_spill] sm:$0xff] %v11051_v62  ;;  %v11053_v6 = vpop.f32.mrb[14].mxu0  ;;  %v11055_v7 = vpop.f32.mrb[14].mxu1 }
 0x18f   :  { %14103 = vst [vmem:[#allocation39_spill] sm:$0xff] %v11053_v6  ;;  %14104 = vst [vmem:[#allocation40_spill] sm:$0xff] %v11055_v7  ;;  %v11057_v8 = vpop.f32.mrb[15].mxu0  ;;  %v11059_v9 = vpop.f32.mrb[15].mxu1  ;;  %v11062_v7 = vshrl.u32 %v14074_v30, 7 }
 0x190   :  { %14105 = vst [vmem:[#allocation41_spill] sm:$0xff] %v11057_v8  ;;  %14106 = vst [vmem:[#allocation42_spill] sm:$0xff] %v11059_v9 }
 0x19c   :  { %v500_v10 = vpop.f32.mrb[20].mxu0  ;;  %v599_v0 = vpop.f32.mrb[20].mxu1 }
 0x19d   :  { %v501_v33 = vpop.f32.mrb[21].mxu0  ;;  %v600_v34 = vpop.f32.mrb[21].mxu1  ;;  %v11065_v0 = vsub.s32 0, %v11062_v7 }
 0x19e   :  { %v502_v32 = vpop.f32.mrb[22].mxu0  ;;  %v601_v35 = vpop.f32.mrb[22].mxu1 }
 0x19f   :  { %v503_v31 = vpop.f32.mrb[23].mxu0  ;;  %v602_v44 = vpop.f32.mrb[23].mxu1  ;;  %14107 = vst [vmem:[#allocation43_spill] sm:$0xff] %v11065_v0  ;;  %v11068_v32 = vsub.s32 2, %v11062_v7 }
 0x1a0   :  { %v188_v31 = vld [vmem:[%s14064_s4] sm:$0xf] }
 0x1a1   :  { %14108 = vst [vmem:[#allocation44_spill] sm:$0xff] %v11068_v32 }
 0x1a4   :  { %v506_v53 = vpop.f32.mrb[24].mxu0  ;;  %v605_v29 = vpop.f32.mrb[24].mxu1 }
 0x1a5   :  { %v507_v62 = vpop.f32.mrb[25].mxu0  ;;  %v606_v28 = vpop.f32.mrb[25].mxu1  ;;  %v11074_v29 = vsub.s32 1, %v11062_v7 }
 0x1a6   :  { %v508_v6 = vpop.f32.mrb[26].mxu0  ;;  %v607_v27 = vpop.f32.mrb[26].mxu1  ;;  %v11080_v62 = vrot.slane %v188_v31, %v11065_v0 }
 0x1a7   :  { %v509_v8 = vpop.f32.mrb[27].mxu0  ;;  %v608_v9 = vpop.f32.mrb[27].mxu1  ;;  %14109 = vst [vmem:[#allocation45_spill] sm:$0xff] %v11074_v29  ;;  %v11077_v27 = vsub.s32 3, %v11062_v7  ;;  %v11083_v6 = vrot.slane %v188_v31, %v11068_v32  ;;  %v11086_v10 = vrot.slane %v188_v31, %v11074_v29 }
 0x1a9   :  { %14110 = vst [vmem:[#allocation46_spill] sm:$0xff] %v11077_v27  ;;  %v11089_v30 = vrot.slane %v188_v31, %v11077_v27 }
 0x1ac   :  { %v512_v28 = vpop.f32.mrb[28].mxu0  ;;  %v611_v33 = vpop.f32.mrb[28].mxu1 }
 0x1ad   :  { %v513_v34 = vpop.f32.mrb[29].mxu0  ;;  %v612_v35 = vpop.f32.mrb[29].mxu1  ;;  %v453_v28 = vadd.f32 %v10997_v11, %v11080_v62  ;;  %v552_v33 = vadd.f32 %v10999_v12, %v11083_v6 }
 0x1ae   :  { %v514_v44 = vpop.f32.mrb[30].mxu0  ;;  %v613_v53 = vpop.f32.mrb[30].mxu1 }
 0x1af   :  { %v515_v8 = vpop.f32.mrb[31].mxu0  ;;  %v614_v9 = vpop.f32.mrb[31].mxu1  ;;  %v455_v44 = vadd.f32 %v11001_v13, %v11086_v10  ;;  %v554_v53 = vadd.f32 %v11003_v14, %v11089_v30 }
 0x1b4   :  { %v858_v34 = vpop.f32.mrb[32].mxu0  ;;  %v899_v35 = vpop.f32.mrb[32].mxu1 }
 0x1b5   :  { %v906_v8 = vadd.f32 %v858_v34, %v453_v28  ;;  %v908_v9 = vadd.f32 %v899_v35, %v552_v33  ;;  %v860_v32 = vpop.f32.mrb[33].mxu0  ;;  %v901_v0 = vpop.f32.mrb[33].mxu1 }
 0x1b6   :  { %v907_v31 = vadd.f32 %v860_v32, %v455_v44  ;;  %v909_v27 = vadd.f32 %v901_v0, %v554_v53  ;;  %v862_v29 = vpop.f32.mrb[34].mxu0  ;;  %v903_v26 = vpop.f32.mrb[34].mxu1 }
 0x1b7   :  { %v8649_v11 = vmul.f32 -1.442695, %v906_v8  ;;  %v863_v25 = vpop.f32.mrb[35].mxu0  ;;  %v904_v24 = vpop.f32.mrb[35].mxu1 }
 0x1b8   :  { %v8650_v12 = vmul.f32 -1.442695, %v907_v31  ;;  %v8651_v23 = vmul.f32 -1.442695, %v909_v27  ;;  %v10669_v27 = vmov 1966171168  }
 0x1b9   :  { %9873 = vpow2.f32 %v8649_v11  ;;  %v937_v34 = vunpack.c.l.s4 %v10669_v27 }
 0x1ba   :  { %9875 = vpow2.f32 %v8650_v12 }
 0x1bb   :  { %9877 = vpow2.f32 %v8651_v23 }
 0x1bc   :  { %9879 = vtanh.f32 %v908_v9 }
 0x1c3   :  { %v9874_v22 = vpop.eup %9873 }
 0x1c4   :  { %v9876_v13 = vpop.eup %9875  ;;  %v913_v21 = vadd.f32 1.0, %v9874_v22  ;;  %v938_v22 = vunpack.c.0.s8 %v937_v34 }
 0x1c5   :  { %v919_v14 = vadd.f32 1.0, %v9876_v13  ;;  %v9878_v28 = vpop.eup %9877 }
 0x1c6   :  { %9881 = vrcp.f32 %v913_v21  ;;  %v9880_v32 = vpop.eup %9879  ;;  %v926_v33 = vadd.f32 1.0, %v9878_v28  ;;  %v11103_v35 = vsub.s32 %v938_v22, %v11062_v7 }
 0x1c7   :  { %9883 = vrcp.f32 %v919_v14 }
 0x1c8   :  { %9885 = vrcp.f32 %v926_v33 }
 0x1d0   :  { %v9882_v0 = vpop.eup %9881 }
 0x1d1   :  { %v9884_v29 = vpop.eup %9883  ;;  %v930_v26 = vmul.f32 %v9882_v0, %v9880_v32  ;;  %v14111_v0 = vmov 0  }
 0x1d2   :  { %v929_v25 = vmul.f32 0.0, %v9884_v29  ;;  %v9886_v23 = vpop.eup %9885 }
 0x1d4   :  { %v11099_v24 = vadd.f32 %v930_v26, %v929_v25 }
 0x1d6   :  { %9887 = vtanh.f32 %v11099_v24 }
 0x1e0   :  { %v9888_v21 = vpop.eup %9887 }
 0x1e1   :  { %v933_v44 = vmul.f32 %v9888_v21, %v9886_v23 }
 0x1e3   :  { %v935_v53 = vcombine.high %v933_v44, %v933_v44  ;;  %v942_v8 = vrot.slane %v933_v44, %v11103_v35  ;;  %v1000_v9 = vpack.c.bf16 %v933_v44, %v933_v44 }
 0x1e5   :  { %v949_v31 = vrot.slane %v935_v53, %v11103_v35  ;;  %v950_v11 = vcombine.high %v942_v8, %v942_v8  ;;  %v958_v12 = vrot.slane %v942_v8, %v11103_v35  ;;  %8652 = vst.sshfl [vmem:[#allocation2] sm:$0x1 pattern:$0x73625140] %v942_v8  ;;  %1034 = vmatmul.mubr.bf16.vlgmr.msra.gmra.mrb[36].mxu0 %v1000_v9 }
 0x1e6   :  { %1075 = vmatmul.mubr.bf16.vlgmr.msra.gmra.mrb[36].mxu1 %v1000_v9  ;;  %1179 = vmatpush1.bf16.msra.mxu0 %v10851_v36 }
 0x1e7   :  { %1220 = vmatpush1.bf16.msra.mxu1 %v10855_v37  ;;  %v951_v13 = vcombine.high %v949_v31, %v949_v31  ;;  %v965_v14 = vrot.slane %v949_v31, %v11103_v35  ;;  %v972_v28 = vrot.slane %v950_v11, %v11103_v35  ;;  %v980_v32 = vcombine.high %v958_v12, %v958_v12 }
 0x1e8   :  { %8653 = vst.sshfl [vmem:[#allocation2 + $0x10] sm:$0x1 pattern:$0x73625140] %v950_v11  ;;  %1180 = vmatprep.subr.bf16.mxu0 %v10857_v38  ;;  %1221 = vmatprep.subr.bf16.mxu1 %v10859_v39  ;;  %v11143_v38 = vld [vmem:[#allocation9 + $0x4] ss:$16 sps:$4 sm:$0xff]  }
 0x1e9   :  { %8654 = vst.sshfl [vmem:[#allocation2 + $0x40] sm:$0x1 pattern:$0x73625140] %v949_v31  ;;  %1210 = vmatprep.mubr.bf16.mxu0 %v14111_v0  ;;  %v979_v29 = vrot.slane %v951_v13, %v11103_v35  ;;  %v981_v26 = vcombine.high %v965_v14, %v965_v14  ;;  %v982_v36 = vcombine.high %v972_v28, %v972_v28  ;;  %994 = vst [vmem:[#allocation2 + $0x20] sm:$0x1] %v980_v32 }
 0x1ea   :  { %8655 = vst.sshfl [vmem:[#allocation2 + $0x50] sm:$0x1 pattern:$0x73625140] %v951_v13  ;;  %1251 = vmatprep.mubr.bf16.mxu1 %v14111_v0  ;;  %1181 = vmatpush1.bf16.msra.mxu0 %v10865_v40  ;;  %v11146_v39 = vld [vmem:[#allocation9 + $0xc] ss:$16 sps:$4 sm:$0xff]   ;;  %v457_v40 = vadd.f32 %v11005_v15, %v11080_v62 }
 0x1eb   :  { %1222 = vmatpush1.bf16.msra.mxu1 %v10867_v41  ;;  %v983_v37 = vcombine.high %v979_v29, %v979_v29  ;;  %995 = vst [vmem:[#allocation2 + $0x30] sm:$0x1] %v982_v36  ;;  %998 = vst [vmem:[#allocation2 + $0x60] sm:$0x1] %v981_v26  ;;  %1182 = vmatprep.subr.bf16.mxu0 %v10869_v42  ;;  %v556_v41 = vadd.f32 %v11007_v16, %v11083_v6  ;;  %v11167_v11 = vld [vmem:[#allocation9 + $0x8] ss:$16 sps:$4 sm:$0xff]  }
 0x1ec   :  { %1223 = vmatprep.subr.bf16.mxu1 %v10873_v43  ;;  %v11172_v32 = vld [vmem:[#allocation9 + $0x24] ss:$16 sps:$4 sm:$0xff]   ;;  %v11175_v29 = vld [vmem:[#allocation9 + $0x2c] ss:$16 sps:$4 sm:$0xff]  }
 0x1ed   :  { %999 = vst [vmem:[#allocation2 + $0x70] sm:$0x1] %v983_v37 }
 0x1ee   :  { %1183 = vmatpush1.bf16.msra.mxu0 %v10875_v45  ;;  %v459_v45 = vadd.f32 %v11009_v17, %v11086_v10 }
 0x1ef   :  { %1224 = vmatpush1.bf16.msra.mxu1 %v10879_v46  ;;  %1184 = vmatprep.subr.bf16.mxu0 %v10881_v47  ;;  %v558_v46 = vadd.f32 %v11011_v18, %v11089_v30 }
 0x1f0   :  { %1225 = vmatprep.subr.bf16.mxu1 %v10885_v48 }
 0x1f2   :  { %1185 = vmatpush1.bf16.msra.mxu0 %v10887_v49 }
 0x1f3   :  { %1226 = vmatpush1.bf16.msra.mxu1 %v10891_v50  ;;  %1186 = vmatprep.subr.bf16.mxu0 %v10895_v51 }
 0x1f4   :  { %1227 = vmatprep.subr.bf16.mxu1 %v10899_v52 }
 0x1f6   :  { %1187 = vmatpush1.bf16.msra.mxu0 %v10901_v54 }
 0x1f7   :  { %1228 = vmatpush1.bf16.msra.mxu1 %v10905_v55  ;;  %1188 = vmatprep.subr.bf16.mxu0 %v10909_v56 }
 0x1f8   :  { %1229 = vmatprep.subr.bf16.mxu1 %v10911_v57 }
 0x1fa   :  { %1189 = vmatpush1.bf16.msra.mxu0 %v10913_v58 }
 0x1fb   :  { %1230 = vmatpush1.bf16.msra.mxu1 %v10915_v59  ;;  %1190 = vmatprep.subr.bf16.mxu0 %v10919_v60 }
 0x1fc   :  { %1231 = vmatprep.subr.bf16.mxu1 %v10921_v61 }
 0x1fe   :  { %1191 = vmatpush1.bf16.msra.mxu0 %v10927_v63 }
 0x1ff   :  { %1232 = vmatpush1.bf16.msra.mxu1 %v10929_v1  ;;  %1192 = vmatprep.subr.bf16.mxu0 %v10931_v2 }
 0x200   :  { %1233 = vmatprep.subr.bf16.mxu1 %v10933_v3 }
 0x202   :  { %1193 = vmatpush1.bf16.msra.mxu0 %v10939_v4 }
 0x203   :  { %1234 = vmatpush1.bf16.msra.mxu1 %v10941_v5  ;;  %1355 = vmatprep.subr.bf16.mxu0 %v11143_v38 }
 0x204   :  { %1396 = vmatprep.subr.bf16.mxu1 %v11146_v39 }
 0x2b8   :  { %v1035_v42 = vpop.f32.mrb[36].mxu0 }
 0x2b9   :  { %v1076_v43 = vpop.f32.mrb[36].mxu1  ;;  %v1083_v47 = vadd.f32 %v1035_v42, %v457_v40  ;;  %v1037_v49 = vpop.f32.mrb[37].mxu0  ;;  %v11181_v40 = vld [vmem:[#allocation9 + $0x20] ss:$16 sps:$4 sm:$0xff]  }
 0x2ba   :  { %v1085_v48 = vadd.f32 %v1076_v43, %v556_v41  ;;  %v1078_v50 = vpop.f32.mrb[37].mxu1  ;;  %v1084_v51 = vadd.f32 %v1037_v49, %v459_v45  ;;  %v1039_v54 = vpop.f32.mrb[38].mxu0  ;;  %v11184_v41 = vld [vmem:[#allocation9 + $0x28] ss:$16 sps:$4 sm:$0xff]   ;;  %v11187_v43 = vld [vmem:[#allocation9 + $0x44] ss:$16 sps:$4 sm:$0xff]  }
 0x2bb   :  { %v1086_v52 = vadd.f32 %v1078_v50, %v558_v46  ;;  %v1080_v55 = vpop.f32.mrb[38].mxu1  ;;  %v8656_v56 = vmul.f32 -1.442695, %v1083_v47  ;;  %v1040_v57 = vpop.f32.mrb[39].mxu0  ;;  %v11190_v45 = vld [vmem:[#allocation9 + $0x4c] ss:$16 sps:$4 sm:$0xff]  }
 0x2bc   :  { %v1081_v58 = vpop.f32.mrb[39].mxu1  ;;  %v8657_v59 = vmul.f32 -1.442695, %v1084_v51  ;;  %v11193_v46 = vld [vmem:[#allocation9 + $0x40] ss:$16 sps:$4 sm:$0xff]  }
 0x2bd   :  { %9889 = vpow2.f32 %v8656_v56  ;;  %v8658_v60 = vmul.f32 -1.442695, %v1086_v52  ;;  %v11196_v47 = vld [vmem:[#allocation9 + $0x48] ss:$16 sps:$4 sm:$0xff]   ;;  %v11202_v49 = vld [vmem:[#allocation9 + $0x6c] ss:$16 sps:$4 sm:$0xff]  }
 0x2be   :  { %9891 = vpow2.f32 %v8657_v59  ;;  %v11205_v50 = vld [vmem:[#allocation9 + $0x60] ss:$16 sps:$4 sm:$0xff]   ;;  %v11208_v51 = vld [vmem:[#allocation9 + $0x68] ss:$16 sps:$4 sm:$0xff]   ;;  %v11211_v52 = vld [vmem:[#allocation9 + $0x84] ss:$16 sps:$4 sm:$0xff]  }
 0x2bf   :  { %9893 = vpow2.f32 %v8658_v60  ;;  %v11214_v54 = vld [vmem:[#allocation9 + $0x8c] ss:$16 sps:$4 sm:$0xff]   ;;  %v11217_v55 = vld [vmem:[#allocation9 + $0x80] ss:$16 sps:$4 sm:$0xff]   ;;  %v11220_v56 = vld [vmem:[#allocation9 + $0x88] ss:$16 sps:$4 sm:$0xff]  }
 0x2c0   :  { %9895 = vtanh.f32 %v1085_v48  ;;  %v11199_v48 = vld [vmem:[#allocation9 + $0x64] ss:$16 sps:$4 sm:$0xff]   ;;  %v11226_v58 = vld [vmem:[#allocation9 + $0xac] ss:$16 sps:$4 sm:$0xff]   ;;  %v11229_v59 = vld [vmem:[#allocation9 + $0xa0] ss:$16 sps:$4 sm:$0xff]  }
 0x2c1   :  { %v11223_v57 = vld [vmem:[#allocation9 + $0xa4] ss:$16 sps:$4 sm:$0xff]   ;;  %v11232_v60 = vld [vmem:[#allocation9 + $0xa8] ss:$16 sps:$4 sm:$0xff]  }
 0x2c7   :  { %v9890_v61 = vpop.eup %9889 }
 0x2c8   :  { %v9892_v63 = vpop.eup %9891  ;;  %v1090_v1 = vadd.f32 1.0, %v9890_v61  ;;  %v11235_v61 = vld [vmem:[#allocation9 + $0xc4] ss:$16 sps:$4 sm:$0xff]  }
 0x2c9   :  { %v1096_v2 = vadd.f32 1.0, %v9892_v63  ;;  %v9894_v3 = vpop.eup %9893  ;;  %v11238_v63 = vld [vmem:[#allocation9 + $0xcc] ss:$16 sps:$4 sm:$0xff]  }
 0x2ca   :  { %9897 = vrcp.f32 %v1090_v1  ;;  %v9896_v15 = vpop.eup %9895  ;;  %v1103_v33 = vadd.f32 1.0, %v9894_v3  ;;  %v11241_v1 = vld [vmem:[#allocation9 + $0xc0] ss:$16 sps:$4 sm:$0xff]   ;;  %v11247_v3 = vld [vmem:[#allocation9 + $0xe4] ss:$16 sps:$4 sm:$0xff]  }
 0x2cb   :  { %9899 = vrcp.f32 %v1096_v2  ;;  %v11244_v2 = vld [vmem:[#allocation9 + $0xc8] ss:$16 sps:$4 sm:$0xff]  }
 0x2cc   :  { %9901 = vrcp.f32 %v1103_v33 }
 0x2d4   :  { %v9898_v16 = vpop.eup %9897 }
 0x2d5   :  { %v9900_v17 = vpop.eup %9899  ;;  %v1107_v18 = vmul.f32 %v9898_v16, %v9896_v15  ;;  %v11250_v15 = vld [vmem:[#allocation9 + $0xec] ss:$16 sps:$4 sm:$0xff]   ;;  %v463_v16 = vadd.f32 %v11013_v19, %v11080_v62 }
 0x2d6   :  { %v1106_v25 = vmul.f32 %v9900_v17, %v11099_v24  ;;  %v9902_v34 = vpop.eup %9901  ;;  %v11164_v24 = vld [vmem:[#allocation9] ss:$16 sps:$4 sm:$0xff]   ;;  %v562_v17 = vadd.f32 %v11015_v20, %v11083_v6 }
 0x2d8   :  { %v11158_v27 = vadd.f32 %v1107_v18, %v1106_v25  ;;  %v14112_v18 = vld [vmem:[#allocation21_spill] sm:$0xff]  ;;  %v14113_v25 = vld [vmem:[#allocation22_spill] sm:$0xff] }
 0x2d9   :  { %v465_v33 = vadd.f32 %v14112_v18, %v11086_v10 }
 0x2da   :  { %9903 = vtanh.f32 %v11158_v27 }
 0x2e4   :  { %v9904_v22 = vpop.eup %9903 }
 0x2e5   :  { %v1110_v23 = vmul.f32 %v9904_v22, %v9902_v34  ;;  %v564_v34 = vadd.f32 %v14113_v25, %v11089_v30 }
 0x2e7   :  { %v1112_v21 = vcombine.high %v1110_v23, %v1110_v23  ;;  %v1119_v44 = vrot.slane %v1110_v23, %v11103_v35  ;;  %v1177_v53 = vpack.c.bf16 %v1110_v23, %v1110_v23 }
 0x2e9   :  { %v1126_v8 = vrot.slane %v1112_v21, %v11103_v35  ;;  %v1127_v9 = vcombine.high %v1119_v44, %v1119_v44  ;;  %v1135_v31 = vrot.slane %v1119_v44, %v11103_v35  ;;  %8659 = vst.sshfl [vmem:[#allocation2 + $0x1] sm:$0x1 pattern:$0x73625140] %v1119_v44  ;;  %1211 = vmatmul.mubr.bf16.vlgmr.msra.gmra.mrb[40].mxu0 %v1177_v53 }
 0x2ea   :  { %1252 = vmatmul.mubr.bf16.vlgmr.msra.gmra.mrb[40].mxu1 %v1177_v53  ;;  %1356 = vmatpush1.bf16.msra.mxu0 %v11164_v24 }
 0x2eb   :  { %1397 = vmatpush1.bf16.msra.mxu1 %v11167_v11  ;;  %v1128_v12 = vcombine.high %v1126_v8, %v1126_v8  ;;  %v1142_v13 = vrot.slane %v1126_v8, %v11103_v35  ;;  %v1149_v14 = vrot.slane %v1127_v9, %v11103_v35  ;;  %v1157_v28 = vcombine.high %v1135_v31, %v1135_v31 }
 0x2ec   :  { %8660 = vst.sshfl [vmem:[#allocation2 + $0x11] sm:$0x1 pattern:$0x73625140] %v1127_v9  ;;  %1357 = vmatprep.subr.bf16.mxu0 %v11172_v32  ;;  %1398 = vmatprep.subr.bf16.mxu1 %v11175_v29 }
 0x2ed   :  { %8661 = vst.sshfl [vmem:[#allocation2 + $0x41] sm:$0x1 pattern:$0x73625140] %v1126_v8  ;;  %1387 = vmatprep.mubr.bf16.mxu0 %v14111_v0  ;;  %v1156_v26 = vrot.slane %v1128_v12, %v11103_v35  ;;  %v1158_v36 = vcombine.high %v1142_v13, %v1142_v13  ;;  %v1159_v37 = vcombine.high %v1149_v14, %v1149_v14  ;;  %1171 = vst [vmem:[#allocation2 + $0x21] sm:$0x1] %v1157_v28 }
 0x2ee   :  { %8662 = vst.sshfl [vmem:[#allocation2 + $0x51] sm:$0x1 pattern:$0x73625140] %v1128_v12  ;;  %1428 = vmatprep.mubr.bf16.mxu1 %v14111_v0  ;;  %1358 = vmatpush1.bf16.msra.mxu0 %v11181_v40 }
 0x2ef   :  { %1399 = vmatpush1.bf16.msra.mxu1 %v11184_v41  ;;  %v1160_v42 = vcombine.high %v1156_v26, %v1156_v26  ;;  %1172 = vst [vmem:[#allocation2 + $0x31] sm:$0x1] %v1159_v37  ;;  %1175 = vst [vmem:[#allocation2 + $0x61] sm:$0x1] %v1158_v36  ;;  %1359 = vmatprep.subr.bf16.mxu0 %v11187_v43 }
 0x2f0   :  { %1400 = vmatprep.subr.bf16.mxu1 %v11190_v45 }
 0x2f1   :  { %1176 = vst [vmem:[#allocation2 + $0x71] sm:$0x1] %v1160_v42 }
 0x2f2   :  { %1360 = vmatpush1.bf16.msra.mxu0 %v11193_v46 }
 0x2f3   :  { %1401 = vmatpush1.bf16.msra.mxu1 %v11196_v47  ;;  %1361 = vmatprep.subr.bf16.mxu0 %v11199_v48 }
 0x2f4   :  { %1402 = vmatprep.subr.bf16.mxu1 %v11202_v49 }
 0x2f6   :  { %1362 = vmatpush1.bf16.msra.mxu0 %v11205_v50 }
 0x2f7   :  { %1403 = vmatpush1.bf16.msra.mxu1 %v11208_v51  ;;  %1363 = vmatprep.subr.bf16.mxu0 %v11211_v52 }
 0x2f8   :  { %1404 = vmatprep.subr.bf16.mxu1 %v11214_v54 }
 0x2fa   :  { %1364 = vmatpush1.bf16.msra.mxu0 %v11217_v55 }
 0x2fb   :  { %1405 = vmatpush1.bf16.msra.mxu1 %v11220_v56  ;;  %1365 = vmatprep.subr.bf16.mxu0 %v11223_v57 }
 0x2fc   :  { %1406 = vmatprep.subr.bf16.mxu1 %v11226_v58 }
 0x2fe   :  { %1366 = vmatpush1.bf16.msra.mxu0 %v11229_v59 }
 0x2ff   :  { %1407 = vmatpush1.bf16.msra.mxu1 %v11232_v60  ;;  %1367 = vmatprep.subr.bf16.mxu0 %v11235_v61 }
 0x300   :  { %1408 = vmatprep.subr.bf16.mxu1 %v11238_v63 }
 0x302   :  { %1368 = vmatpush1.bf16.msra.mxu0 %v11241_v1 }
 0x303   :  { %1409 = vmatpush1.bf16.msra.mxu1 %v11244_v2  ;;  %1369 = vmatprep.subr.bf16.mxu0 %v11247_v3 }
 0x304   :  { %1410 = vmatprep.subr.bf16.mxu1 %v11250_v15 }
 0x306   :  { %1370 = vmatpush1.bf16.msra.mxu0 %v10939_v4 }
 0x307   :  { %1411 = vmatpush1.bf16.msra.mxu1 %v10941_v5  ;;  %1532 = vmatprep.subr.bf16.mxu0 %v11143_v38 }
 0x308   :  { %1573 = vmatprep.subr.bf16.mxu1 %v11146_v39 }
 0x3bc   :  { %v1212_v22 = vpop.f32.mrb[40].mxu0 }
 0x3bd   :  { %v1253_v4 = vpop.f32.mrb[40].mxu1  ;;  %v1260_v23 = vadd.f32 %v1212_v22, %v463_v16  ;;  %v1214_v21 = vpop.f32.mrb[41].mxu0 }
 0x3be   :  { %v1262_v5 = vadd.f32 %v1253_v4, %v562_v17  ;;  %v1255_v44 = vpop.f32.mrb[41].mxu1  ;;  %v1261_v53 = vadd.f32 %v1214_v21, %v465_v33  ;;  %v1216_v9 = vpop.f32.mrb[42].mxu0 }
 0x3bf   :  { %v1263_v8 = vadd.f32 %v1255_v44, %v564_v34  ;;  %v1257_v31 = vpop.f32.mrb[42].mxu1  ;;  %v8663_v19 = vmul.f32 -1.442695, %v1260_v23  ;;  %v1217_v12 = vpop.f32.mrb[43].mxu0 }
 0x3c0   :  { %v1258_v13 = vpop.f32.mrb[43].mxu1  ;;  %v8664_v20 = vmul.f32 -1.442695, %v1261_v53 }
 0x3c1   :  { %9905 = vpow2.f32 %v8663_v19  ;;  %v8665_v14 = vmul.f32 -1.442695, %v1263_v8 }
 0x3c2   :  { %9907 = vpow2.f32 %v8664_v20 }
 0x3c3   :  { %9909 = vpow2.f32 %v8665_v14 }
 0x3c4   :  { %9911 = vtanh.f32 %v1262_v5 }
 0x3cb   :  { %v9906_v28 = vpop.eup %9905 }
 0x3cc   :  { %v9908_v26 = vpop.eup %9907  ;;  %v1267_v36 = vadd.f32 1.0, %v9906_v28 }
 0x3cd   :  { %v1273_v37 = vadd.f32 1.0, %v9908_v26  ;;  %v9910_v42 = vpop.eup %9909 }
 0x3ce   :  { %9913 = vrcp.f32 %v1267_v36  ;;  %v9912_v16 = vpop.eup %9911  ;;  %v1280_v25 = vadd.f32 1.0, %v9910_v42  ;;  %v11305_v36 = vld [vmem:[#allocation9 + $0xe0] ss:$16 sps:$4 sm:$0xff]   ;;  %v14114_v42 = vld [vmem:[#allocation23_spill] sm:$0xff] }
 0x3cf   :  { %9915 = vrcp.f32 %v1273_v37  ;;  %v11308_v37 = vld [vmem:[#allocation9 + $0xe8] ss:$16 sps:$4 sm:$0xff]  }
 0x3d0   :  { %9917 = vrcp.f32 %v1280_v25 }
 0x3d8   :  { %v9914_v17 = vpop.eup %9913 }
 0x3d9   :  { %v9916_v18 = vpop.eup %9915  ;;  %v1284_v33 = vmul.f32 %v9914_v17, %v9912_v16  ;;  %v467_v16 = vadd.f32 %v14114_v42, %v11080_v62  ;;  %v14115_v17 = vld [vmem:[#allocation24_spill] sm:$0xff] }
 0x3da   :  { %v1283_v34 = vmul.f32 %v9916_v18, %v11158_v27  ;;  %v9918_v4 = vpop.eup %9917  ;;  %v566_v18 = vadd.f32 %v14115_v17, %v11083_v6 }
 0x3dc   :  { %v11266_v22 = vadd.f32 %v1284_v33, %v1283_v34  ;;  %v14116_v33 = vld [vmem:[#allocation25_spill] sm:$0xff]  ;;  %v14117_v34 = vld [vmem:[#allocation26_spill] sm:$0xff] }
 0x3dd   :  { %v469_v25 = vadd.f32 %v14116_v33, %v11086_v10 }
 0x3de   :  { %9919 = vtanh.f32 %v11266_v22 }
 0x3e8   :  { %v9920_v23 = vpop.eup %9919 }
 0x3e9   :  { %v1287_v21 = vmul.f32 %v9920_v23, %v9918_v4  ;;  %v568_v4 = vadd.f32 %v14117_v34, %v11089_v30 }
 0x3eb   :  { %v1289_v5 = vcombine.high %v1287_v21, %v1287_v21  ;;  %v1296_v44 = vrot.slane %v1287_v21, %v11103_v35  ;;  %v1354_v53 = vpack.c.bf16 %v1287_v21, %v1287_v21 }
 0x3ed   :  { %v1303_v8 = vrot.slane %v1289_v5, %v11103_v35  ;;  %v1304_v9 = vcombine.high %v1296_v44, %v1296_v44  ;;  %v1312_v31 = vrot.slane %v1296_v44, %v11103_v35  ;;  %8666 = vst.sshfl [vmem:[#allocation2 + $0x2] sm:$0x1 pattern:$0x73625140] %v1296_v44  ;;  %1388 = vmatmul.mubr.bf16.vlgmr.msra.gmra.mrb[44].mxu0 %v1354_v53 }
 0x3ee   :  { %1429 = vmatmul.mubr.bf16.vlgmr.msra.gmra.mrb[44].mxu1 %v1354_v53  ;;  %1533 = vmatpush1.bf16.msra.mxu0 %v11164_v24 }
 0x3ef   :  { %1574 = vmatpush1.bf16.msra.mxu1 %v11167_v11  ;;  %v1305_v27 = vcombine.high %v1303_v8, %v1303_v8  ;;  %v1319_v19 = vrot.slane %v1303_v8, %v11103_v35  ;;  %v1326_v12 = vrot.slane %v1304_v9, %v11103_v35  ;;  %v1334_v13 = vcombine.high %v1312_v31, %v1312_v31 }
 0x3f0   :  { %8667 = vst.sshfl [vmem:[#allocation2 + $0x12] sm:$0x1 pattern:$0x73625140] %v1304_v9  ;;  %1534 = vmatprep.subr.bf16.mxu0 %v11172_v32  ;;  %1575 = vmatprep.subr.bf16.mxu1 %v11175_v29 }
 0x3f1   :  { %8668 = vst.sshfl [vmem:[#allocation2 + $0x42] sm:$0x1 pattern:$0x73625140] %v1303_v8  ;;  %1564 = vmatprep.mubr.bf16.mxu0 %v14111_v0  ;;  %v1333_v20 = vrot.slane %v1305_v27, %v11103_v35  ;;  %v1335_v14 = vcombine.high %v1319_v19, %v1319_v19  ;;  %v1336_v28 = vcombine.high %v1326_v12, %v1326_v12  ;;  %1348 = vst [vmem:[#allocation2 + $0x22] sm:$0x1] %v1334_v13 }
 0x3f2   :  { %8669 = vst.sshfl [vmem:[#allocation2 + $0x52] sm:$0x1 pattern:$0x73625140] %v1305_v27  ;;  %1605 = vmatprep.mubr.bf16.mxu1 %v14111_v0  ;;  %1535 = vmatpush1.bf16.msra.mxu0 %v11181_v40 }
 0x3f3   :  { %1576 = vmatpush1.bf16.msra.mxu1 %v11184_v41  ;;  %v1337_v26 = vcombine.high %v1333_v20, %v1333_v20  ;;  %1349 = vst [vmem:[#allocation2 + $0x32] sm:$0x1] %v1336_v28  ;;  %1352 = vst [vmem:[#allocation2 + $0x62] sm:$0x1] %v1335_v14  ;;  %1536 = vmatprep.subr.bf16.mxu0 %v11187_v43 }
 0x3f4   :  { %1577 = vmatprep.subr.bf16.mxu1 %v11190_v45 }
 0x3f5   :  { %1353 = vst [vmem:[#allocation2 + $0x72] sm:$0x1] %v1337_v26 }
 0x3f6   :  { %1537 = vmatpush1.bf16.msra.mxu0 %v11193_v46 }
 0x3f7   :  { %1578 = vmatpush1.bf16.msra.mxu1 %v11196_v47  ;;  %1538 = vmatprep.subr.bf16.mxu0 %v11199_v48 }
 0x3f8   :  { %1579 = vmatprep.subr.bf16.mxu1 %v11202_v49 }
 0x3fa   :  { %1539 = vmatpush1.bf16.msra.mxu0 %v11205_v50 }
 0x3fb   :  { %1580 = vmatpush1.bf16.msra.mxu1 %v11208_v51  ;;  %1540 = vmatprep.subr.bf16.mxu0 %v11211_v52 }
 0x3fc   :  { %1581 = vmatprep.subr.bf16.mxu1 %v11214_v54 }
 0x3fe   :  { %1541 = vmatpush1.bf16.msra.mxu0 %v11217_v55 }
 0x3ff   :  { %1582 = vmatpush1.bf16.msra.mxu1 %v11220_v56  ;;  %1542 = vmatprep.subr.bf16.mxu0 %v11223_v57 }
 0x400   :  { %1583 = vmatprep.subr.bf16.mxu1 %v11226_v58 }
 0x402   :  { %1543 = vmatpush1.bf16.msra.mxu0 %v11229_v59 }
 0x403   :  { %1584 = vmatpush1.bf16.msra.mxu1 %v11232_v60  ;;  %1544 = vmatprep.subr.bf16.mxu0 %v11235_v61 }
 0x404   :  { %1585 = vmatprep.subr.bf16.mxu1 %v11238_v63 }
 0x406   :  { %1545 = vmatpush1.bf16.msra.mxu0 %v11241_v1 }
 0x407   :  { %1586 = vmatpush1.bf16.msra.mxu1 %v11244_v2  ;;  %1546 = vmatprep.subr.bf16.mxu0 %v11247_v3 }
 0x408   :  { %1587 = vmatprep.subr.bf16.mxu1 %v11250_v15 }
 0x40a   :  { %1547 = vmatpush1.bf16.msra.mxu0 %v11305_v36 }
 0x40b   :  { %1588 = vmatpush1.bf16.msra.mxu1 %v11308_v37  ;;  %1709 = vmatprep.subr.bf16.mxu0 %v11143_v38 }
 0x40c   :  { %1750 = vmatprep.subr.bf16.mxu1 %v11146_v39 }
 0x4c0   :  { %v1389_v23 = vpop.f32.mrb[44].mxu0 }
 0x4c1   :  { %v1430_v21 = vpop.f32.mrb[44].mxu1  ;;  %v1437_v5 = vadd.f32 %v1389_v23, %v467_v16  ;;  %v1391_v53 = vpop.f32.mrb[45].mxu0 }
 0x4c2   :  { %v1439_v44 = vadd.f32 %v1430_v21, %v566_v18  ;;  %v1432_v8 = vpop.f32.mrb[45].mxu1  ;;  %v1438_v9 = vadd.f32 %v1391_v53, %v469_v25  ;;  %v1393_v27 = vpop.f32.mrb[46].mxu0 }
 0x4c3   :  { %v1440_v31 = vadd.f32 %v1432_v8, %v568_v4  ;;  %v1434_v19 = vpop.f32.mrb[46].mxu1  ;;  %v8670_v12 = vmul.f32 -1.442695, %v1437_v5  ;;  %v1394_v13 = vpop.f32.mrb[47].mxu0 }
 0x4c4   :  { %v1435_v20 = vpop.f32.mrb[47].mxu1  ;;  %v8671_v14 = vmul.f32 -1.442695, %v1438_v9 }
 0x4c5   :  { %9921 = vpow2.f32 %v8670_v12  ;;  %v8672_v28 = vmul.f32 -1.442695, %v1440_v31 }
 0x4c6   :  { %9923 = vpow2.f32 %v8671_v14 }
 0x4c7   :  { %9925 = vpow2.f32 %v8672_v28 }
 0x4c8   :  { %9927 = vtanh.f32 %v1439_v44 }
 0x4cf   :  { %v9922_v26 = vpop.eup %9921 }
 0x4d0   :  { %v9924_v42 = vpop.eup %9923  ;;  %v1444_v17 = vadd.f32 1.0, %v9922_v26 }
 0x4d1   :  { %v1450_v16 = vadd.f32 1.0, %v9924_v42  ;;  %v9926_v18 = vpop.eup %9925 }
 0x4d2   :  { %9929 = vrcp.f32 %v1444_v17  ;;  %v9928_v33 = vpop.eup %9927  ;;  %v1457_v23 = vadd.f32 1.0, %v9926_v18  ;;  %v14118_v18 = vld [vmem:[#allocation27_spill] sm:$0xff] }
 0x4d3   :  { %9931 = vrcp.f32 %v1450_v16 }
 0x4d4   :  { %9933 = vrcp.f32 %v1457_v23 }
 0x4dc   :  { %v9930_v25 = vpop.eup %9929 }
 0x4dd   :  { %v9932_v34 = vpop.eup %9931  ;;  %v1461_v4 = vmul.f32 %v9930_v25, %v9928_v33  ;;  %v473_v33 = vadd.f32 %v14118_v18, %v11080_v62  ;;  %v14119_v25 = vld [vmem:[#allocation28_spill] sm:$0xff] }
 0x4de   :  { %v1460_v21 = vmul.f32 %v9932_v34, %v11266_v22  ;;  %v9934_v53 = vpop.eup %9933  ;;  %v572_v34 = vadd.f32 %v14119_v25, %v11083_v6 }
 0x4e0   :  { %v11322_v5 = vadd.f32 %v1461_v4, %v1460_v21  ;;  %v14120_v4 = vld [vmem:[#allocation29_spill] sm:$0xff]  ;;  %v14121_v21 = vld [vmem:[#allocation30_spill] sm:$0xff] }
 0x4e1   :  { %v475_v23 = vadd.f32 %v14120_v4, %v11086_v10 }
 0x4e2   :  { %9935 = vtanh.f32 %v11322_v5 }
 0x4ec   :  { %v9936_v8 = vpop.eup %9935 }
 0x4ed   :  { %v1464_v9 = vmul.f32 %v9936_v8, %v9934_v53  ;;  %v574_v53 = vadd.f32 %v14121_v21, %v11089_v30 }
 0x4ef   :  { %v1466_v44 = vcombine.high %v1464_v9, %v1464_v9  ;;  %v1473_v31 = vrot.slane %v1464_v9, %v11103_v35  ;;  %v1531_v27 = vpack.c.bf16 %v1464_v9, %v1464_v9 }
 0x4f1   :  { %v1480_v19 = vrot.slane %v1466_v44, %v11103_v35  ;;  %v1481_v12 = vcombine.high %v1473_v31, %v1473_v31  ;;  %v1489_v13 = vrot.slane %v1473_v31, %v11103_v35  ;;  %8673 = vst.sshfl [vmem:[#allocation2 + $0x3] sm:$0x1 pattern:$0x73625140] %v1473_v31  ;;  %1565 = vmatmul.mubr.bf16.vlgmr.msra.gmra.mrb[48].mxu0 %v1531_v27 }
 0x4f2   :  { %1606 = vmatmul.mubr.bf16.vlgmr.msra.gmra.mrb[48].mxu1 %v1531_v27  ;;  %1710 = vmatpush1.bf16.msra.mxu0 %v11164_v24 }
 0x4f3   :  { %1751 = vmatpush1.bf16.msra.mxu1 %v11167_v11  ;;  %v1482_v22 = vcombine.high %v1480_v19, %v1480_v19  ;;  %v1496_v20 = vrot.slane %v1480_v19, %v11103_v35  ;;  %v1503_v14 = vrot.slane %v1481_v12, %v11103_v35  ;;  %v1511_v28 = vcombine.high %v1489_v13, %v1489_v13 }
 0x4f4   :  { %8674 = vst.sshfl [vmem:[#allocation2 + $0x13] sm:$0x1 pattern:$0x73625140] %v1481_v12  ;;  %1711 = vmatprep.subr.bf16.mxu0 %v11172_v32  ;;  %1752 = vmatprep.subr.bf16.mxu1 %v11175_v29 }
 0x4f5   :  { %8675 = vst.sshfl [vmem:[#allocation2 + $0x43] sm:$0x1 pattern:$0x73625140] %v1480_v19  ;;  %1741 = vmatprep.mubr.bf16.mxu0 %v14111_v0  ;;  %v1510_v26 = vrot.slane %v1482_v22, %v11103_v35  ;;  %v1512_v42 = vcombine.high %v1496_v20, %v1496_v20  ;;  %v1513_v17 = vcombine.high %v1503_v14, %v1503_v14  ;;  %1525 = vst [vmem:[#allocation2 + $0x23] sm:$0x1] %v1511_v28 }
 0x4f6   :  { %8676 = vst.sshfl [vmem:[#allocation2 + $0x53] sm:$0x1 pattern:$0x73625140] %v1482_v22  ;;  %1782 = vmatprep.mubr.bf16.mxu1 %v14111_v0  ;;  %1712 = vmatpush1.bf16.msra.mxu0 %v11181_v40 }
 0x4f7   :  { %1753 = vmatpush1.bf16.msra.mxu1 %v11184_v41  ;;  %v1514_v16 = vcombine.high %v1510_v26, %v1510_v26  ;;  %1526 = vst [vmem:[#allocation2 + $0x33] sm:$0x1] %v1513_v17  ;;  %1529 = vst [vmem:[#allocation2 + $0x63] sm:$0x1] %v1512_v42  ;;  %1713 = vmatprep.subr.bf16.mxu0 %v11187_v43 }
 0x4f8   :  { %1754 = vmatprep.subr.bf16.mxu1 %v11190_v45 }
 0x4f9   :  { %1530 = vst [vmem:[#allocation2 + $0x73] sm:$0x1] %v1514_v16 }
 0x4fa   :  { %1714 = vmatpush1.bf16.msra.mxu0 %v11193_v46 }
 0x4fb   :  { %1755 = vmatpush1.bf16.msra.mxu1 %v11196_v47  ;;  %1715 = vmatprep.subr.bf16.mxu0 %v11199_v48 }
 0x4fc   :  { %1756 = vmatprep.subr.bf16.mxu1 %v11202_v49 }
 0x4fe   :  { %1716 = vmatpush1.bf16.msra.mxu0 %v11205_v50 }
 0x4ff   :  { %1757 = vmatpush1.bf16.msra.mxu1 %v11208_v51  ;;  %1717 = vmatprep.subr.bf16.mxu0 %v11211_v52 }
 0x500   :  { %1758 = vmatprep.subr.bf16.mxu1 %v11214_v54 }
 0x502   :  { %1718 = vmatpush1.bf16.msra.mxu0 %v11217_v55 }
 0x503   :  { %1759 = vmatpush1.bf16.msra.mxu1 %v11220_v56  ;;  %1719 = vmatprep.subr.bf16.mxu0 %v11223_v57 }
 0x504   :  { %1760 = vmatprep.subr.bf16.mxu1 %v11226_v58 }
 0x506   :  { %1720 = vmatpush1.bf16.msra.mxu0 %v11229_v59 }
 0x507   :  { %1761 = vmatpush1.bf16.msra.mxu1 %v11232_v60  ;;  %1721 = vmatprep.subr.bf16.mxu0 %v11235_v61 }
 0x508   :  { %1762 = vmatprep.subr.bf16.mxu1 %v11238_v63 }
 0x50a   :  { %1722 = vmatpush1.bf16.msra.mxu0 %v11241_v1 }
 0x50b   :  { %1763 = vmatpush1.bf16.msra.mxu1 %v11244_v2  ;;  %1723 = vmatprep.subr.bf16.mxu0 %v11247_v3 }
 0x50c   :  { %1764 = vmatprep.subr.bf16.mxu1 %v11250_v15 }
 0x50e   :  { %1724 = vmatpush1.bf16.msra.mxu0 %v11305_v36 }
 0x50f   :  { %1765 = vmatpush1.bf16.msra.mxu1 %v11308_v37  ;;  %1886 = vmatprep.subr.bf16.mxu0 %v11143_v38 }
 0x510   :  { %1927 = vmatprep.subr.bf16.mxu1 %v11146_v39 }
 0x5c4   :  { %v1566_v8 = vpop.f32.mrb[48].mxu0 }
 0x5c5   :  { %v1607_v9 = vpop.f32.mrb[48].mxu1  ;;  %v1614_v44 = vadd.f32 %v1566_v8, %v473_v33  ;;  %v1568_v27 = vpop.f32.mrb[49].mxu0 }
 0x5c6   :  { %v1616_v31 = vadd.f32 %v1607_v9, %v572_v34  ;;  %v1609_v19 = vpop.f32.mrb[49].mxu1  ;;  %v1615_v12 = vadd.f32 %v1568_v27, %v475_v23  ;;  %v1570_v22 = vpop.f32.mrb[50].mxu0 }
 0x5c7   :  { %v1617_v13 = vadd.f32 %v1609_v19, %v574_v53  ;;  %v1611_v20 = vpop.f32.mrb[50].mxu1  ;;  %v8677_v14 = vmul.f32 -1.442695, %v1614_v44  ;;  %v1571_v28 = vpop.f32.mrb[51].mxu0 }
 0x5c8   :  { %v1612_v26 = vpop.f32.mrb[51].mxu1  ;;  %v8678_v42 = vmul.f32 -1.442695, %v1615_v12 }
 0x5c9   :  { %9937 = vpow2.f32 %v8677_v14  ;;  %v8679_v17 = vmul.f32 -1.442695, %v1617_v13 }
 0x5ca   :  { %9939 = vpow2.f32 %v8678_v42 }
 0x5cb   :  { %9941 = vpow2.f32 %v8679_v17 }
 0x5cc   :  { %9943 = vtanh.f32 %v1616_v31 }
 0x5d3   :  { %v9938_v16 = vpop.eup %9937 }
 0x5d4   :  { %v9940_v18 = vpop.eup %9939  ;;  %v1621_v25 = vadd.f32 1.0, %v9938_v16 }
 0x5d5   :  { %v1627_v33 = vadd.f32 1.0, %v9940_v18  ;;  %v9942_v34 = vpop.eup %9941 }
 0x5d6   :  { %9945 = vrcp.f32 %v1621_v25  ;;  %v9944_v4 = vpop.eup %9943  ;;  %v1634_v8 = vadd.f32 1.0, %v9942_v34  ;;  %v14122_v34 = vld [vmem:[#allocation31_spill] sm:$0xff] }
 0x5d7   :  { %9947 = vrcp.f32 %v1627_v33 }
 0x5d8   :  { %9949 = vrcp.f32 %v1634_v8 }
 0x5e0   :  { %v9946_v23 = vpop.eup %9945 }
 0x5e1   :  { %v9948_v21 = vpop.eup %9947  ;;  %v1638_v53 = vmul.f32 %v9946_v23, %v9944_v4  ;;  %v477_v4 = vadd.f32 %v14122_v34, %v11080_v62  ;;  %v14123_v23 = vld [vmem:[#allocation32_spill] sm:$0xff] }
 0x5e2   :  { %v1637_v9 = vmul.f32 %v9948_v21, %v11322_v5  ;;  %v9950_v27 = vpop.eup %9949  ;;  %v576_v21 = vadd.f32 %v14123_v23, %v11083_v6 }
 0x5e4   :  { %v11374_v44 = vadd.f32 %v1638_v53, %v1637_v9  ;;  %v14124_v53 = vld [vmem:[#allocation33_spill] sm:$0xff]  ;;  %v14125_v9 = vld [vmem:[#allocation34_spill] sm:$0xff] }
 0x5e5   :  { %v479_v8 = vadd.f32 %v14124_v53, %v11086_v10 }
 0x5e6   :  { %9951 = vtanh.f32 %v11374_v44 }
 0x5f0   :  { %v9952_v19 = vpop.eup %9951 }
 0x5f1   :  { %v1641_v12 = vmul.f32 %v9952_v19, %v9950_v27  ;;  %v578_v27 = vadd.f32 %v14125_v9, %v11089_v30 }
 0x5f3   :  { %v1643_v31 = vcombine.high %v1641_v12, %v1641_v12  ;;  %v1650_v13 = vrot.slane %v1641_v12, %v11103_v35  ;;  %v1708_v22 = vpack.c.bf16 %v1641_v12, %v1641_v12 }
 0x5f5   :  { %v1657_v20 = vrot.slane %v1643_v31, %v11103_v35  ;;  %v1658_v14 = vcombine.high %v1650_v13, %v1650_v13  ;;  %v1666_v28 = vrot.slane %v1650_v13, %v11103_v35  ;;  %8680 = vst.sshfl [vmem:[#allocation2 + $0x4] sm:$0x1 pattern:$0x73625140] %v1650_v13  ;;  %1742 = vmatmul.mubr.bf16.vlgmr.msra.gmra.mrb[52].mxu0 %v1708_v22 }
 0x5f6   :  { %1783 = vmatmul.mubr.bf16.vlgmr.msra.gmra.mrb[52].mxu1 %v1708_v22  ;;  %1887 = vmatpush1.bf16.msra.mxu0 %v11164_v24 }
 0x5f7   :  { %1928 = vmatpush1.bf16.msra.mxu1 %v11167_v11  ;;  %v1659_v5 = vcombine.high %v1657_v20, %v1657_v20  ;;  %v1673_v26 = vrot.slane %v1657_v20, %v11103_v35  ;;  %v1680_v42 = vrot.slane %v1658_v14, %v11103_v35  ;;  %v1688_v17 = vcombine.high %v1666_v28, %v1666_v28 }
 0x5f8   :  { %8681 = vst.sshfl [vmem:[#allocation2 + $0x14] sm:$0x1 pattern:$0x73625140] %v1658_v14  ;;  %1888 = vmatprep.subr.bf16.mxu0 %v11172_v32  ;;  %1929 = vmatprep.subr.bf16.mxu1 %v11175_v29 }
 0x5f9   :  { %8682 = vst.sshfl [vmem:[#allocation2 + $0x44] sm:$0x1 pattern:$0x73625140] %v1657_v20  ;;  %1918 = vmatprep.mubr.bf16.mxu0 %v14111_v0  ;;  %v1687_v16 = vrot.slane %v1659_v5, %v11103_v35  ;;  %v1689_v18 = vcombine.high %v1673_v26, %v1673_v26  ;;  %v1690_v25 = vcombine.high %v1680_v42, %v1680_v42  ;;  %1702 = vst [vmem:[#allocation2 + $0x24] sm:$0x1] %v1688_v17 }
 0x5fa   :  { %8683 = vst.sshfl [vmem:[#allocation2 + $0x54] sm:$0x1 pattern:$0x73625140] %v1659_v5  ;;  %1959 = vmatprep.mubr.bf16.mxu1 %v14111_v0  ;;  %1889 = vmatpush1.bf16.msra.mxu0 %v11181_v40 }
 0x5fb   :  { %1930 = vmatpush1.bf16.msra.mxu1 %v11184_v41  ;;  %v1691_v33 = vcombine.high %v1687_v16, %v1687_v16  ;;  %1703 = vst [vmem:[#allocation2 + $0x34] sm:$0x1] %v1690_v25  ;;  %1706 = vst [vmem:[#allocation2 + $0x64] sm:$0x1] %v1689_v18  ;;  %1890 = vmatprep.subr.bf16.mxu0 %v11187_v43 }
 0x5fc   :  { %1931 = vmatprep.subr.bf16.mxu1 %v11190_v45 }
 0x5fd   :  { %1707 = vst [vmem:[#allocation2 + $0x74] sm:$0x1] %v1691_v33 }
 0x5fe   :  { %1891 = vmatpush1.bf16.msra.mxu0 %v11193_v46 }
 0x5ff   :  { %1932 = vmatpush1.bf16.msra.mxu1 %v11196_v47  ;;  %1892 = vmatprep.subr.bf16.mxu0 %v11199_v48 }
 0x600   :  { %1933 = vmatprep.subr.bf16.mxu1 %v11202_v49 }
 0x602   :  { %1893 = vmatpush1.bf16.msra.mxu0 %v11205_v50 }
 0x603   :  { %1934 = vmatpush1.bf16.msra.mxu1 %v11208_v51  ;;  %1894 = vmatprep.subr.bf16.mxu0 %v11211_v52 }
 0x604   :  { %1935 = vmatprep.subr.bf16.mxu1 %v11214_v54 }
 0x606   :  { %1895 = vmatpush1.bf16.msra.mxu0 %v11217_v55 }
 0x607   :  { %1936 = vmatpush1.bf16.msra.mxu1 %v11220_v56  ;;  %1896 = vmatprep.subr.bf16.mxu0 %v11223_v57 }
 0x608   :  { %1937 = vmatprep.subr.bf16.mxu1 %v11226_v58 }
 0x60a   :  { %1897 = vmatpush1.bf16.msra.mxu0 %v11229_v59 }
 0x60b   :  { %1938 = vmatpush1.bf16.msra.mxu1 %v11232_v60  ;;  %1898 = vmatprep.subr.bf16.mxu0 %v11235_v61 }
 0x60c   :  { %1939 = vmatprep.subr.bf16.mxu1 %v11238_v63 }
 0x60e   :  { %1899 = vmatpush1.bf16.msra.mxu0 %v11241_v1 }
 0x60f   :  { %1940 = vmatpush1.bf16.msra.mxu1 %v11244_v2  ;;  %1900 = vmatprep.subr.bf16.mxu0 %v11247_v3 }
 0x610   :  { %1941 = vmatprep.subr.bf16.mxu1 %v11250_v15 }
 0x612   :  { %1901 = vmatpush1.bf16.msra.mxu0 %v11305_v36 }
 0x613   :  { %1942 = vmatpush1.bf16.msra.mxu1 %v11308_v37  ;;  %2063 = vmatprep.subr.bf16.mxu0 %v11143_v38 }
 0x614   :  { %2104 = vmatprep.subr.bf16.mxu1 %v11146_v39 }
 0x6c8   :  { %v1743_v19 = vpop.f32.mrb[52].mxu0 }
 0x6c9   :  { %v1784_v12 = vpop.f32.mrb[52].mxu1  ;;  %v1791_v31 = vadd.f32 %v1743_v19, %v477_v4  ;;  %v1745_v22 = vpop.f32.mrb[53].mxu0 }
 0x6ca   :  { %v1793_v13 = vadd.f32 %v1784_v12, %v576_v21  ;;  %v1786_v20 = vpop.f32.mrb[53].mxu1  ;;  %v1792_v14 = vadd.f32 %v1745_v22, %v479_v8  ;;  %v1747_v5 = vpop.f32.mrb[54].mxu0 }
 0x6cb   :  { %v1794_v28 = vadd.f32 %v1786_v20, %v578_v27  ;;  %v1788_v26 = vpop.f32.mrb[54].mxu1  ;;  %v8684_v42 = vmul.f32 -1.442695, %v1791_v31  ;;  %v1748_v17 = vpop.f32.mrb[55].mxu0 }
 0x6cc   :  { %v1789_v16 = vpop.f32.mrb[55].mxu1  ;;  %v8685_v18 = vmul.f32 -1.442695, %v1792_v14 }
 0x6cd   :  { %9953 = vpow2.f32 %v8684_v42  ;;  %v8686_v25 = vmul.f32 -1.442695, %v1794_v28 }
 0x6ce   :  { %9955 = vpow2.f32 %v8685_v18 }
 0x6cf   :  { %9957 = vpow2.f32 %v8686_v25 }
 0x6d0   :  { %9959 = vtanh.f32 %v1793_v13 }
 0x6d7   :  { %v9954_v33 = vpop.eup %9953 }
 0x6d8   :  { %v9956_v34 = vpop.eup %9955  ;;  %v1798_v23 = vadd.f32 1.0, %v9954_v33 }
 0x6d9   :  { %v1804_v4 = vadd.f32 1.0, %v9956_v34  ;;  %v9958_v21 = vpop.eup %9957 }
 0x6da   :  { %9961 = vrcp.f32 %v1798_v23  ;;  %v9960_v53 = vpop.eup %9959  ;;  %v1811_v19 = vadd.f32 1.0, %v9958_v21  ;;  %v14126_v21 = vld [vmem:[#allocation35_spill] sm:$0xff] }
 0x6db   :  { %9963 = vrcp.f32 %v1804_v4 }
 0x6dc   :  { %9965 = vrcp.f32 %v1811_v19 }
 0x6e4   :  { %v9962_v8 = vpop.eup %9961 }
 0x6e5   :  { %v9964_v9 = vpop.eup %9963  ;;  %v1815_v27 = vmul.f32 %v9962_v8, %v9960_v53  ;;  %v483_v53 = vadd.f32 %v14126_v21, %v11080_v62  ;;  %v14127_v8 = vld [vmem:[#allocation36_spill] sm:$0xff] }
 0x6e6   :  { %v1814_v12 = vmul.f32 %v9964_v9, %v11374_v44  ;;  %v9966_v22 = vpop.eup %9965  ;;  %v582_v9 = vadd.f32 %v14127_v8, %v11083_v6 }
 0x6e8   :  { %v11426_v31 = vadd.f32 %v1815_v27, %v1814_v12  ;;  %v14128_v27 = vld [vmem:[#allocation37_spill] sm:$0xff]  ;;  %v14129_v12 = vld [vmem:[#allocation38_spill] sm:$0xff] }
 0x6e9   :  { %v485_v19 = vadd.f32 %v14128_v27, %v11086_v10 }
 0x6ea   :  { %9967 = vtanh.f32 %v11426_v31 }
 0x6f4   :  { %v9968_v20 = vpop.eup %9967 }
 0x6f5   :  { %v1818_v14 = vmul.f32 %v9968_v20, %v9966_v22  ;;  %v584_v22 = vadd.f32 %v14129_v12, %v11089_v30 }
 0x6f7   :  { %v1820_v13 = vcombine.high %v1818_v14, %v1818_v14  ;;  %v1827_v28 = vrot.slane %v1818_v14, %v11103_v35  ;;  %v1885_v5 = vpack.c.bf16 %v1818_v14, %v1818_v14 }
 0x6f9   :  { %v1834_v26 = vrot.slane %v1820_v13, %v11103_v35  ;;  %v1835_v42 = vcombine.high %v1827_v28, %v1827_v28  ;;  %v1843_v17 = vrot.slane %v1827_v28, %v11103_v35  ;;  %8687 = vst.sshfl [vmem:[#allocation2 + $0x5] sm:$0x1 pattern:$0x73625140] %v1827_v28  ;;  %1919 = vmatmul.mubr.bf16.vlgmr.msra.gmra.mrb[56].mxu0 %v1885_v5 }
 0x6fa   :  { %1960 = vmatmul.mubr.bf16.vlgmr.msra.gmra.mrb[56].mxu1 %v1885_v5  ;;  %2064 = vmatpush1.bf16.msra.mxu0 %v11164_v24 }
 0x6fb   :  { %2105 = vmatpush1.bf16.msra.mxu1 %v11167_v11  ;;  %v1836_v44 = vcombine.high %v1834_v26, %v1834_v26  ;;  %v1850_v16 = vrot.slane %v1834_v26, %v11103_v35  ;;  %v1857_v18 = vrot.slane %v1835_v42, %v11103_v35  ;;  %v1865_v25 = vcombine.high %v1843_v17, %v1843_v17 }
 0x6fc   :  { %8688 = vst.sshfl [vmem:[#allocation2 + $0x15] sm:$0x1 pattern:$0x73625140] %v1835_v42  ;;  %2065 = vmatprep.subr.bf16.mxu0 %v11172_v32  ;;  %2106 = vmatprep.subr.bf16.mxu1 %v11175_v29 }
 0x6fd   :  { %8689 = vst.sshfl [vmem:[#allocation2 + $0x45] sm:$0x1 pattern:$0x73625140] %v1834_v26  ;;  %2095 = vmatprep.mubr.bf16.mxu0 %v14111_v0  ;;  %v1864_v33 = vrot.slane %v1836_v44, %v11103_v35  ;;  %v1866_v34 = vcombine.high %v1850_v16, %v1850_v16  ;;  %v1867_v23 = vcombine.high %v1857_v18, %v1857_v18  ;;  %1879 = vst [vmem:[#allocation2 + $0x25] sm:$0x1] %v1865_v25 }
 0x6fe   :  { %8690 = vst.sshfl [vmem:[#allocation2 + $0x55] sm:$0x1 pattern:$0x73625140] %v1836_v44  ;;  %2136 = vmatprep.mubr.bf16.mxu1 %v14111_v0  ;;  %2066 = vmatpush1.bf16.msra.mxu0 %v11181_v40 }
 0x6ff   :  { %2107 = vmatpush1.bf16.msra.mxu1 %v11184_v41  ;;  %v1868_v4 = vcombine.high %v1864_v33, %v1864_v33  ;;  %1880 = vst [vmem:[#allocation2 + $0x35] sm:$0x1] %v1867_v23  ;;  %1883 = vst [vmem:[#allocation2 + $0x65] sm:$0x1] %v1866_v34  ;;  %2067 = vmatprep.subr.bf16.mxu0 %v11187_v43 }
 0x700   :  { %2108 = vmatprep.subr.bf16.mxu1 %v11190_v45 }
 0x701   :  { %1884 = vst [vmem:[#allocation2 + $0x75] sm:$0x1] %v1868_v4 }
 0x702   :  { %2068 = vmatpush1.bf16.msra.mxu0 %v11193_v46 }
 0x703   :  { %2109 = vmatpush1.bf16.msra.mxu1 %v11196_v47  ;;  %2069 = vmatprep.subr.bf16.mxu0 %v11199_v48 }
 0x704   :  { %2110 = vmatprep.subr.bf16.mxu1 %v11202_v49 }
 0x706   :  { %2070 = vmatpush1.bf16.msra.mxu0 %v11205_v50 }
 0x707   :  { %2111 = vmatpush1.bf16.msra.mxu1 %v11208_v51  ;;  %2071 = vmatprep.subr.bf16.mxu0 %v11211_v52 }
 0x708   :  { %2112 = vmatprep.subr.bf16.mxu1 %v11214_v54 }
 0x70a   :  { %2072 = vmatpush1.bf16.msra.mxu0 %v11217_v55 }
 0x70b   :  { %2113 = vmatpush1.bf16.msra.mxu1 %v11220_v56  ;;  %2073 = vmatprep.subr.bf16.mxu0 %v11223_v57 }
 0x70c   :  { %2114 = vmatprep.subr.bf16.mxu1 %v11226_v58 }
 0x70e   :  { %2074 = vmatpush1.bf16.msra.mxu0 %v11229_v59 }
 0x70f   :  { %2115 = vmatpush1.bf16.msra.mxu1 %v11232_v60  ;;  %2075 = vmatprep.subr.bf16.mxu0 %v11235_v61 }
 0x710   :  { %2116 = vmatprep.subr.bf16.mxu1 %v11238_v63 }
 0x712   :  { %2076 = vmatpush1.bf16.msra.mxu0 %v11241_v1 }
 0x713   :  { %2117 = vmatpush1.bf16.msra.mxu1 %v11244_v2  ;;  %2077 = vmatprep.subr.bf16.mxu0 %v11247_v3 }
 0x714   :  { %2118 = vmatprep.subr.bf16.mxu1 %v11250_v15 }
 0x716   :  { %2078 = vmatpush1.bf16.msra.mxu0 %v11305_v36 }
 0x717   :  { %2119 = vmatpush1.bf16.msra.mxu1 %v11308_v37  ;;  %2240 = vmatprep.subr.bf16.mxu0 %v11143_v38 }
 0x718   :  { %2281 = vmatprep.subr.bf16.mxu1 %v11146_v39 }
 0x7cc   :  { %v1920_v20 = vpop.f32.mrb[56].mxu0 }
 0x7cd   :  { %v1961_v14 = vpop.f32.mrb[56].mxu1  ;;  %v1968_v13 = vadd.f32 %v1920_v20, %v483_v53  ;;  %v1922_v5 = vpop.f32.mrb[57].mxu0 }
 0x7ce   :  { %v1970_v28 = vadd.f32 %v1961_v14, %v582_v9  ;;  %v1963_v38 = vpop.f32.mrb[57].mxu1  ;;  %v1969_v26 = vadd.f32 %v1922_v5, %v485_v19  ;;  %v1924_v42 = vpop.f32.mrb[58].mxu0 }
 0x7cf   :  { %v1971_v39 = vadd.f32 %v1963_v38, %v584_v22  ;;  %v1965_v17 = vpop.f32.mrb[58].mxu1  ;;  %v8691_v44 = vmul.f32 -1.442695, %v1968_v13  ;;  %v1925_v16 = vpop.f32.mrb[59].mxu0 }
 0x7d0   :  { %v1966_v18 = vpop.f32.mrb[59].mxu1  ;;  %v8692_v25 = vmul.f32 -1.442695, %v1969_v26 }
 0x7d1   :  { %9969 = vpow2.f32 %v8691_v44  ;;  %v8693_v33 = vmul.f32 -1.442695, %v1971_v39 }
 0x7d2   :  { %9971 = vpow2.f32 %v8692_v25 }
 0x7d3   :  { %9973 = vpow2.f32 %v8693_v33 }
 0x7d4   :  { %9975 = vtanh.f32 %v1970_v28 }
 0x7db   :  { %v9970_v34 = vpop.eup %9969 }
 0x7dc   :  { %v9972_v23 = vpop.eup %9971  ;;  %v1975_v4 = vadd.f32 1.0, %v9970_v34 }
 0x7dd   :  { %v1981_v21 = vadd.f32 1.0, %v9972_v23  ;;  %v9974_v53 = vpop.eup %9973 }
 0x7de   :  { %9977 = vrcp.f32 %v1975_v4  ;;  %v9976_v8 = vpop.eup %9975  ;;  %v1988_v12 = vadd.f32 1.0, %v9974_v53 }
 0x7df   :  { %9979 = vrcp.f32 %v1981_v21 }
 0x7e0   :  { %9981 = vrcp.f32 %v1988_v12 }
 0x7e8   :  { %v9978_v9 = vpop.eup %9977 }
 0x7e9   :  { %v9980_v27 = vpop.eup %9979  ;;  %v1992_v19 = vmul.f32 %v9978_v9, %v9976_v8 }
 0x7ea   :  { %v1991_v22 = vmul.f32 %v9980_v27, %v11426_v31  ;;  %v9982_v14 = vpop.eup %9981 }
 0x7ec   :  { %v11478_v20 = vadd.f32 %v1992_v19, %v1991_v22 }
 0x7ee   :  { %9983 = vtanh.f32 %v11478_v20 }
 0x7f8   :  { %v9984_v13 = vpop.eup %9983 }
 0x7f9   :  { %v1995_v5 = vmul.f32 %v9984_v13, %v9982_v14 }
 0x7fb   :  { %v1997_v28 = vcombine.high %v1995_v5, %v1995_v5  ;;  %v2004_v38 = vrot.slane %v1995_v5, %v11103_v35  ;;  %v2062_v26 = vpack.c.bf16 %v1995_v5, %v1995_v5 }
 0x7fd   :  { %v2011_v39 = vrot.slane %v1997_v28, %v11103_v35  ;;  %v2012_v42 = vcombine.high %v2004_v38, %v2004_v38  ;;  %v2020_v17 = vrot.slane %v2004_v38, %v11103_v35  ;;  %8694 = vst.sshfl [vmem:[#allocation2 + $0x6] sm:$0x1 pattern:$0x73625140] %v2004_v38  ;;  %2096 = vmatmul.mubr.bf16.vlgmr.msra.gmra.mrb[60].mxu0 %v2062_v26 }
 0x7fe   :  { %2137 = vmatmul.mubr.bf16.vlgmr.msra.gmra.mrb[60].mxu1 %v2062_v26  ;;  %2241 = vmatpush1.bf16.msra.mxu0 %v11164_v24 }
 0x7ff   :  { %2282 = vmatpush1.bf16.msra.mxu1 %v11167_v11  ;;  %v2013_v31 = vcombine.high %v2011_v39, %v2011_v39  ;;  %v2027_v44 = vrot.slane %v2011_v39, %v11103_v35  ;;  %v2034_v16 = vrot.slane %v2012_v42, %v11103_v35  ;;  %v2042_v18 = vcombine.high %v2020_v17, %v2020_v17 }
 0x800   :  { %8695 = vst.sshfl [vmem:[#allocation2 + $0x16] sm:$0x1 pattern:$0x73625140] %v2012_v42  ;;  %2242 = vmatprep.subr.bf16.mxu0 %v11172_v32  ;;  %2283 = vmatprep.subr.bf16.mxu1 %v11175_v29  ;;  %v14130_v32 = vld [vmem:[#allocation39_spill] sm:$0xff] }
 0x801   :  { %8696 = vst.sshfl [vmem:[#allocation2 + $0x46] sm:$0x1 pattern:$0x73625140] %v2011_v39  ;;  %2272 = vmatprep.mubr.bf16.mxu0 %v14111_v0  ;;  %v2041_v25 = vrot.slane %v2013_v31, %v11103_v35  ;;  %v2043_v33 = vcombine.high %v2027_v44, %v2027_v44  ;;  %v2044_v24 = vcombine.high %v2034_v16, %v2034_v16  ;;  %2056 = vst [vmem:[#allocation2 + $0x26] sm:$0x1] %v2042_v18 }
 0x802   :  { %8697 = vst.sshfl [vmem:[#allocation2 + $0x56] sm:$0x1 pattern:$0x73625140] %v2013_v31  ;;  %2313 = vmatprep.mubr.bf16.mxu1 %v14111_v0  ;;  %2243 = vmatpush1.bf16.msra.mxu0 %v11181_v40  ;;  %v487_v29 = vadd.f32 %v14130_v32, %v11080_v62  ;;  %v14131_v40 = vld [vmem:[#allocation40_spill] sm:$0xff] }
 0x803   :  { %2284 = vmatpush1.bf16.msra.mxu1 %v11184_v41  ;;  %v2045_v11 = vcombine.high %v2041_v25, %v2041_v25  ;;  %2057 = vst [vmem:[#allocation2 + $0x36] sm:$0x1] %v2044_v24  ;;  %2060 = vst [vmem:[#allocation2 + $0x66] sm:$0x1] %v2043_v33  ;;  %2244 = vmatprep.subr.bf16.mxu0 %v11187_v43  ;;  %v586_v41 = vadd.f32 %v14131_v40, %v11083_v6  ;;  %v14132_v43 = vld [vmem:[#allocation41_spill] sm:$0xff] }
 0x804   :  { %2285 = vmatprep.subr.bf16.mxu1 %v11190_v45  ;;  %v489_v45 = vadd.f32 %v14132_v43, %v11086_v10  ;;  %v9739_v18 = vld [vmem:[#allocation11 + $0x4] ss:$12 sps:$4 sm:$0xff]   ;;  %v9737_v25 = vld [vmem:[#allocation11] ss:$12 sps:$4 sm:$0xff]   ;;  %v9740_v33 = vld [vmem:[#allocation11 + $0x8] ss:$12 sps:$4 sm:$0xff]  }
 0x805   :  { %2061 = vst [vmem:[#allocation2 + $0x76] sm:$0x1] %v2045_v11  ;;  %v9743_v24 = vld [vmem:[#allocation11 + $0x1c] ss:$12 sps:$4 sm:$0xff]   ;;  %v9741_v11 = vld [vmem:[#allocation11 + $0x18] ss:$12 sps:$4 sm:$0xff]  }
 0x806   :  { %2245 = vmatpush1.bf16.msra.mxu0 %v11193_v46  ;;  %v14133_v46 = vld [vmem:[#allocation42_spill] sm:$0xff]  ;;  %v9744_v32 = vld [vmem:[#allocation11 + $0x20] ss:$12 sps:$4 sm:$0xff]  }
 0x807   :  { %2286 = vmatpush1.bf16.msra.mxu1 %v11196_v47  ;;  %2246 = vmatprep.subr.bf16.mxu0 %v11199_v48  ;;  %v588_v47 = vadd.f32 %v14133_v46, %v11089_v30  ;;  %v9745_v40 = vld [vmem:[#allocation11 + $0x30] ss:$12 sps:$4 sm:$0xff]   ;;  %v9751_v43 = vld [vmem:[#allocation11 + $0x4c] ss:$12 sps:$4 sm:$0xff]  }
 0x808   :  { %2287 = vmatprep.subr.bf16.mxu1 %v11202_v49  ;;  %v9752_v46 = vld [vmem:[#allocation11 + $0x50] ss:$12 sps:$4 sm:$0xff]  }
 0x80a   :  { %2247 = vmatpush1.bf16.msra.mxu0 %v11205_v50 }
 0x80b   :  { %2288 = vmatpush1.bf16.msra.mxu1 %v11208_v51  ;;  %2248 = vmatprep.subr.bf16.mxu0 %v11211_v52 }
 0x80c   :  { %2289 = vmatprep.subr.bf16.mxu1 %v11214_v54 }
 0x80e   :  { %2249 = vmatpush1.bf16.msra.mxu0 %v11217_v55 }
 0x80f   :  { %2290 = vmatpush1.bf16.msra.mxu1 %v11220_v56  ;;  %2250 = vmatprep.subr.bf16.mxu0 %v11223_v57 }
 0x810   :  { %2291 = vmatprep.subr.bf16.mxu1 %v11226_v58 }
 0x812   :  { %2251 = vmatpush1.bf16.msra.mxu0 %v11229_v59 }
 0x813   :  { %2292 = vmatpush1.bf16.msra.mxu1 %v11232_v60  ;;  %2252 = vmatprep.subr.bf16.mxu0 %v11235_v61 }
 0x814   :  { %2293 = vmatprep.subr.bf16.mxu1 %v11238_v63 }
 0x816   :  { %2253 = vmatpush1.bf16.msra.mxu0 %v11241_v1 }
 0x817   :  { %2294 = vmatpush1.bf16.msra.mxu1 %v11244_v2  ;;  %2254 = vmatprep.subr.bf16.mxu0 %v11247_v3 }
 0x818   :  { %2295 = vmatprep.subr.bf16.mxu1 %v11250_v15 }
 0x81a   :  { %2255 = vmatpush1.bf16.msra.mxu0 %v11305_v36 }
 0x81b   :  { %2296 = vmatpush1.bf16.msra.mxu1 %v11308_v37  ;;  %2633 = vmatprep.subr.bf16.mxu0 %v9739_v18 }
 0x81c   :  { %9065 = vmatprep.subr.bf16.mxu1 %v9740_v33 }
 0x8d0   :  { %v2097_v48 = vpop.f32.mrb[60].mxu0 }
 0x8d1   :  { %v2138_v49 = vpop.f32.mrb[60].mxu1  ;;  %v2145_v50 = vadd.f32 %v2097_v48, %v487_v29  ;;  %v2099_v52 = vpop.f32.mrb[61].mxu0  ;;  %v9747_v29 = vld [vmem:[#allocation11 + $0x34] ss:$12 sps:$4 sm:$0xff]  }
 0x8d2   :  { %v2147_v51 = vadd.f32 %v2138_v49, %v586_v41  ;;  %v2140_v54 = vpop.f32.mrb[61].mxu1  ;;  %v2146_v55 = vadd.f32 %v2099_v52, %v489_v45  ;;  %v2101_v57 = vpop.f32.mrb[62].mxu0  ;;  %v9748_v41 = vld [vmem:[#allocation11 + $0x38] ss:$12 sps:$4 sm:$0xff]   ;;  %v9749_v45 = vld [vmem:[#allocation11 + $0x48] ss:$12 sps:$4 sm:$0xff]  }
 0x8d3   :  { %v2148_v56 = vadd.f32 %v2140_v54, %v588_v47  ;;  %v2142_v58 = vpop.f32.mrb[62].mxu1  ;;  %v8698_v59 = vmul.f32 -1.442695, %v2145_v50  ;;  %v2102_v60 = vpop.f32.mrb[63].mxu0  ;;  %v9755_v47 = vld [vmem:[#allocation11 + $0x64] ss:$12 sps:$4 sm:$0xff]  }
 0x8d4   :  { %v2143_v61 = vpop.f32.mrb[63].mxu1  ;;  %v8699_v63 = vmul.f32 -1.442695, %v2146_v55  ;;  %v9753_v48 = vld [vmem:[#allocation11 + $0x60] ss:$12 sps:$4 sm:$0xff]  }
 0x8d5   :  { %9985 = vpow2.f32 %v8698_v59  ;;  %v8700_v1 = vmul.f32 -1.442695, %v2148_v56  ;;  %v9756_v49 = vld [vmem:[#allocation11 + $0x68] ss:$12 sps:$4 sm:$0xff]   ;;  %v9760_v52 = vld [vmem:[#allocation11 + $0x80] ss:$12 sps:$4 sm:$0xff]  }
 0x8d6   :  { %9987 = vpow2.f32 %v8699_v63  ;;  %v9759_v50 = vld [vmem:[#allocation11 + $0x7c] ss:$12 sps:$4 sm:$0xff]   ;;  %v9763_v54 = vld [vmem:[#allocation11 + $0x94] ss:$12 sps:$4 sm:$0xff]   ;;  %v9764_v56 = vld [vmem:[#allocation11 + $0x98] ss:$12 sps:$4 sm:$0xff]  }
 0x8d7   :  { %9989 = vpow2.f32 %v8700_v1  ;;  %v9761_v55 = vld [vmem:[#allocation11 + $0x90] ss:$12 sps:$4 sm:$0xff]   ;;  %v9767_v57 = vld [vmem:[#allocation11 + $0xac] ss:$12 sps:$4 sm:$0xff]   ;;  %v9765_v58 = vld [vmem:[#allocation11 + $0xa8] ss:$12 sps:$4 sm:$0xff]  }
 0x8d8   :  { %9991 = vtanh.f32 %v2147_v51  ;;  %v9757_v51 = vld [vmem:[#allocation11 + $0x78] ss:$12 sps:$4 sm:$0xff]   ;;  %v9768_v59 = vld [vmem:[#allocation11 + $0xb0] ss:$12 sps:$4 sm:$0xff]   ;;  %v11538_v60 = vld [vmem:[#allocation2 + $0x8] sm:$0xff] }
 0x8df   :  { %v9986_v2 = vpop.eup %9985 }
 0x8e0   :  { %v9988_v3 = vpop.eup %9987  ;;  %v2152_v15 = vadd.f32 1.0, %v9986_v2 }
 0x8e1   :  { %v2158_v36 = vadd.f32 1.0, %v9988_v3  ;;  %v9990_v37 = vpop.eup %9989 }
 0x8e2   :  { %9993 = vrcp.f32 %v2152_v15  ;;  %v9992_v34 = vpop.eup %9991  ;;  %v2165_v53 = vadd.f32 1.0, %v9990_v37 }
 0x8e3   :  { %9995 = vrcp.f32 %v2158_v36 }
 0x8e4   :  { %9997 = vrcp.f32 %v2165_v53 }
 0x8ec   :  { %v9994_v23 = vpop.eup %9993 }
 0x8ed   :  { %v9996_v4 = vpop.eup %9995  ;;  %v2169_v21 = vmul.f32 %v9994_v23, %v9992_v34 }
 0x8ee   :  { %v2168_v8 = vmul.f32 %v9996_v4, %v11478_v20  ;;  %v9998_v27 = vpop.eup %9997 }
 0x8f0   :  { %v11528_v9 = vadd.f32 %v2169_v21, %v2168_v8 }
 0x8f2   :  { %9999 = vtanh.f32 %v11528_v9 }
 0x8fc   :  { %v10000_v19 = vpop.eup %9999 }
 0x8fd   :  { %v2172_v12 = vmul.f32 %v10000_v19, %v9998_v27 }
 0x8ff   :  { %v2174_v22 = vcombine.high %v2172_v12, %v2172_v12  ;;  %v2181_v14 = vrot.slane %v2172_v12, %v11103_v35  ;;  %v2239_v13 = vpack.c.bf16 %v2172_v12, %v2172_v12 }
 0x901   :  { %v2188_v5 = vrot.slane %v2174_v22, %v11103_v35  ;;  %v2189_v28 = vcombine.high %v2181_v14, %v2181_v14  ;;  %v2197_v38 = vrot.slane %v2181_v14, %v11103_v35  ;;  %8701 = vst.sshfl [vmem:[#allocation2 + $0x7] sm:$0x1 pattern:$0x73625140] %v2181_v14  ;;  %2273 = vmatmul.mubr.bf16.vlgmr.msra.gmra.mrb[16].mxu0 %v2239_v13 }
 0x902   :  { %2314 = vmatmul.mubr.bf16.vlgmr.msra.gmra.mrb[16].mxu1 %v2239_v13  ;;  %2665 = vmatprep.mubr.bf16.mxu0 %v14111_v0 }
 0x903   :  { %v2190_v20 = vcombine.high %v2188_v5, %v2188_v5  ;;  %v2204_v26 = vrot.slane %v2188_v5, %v11103_v35  ;;  %v2211_v39 = vrot.slane %v2189_v28, %v11103_v35  ;;  %v2219_v42 = vcombine.high %v2197_v38, %v2197_v38  ;;  %8702 = vst.sshfl [vmem:[#allocation2 + $0x17] sm:$0x1 pattern:$0x73625140] %v2189_v28 }
 0x904   :  { %8703 = vst.sshfl [vmem:[#allocation2 + $0x47] sm:$0x1 pattern:$0x73625140] %v2188_v5  ;;  %2634 = vmatpush1.bf16.msra.mxu0 %v9737_v25  ;;  %9066 = vmatpush3.bf16.msra.mxu1 %v9740_v33 }
 0x905   :  { %v2218_v17 = vrot.slane %v2190_v20, %v11103_v35  ;;  %v2220_v31 = vcombine.high %v2204_v26, %v2204_v26  ;;  %v2221_v44 = vcombine.high %v2211_v39, %v2211_v39  ;;  %2233 = vst [vmem:[#allocation2 + $0x27] sm:$0x1] %v2219_v42  ;;  %8704 = vst.sshfl [vmem:[#allocation2 + $0x57] sm:$0x1 pattern:$0x73625140] %v2190_v20  ;;  %2635 = vmatprep.subr.bf16.mxu0 %v9743_v24 }
 0x906   :  { %9067 = vmatprep.subr.bf16.mxu1 %v9744_v32 }
 0x907   :  { %v2222_v16 = vcombine.high %v2218_v17, %v2218_v17  ;;  %2234 = vst [vmem:[#allocation2 + $0x37] sm:$0x1] %v2221_v44  ;;  %2237 = vst [vmem:[#allocation2 + $0x67] sm:$0x1] %v2220_v31 }
 0x908   :  { %2636 = vmatpush1.bf16.msra.mxu0 %v9741_v11  ;;  %9068 = vmatpush3.bf16.msra.mxu1 %v9744_v32 }
 0x909   :  { %2238 = vst [vmem:[#allocation2 + $0x77] sm:$0x1] %v2222_v16  ;;  %2637 = vmatprep.subr.bf16.mxu0 %v9747_v29  ;;  %9069 = vmatprep.subr.bf16.mxu1 %v9748_v41 }
 0x90c   :  { %2638 = vmatpush1.bf16.msra.mxu0 %v9745_v40  ;;  %9070 = vmatpush3.bf16.msra.mxu1 %v9748_v41  ;;  %v2416_v40 = vld [vmem:[#allocation2] sm:$0xff] }
 0x90d   :  { %2639 = vmatprep.subr.bf16.mxu0 %v9751_v43  ;;  %9071 = vmatprep.subr.bf16.mxu1 %v9752_v46 }
 0x910   :  { %2640 = vmatpush1.bf16.msra.mxu0 %v9749_v45  ;;  %9072 = vmatpush3.bf16.msra.mxu1 %v9752_v46  ;;  %v2418_v45 = vld [vmem:[#allocation2 + $0x10] sm:$0xff] }
 0x911   :  { %2641 = vmatprep.subr.bf16.mxu0 %v9755_v47  ;;  %9073 = vmatprep.subr.bf16.mxu1 %v9756_v49 }
 0x914   :  { %2642 = vmatpush1.bf16.msra.mxu0 %v9753_v48  ;;  %9074 = vmatpush3.bf16.msra.mxu1 %v9756_v49  ;;  %v2420_v48 = vld [vmem:[#allocation2 + $0x20] sm:$0xff] }
 0x915   :  { %2643 = vmatprep.subr.bf16.mxu0 %v9759_v50  ;;  %9075 = vmatprep.subr.bf16.mxu1 %v9760_v52 }
 0x918   :  { %2644 = vmatpush1.bf16.msra.mxu0 %v9757_v51  ;;  %9076 = vmatpush3.bf16.msra.mxu1 %v9760_v52  ;;  %v2422_v52 = vld [vmem:[#allocation2 + $0x30] sm:$0xff] }
 0x919   :  { %2645 = vmatprep.subr.bf16.mxu0 %v9763_v54  ;;  %9077 = vmatprep.subr.bf16.mxu1 %v9764_v56 }
 0x91c   :  { %2646 = vmatpush1.bf16.msra.mxu0 %v9761_v55  ;;  %9078 = vmatpush3.bf16.msra.mxu1 %v9764_v56  ;;  %v2424_v55 = vld [vmem:[#allocation2 + $0x40] sm:$0xff] }
 0x91d   :  { %2647 = vmatprep.subr.bf16.mxu0 %v9767_v57  ;;  %9079 = vmatprep.subr.bf16.mxu1 %v9768_v59 }
 0x920   :  { %2648 = vmatpush1.bf16.msra.mxu0 %v9765_v58  ;;  %9080 = vmatpush3.bf16.msra.mxu1 %v9768_v59  ;;  %v2426_v59 = vld [vmem:[#allocation2 + $0x50] sm:$0xff] }
 0x921   :  { %9121 = vmatprep.subr.bf16.mxu0 %v11538_v60  ;;  %9097 = vmatprep.subr.bf16.mxu1 %v11538_v60 }
 0x9d4   :  { %v2274_v61 = vpop.f32.mrb[16].mxu0 }
 0x9d5   :  { %v2315_v63 = vpop.f32.mrb[16].mxu1  ;;  %v9601_v1 = vadd.f32 %v2274_v61, %v11080_v62  ;;  %v2276_v2 = vpop.f32.mrb[17].mxu0 }
 0x9d6   :  { %v2317_v3 = vpop.f32.mrb[17].mxu1  ;;  %v9602_v15 = vadd.f32 %v2276_v2, %v11086_v10  ;;  %v2278_v36 = vpop.f32.mrb[18].mxu0  ;;  %v9603_v27 = vadd.f32 %v2315_v63, %v11083_v6  ;;  %v2428_v63 = vld [vmem:[#allocation2 + $0x60] sm:$0xff] }
 0x9d7   :  { %v2319_v37 = vpop.f32.mrb[18].mxu1  ;;  %v8705_v34 = vmul.f32 -1.442695, %v9601_v1  ;;  %v2279_v23 = vpop.f32.mrb[19].mxu0  ;;  %v9604_v53 = vadd.f32 %v2317_v3, %v11089_v30  ;;  %v2430_v3 = vld [vmem:[#allocation2 + $0x70] sm:$0xff] }
 0x9d8   :  { %v2320_v4 = vpop.f32.mrb[19].mxu1  ;;  %v8706_v21 = vmul.f32 -1.442695, %v9602_v15  ;;  %v2488_v36 = vld [vmem:[%s14066_s6] sm:$0x7]  ;;  %v14134_v37 = vld [vmem:[#allocation45_spill] sm:$0xff] }
 0x9d9   :  { %10001 = vpow2.f32 %v8705_v34  ;;  %v8707_v8 = vmul.f32 -1.442695, %v9604_v53  ;;  %v11568_v34 = vrot.slane %v2488_v36, %v14134_v37  ;;  %v14135_v23 = vld [vmem:[#allocation43_spill] sm:$0xff] }
 0x9da   :  { %10003 = vpow2.f32 %v8706_v21  ;;  %v11571_v4 = vrot.slane %v2488_v36, %v14135_v23 }
 0x9db   :  { %10005 = vpow2.f32 %v8707_v8  ;;  %v14136_v8 = vld [vmem:[#allocation44_spill] sm:$0xff] }
 0x9dc   :  { %10007 = vtanh.f32 %v9603_v27  ;;  %v11574_v27 = vrot.slane %v2488_v36, %v14136_v8 }
 0x9e3   :  { %v10002_v19 = vpop.eup %10001 }
 0x9e4   :  { %v10004_v12 = vpop.eup %10003  ;;  %v2329_v62 = vadd.f32 1.0, %v10002_v19 }
 0x9e5   :  { %v2335_v22 = vadd.f32 1.0, %v10004_v12  ;;  %v10006_v10 = vpop.eup %10005 }
 0x9e6   :  { %10009 = vrcp.f32 %v2329_v62  ;;  %v10008_v14 = vpop.eup %10007  ;;  %v2342_v38 = vadd.f32 1.0, %v10006_v10 }
 0x9e7   :  { %10011 = vrcp.f32 %v2335_v22 }
 0x9e8   :  { %10013 = vrcp.f32 %v2342_v38 }
 0x9f0   :  { %v10010_v13 = vpop.eup %10009 }
 0x9f1   :  { %v10012_v5 = vpop.eup %10011  ;;  %v2346_v28 = vmul.f32 %v10010_v13, %v10008_v14 }
 0x9f2   :  { %v2345_v20 = vmul.f32 %v10012_v5, %v11528_v9  ;;  %v10014_v6 = vpop.eup %10013 }
 0x9f4   :  { %v2347_v30 = vadd.f32 %v2346_v28, %v2345_v20 }
 0x9f6   :  { %10015 = vtanh.f32 %v2347_v30 }
 0xa00   :  { %v10016_v26 = vpop.eup %10015 }
 0xa01   :  { %v2349_v39 = vmul.f32 %v10016_v26, %v10014_v6 }
 0xa03   :  { %v2351_v42 = vcombine.high %v2349_v39, %v2349_v39  ;;  %v2358_v17 = vrot.slane %v2349_v39, %v11103_v35 }
 0xa05   :  { %v2365_v31 = vrot.slane %v2351_v42, %v11103_v35  ;;  %v2366_v44 = vcombine.high %v2358_v17, %v2358_v17  ;;  %v2374_v16 = vrot.slane %v2358_v17, %v11103_v35  ;;  %8708 = vst.sshfl [vmem:[#allocation2 + $0x8] sm:$0x1 pattern:$0x73625140] %v2358_v17 }
 0xa07   :  { %v2367_v18 = vcombine.high %v2365_v31, %v2365_v31  ;;  %v2381_v25 = vrot.slane %v2365_v31, %v11103_v35  ;;  %v2388_v9 = vrot.slane %v2366_v44, %v11103_v35  ;;  %v2396_v33 = vcombine.high %v2374_v16, %v2374_v16  ;;  %8709 = vst.sshfl [vmem:[#allocation2 + $0x18] sm:$0x1 pattern:$0x73625140] %v2366_v44 }
 0xa08   :  { %8710 = vst.sshfl [vmem:[#allocation2 + $0x48] sm:$0x1 pattern:$0x73625140] %v2365_v31 }
 0xa09   :  { %v2395_v24 = vrot.slane %v2367_v18, %v11103_v35  ;;  %v2397_v11 = vcombine.high %v2381_v25, %v2381_v25  ;;  %v2398_v32 = vcombine.high %v2388_v9, %v2388_v9  ;;  %2410 = vst [vmem:[#allocation2 + $0x28] sm:$0x1] %v2396_v33  ;;  %8711 = vst.sshfl [vmem:[#allocation2 + $0x58] sm:$0x1 pattern:$0x73625140] %v2367_v18 }
 0xa0b   :  { %v2399_v29 = vcombine.high %v2395_v24, %v2395_v24  ;;  %2411 = vst [vmem:[#allocation2 + $0x38] sm:$0x1] %v2398_v32  ;;  %2414 = vst [vmem:[#allocation2 + $0x68] sm:$0x1] %v2397_v11 }
 0xa0c   :  { %v2417_v41 = vld [vmem:[#allocation2 + $0x8] sm:$0xff] }
 0xa0d   :  { %2415 = vst [vmem:[#allocation2 + $0x78] sm:$0x1] %v2399_v29  ;;  %v2448_v43 = vpack.c.bf16 %v2417_v41, %v2416_v40 }
 0xa0e   :  { %v2419_v46 = vld [vmem:[#allocation2 + $0x18] sm:$0xff] }
 0xa0f   :  { %2666 = vmatmul.mubr.bf16.vlgmr.msra.gmra.mrb[64].mxu0 %v2448_v43  ;;  %9081 = vmatprep.mubr.bf16.mxu1 %v2448_v43  ;;  %v2449_v47 = vpack.c.bf16 %v2419_v46, %v2418_v45  ;;  %v2425_v51 = vld [vmem:[#allocation2 + $0x48] sm:$0xff] }
 0xa10   :  { %v2421_v49 = vld [vmem:[#allocation2 + $0x28] sm:$0xff]  ;;  %2675 = vmatprep.mubr.bf16.mxu0 %v14111_v0  ;;  %v2452_v56 = vpack.c.bf16 %v2425_v51, %v2424_v55  ;;  %v2427_v57 = vld [vmem:[#allocation2 + $0x58] sm:$0xff] }
 0xa11   :  { %9082 = vmatmul.mubr.bf16.vlgmr.msra.gmra.mrb[64].mxu1 %v2449_v47  ;;  %v2450_v35 = vpack.c.bf16 %v2421_v49, %v2420_v48  ;;  %v2453_v61 = vpack.c.bf16 %v2427_v57, %v2426_v59 }
 0xa12   :  { %v2423_v50 = vld [vmem:[#allocation2 + $0x38] sm:$0xff]  ;;  %v2429_v58 = vld [vmem:[#allocation2 + $0x68] sm:$0xff] }
 0xa13   :  { %9085 = vmatprep.mubr.bf16.mxu1 %v2450_v35  ;;  %v2451_v54 = vpack.c.bf16 %v2423_v50, %v2422_v52  ;;  %v2454_v1 = vpack.c.bf16 %v2429_v58, %v2428_v63 }
 0xa14   :  { %v2431_v2 = vld [vmem:[#allocation2 + $0x78] sm:$0xff] }
 0xa15   :  { %v2455_v15 = vpack.c.bf16 %v2431_v2, %v2430_v3 }
 0xa17   :  { %2676 = vmatmul.mubr.bf16.gmra.mrb[68].mxu0 %v2449_v47 }
 0xa18   :  { %2685 = vmatprep.mubr.bf16.mxu0 %v14111_v0 }
 0xa19   :  { %9086 = vmatmul.mubr.bf16.gmra.mrb[68].mxu1 %v2451_v54 }
 0xa1a   :  { %9089 = vmatprep.mubr.bf16.mxu1 %v2452_v56 }
 0xa1f   :  { %2686 = vmatmul.mubr.bf16.gmra.mrb[72].mxu0 %v2450_v35 }
 0xa20   :  { %2695 = vmatprep.mubr.bf16.mxu0 %v14111_v0 }
 0xa21   :  { %9090 = vmatmul.mubr.bf16.gmra.mrb[72].mxu1 %v2453_v61 }
 0xa22   :  { %9093 = vmatprep.mubr.bf16.mxu1 %v2454_v1 }
 0xa27   :  { %2696 = vmatmul.mubr.bf16.gmra.mrb[76].mxu0 %v2451_v54 }
 0xa28   :  { %2705 = vmatprep.mubr.bf16.mxu0 %v14111_v0 }
 0xa29   :  { %9094 = vmatmul.mubr.bf16.gmra.mrb[76].mxu1 %v2455_v15 }
 0xa2a   :  { %9099 = vmatprep.mubr.msk.bf16.mxu1 %vm10670_vm0, %v11538_v60 }
 0xa2f   :  { %2706 = vmatmul.mubr.bf16.gmra.mrb[80].mxu0 %v2452_v56 }
 0xa30   :  { %2715 = vmatprep.mubr.bf16.mxu0 %v14111_v0 }
 0xa37   :  { %2716 = vmatmul.mubr.bf16.gmra.mrb[84].mxu0 %v2453_v61 }
 0xa38   :  { %2725 = vmatprep.mubr.bf16.mxu0 %v14111_v0 }
 0xa3f   :  { %2726 = vmatmul.mubr.bf16.gmra.mrb[88].mxu0 %v2454_v1 }
 0xa40   :  { %2735 = vmatprep.mubr.bf16.mxu0 %v14111_v0 }
 0xa47   :  { %2736 = vmatmul.mubr.bf16.gmra.mrb[92].mxu0 %v2455_v15 }
 0xa48   :  { %9123 = vmatprep.mubr.msk.bf16.mxu0 %vm10670_vm0, %v11538_v60 }
 0xae2   :  { %v2667_v21 = vpop.f32.mrb[64].mxu0 }
 0xae3   :  { %v2669_v53 = vpop.f32.mrb[65].mxu0  ;;  %v2668_v22 = vadd.f32 %v2667_v21, %v11571_v4 }
 0xae4   :  { %v2670_v19 = vadd.f32 %v2669_v53, %v11568_v34  ;;  %v2671_v12 = vpop.f32.mrb[66].mxu0  ;;  %v9083_v62 = vpop.f32.mrb[64].mxu1 }
 0xae5   :  { %v2672_v10 = vadd.f32 %v2671_v12, %v11571_v4  ;;  %v2673_v14 = vpop.f32.mrb[67].mxu0  ;;  %v2780_v13 = vpop.f32.mrb[65].mxu1  ;;  %v11581_v20 = vadd.f32 %v9083_v62, %v11574_v27 }
 0xae6   :  { %v2674_v5 = vadd.f32 %v2673_v14, %v11568_v34  ;;  %v9084_v28 = vpop.f32.mrb[66].mxu1  ;;  %v11587_v39 = vadd.f32 %v2780_v13, %v11574_v27 }
 0xae7   :  { %v2843_v38 = vpack.c.bf16 %v2672_v10, %v2668_v22  ;;  %v11584_v30 = vadd.f32 %v9084_v28, %v11574_v27  ;;  %v2783_v6 = vpop.f32.mrb[67].mxu1 }
 0xae8   :  { %v2851_v26 = vpack.c.bf16 %v2674_v5, %v2670_v19  ;;  %v11590_v42 = vadd.f32 %v2783_v6, %v11574_v27 }
 0xae9   :  { %v2860_v17 = vpack.c.bf16 %v11584_v30, %v11581_v20 }
 0xaea   :  { %v2859_v31 = vpack.c.bf16 %v11590_v42, %v11587_v39  ;;  %v2677_v44 = vpop.f32.mrb[68].mxu0  ;;  %9098 = vmatpush3.bf16.xpose.msra.mxu1 %v2851_v26 }
 0xaeb   :  { %v2679_v16 = vpop.f32.mrb[69].mxu0  ;;  %9103 = vmatprep.subr.bf16.mxu1 %v11538_v60  ;;  %v2678_v33 = vadd.f32 %v2677_v44, %v11571_v4 }
 0xaec   :  { %v2680_v18 = vadd.f32 %v2679_v16, %v11568_v34  ;;  %v2681_v25 = vpop.f32.mrb[70].mxu0  ;;  %v9087_v9 = vpop.f32.mrb[68].mxu1 }
 0xaed   :  { %v2682_v24 = vadd.f32 %v2681_v25, %v11571_v4  ;;  %v11601_v11 = vadd.f32 %v9087_v9, %v11574_v27  ;;  %v2683_v32 = vpop.f32.mrb[71].mxu0  ;;  %v2796_v29 = vpop.f32.mrb[69].mxu1 }
 0xaee   :  { %v2684_v40 = vadd.f32 %v2683_v32, %v11568_v34  ;;  %v11605_v41 = vadd.f32 %v2796_v29, %v11574_v27  ;;  %v9088_v43 = vpop.f32.mrb[70].mxu1 }
 0xaef   :  { %v2844_v45 = vpack.c.bf16 %v2682_v24, %v2678_v33  ;;  %v11608_v46 = vadd.f32 %v9088_v43, %v11574_v27  ;;  %v2799_v47 = vpop.f32.mrb[71].mxu1 }
 0xaf0   :  { %v2852_v48 = vpack.c.bf16 %v2684_v40, %v2680_v18  ;;  %v11611_v49 = vadd.f32 %v2799_v47, %v11574_v27 }
 0xaf1   :  { %v2862_v35 = vpack.c.bf16 %v11608_v46, %v11601_v11  ;;  %9100 = vmatmul.mubr.bf16.vlgmr.msra.gmra.mrb[80].mxu1 %v2843_v38 }
 0xaf2   :  { %v2861_v50 = vpack.c.bf16 %v11611_v49, %v11605_v41  ;;  %v2687_v51 = vpop.f32.mrb[72].mxu0  ;;  %9104 = vmatpush3.bf16.xpose.msra.mxu1 %v2852_v48  ;;  %9105 = vmatprep.mubr.msk.bf16.mxu1 %vm10670_vm0, %v11538_v60 }
 0xaf3   :  { %v2689_v52 = vpop.f32.mrb[73].mxu0  ;;  %9109 = vmatprep.subr.bf16.mxu1 %v11538_v60  ;;  %v2688_v57 = vadd.f32 %v2687_v51, %v11571_v4 }
 0xaf4   :  { %v2690_v54 = vadd.f32 %v2689_v52, %v11568_v34  ;;  %v2691_v55 = vpop.f32.mrb[74].mxu0  ;;  %v9091_v56 = vpop.f32.mrb[72].mxu1 }
 0xaf5   :  { %v2692_v58 = vadd.f32 %v2691_v55, %v11571_v4  ;;  %v11624_v59 = vadd.f32 %v9091_v56, %v11574_v27  ;;  %v2693_v61 = vpop.f32.mrb[75].mxu0  ;;  %v2812_v63 = vpop.f32.mrb[73].mxu1 }
 0xaf6   :  { %v2694_v1 = vadd.f32 %v2693_v61, %v11568_v34  ;;  %v11628_v2 = vadd.f32 %v2812_v63, %v11574_v27  ;;  %v9092_v3 = vpop.f32.mrb[74].mxu1 }
 0xaf7   :  { %v2845_v15 = vpack.c.bf16 %v2692_v58, %v2688_v57  ;;  %v11631_v36 = vadd.f32 %v9092_v3, %v11574_v27  ;;  %v2815_v21 = vpop.f32.mrb[75].mxu1 }
 0xaf8   :  { %v2853_v53 = vpack.c.bf16 %v2694_v1, %v2690_v54  ;;  %v11634_v19 = vadd.f32 %v2815_v21, %v11574_v27 }
 0xaf9   :  { %v2864_v12 = vpack.c.bf16 %v11631_v36, %v11624_v59  ;;  %9106 = vmatmul.mubr.bf16.vlgmr.msra.gmra.mrb[84].mxu1 %v2844_v45 }
 0xafa   :  { %v2863_v62 = vpack.c.bf16 %v11634_v19, %v11628_v2  ;;  %v2697_v22 = vpop.f32.mrb[76].mxu0  ;;  %9110 = vmatpush3.bf16.xpose.msra.mxu1 %v2853_v53  ;;  %9111 = vmatprep.mubr.msk.bf16.mxu1 %vm10670_vm0, %v11538_v60 }
 0xafb   :  { %v2699_v10 = vpop.f32.mrb[77].mxu0  ;;  %9115 = vmatprep.subr.bf16.mxu1 %v11538_v60  ;;  %v2698_v28 = vadd.f32 %v2697_v22, %v11571_v4 }
 0xafc   :  { %v2700_v14 = vadd.f32 %v2699_v10, %v11568_v34  ;;  %v2701_v13 = vpop.f32.mrb[78].mxu0  ;;  %v9095_v5 = vpop.f32.mrb[76].mxu1 }
 0xafd   :  { %v2702_v38 = vadd.f32 %v2701_v13, %v11571_v4  ;;  %v11647_v6 = vadd.f32 %v9095_v5, %v11574_v27  ;;  %v2703_v26 = vpop.f32.mrb[79].mxu0  ;;  %v2828_v44 = vpop.f32.mrb[77].mxu1 }
 0xafe   :  { %v2704_v16 = vadd.f32 %v2703_v26, %v11568_v34  ;;  %v11651_v18 = vadd.f32 %v2828_v44, %v11574_v27  ;;  %v9096_v25 = vpop.f32.mrb[78].mxu1 }
 0xaff   :  { %v2846_v9 = vpack.c.bf16 %v2702_v38, %v2698_v28  ;;  %v11654_v33 = vadd.f32 %v9096_v25, %v11574_v27  ;;  %v2831_v24 = vpop.f32.mrb[79].mxu1 }
 0xb00   :  { %v2854_v32 = vpack.c.bf16 %v2704_v16, %v2700_v14  ;;  %v11657_v29 = vadd.f32 %v2831_v24, %v11574_v27 }
 0xb01   :  { %v2866_v40 = vpack.c.bf16 %v11654_v33, %v11647_v6  ;;  %9112 = vmatmul.mubr.bf16.vlgmr.msra.gmra.mrb[88].mxu1 %v2845_v15 }
 0xb02   :  { %v2865_v43 = vpack.c.bf16 %v11657_v29, %v11651_v18  ;;  %v2707_v45 = vpop.f32.mrb[80].mxu0  ;;  %9116 = vmatpush3.bf16.xpose.msra.mxu1 %v2854_v32  ;;  %9117 = vmatprep.mubr.msk.bf16.mxu1 %vm10670_vm0, %v11538_v60 }
 0xb03   :  { %v2709_v47 = vpop.f32.mrb[81].mxu0  ;;  %9127 = vmatprep.subr.bf16.mxu1 %v11538_v60  ;;  %v2708_v27 = vadd.f32 %v2707_v45, %v11571_v4 }
 0xb04   :  { %v2710_v48 = vadd.f32 %v2709_v47, %v11568_v34  ;;  %v2711_v51 = vpop.f32.mrb[82].mxu0 }
 0xb05   :  { %v2712_v52 = vadd.f32 %v2711_v51, %v11571_v4  ;;  %v2713_v54 = vpop.f32.mrb[83].mxu0 }
 0xb06   :  { %v2714_v55 = vadd.f32 %v2713_v54, %v11568_v34 }
 0xb07   :  { %v2847_v56 = vpack.c.bf16 %v2712_v52, %v2708_v27 }
 0xb08   :  { %v2855_v57 = vpack.c.bf16 %v2714_v55, %v2710_v48 }
 0xb09   :  { %9118 = vmatmul.mubr.bf16.vlgmr.msra.gmra.mrb[92].mxu1 %v2846_v9 }
 0xb0a   :  { %v2717_v58 = vpop.f32.mrb[84].mxu0  ;;  %9122 = vmatpush3.bf16.xpose.msra.mxu0 %v2855_v57  ;;  %9129 = vmatprep.mubr.msk.bf16.mxu1 %vm10670_vm0, %v11538_v60 }
 0xb0b   :  { %v2719_v61 = vpop.f32.mrb[85].mxu0  ;;  %9133 = vmatprep.subr.bf16.mxu0 %v11538_v60  ;;  %v2718_v3 = vadd.f32 %v2717_v58, %v11571_v4 }
 0xb0c   :  { %v2720_v63 = vadd.f32 %v2719_v61, %v11568_v34  ;;  %v2721_v1 = vpop.f32.mrb[86].mxu0 }
 0xb0d   :  { %v2722_v15 = vadd.f32 %v2721_v1, %v11571_v4  ;;  %v2723_v21 = vpop.f32.mrb[87].mxu0 }
 0xb0e   :  { %v2724_v53 = vadd.f32 %v2723_v21, %v11568_v34 }
 0xb0f   :  { %v2848_v22 = vpack.c.bf16 %v2722_v15, %v2718_v3 }
 0xb10   :  { %v2856_v10 = vpack.c.bf16 %v2724_v53, %v2720_v63  ;;  %v2434_v63 = vld [vmem:[#allocation6 + $0x10] sm:$0xff]  ;;  %v2435_v53 = vld [vmem:[#allocation6 + $0x18] sm:$0xff] }
 0xb11   :  { %9124 = vmatmul.mubr.bf16.vlgmr.msra.gmra.mrb[96].mxu0 %v2847_v56  ;;  %v2433_v56 = vld [vmem:[#allocation6 + $0x8] sm:$0xff] }
 0xb12   :  { %v2727_v14 = vpop.f32.mrb[88].mxu0  ;;  %9128 = vmatpush3.bf16.xpose.msra.mxu1 %v2856_v10  ;;  %9135 = vmatprep.mubr.msk.bf16.mxu0 %vm10670_vm0, %v11538_v60 }
 0xb13   :  { %v2729_v13 = vpop.f32.mrb[89].mxu0  ;;  %9139 = vmatprep.subr.bf16.mxu1 %v11538_v60  ;;  %v2728_v38 = vadd.f32 %v2727_v14, %v11571_v4 }
 0xb14   :  { %v2730_v5 = vadd.f32 %v2729_v13, %v11568_v34  ;;  %v2731_v28 = vpop.f32.mrb[90].mxu0 }
 0xb15   :  { %v2732_v26 = vadd.f32 %v2731_v28, %v11571_v4  ;;  %v2733_v44 = vpop.f32.mrb[91].mxu0 }
 0xb16   :  { %v2734_v16 = vadd.f32 %v2733_v44, %v11568_v34 }
 0xb17   :  { %v2849_v25 = vpack.c.bf16 %v2732_v26, %v2728_v38  ;;  %v2436_v38 = vld [vmem:[#allocation6 + $0x20] sm:$0xff] }
 0xb18   :  { %v2857_v9 = vpack.c.bf16 %v2734_v16, %v2730_v5 }
 0xb19   :  { %9130 = vmatmul.mubr.bf16.vlgmr.msra.gmra.mrb[96].mxu1 %v2848_v22 }
 0xb1a   :  { %v2737_v24 = vpop.f32.mrb[92].mxu0  ;;  %9134 = vmatpush3.bf16.xpose.msra.mxu0 %v2857_v9  ;;  %9141 = vmatprep.mubr.msk.bf16.mxu1 %vm10670_vm0, %v11538_v60  ;;  %v2437_v9 = vld [vmem:[#allocation6 + $0x28] sm:$0xff] }
 0xb1b   :  { %v2739_v32 = vpop.f32.mrb[93].mxu0  ;;  %9145 = vmatprep.subr.bf16.mxu0 %v11538_v60  ;;  %v2738_v48 = vadd.f32 %v2737_v24, %v11571_v4 }
 0xb1c   :  { %v2740_v45 = vadd.f32 %v2739_v32, %v11568_v34  ;;  %v2741_v47 = vpop.f32.mrb[94].mxu0 }
 0xb1d   :  { %v2742_v51 = vadd.f32 %v2741_v47, %v11571_v4  ;;  %v2743_v27 = vpop.f32.mrb[95].mxu0  ;;  %v2432_v4 = vld [vmem:[#allocation6] sm:$0xff] }
 0xb1e   :  { %v2744_v52 = vadd.f32 %v2743_v27, %v11568_v34 }
 0xb1f   :  { %v2850_v54 = vpack.c.bf16 %v2742_v51, %v2738_v48 }
 0xb20   :  { %v2858_v55 = vpack.c.bf16 %v2744_v52, %v2740_v45  ;;  %v2438_v52 = vld [vmem:[#allocation6 + $0x30] sm:$0xff] }
 0xb21   :  { %9136 = vmatmul.mubr.bf16.vlgmr.msra.gmra.mrb[100].mxu0 %v2849_v25 }
 0xb22   :  { %9140 = vmatpush3.bf16.xpose.msra.mxu1 %v2858_v55  ;;  %9146 = vmatpush3.bf16.msra.mxu0 %v2859_v31 }
 0xb23   :  { %9151 = vmatprep.subr.bf16.mxu1 %v11538_v60  ;;  %9147 = vmatprep.mubr.msk.bf16.mxu0 %vm10670_vm0, %v11538_v60 }
 0xb24   :  { %9157 = vmatprep.subr.bf16.mxu0 %v11538_v60 }
 0xb29   :  { %9142 = vmatmul.mubr.bf16.vlgmr.msra.gmra.mrb[100].mxu1 %v2850_v54 }
 0xb2a   :  { %9152 = vmatpush3.bf16.msra.mxu1 %v2860_v17  ;;  %9153 = vmatprep.mubr.msk.bf16.mxu1 %vm10670_vm0, %v11538_v60 }
 0xb2b   :  { %9163 = vmatprep.subr.bf16.mxu1 %v11538_v60 }
 0xbc4   :  { %v2901_v34 = vpop.f32.mrb[80].mxu1 }
 0xbc5   :  { %v3195_v39 = vmul.f32 0.14142136, %v2901_v34  ;;  %v9101_v42 = vpop.f32.mrb[81].mxu1 }
 0xbc6   :  { %v2904_v31 = vpop.f32.mrb[82].mxu1 }
 0xbc7   :  { %v3196_v57 = vmul.f32 0.14142136, %v2904_v31  ;;  %v9102_v58 = vpop.f32.mrb[83].mxu1  ;;  %v11704_v61 = vadd.f32 %v3195_v39, %v2432_v4  ;;  %v2439_v4 = vld [vmem:[#allocation6 + $0x38] sm:$0xff] }
 0xbc9   :  { %v3228_v20 = vsel %vm3227_vm1, %v11704_v61, -inf  ;;  %v11708_v30 = vadd.f32 %v3196_v57, %v2433_v56 }
 0xbca   :  { %3229 = vmax.xlane.f32.xlu0 %v3228_v20 }
 0xbcb   :  { %v3231_v15 = vsel %vm3227_vm1, %v11708_v30, -inf }
 0xbcc   :  { %v2942_v17 = vpop.f32.mrb[84].mxu1 }
 0xbcd   :  { %v3197_v1 = vmul.f32 0.14142136, %v2942_v17  ;;  %v9107_v3 = vpop.f32.mrb[85].mxu1  ;;  %v2440_v17 = vld [vmem:[#allocation6 + $0x40] sm:$0xff] }
 0xbce   :  { %3232 = vmax.xlane.f32.xlu0 %v3231_v15  ;;  %v2945_v21 = vpop.f32.mrb[86].mxu1  ;;  %v2441_v15 = vld [vmem:[#allocation6 + $0x48] sm:$0xff] }
 0xbcf   :  { %v3198_v22 = vmul.f32 0.14142136, %v2945_v21  ;;  %v9108_v10 = vpop.f32.mrb[87].mxu1  ;;  %v11712_v14 = vadd.f32 %v3197_v1, %v2434_v63 }
 0xbd1   :  { %v3234_v13 = vsel %vm3227_vm1, %v11712_v14, -inf  ;;  %v11716_v5 = vadd.f32 %v3198_v22, %v2435_v53 }
 0xbd2   :  { %3235 = vmax.xlane.f32.xlu1 %v3234_v13 }
 0xbd3   :  { %v3237_v16 = vsel %vm3227_vm1, %v11716_v5, -inf }
 0xbd4   :  { %v2983_v28 = vpop.f32.mrb[88].mxu1 }
 0xbd5   :  { %v3199_v26 = vmul.f32 0.14142136, %v2983_v28  ;;  %v9113_v44 = vpop.f32.mrb[89].mxu1 }
 0xbd6   :  { %3238 = vmax.xlane.f32.xlu1 %v3237_v16  ;;  %v2986_v25 = vpop.f32.mrb[90].mxu1 }
 0xbd7   :  { %v3200_v24 = vmul.f32 0.14142136, %v2986_v25  ;;  %v9114_v32 = vpop.f32.mrb[91].mxu1  ;;  %v11720_v45 = vadd.f32 %v3199_v26, %v2436_v38  ;;  %v2442_v26 = vld [vmem:[#allocation6 + $0x50] sm:$0xff] }
 0xbd9   :  { %v3240_v47 = vsel %vm3227_vm1, %v11720_v45, -inf  ;;  %v11724_v48 = vadd.f32 %v3200_v24, %v2437_v9  ;;  %v2443_v9 = vld [vmem:[#allocation6 + $0x58] sm:$0xff] }
 0xbda   :  { %3241 = vmax.xlane.f32.xlu0 %v3240_v47 }
 0xbdb   :  { %v3243_v51 = vsel %vm3227_vm1, %v11724_v48, -inf }
 0xbdc   :  { %3244 = vmax.xlane.f32.xlu1 %v3243_v51  ;;  %v3024_v27 = vpop.f32.mrb[92].mxu1 }
 0xbdd   :  { %v3201_v54 = vmul.f32 0.14142136, %v3024_v27  ;;  %v9119_v55 = vpop.f32.mrb[93].mxu1 }
 0xbde   :  { %v3027_v34 = vpop.f32.mrb[94].mxu1  ;;  %v2444_v55 = vld [vmem:[#allocation6 + $0x60] sm:$0xff] }
 0xbdf   :  { %v3202_v39 = vmul.f32 0.14142136, %v3027_v34  ;;  %v9120_v42 = vpop.f32.mrb[95].mxu1  ;;  %v11728_v31 = vadd.f32 %v3201_v54, %v2438_v52 }
 0xbe0   :  { %v2445_v42 = vld [vmem:[#allocation6 + $0x68] sm:$0xff] }
 0xbe1   :  { %v3246_v56 = vsel %vm3227_vm1, %v11728_v31, -inf  ;;  %v11732_v57 = vadd.f32 %v3202_v39, %v2439_v4 }
 0xbe2   :  { %3247 = vmax.xlane.f32.xlu0 %v3246_v56 }
 0xbe3   :  { %v3249_v58 = vsel %vm3227_vm1, %v11732_v57, -inf }
 0xbe4   :  { %3250 = vmax.xlane.f32.xlu1 %v3249_v58  ;;  %v3065_v20 = vpop.f32.mrb[96].mxu0 }
 0xbe5   :  { %v3203_v63 = vmul.f32 0.14142136, %v3065_v20  ;;  %v9125_v1 = vpop.f32.mrb[97].mxu0 }
 0xbe6   :  { %v3068_v3 = vpop.f32.mrb[98].mxu0 }
 0xbe7   :  { %v3204_v21 = vmul.f32 0.14142136, %v3068_v3  ;;  %v9126_v53 = vpop.f32.mrb[99].mxu0  ;;  %v11736_v22 = vadd.f32 %v3203_v63, %v2440_v17 }
 0xbe9   :  { %v3252_v10 = vsel %vm3227_vm1, %v11736_v22, -inf  ;;  %v11740_v13 = vadd.f32 %v3204_v21, %v2441_v15  ;;  %v2446_v15 = vld [vmem:[#allocation6 + $0x70] sm:$0xff] }
 0xbea   :  { %3253 = vmax.xlane.f32.xlu0 %v3252_v10 }
 0xbeb   :  { %v3255_v28 = vsel %vm3227_vm1, %v11740_v13, -inf }
 0xbec   :  { %v3106_v38 = vpop.f32.mrb[96].mxu1  ;;  %3256 = vmax.xlane.f32.xlu1 %v3255_v28  ;;  %v2447_v28 = vld [vmem:[#allocation6 + $0x78] sm:$0xff] }
 0xbed   :  { %v3205_v44 = vmul.f32 0.14142136, %v3106_v38  ;;  %v9131_v16 = vpop.f32.mrb[97].mxu1 }
 0xbee   :  { %v3109_v25 = vpop.f32.mrb[98].mxu1 }
 0xbef   :  { %v3206_v24 = vmul.f32 0.14142136, %v3109_v25  ;;  %v9132_v32 = vpop.f32.mrb[99].mxu1  ;;  %v11744_v47 = vadd.f32 %v3205_v44, %v2442_v26 }
 0xbf1   :  { %v3258_v51 = vsel %vm3227_vm1, %v11744_v47, -inf  ;;  %v11748_v27 = vadd.f32 %v3206_v24, %v2443_v9 }
 0xbf2   :  { %3259 = vmax.xlane.f32.xlu0 %v3258_v51 }
 0xbf3   :  { %v3261_v52 = vsel %vm3227_vm1, %v11748_v27, -inf }
 0xbf4   :  { %3262 = vmax.xlane.f32.xlu1 %v3261_v52  ;;  %v3147_v54 = vpop.f32.mrb[100].mxu0 }
 0xbf5   :  { %v3207_v34 = vmul.f32 0.14142136, %v3147_v54  ;;  %v9137_v4 = vpop.f32.mrb[101].mxu0 }
 0xbf6   :  { %v3150_v39 = vpop.f32.mrb[102].mxu0 }
 0xbf7   :  { %v3208_v56 = vmul.f32 0.14142136, %v3150_v39  ;;  %v9138_v58 = vpop.f32.mrb[103].mxu0  ;;  %v11752_v20 = vadd.f32 %v3207_v34, %v2444_v55 }
 0xbf9   :  { %v3264_v17 = vsel %vm3227_vm1, %v11752_v20, -inf  ;;  %v11756_v63 = vadd.f32 %v3208_v56, %v2445_v42 }
 0xbfa   :  { %3265 = vmax.xlane.f32.xlu0 %v3264_v17 }
 0xbfb   :  { %v3267_v1 = vsel %vm3227_vm1, %v11756_v63, -inf }
 0xbfc   :  { %3268 = vmax.xlane.f32.xlu1 %v3267_v1  ;;  %v3188_v3 = vpop.f32.mrb[100].mxu1 }
 0xbfd   :  { %v3209_v21 = vmul.f32 0.14142136, %v3188_v3  ;;  %v9143_v53 = vpop.f32.mrb[101].mxu1 }
 0xbfe   :  { %v3191_v10 = vpop.f32.mrb[102].mxu1 }
 0xbff   :  { %v3210_v38 = vmul.f32 0.14142136, %v3191_v10  ;;  %v9144_v26 = vpop.f32.mrb[103].mxu1  ;;  %v11760_v44 = vadd.f32 %v3209_v21, %v2446_v15 }
 0xc01   :  { %v3270_v16 = vsel %vm3227_vm1, %v11760_v44, -inf  ;;  %v11764_v25 = vadd.f32 %v3210_v38, %v2447_v28 }
 0xc02   :  { %3271 = vmax.xlane.f32.xlu0 %v3270_v16 }
 0xc03   :  { %v3273_v9 = vsel %vm3227_vm1, %v11764_v25, -inf }
 0xc04   :  { %3274 = vmax.xlane.f32.xlu1 %v3273_v9 }
 0xc57   :  { %v3230_v24 = vpop.xlane.xlu0 %3229 }
 0xc58   :  { %v3276_v32 = vsub.f32 %v11704_v61, %v3230_v24 }
 0xc5a   :  { %v3292_v51 = vmul.f32 1.442695, %v3276_v32 }
 0xc5b   :  { %v3233_v52 = vpop.xlane.xlu0 %3232 }
 0xc5c   :  { %10017 = vpow2.f32 %v3292_v51  ;;  %v3277_v54 = vsub.f32 %v11708_v30, %v3233_v52 }
 0xc5e   :  { %v3294_v55 = vmul.f32 1.442695, %v3277_v54 }
 0xc5f   :  { %v3236_v34 = vpop.xlane.xlu1 %3235 }
 0xc60   :  { %10019 = vpow2.f32 %v3294_v55  ;;  %v3278_v4 = vsub.f32 %v11712_v14, %v3236_v34 }
 0xc62   :  { %v3296_v39 = vmul.f32 1.442695, %v3278_v4 }
 0xc63   :  { %v3239_v42 = vpop.xlane.xlu1 %3238 }
 0xc64   :  { %10021 = vpow2.f32 %v3296_v39  ;;  %v3279_v56 = vsub.f32 %v11716_v5, %v3239_v42 }
 0xc66   :  { %v11772_v58 = vpop.eup %10017  ;;  %v3298_v17 = vmul.f32 1.442695, %v3279_v56 }
 0xc67   :  { %v3242_v1 = vpop.xlane.xlu0 %3241  ;;  %v3324_v61 = vsel %vm3227_vm1, %v11772_v58, 0.0 }
 0xc68   :  { %10023 = vpow2.f32 %v3298_v17  ;;  %v3280_v30 = vsub.f32 %v11720_v45, %v3242_v1  ;;  %3325 = vadd.xlane.f32.xlu0 %v3324_v61 }
 0xc69   :  { %v3245_v3 = vpop.xlane.xlu1 %3244 }
 0xc6a   :  { %v11777_v15 = vpop.eup %10019  ;;  %v3300_v14 = vmul.f32 1.442695, %v3280_v30  ;;  %v3281_v21 = vsub.f32 %v11724_v48, %v3245_v3 }
 0xc6b   :  { %v3327_v5 = vsel %vm3227_vm1, %v11777_v15, 0.0 }
 0xc6c   :  { %10025 = vpow2.f32 %v3300_v14  ;;  %v3302_v53 = vmul.f32 1.442695, %v3281_v21  ;;  %3328 = vadd.xlane.f32.xlu1 %v3327_v5 }
 0xc6e   :  { %v11782_v10 = vpop.eup %10021  ;;  %10027 = vpow2.f32 %v3302_v53 }
 0xc6f   :  { %v3248_v28 = vpop.xlane.xlu0 %3247  ;;  %v3330_v45 = vsel %vm3227_vm1, %v11782_v10, 0.0 }
 0xc70   :  { %v3282_v38 = vsub.f32 %v11728_v31, %v3248_v28  ;;  %3331 = vadd.xlane.f32.xlu0 %v3330_v45 }
 0xc71   :  { %v3251_v26 = vpop.xlane.xlu1 %3250 }
 0xc72   :  { %v11787_v16 = vpop.eup %10023  ;;  %v3304_v48 = vmul.f32 1.442695, %v3282_v38  ;;  %v3283_v9 = vsub.f32 %v11732_v57, %v3251_v26 }
 0xc73   :  { %v3333_v24 = vsel %vm3227_vm1, %v11787_v16, 0.0 }
 0xc74   :  { %10029 = vpow2.f32 %v3304_v48  ;;  %v3306_v32 = vmul.f32 1.442695, %v3283_v9  ;;  %3334 = vadd.xlane.f32.xlu1 %v3333_v24 }
 0xc76   :  { %v11792_v51 = vpop.eup %10025  ;;  %10031 = vpow2.f32 %v3306_v32 }
 0xc77   :  { %v3254_v52 = vpop.xlane.xlu0 %3253  ;;  %v3336_v31 = vsel %vm3227_vm1, %v11792_v51, 0.0 }
 0xc78   :  { %v11796_v54 = vpop.eup %10027  ;;  %v3284_v55 = vsub.f32 %v11736_v22, %v3254_v52  ;;  %3337 = vadd.xlane.f32.xlu0 %v3336_v31 }
 0xc79   :  { %v3257_v34 = vpop.xlane.xlu1 %3256  ;;  %v3339_v57 = vsel %vm3227_vm1, %v11796_v54, 0.0 }
 0xc7a   :  { %v3308_v4 = vmul.f32 1.442695, %v3284_v55  ;;  %v3285_v39 = vsub.f32 %v11740_v13, %v3257_v34  ;;  %3340 = vadd.xlane.f32.xlu1 %v3339_v57 }
 0xc7c   :  { %10033 = vpow2.f32 %v3308_v4  ;;  %v3310_v42 = vmul.f32 1.442695, %v3285_v39 }
 0xc7e   :  { %v11802_v56 = vpop.eup %10029  ;;  %10035 = vpow2.f32 %v3310_v42 }
 0xc7f   :  { %v3260_v17 = vpop.xlane.xlu0 %3259  ;;  %v3342_v1 = vsel %vm3227_vm1, %v11802_v56, 0.0 }
 0xc80   :  { %v11806_v61 = vpop.eup %10031  ;;  %v3286_v22 = vsub.f32 %v11744_v47, %v3260_v17  ;;  %3343 = vadd.xlane.f32.xlu0 %v3342_v1 }
 0xc81   :  { %v3263_v30 = vpop.xlane.xlu1 %3262  ;;  %v3345_v3 = vsel %vm3227_vm1, %v11806_v61, 0.0 }
 0xc82   :  { %v3312_v13 = vmul.f32 1.442695, %v3286_v22  ;;  %v3287_v14 = vsub.f32 %v11748_v27, %v3263_v30  ;;  %3346 = vadd.xlane.f32.xlu1 %v3345_v3 }
 0xc84   :  { %10037 = vpow2.f32 %v3312_v13  ;;  %v3314_v21 = vmul.f32 1.442695, %v3287_v14 }
 0xc86   :  { %v11812_v5 = vpop.eup %10033  ;;  %10039 = vpow2.f32 %v3314_v21 }
 0xc87   :  { %v3266_v53 = vpop.xlane.xlu0 %3265  ;;  %v3348_v28 = vsel %vm3227_vm1, %v11812_v5, 0.0 }
 0xc88   :  { %v11816_v45 = vpop.eup %10035  ;;  %v3288_v47 = vsub.f32 %v11752_v20, %v3266_v53  ;;  %3349 = vadd.xlane.f32.xlu0 %v3348_v28 }
 0xc89   :  { %v3269_v38 = vpop.xlane.xlu1 %3268  ;;  %v3351_v26 = vsel %vm3227_vm1, %v11816_v45, 0.0 }
 0xc8a   :  { %v3316_v27 = vmul.f32 1.442695, %v3288_v47  ;;  %v3289_v48 = vsub.f32 %v11756_v63, %v3269_v38  ;;  %3352 = vadd.xlane.f32.xlu1 %v3351_v26 }
 0xc8c   :  { %10041 = vpow2.f32 %v3316_v27  ;;  %v3318_v9 = vmul.f32 1.442695, %v3289_v48 }
 0xc8e   :  { %v11822_v24 = vpop.eup %10037  ;;  %10043 = vpow2.f32 %v3318_v9 }
 0xc8f   :  { %v3272_v32 = vpop.xlane.xlu0 %3271  ;;  %v3354_v52 = vsel %vm3227_vm1, %v11822_v24, 0.0 }
 0xc90   :  { %v11826_v31 = vpop.eup %10039  ;;  %v3290_v20 = vsub.f32 %v11760_v44, %v3272_v32  ;;  %3355 = vadd.xlane.f32.xlu0 %v3354_v52 }
 0xc91   :  { %v3275_v55 = vpop.xlane.xlu1 %3274  ;;  %v3357_v34 = vsel %vm3227_vm1, %v11826_v31, 0.0 }
 0xc92   :  { %v3320_v63 = vmul.f32 1.442695, %v3290_v20  ;;  %v3291_v57 = vsub.f32 %v11764_v25, %v3275_v55  ;;  %3358 = vadd.xlane.f32.xlu1 %v3357_v34 }
 0xc94   :  { %10045 = vpow2.f32 %v3320_v63  ;;  %v3322_v4 = vmul.f32 1.442695, %v3291_v57 }
 0xc96   :  { %v11832_v39 = vpop.eup %10041  ;;  %10047 = vpow2.f32 %v3322_v4 }
 0xc97   :  { %v3360_v42 = vsel %vm3227_vm1, %v11832_v39, 0.0 }
 0xc98   :  { %v11836_v17 = vpop.eup %10043  ;;  %3361 = vadd.xlane.f32.xlu0 %v3360_v42 }
 0xc99   :  { %v3363_v44 = vsel %vm3227_vm1, %v11836_v17, 0.0 }
 0xc9a   :  { %3364 = vadd.xlane.f32.xlu1 %v3363_v44 }
 0xc9e   :  { %v11840_v1 = vpop.eup %10045 }
 0xc9f   :  { %v3366_v25 = vsel %vm3227_vm1, %v11840_v1, 0.0 }
 0xca0   :  { %v11844_v22 = vpop.eup %10047  ;;  %3367 = vadd.xlane.f32.xlu0 %v3366_v25 }
 0xca1   :  { %v3369_v30 = vsel %vm3227_vm1, %v11844_v22, 0.0 }
 0xca2   :  { %3370 = vadd.xlane.f32.xlu1 %v3369_v30 }
 0xcf5   :  { %v3326_v3 = vpop.xlane.xlu0 %3325 }
 0xcf6   :  { %10049 = vrcp.f32 %v3326_v3 }
 0xcf9   :  { %v3329_v13 = vpop.xlane.xlu1 %3328 }
 0xcfa   :  { %10051 = vrcp.f32 %v3329_v13 }
 0xcfd   :  { %v3332_v14 = vpop.xlane.xlu0 %3331 }
 0xcfe   :  { %10053 = vrcp.f32 %v3332_v14 }
 0xd00   :  { %v10050_v53 = vpop.eup %10049 }
 0xd01   :  { %v3335_v21 = vpop.xlane.xlu1 %3334  ;;  %v3388_v47 = vmul.f32 %v10050_v53, %v11772_v58 }
 0xd02   :  { %10055 = vrcp.f32 %v3335_v21 }
 0xd04   :  { %v10052_v28 = vpop.eup %10051 }
 0xd05   :  { %v3389_v38 = vmul.f32 %v10052_v28, %v11777_v15  ;;  %v3338_v26 = vpop.xlane.xlu0 %3337  ;;  %v10419_v28 = vld [vmem:[#allocation2 + $0x8] sm:$0xff] }
 0xd06   :  { %10057 = vrcp.f32 %v3338_v26 }
 0xd07   :  { %v3341_v27 = vpop.xlane.xlu1 %3340  ;;  %v3404_v48 = vpack.c.bf16 %v3389_v38, %v3388_v47 }
 0xd08   :  { %10059 = vrcp.f32 %v3341_v27  ;;  %v10054_v9 = vpop.eup %10053 }
 0xd09   :  { %9148 = vmatmul.mubr.msk.bf16.vlgmr.msra.gmra.mrb[104].mxu0 %vm3227_vm1, %v3404_v48  ;;  %v3390_v15 = vmul.f32 %v10054_v9, %v11782_v10  ;;  %v10421_v9 = vld [vmem:[#allocation2 + $0x18] sm:$0xff] }
 0xd0a   :  { %9158 = vmatpush3.bf16.msra.mxu0 %v2861_v50  ;;  %9159 = vmatprep.mubr.msk.bf16.mxu0 %vm10670_vm0, %v11538_v60 }
 0xd0b   :  { %9169 = vmatprep.subr.bf16.mxu0 %v11538_v60 }
 0xd0c   :  { %v10056_v58 = vpop.eup %10055 }
 0xd0d   :  { %v3391_v32 = vmul.f32 %v10056_v58, %v11787_v16  ;;  %v3344_v52 = vpop.xlane.xlu0 %3343 }
 0xd0e   :  { %10061 = vrcp.f32 %v3344_v52  ;;  %v10422_v52 = vld [vmem:[#allocation2 + $0x20] sm:$0xff] }
 0xd0f   :  { %v3347_v20 = vpop.xlane.xlu1 %3346  ;;  %v3405_v55 = vpack.c.bf16 %v3391_v32, %v3390_v15 }
 0xd10   :  { %v10058_v34 = vpop.eup %10057  ;;  %10063 = vrcp.f32 %v3347_v20 }
 0xd11   :  { %9154 = vmatmul.mubr.msk.bf16.vlgmr.msra.gmra.mrb[104].mxu1 %vm3227_vm1, %v3405_v55  ;;  %v3392_v49 = vmul.f32 %v10058_v34, %v11792_v51 }
 0xd12   :  { %v10060_v41 = vpop.eup %10059  ;;  %9164 = vmatpush3.bf16.msra.mxu1 %v2862_v35  ;;  %9165 = vmatprep.mubr.msk.bf16.mxu1 %vm10670_vm0, %v11538_v60 }
 0xd13   :  { %v3393_v50 = vmul.f32 %v10060_v41, %v11796_v54  ;;  %9175 = vmatprep.subr.bf16.mxu1 %v11538_v60  ;;  %v10423_v41 = vld [vmem:[#allocation2 + $0x28] sm:$0xff] }
 0xd15   :  { %v3350_v10 = vpop.xlane.xlu0 %3349  ;;  %v3406_v16 = vpack.c.bf16 %v3393_v50, %v3392_v49 }
 0xd16   :  { %10065 = vrcp.f32 %v3350_v10 }
 0xd17   :  { %9160 = vmatmul.mubr.msk.bf16.vlgmr.msra.gmra.mrb[108].mxu0 %vm3227_vm1, %v3406_v16  ;;  %v3353_v63 = vpop.xlane.xlu1 %3352  ;;  %v10424_v16 = vld [vmem:[#allocation2 + $0x30] sm:$0xff] }
 0xd18   :  { %v10062_v57 = vpop.eup %10061  ;;  %9170 = vmatpush3.bf16.msra.mxu0 %v2863_v62  ;;  %10067 = vrcp.f32 %v3353_v63  ;;  %9171 = vmatprep.mubr.msk.bf16.mxu0 %vm10670_vm0, %v11538_v60 }
 0xd19   :  { %9181 = vmatprep.subr.bf16.mxu0 %v11538_v60  ;;  %v3394_v46 = vmul.f32 %v10062_v57, %v11802_v56 }
 0xd1a   :  { %v10064_v11 = vpop.eup %10063 }
 0xd1b   :  { %v3395_v35 = vmul.f32 %v10064_v11, %v11806_v61 }
 0xd1d   :  { %v3356_v51 = vpop.xlane.xlu0 %3355  ;;  %v3407_v54 = vpack.c.bf16 %v3395_v35, %v3394_v46  ;;  %v10425_v46 = vld [vmem:[#allocation2 + $0x38] sm:$0xff] }
 0xd1e   :  { %10069 = vrcp.f32 %v3356_v51 }
 0xd1f   :  { %9166 = vmatmul.mubr.msk.bf16.vlgmr.msra.gmra.mrb[108].mxu1 %vm3227_vm1, %v3407_v54  ;;  %v3359_v4 = vpop.xlane.xlu1 %3358 }
 0xd20   :  { %v10066_v42 = vpop.eup %10065  ;;  %9176 = vmatpush3.bf16.msra.mxu1 %v2864_v12  ;;  %10071 = vrcp.f32 %v3359_v4  ;;  %9177 = vmatprep.mubr.msk.bf16.mxu1 %vm10670_vm0, %v11538_v60  ;;  %v10426_v4 = vld [vmem:[#allocation2 + $0x40] sm:$0xff] }
 0xd21   :  { %9187 = vmatprep.subr.bf16.mxu1 %v11538_v60  ;;  %v3396_v19 = vmul.f32 %v10066_v42, %v11812_v5 }
 0xd22   :  { %v10068_v2 = vpop.eup %10067 }
 0xd23   :  { %v3397_v62 = vmul.f32 %v10068_v2, %v11816_v45 }
 0xd25   :  { %v3362_v56 = vpop.xlane.xlu0 %3361  ;;  %v3408_v61 = vpack.c.bf16 %v3397_v62, %v3396_v19  ;;  %v10427_v62 = vld [vmem:[#allocation2 + $0x48] sm:$0xff] }
 0xd26   :  { %10073 = vrcp.f32 %v3362_v56 }
 0xd27   :  { %9172 = vmatmul.mubr.msk.bf16.vlgmr.msra.gmra.mrb[112].mxu0 %vm3227_vm1, %v3408_v61  ;;  %v3365_v44 = vpop.xlane.xlu1 %3364 }
 0xd28   :  { %v10070_v25 = vpop.eup %10069  ;;  %9182 = vmatpush3.bf16.msra.mxu0 %v2865_v43  ;;  %10075 = vrcp.f32 %v3365_v44  ;;  %9183 = vmatprep.mubr.msk.bf16.mxu0 %vm10670_vm0, %v11538_v60 }
 0xd29   :  { %v3398_v36 = vmul.f32 %v10070_v25, %v11822_v24  ;;  %v10428_v25 = vld [vmem:[#allocation2 + $0x50] sm:$0xff] }
 0xd2a   :  { %v10072_v59 = vpop.eup %10071 }
 0xd2b   :  { %v3399_v12 = vmul.f32 %v10072_v59, %v11826_v31 }
 0xd2d   :  { %v3368_v5 = vpop.xlane.xlu0 %3367  ;;  %v3409_v45 = vpack.c.bf16 %v3399_v12, %v3398_v36 }
 0xd2e   :  { %10077 = vrcp.f32 %v3368_v5  ;;  %v10429_v5 = vld [vmem:[#allocation2 + $0x58] sm:$0xff] }
 0xd2f   :  { %9178 = vmatmul.mubr.msk.bf16.vlgmr.msra.gmra.mrb[112].mxu1 %vm3227_vm1, %v3409_v45  ;;  %v3371_v30 = vpop.xlane.xlu1 %3370 }
 0xd30   :  { %v10074_v3 = vpop.eup %10073  ;;  %9188 = vmatpush3.bf16.msra.mxu1 %v2866_v40  ;;  %10079 = vrcp.f32 %v3371_v30  ;;  %9189 = vmatprep.mubr.msk.bf16.mxu1 %vm10670_vm0, %v11538_v60  ;;  %v10418_v40 = vld [vmem:[#allocation2] sm:$0xff] }
 0xd31   :  { %v3400_v29 = vmul.f32 %v10074_v3, %v11832_v39 }
 0xd32   :  { %v10076_v18 = vpop.eup %10075 }
 0xd33   :  { %v3401_v43 = vmul.f32 %v10076_v18, %v11836_v17  ;;  %v10430_v18 = vld [vmem:[#allocation2 + $0x60] sm:$0xff] }
 0xd35   :  { %v3410_v24 = vpack.c.bf16 %v3401_v43, %v3400_v29 }
 0xd37   :  { %9184 = vmatmul.mubr.msk.bf16.vlgmr.msra.gmra.mrb[116].mxu0 %vm3227_vm1, %v3410_v24 }
 0xd38   :  { %v10078_v31 = vpop.eup %10077 }
 0xd39   :  { %v3402_v14 = vmul.f32 %v10078_v31, %v11840_v1  ;;  %v10431_v31 = vld [vmem:[#allocation2 + $0x68] sm:$0xff] }
 0xd3a   :  { %v10080_v13 = vpop.eup %10079 }
 0xd3b   :  { %v3403_v21 = vmul.f32 %v10080_v13, %v11844_v22  ;;  %v10420_v22 = vld [vmem:[#allocation2 + $0x10] sm:$0xff] }
 0xd3d   :  { %v3411_v6 = vpack.c.bf16 %v3403_v21, %v3402_v14 }
 0xd3f   :  { %9190 = vmatmul.mubr.msk.bf16.vlgmr.msra.gmra.mrb[116].mxu1 %vm3227_vm1, %v3411_v6  ;;  %v10432_v6 = vld [vmem:[#allocation2 + $0x70] sm:$0xff] }
 0xd40   :  { %4653 = vmatprep.mubr.bf16.mxu1 %v14111_v0 }
 0xddc   :  { %v3449_v33 = vpop.f32.mrb[104].mxu0 }
 0xddd   :  { %v11907_v53 = vadd.f32 %v10418_v40, %v3449_v33  ;;  %v9149_v39 = vpop.f32.mrb[105].mxu0 }
 0xdde   :  { %v3452_v17 = vpop.f32.mrb[106].mxu0 }
 0xddf   :  { %v11909_v47 = vadd.f32 %v10419_v28, %v3452_v17  ;;  %3781 = vadd.xlane.f32.xlu0 %v11907_v53  ;;  %v9150_v38 = vpop.f32.mrb[107].mxu0  ;;  %v10433_v17 = vld [vmem:[#allocation2 + $0x78] sm:$0xff] }
 0xde1   :  { %3783 = vadd.xlane.f32.xlu1 %v11909_v47 }
 0xde4   :  { %v3493_v1 = vpop.f32.mrb[104].mxu1 }
 0xde5   :  { %v11913_v26 = vadd.f32 %v10420_v22, %v3493_v1  ;;  %v9155_v27 = vpop.f32.mrb[105].mxu1  ;;  %v14137_v1 = vlaneseq }
 0xde6   :  { %v3496_v48 = vpop.f32.mrb[106].mxu1 }
 0xde7   :  { %v11915_v58 = vadd.f32 %v10421_v9, %v3496_v48  ;;  %3785 = vadd.xlane.f32.xlu0 %v11913_v26  ;;  %v9156_v15 = vpop.f32.mrb[107].mxu1  ;;  %v136_v22 = vand.u32 127, %v14137_v1 }
 0xde9   :  { %3787 = vadd.xlane.f32.xlu1 %v11915_v58  ;;  %vm137_vm2 = vcmp.lt.s32.totalorder %v136_v22, 50 }
 0xdea   :  { %v3537_v32 = vpop.f32.mrb[108].mxu0  ;;  %v11957_v9 = vsel %vm137_vm2, 1.0, %v11538_v60 }
 0xdeb   :  { %v11919_v20 = vadd.f32 %v10422_v52, %v3537_v32  ;;  %v9161_v55 = vpop.f32.mrb[109].mxu0 }
 0xdec   :  { %v3540_v34 = vpop.f32.mrb[110].mxu0 }
 0xded   :  { %v11921_v49 = vadd.f32 %v10423_v41, %v3540_v34  ;;  %v9162_v50 = vpop.f32.mrb[111].mxu0  ;;  %3789 = vadd.xlane.f32.xlu0 %v11919_v20 }
 0xdef   :  { %3791 = vadd.xlane.f32.xlu1 %v11921_v49 }
 0xdf2   :  { %v3581_v10 = vpop.f32.mrb[108].mxu1 }
 0xdf3   :  { %v11925_v63 = vadd.f32 %v10424_v16, %v3581_v10  ;;  %v9167_v57 = vpop.f32.mrb[109].mxu1 }
 0xdf4   :  { %v3584_v11 = vpop.f32.mrb[110].mxu1 }
 0xdf5   :  { %v11927_v35 = vadd.f32 %v10425_v46, %v3584_v11  ;;  %3793 = vadd.xlane.f32.xlu0 %v11925_v63  ;;  %v9168_v51 = vpop.f32.mrb[111].mxu1 }
 0xdf7   :  { %3795 = vadd.xlane.f32.xlu1 %v11927_v35 }
 0xdfa   :  { %v3625_v54 = vpop.f32.mrb[112].mxu0 }
 0xdfb   :  { %v11931_v42 = vadd.f32 %v10426_v4, %v3625_v54  ;;  %v9173_v2 = vpop.f32.mrb[113].mxu0 }
 0xdfc   :  { %v3628_v19 = vpop.f32.mrb[114].mxu0 }
 0xdfd   :  { %v11933_v56 = vadd.f32 %v10427_v62, %v3628_v19  ;;  %v9174_v61 = vpop.f32.mrb[115].mxu0  ;;  %3797 = vadd.xlane.f32.xlu0 %v11931_v42 }
 0xdff   :  { %3799 = vadd.xlane.f32.xlu1 %v11933_v56 }
 0xe02   :  { %v3669_v44 = vpop.f32.mrb[112].mxu1 }
 0xe03   :  { %v11937_v59 = vadd.f32 %v10428_v25, %v3669_v44  ;;  %v9179_v36 = vpop.f32.mrb[113].mxu1 }
 0xe04   :  { %v3672_v12 = vpop.f32.mrb[114].mxu1 }
 0xe05   :  { %v11939_v45 = vadd.f32 %v10429_v5, %v3672_v12  ;;  %3801 = vadd.xlane.f32.xlu0 %v11937_v59  ;;  %v9180_v30 = vpop.f32.mrb[115].mxu1 }
 0xe07   :  { %3803 = vadd.xlane.f32.xlu1 %v11939_v45 }
 0xe0a   :  { %v3713_v3 = vpop.f32.mrb[116].mxu0 }
 0xe0b   :  { %v11943_v29 = vadd.f32 %v10430_v18, %v3713_v3  ;;  %v9185_v43 = vpop.f32.mrb[117].mxu0  ;;  %v9769_v3 = vld [vmem:[#allocation12] sm:$0xff]  }
 0xe0c   :  { %v3716_v24 = vpop.f32.mrb[118].mxu0  ;;  %9193 = vmatprep.subr.bf16.mxu0 %v9769_v3 }
 0xe0d   :  { %v11945_v13 = vadd.f32 %v10431_v31, %v3716_v24  ;;  %v9186_v14 = vpop.f32.mrb[119].mxu0  ;;  %3805 = vadd.xlane.f32.xlu0 %v11943_v29  ;;  %9194 = vmatpush3.bf16.msra.mxu0 %v9769_v3 }
 0xe0e   :  { %v9770_v14 = vld [vmem:[#allocation12 + $0x8] sm:$0xff]  }
 0xe0f   :  { %3807 = vadd.xlane.f32.xlu1 %v11945_v13  ;;  %9195 = vmatprep.subr.bf16.mxu0 %v9770_v14 }
 0xe11   :  { %9196 = vmatpush3.bf16.msra.mxu0 %v9770_v14 }
 0xe12   :  { %v3757_v21 = vpop.f32.mrb[116].mxu1 }
 0xe13   :  { %v11949_v33 = vadd.f32 %v10432_v6, %v3757_v21  ;;  %v9191_v40 = vpop.f32.mrb[117].mxu1 }
 0xe14   :  { %v3760_v39 = vpop.f32.mrb[118].mxu1 }
 0xe15   :  { %v11951_v28 = vadd.f32 %v10433_v17, %v3760_v39  ;;  %3809 = vadd.xlane.f32.xlu0 %v11949_v33  ;;  %v9192_v38 = vpop.f32.mrb[119].mxu1  ;;  %v9771_v17 = vld [vmem:[#allocation12 + $0x10] sm:$0xff]  }
 0xe16   :  { %9197 = vmatprep.subr.bf16.mxu0 %v9771_v17 }
 0xe17   :  { %3811 = vadd.xlane.f32.xlu1 %v11951_v28  ;;  %9198 = vmatpush3.bf16.msra.mxu0 %v9771_v17 }
 0xe6c   :  { %v3782_v27 = vpop.xlane.xlu0 %3781 }
 0xe6d   :  { %v3813_v48 = vmul.f32 0.02, %v3782_v27 }
 0xe6e   :  { %v3784_v15 = vpop.xlane.xlu1 %3783 }
 0xe6f   :  { %v3829_v32 = vsub.f32 %v11907_v53, %v3813_v48  ;;  %v3814_v52 = vmul.f32 0.02, %v3784_v15  ;;  %v9772_v48 = vld [vmem:[#allocation12 + $0x18] sm:$0xff]  }
 0xe70   :  { %9199 = vmatprep.subr.bf16.mxu0 %v9772_v48 }
 0xe71   :  { %v3830_v55 = vsub.f32 %v11909_v47, %v3814_v52  ;;  %v11962_v34 = vmul.f32 %v11957_v9, %v3829_v32  ;;  %9200 = vmatpush3.bf16.msra.mxu0 %v9772_v48 }
 0xe73   :  { %v3861_v41 = vmul.f32 %v11962_v34, %v11962_v34  ;;  %v11967_v50 = vmul.f32 %v11957_v9, %v3830_v55 }
 0xe74   :  { %v3786_v10 = vpop.xlane.xlu0 %3785 }
 0xe75   :  { %v3815_v16 = vmul.f32 0.02, %v3786_v10  ;;  %3877 = vadd.xlane.f32.xlu0 %v3861_v41  ;;  %v3862_v57 = vmul.f32 %v11967_v50, %v11967_v50  ;;  %v9773_v41 = vld [vmem:[#allocation12 + $0x20] sm:$0xff]  }
 0xe76   :  { %v3788_v11 = vpop.xlane.xlu1 %3787  ;;  %9201 = vmatprep.subr.bf16.mxu0 %v9773_v41 }
 0xe77   :  { %v3831_v53 = vsub.f32 %v11913_v26, %v3815_v16  ;;  %v3816_v46 = vmul.f32 0.02, %v3788_v11  ;;  %3879 = vadd.xlane.f32.xlu1 %v3862_v57  ;;  %9202 = vmatpush3.bf16.msra.mxu0 %v9773_v41 }
 0xe79   :  { %v3832_v47 = vsub.f32 %v11915_v58, %v3816_v46  ;;  %v11974_v51 = vmul.f32 %v11957_v9, %v3831_v53  ;;  %v9774_v53 = vld [vmem:[#allocation12 + $0x28] sm:$0xff]  }
 0xe7a   :  { %v3790_v54 = vpop.xlane.xlu0 %3789  ;;  %9203 = vmatprep.subr.bf16.mxu0 %v9774_v53 }
 0xe7b   :  { %v3817_v4 = vmul.f32 0.02, %v3790_v54  ;;  %v3863_v2 = vmul.f32 %v11974_v51, %v11974_v51  ;;  %v11979_v19 = vmul.f32 %v11957_v9, %v3832_v47  ;;  %9204 = vmatpush3.bf16.msra.mxu0 %v9774_v53 }
 0xe7c   :  { %v3792_v62 = vpop.xlane.xlu1 %3791 }
 0xe7d   :  { %v3833_v61 = vsub.f32 %v11919_v20, %v3817_v4  ;;  %v3818_v44 = vmul.f32 0.02, %v3792_v62  ;;  %3881 = vadd.xlane.f32.xlu0 %v3863_v2  ;;  %v3864_v26 = vmul.f32 %v11979_v19, %v11979_v19  ;;  %v9775_v2 = vld [vmem:[#allocation12 + $0x30] sm:$0xff]  }
 0xe7e   :  { %9205 = vmatprep.subr.bf16.mxu0 %v9775_v2 }
 0xe7f   :  { %v3834_v58 = vsub.f32 %v11921_v49, %v3818_v44  ;;  %3883 = vadd.xlane.f32.xlu1 %v3864_v26  ;;  %v11986_v25 = vmul.f32 %v11957_v9, %v3833_v61  ;;  %9206 = vmatpush3.bf16.msra.mxu0 %v9775_v2 }
 0xe81   :  { %v3865_v36 = vmul.f32 %v11986_v25, %v11986_v25  ;;  %v11991_v12 = vmul.f32 %v11957_v9, %v3834_v58  ;;  %v9776_v58 = vld [vmem:[#allocation12 + $0x38] sm:$0xff]  }
 0xe82   :  { %v3794_v5 = vpop.xlane.xlu0 %3793  ;;  %9207 = vmatprep.subr.bf16.mxu0 %v9776_v58 }
 0xe83   :  { %v3819_v30 = vmul.f32 0.02, %v3794_v5  ;;  %3885 = vadd.xlane.f32.xlu0 %v3865_v36  ;;  %v3866_v20 = vmul.f32 %v11991_v12, %v11991_v12  ;;  %9208 = vmatpush3.bf16.msra.mxu0 %v9776_v58 }
 0xe84   :  { %v3796_v18 = vpop.xlane.xlu1 %3795 }
 0xe85   :  { %v3835_v49 = vsub.f32 %v11925_v63, %v3819_v30  ;;  %v3820_v43 = vmul.f32 0.02, %v3796_v18  ;;  %3887 = vadd.xlane.f32.xlu1 %v3866_v20 }
 0xe87   :  { %v3836_v24 = vsub.f32 %v11927_v35, %v3820_v43  ;;  %v11998_v31 = vmul.f32 %v11957_v9, %v3835_v49 }
 0xe89   :  { %v3867_v21 = vmul.f32 %v11998_v31, %v11998_v31  ;;  %v12003_v6 = vmul.f32 %v11957_v9, %v3836_v24 }
 0xe8a   :  { %v3798_v40 = vpop.xlane.xlu0 %3797 }
 0xe8b   :  { %v3821_v63 = vmul.f32 0.02, %v3798_v40  ;;  %3889 = vadd.xlane.f32.xlu0 %v3867_v21  ;;  %v3868_v39 = vmul.f32 %v12003_v6, %v12003_v6 }
 0xe8c   :  { %v3800_v35 = vpop.xlane.xlu1 %3799 }
 0xe8d   :  { %v3837_v38 = vsub.f32 %v11931_v42, %v3821_v63  ;;  %v3822_v1 = vmul.f32 0.02, %v3800_v35  ;;  %3891 = vadd.xlane.f32.xlu1 %v3868_v39 }
 0xe8f   :  { %v3838_v22 = vsub.f32 %v11933_v56, %v3822_v1  ;;  %v12010_v27 = vmul.f32 %v11957_v9, %v3837_v38 }
 0xe91   :  { %v3869_v15 = vmul.f32 %v12010_v27, %v12010_v27  ;;  %v12015_v32 = vmul.f32 %v11957_v9, %v3838_v22  ;;  %v12058_v22 = vld [vmem:[%s14068_s8] sm:$0x1f] }
 0xe92   :  { %v3802_v52 = vpop.xlane.xlu0 %3801 }
 0xe93   :  { %v3823_v42 = vmul.f32 0.02, %v3802_v52  ;;  %3893 = vadd.xlane.f32.xlu0 %v3869_v15  ;;  %v3870_v55 = vmul.f32 %v12015_v32, %v12015_v32 }
 0xe94   :  { %v3804_v56 = vpop.xlane.xlu1 %3803 }
 0xe95   :  { %v3839_v10 = vsub.f32 %v11937_v59, %v3823_v42  ;;  %v3824_v16 = vmul.f32 0.02, %v3804_v56  ;;  %3895 = vadd.xlane.f32.xlu1 %v3870_v55  ;;  %v12062_v42 = vrot.slane %v12058_v22, %v14134_v37 }
 0xe97   :  { %v3840_v57 = vsub.f32 %v11939_v45, %v3824_v16  ;;  %v12022_v11 = vmul.f32 %v11957_v9, %v3839_v10 }
 0xe99   :  { %v3871_v46 = vmul.f32 %v12022_v11, %v12022_v11  ;;  %v12027_v47 = vmul.f32 %v11957_v9, %v3840_v57 }
 0xe9a   :  { %v3806_v54 = vpop.xlane.xlu0 %3805 }
 0xe9b   :  { %v3825_v59 = vmul.f32 0.02, %v3806_v54  ;;  %3897 = vadd.xlane.f32.xlu0 %v3871_v46  ;;  %v3872_v4 = vmul.f32 %v12027_v47, %v12027_v47  ;;  %v12067_v54 = vrot.slane %v12058_v22, %v14136_v8 }
 0xe9c   :  { %v3808_v45 = vpop.xlane.xlu1 %3807 }
 0xe9d   :  { %v3841_v62 = vsub.f32 %v11943_v29, %v3825_v59  ;;  %v3826_v61 = vmul.f32 0.02, %v3808_v45  ;;  %3899 = vadd.xlane.f32.xlu1 %v3872_v4 }
 0xe9f   :  { %v3842_v44 = vsub.f32 %v11945_v13, %v3826_v61  ;;  %v12034_v26 = vmul.f32 %v11957_v9, %v3841_v62 }
 0xea1   :  { %v3873_v36 = vmul.f32 %v12034_v26, %v12034_v26  ;;  %v12039_v5 = vmul.f32 %v11957_v9, %v3842_v44 }
 0xea2   :  { %v3810_v30 = vpop.xlane.xlu0 %3809 }
 0xea3   :  { %v3827_v29 = vmul.f32 0.02, %v3810_v30  ;;  %3901 = vadd.xlane.f32.xlu0 %v3873_v36  ;;  %v3874_v20 = vmul.f32 %v12039_v5, %v12039_v5 }
 0xea4   :  { %v3812_v3 = vpop.xlane.xlu1 %3811 }
 0xea5   :  { %v3843_v13 = vsub.f32 %v11949_v33, %v3827_v29  ;;  %v3828_v18 = vmul.f32 0.02, %v3812_v3  ;;  %3903 = vadd.xlane.f32.xlu1 %v3874_v20 }
 0xea7   :  { %v3844_v49 = vsub.f32 %v11951_v28, %v3828_v18  ;;  %v12046_v43 = vmul.f32 %v11957_v9, %v3843_v13 }
 0xea9   :  { %v3875_v24 = vmul.f32 %v12046_v43, %v12046_v43  ;;  %v12051_v14 = vmul.f32 %v11957_v9, %v3844_v49 }
 0xeab   :  { %3905 = vadd.xlane.f32.xlu0 %v3875_v24  ;;  %v3876_v21 = vmul.f32 %v12051_v14, %v12051_v14 }
 0xead   :  { %3907 = vadd.xlane.f32.xlu1 %v3876_v21 }
 0xf02   :  { %v3878_v40 = vpop.xlane.xlu0 %3877 }
 0xf03   :  { %v3909_v33 = vmul.f32 0.02, %v3878_v40 }
 0xf04   :  { %v3880_v63 = vpop.xlane.xlu1 %3879 }
 0xf05   :  { %v3925_v39 = vadd.f32 1e-05, %v3909_v33  ;;  %v3910_v17 = vmul.f32 0.02, %v3880_v63 }
 0xf07   :  { %10081 = vrsqrt.f32 %v3925_v39  ;;  %v3926_v28 = vadd.f32 1e-05, %v3910_v17 }
 0xf09   :  { %10083 = vrsqrt.f32 %v3926_v28 }
 0xf0a   :  { %v3882_v35 = vpop.xlane.xlu0 %3881 }
 0xf0b   :  { %v3911_v38 = vmul.f32 0.02, %v3882_v35 }
 0xf0c   :  { %v3884_v1 = vpop.xlane.xlu1 %3883 }
 0xf0d   :  { %v3927_v48 = vadd.f32 1e-05, %v3911_v38  ;;  %v3912_v15 = vmul.f32 0.02, %v3884_v1 }
 0xf0f   :  { %10085 = vrsqrt.f32 %v3927_v48  ;;  %v3928_v52 = vadd.f32 1e-05, %v3912_v15 }
 0xf10   :  { %v3886_v55 = vpop.xlane.xlu0 %3885 }
 0xf11   :  { %v10082_v41 = vpop.eup %10081  ;;  %10087 = vrsqrt.f32 %v3928_v52  ;;  %v3913_v56 = vmul.f32 0.02, %v3886_v55 }
 0xf12   :  { %v3888_v10 = vpop.xlane.xlu1 %3887  ;;  %v3957_v16 = vmul.f32 %v10082_v41, %v11962_v34 }
 0xf13   :  { %v10084_v57 = vpop.eup %10083  ;;  %v3929_v53 = vadd.f32 1e-05, %v3913_v56  ;;  %v3914_v46 = vmul.f32 0.02, %v3888_v10 }
 0xf14   :  { %v3958_v59 = vmul.f32 %v10084_v57, %v11967_v50  ;;  %v3977_v4 = vmul.f32 %v12062_v42, %v3957_v16 }
 0xf15   :  { %10089 = vrsqrt.f32 %v3929_v53  ;;  %v3930_v2 = vadd.f32 1e-05, %v3914_v46 }
 0xf16   :  { %v3978_v45 = vmul.f32 %v12062_v42, %v3958_v59  ;;  %v12073_v61 = vadd.f32 %v12067_v54, %v3977_v4 }
 0xf17   :  { %10091 = vrsqrt.f32 %v3930_v2 }
 0xf18   :  { %v3890_v62 = vpop.xlane.xlu0 %3889  ;;  %v12076_v34 = vadd.f32 %v12067_v54, %v3978_v45 }
 0xf19   :  { %v10086_v44 = vpop.eup %10085  ;;  %v3915_v58 = vmul.f32 0.02, %v3890_v62 }
 0xf1a   :  { %v3892_v36 = vpop.xlane.xlu1 %3891  ;;  %v4013_v50 = vpack.c.bf16 %v12076_v34, %v12073_v61  ;;  %v3959_v30 = vmul.f32 %v10086_v44, %v11974_v51 }
 0xf1b   :  { %v10088_v29 = vpop.eup %10087  ;;  %v3931_v20 = vadd.f32 1e-05, %v3915_v58  ;;  %v3916_v3 = vmul.f32 0.02, %v3892_v36 }
 0xf1c   :  { %9209 = vmatprep.mubr.bf16.mxu0 %v4013_v50  ;;  %v3960_v13 = vmul.f32 %v10088_v29, %v11979_v19  ;;  %v3979_v18 = vmul.f32 %v12062_v42, %v3959_v30 }
 0xf1d   :  { %10093 = vrsqrt.f32 %v3931_v20  ;;  %v3932_v49 = vadd.f32 1e-05, %v3916_v3 }
 0xf1e   :  { %v3980_v24 = vmul.f32 %v12062_v42, %v3960_v13  ;;  %v12085_v33 = vadd.f32 %v12067_v54, %v3979_v18 }
 0xf1f   :  { %v10090_v21 = vpop.eup %10089  ;;  %10095 = vrsqrt.f32 %v3932_v49 }
 0xf20   :  { %v3894_v40 = vpop.xlane.xlu0 %3893  ;;  %v12088_v51 = vadd.f32 %v12067_v54, %v3980_v24  ;;  %v3961_v63 = vmul.f32 %v10090_v21, %v11986_v25 }
 0xf21   :  { %v10092_v39 = vpop.eup %10091  ;;  %v3917_v17 = vmul.f32 0.02, %v3894_v40 }
 0xf22   :  { %v3896_v19 = vpop.xlane.xlu1 %3895  ;;  %v4014_v28 = vpack.c.bf16 %v12088_v51, %v12085_v33  ;;  %v3962_v35 = vmul.f32 %v10092_v39, %v11991_v12  ;;  %v3981_v38 = vmul.f32 %v12062_v42, %v3961_v63 }
 0xf23   :  { %v3933_v1 = vadd.f32 1e-05, %v3917_v17  ;;  %v3918_v48 = vmul.f32 0.02, %v3896_v19 }
 0xf24   :  { %9210 = vmatmul.mubr.bf16.vlgmr.msra.gmra.mrb[120].mxu0 %v4014_v28  ;;  %v3982_v15 = vmul.f32 %v12062_v42, %v3962_v35  ;;  %v12097_v55 = vadd.f32 %v12067_v54, %v3981_v38 }
 0xf25   :  { %10097 = vrsqrt.f32 %v3933_v1  ;;  %v3934_v52 = vadd.f32 1e-05, %v3918_v48 }
 0xf26   :  { %v12100_v25 = vadd.f32 %v12067_v54, %v3982_v15 }
 0xf27   :  { %v10094_v41 = vpop.eup %10093  ;;  %10099 = vrsqrt.f32 %v3934_v52 }
 0xf28   :  { %v3898_v56 = vpop.xlane.xlu0 %3897  ;;  %v4015_v12 = vpack.c.bf16 %v12100_v25, %v12097_v55  ;;  %v3963_v10 = vmul.f32 %v10094_v41, %v11998_v31 }
 0xf29   :  { %v10096_v16 = vpop.eup %10095  ;;  %v3919_v57 = vmul.f32 0.02, %v3898_v56 }
 0xf2a   :  { %9213 = vmatprep.mubr.bf16.mxu0 %v4015_v12  ;;  %v3900_v53 = vpop.xlane.xlu1 %3899  ;;  %v3964_v46 = vmul.f32 %v10096_v16, %v12003_v6  ;;  %v3983_v59 = vmul.f32 %v12062_v42, %v3963_v10 }
 0xf2b   :  { %v3935_v4 = vadd.f32 1e-05, %v3919_v57  ;;  %v3920_v2 = vmul.f32 0.02, %v3900_v53 }
 0xf2c   :  { %v3984_v45 = vmul.f32 %v12062_v42, %v3964_v46  ;;  %v12109_v44 = vadd.f32 %v12067_v54, %v3983_v59 }
 0xf2d   :  { %10101 = vrsqrt.f32 %v3935_v4  ;;  %v3936_v62 = vadd.f32 1e-05, %v3920_v2 }
 0xf2e   :  { %v12112_v58 = vadd.f32 %v12067_v54, %v3984_v45 }
 0xf2f   :  { %v10098_v31 = vpop.eup %10097  ;;  %10103 = vrsqrt.f32 %v3936_v62 }
 0xf30   :  { %v3902_v36 = vpop.xlane.xlu0 %3901  ;;  %v4016_v6 = vpack.c.bf16 %v12112_v58, %v12109_v44  ;;  %v3965_v50 = vmul.f32 %v10098_v31, %v12010_v27 }
 0xf31   :  { %v10100_v30 = vpop.eup %10099  ;;  %v3921_v29 = vmul.f32 0.02, %v3902_v36 }
 0xf32   :  { %9214 = vmatmul.mubr.bf16.gmra.mrb[124].mxu0 %v4016_v6  ;;  %v3904_v20 = vpop.xlane.xlu1 %3903  ;;  %v3966_v3 = vmul.f32 %v10100_v30, %v12015_v32  ;;  %v3985_v13 = vmul.f32 %v12062_v42, %v3965_v50 }
 0xf33   :  { %v3937_v18 = vadd.f32 1e-05, %v3921_v29  ;;  %v3922_v49 = vmul.f32 0.02, %v3904_v20 }
 0xf34   :  { %v3986_v24 = vmul.f32 %v12062_v42, %v3966_v3  ;;  %v12121_v40 = vadd.f32 %v12067_v54, %v3985_v13 }
 0xf35   :  { %10105 = vrsqrt.f32 %v3937_v18  ;;  %v3938_v21 = vadd.f32 1e-05, %v3922_v49 }
 0xf36   :  { %v12124_v63 = vadd.f32 %v12067_v54, %v3986_v24 }
 0xf37   :  { %v10102_v27 = vpop.eup %10101  ;;  %10107 = vrsqrt.f32 %v3938_v21 }
 0xf38   :  { %v3906_v39 = vpop.xlane.xlu0 %3905  ;;  %v4017_v32 = vpack.c.bf16 %v12124_v63, %v12121_v40  ;;  %v3967_v17 = vmul.f32 %v10102_v27, %v12022_v11 }
 0xf39   :  { %v10104_v19 = vpop.eup %10103  ;;  %v3923_v28 = vmul.f32 0.02, %v3906_v39 }
 0xf3a   :  { %9217 = vmatprep.mubr.bf16.mxu0 %v4017_v32  ;;  %v3908_v35 = vpop.xlane.xlu1 %3907  ;;  %v3968_v38 = vmul.f32 %v10104_v19, %v12027_v47  ;;  %v3987_v1 = vmul.f32 %v12062_v42, %v3967_v17 }
 0xf3b   :  { %v3939_v48 = vadd.f32 1e-05, %v3923_v28  ;;  %v3924_v15 = vmul.f32 0.02, %v3908_v35 }
 0xf3c   :  { %v3988_v52 = vmul.f32 %v12062_v42, %v3968_v38  ;;  %v12133_v56 = vadd.f32 %v12067_v54, %v3987_v1 }
 0xf3d   :  { %10109 = vrsqrt.f32 %v3939_v48  ;;  %v3940_v41 = vadd.f32 1e-05, %v3924_v15 }
 0xf3e   :  { %v12136_v12 = vadd.f32 %v12067_v54, %v3988_v52 }
 0xf3f   :  { %v10106_v11 = vpop.eup %10105  ;;  %10111 = vrsqrt.f32 %v3940_v41 }
 0xf40   :  { %v4018_v10 = vpack.c.bf16 %v12136_v12, %v12133_v56  ;;  %v3969_v47 = vmul.f32 %v10106_v11, %v12034_v26 }
 0xf41   :  { %v10108_v16 = vpop.eup %10107 }
 0xf42   :  { %9218 = vmatmul.mubr.bf16.gmra.mrb[128].mxu0 %v4018_v10  ;;  %v3970_v57 = vmul.f32 %v10108_v16, %v12039_v5  ;;  %v3989_v53 = vmul.f32 %v12062_v42, %v3969_v47 }
 0xf44   :  { %v3990_v46 = vmul.f32 %v12062_v42, %v3970_v57  ;;  %v12145_v59 = vadd.f32 %v12067_v54, %v3989_v53 }
 0xf46   :  { %v12148_v4 = vadd.f32 %v12067_v54, %v3990_v46 }
 0xf47   :  { %v10110_v2 = vpop.eup %10109 }
 0xf48   :  { %v4019_v45 = vpack.c.bf16 %v12148_v4, %v12145_v59  ;;  %v3971_v26 = vmul.f32 %v10110_v2, %v12046_v43  ;;  %v4040_v43 = vrot.slane %v12058_v22, %v14135_v23 }
 0xf49   :  { %v10112_v62 = vpop.eup %10111 }
 0xf4a   :  { %9221 = vmatprep.mubr.bf16.mxu0 %v4019_v45  ;;  %v3972_v5 = vmul.f32 %v10112_v62, %v12051_v14  ;;  %v3991_v31 = vmul.f32 %v12062_v42, %v3971_v26 }
 0xf4c   :  { %v3992_v36 = vmul.f32 %v12062_v42, %v3972_v5  ;;  %v12157_v6 = vadd.f32 %v12067_v54, %v3991_v31  ;;  %v9777_v31 = vld [vmem:[#allocation11 + $0xc0] ss:$12 sps:$4 sm:$0xff]  }
 0xf4e   :  { %v12160_v50 = vadd.f32 %v12067_v54, %v3992_v36  ;;  %v9782_v36 = vld [vmem:[#allocation11 + $0xdc] ss:$12 sps:$4 sm:$0xff]  }
 0xf50   :  { %v4020_v30 = vpack.c.bf16 %v12160_v50, %v12157_v6 }
 0xf52   :  { %9222 = vmatmul.mubr.bf16.gmra.mrb[132].mxu0 %v4020_v30  ;;  %v12230_v30 = vld [vmem:[#allocation11 + $0xc8] ss:$12 sps:$4 sm:$0xff]  }
 0xf53   :  { %9225 = vmatprep.subr.bf16.mxu0 %v12230_v30 }
 0xf54   :  { %9226 = vmatpush3.bf16.msra.mxu0 %v12230_v30 }
 0xff7   :  { %v9211_v29 = vpop.f32.mrb[120].mxu0 }
 0xff8   :  { %v4132_v20 = vadd.f32 %v9211_v29, %v4040_v43  ;;  %v4123_v14 = vpop.f32.mrb[121].mxu0 }
 0xff9   :  { %v4124_v3 = vadd.f32 %v4123_v14, %v4040_v43  ;;  %v9212_v13 = vpop.f32.mrb[122].mxu0 }
 0xffa   :  { %v4135_v18 = vadd.f32 %v9212_v13, %v4040_v43  ;;  %v4126_v42 = vpop.f32.mrb[123].mxu0  ;;  %v12175_v21 = vadd.f32 %v4132_v20, %v12085_v33 }
 0xffb   :  { %v4127_v49 = vadd.f32 %v4126_v42, %v4040_v43  ;;  %v12167_v24 = vadd.f32 %v4124_v3, %v12073_v61 }
 0xffc   :  { %v12179_v27 = vadd.f32 %v4135_v18, %v12088_v51 }
 0xffd   :  { %4202 = vadd.xlane.f32.xlu0 %v12167_v24  ;;  %v12171_v54 = vadd.f32 %v4127_v49, %v12076_v34 }
 0xfff   :  { %4204 = vadd.xlane.f32.xlu1 %v12171_v54 }
0x1001   :  { %4206 = vadd.xlane.f32.xlu0 %v12175_v21 }
0x1003   :  { %4208 = vadd.xlane.f32.xlu1 %v12179_v27 }
0x1005   :  { %v9215_v39 = vpop.f32.mrb[124].mxu0 }
0x1006   :  { %v4148_v61 = vadd.f32 %v9215_v39, %v4040_v43  ;;  %v4139_v32 = vpop.f32.mrb[125].mxu0 }
0x1007   :  { %v4140_v17 = vadd.f32 %v4139_v32, %v4040_v43  ;;  %v9216_v19 = vpop.f32.mrb[126].mxu0 }
0x1008   :  { %v4151_v28 = vadd.f32 %v9216_v19, %v4040_v43  ;;  %v4142_v34 = vpop.f32.mrb[127].mxu0  ;;  %v12191_v51 = vadd.f32 %v4148_v61, %v12109_v44 }
0x1009   :  { %v4143_v35 = vadd.f32 %v4142_v34, %v4040_v43  ;;  %v12183_v38 = vadd.f32 %v4140_v17, %v12097_v55 }
0x100a   :  { %v12195_v1 = vadd.f32 %v4151_v28, %v12112_v58 }
0x100b   :  { %4210 = vadd.xlane.f32.xlu0 %v12183_v38  ;;  %v12187_v33 = vadd.f32 %v4143_v35, %v12100_v25 }
0x100d   :  { %4212 = vadd.xlane.f32.xlu1 %v12187_v33 }
0x100f   :  { %4214 = vadd.xlane.f32.xlu0 %v12191_v51 }
0x1011   :  { %4216 = vadd.xlane.f32.xlu1 %v12195_v1 }
0x1015   :  { %v9219_v48 = vpop.f32.mrb[128].mxu0 }
0x1016   :  { %v4164_v55 = vadd.f32 %v9219_v48, %v4040_v43  ;;  %v4155_v15 = vpop.f32.mrb[129].mxu0 }
0x1017   :  { %v4156_v52 = vadd.f32 %v4155_v15, %v4040_v43  ;;  %v9220_v41 = vpop.f32.mrb[130].mxu0 }
0x1018   :  { %v4167_v11 = vadd.f32 %v9220_v41, %v4040_v43  ;;  %v4158_v25 = vpop.f32.mrb[131].mxu0  ;;  %v12207_v58 = vadd.f32 %v4164_v55, %v12133_v56 }
0x1019   :  { %v4159_v10 = vadd.f32 %v4158_v25, %v4040_v43  ;;  %v12199_v47 = vadd.f32 %v4156_v52, %v12121_v40 }
0x101a   :  { %v12211_v16 = vadd.f32 %v4167_v11, %v12136_v12 }
0x101b   :  { %4218 = vadd.xlane.f32.xlu0 %v12199_v47  ;;  %v12203_v44 = vadd.f32 %v4159_v10, %v12124_v63 }
0x101d   :  { %4220 = vadd.xlane.f32.xlu1 %v12203_v44 }
0x101f   :  { %4222 = vadd.xlane.f32.xlu0 %v12207_v58 }
0x1021   :  { %4224 = vadd.xlane.f32.xlu1 %v12211_v16 }
0x1025   :  { %v9223_v57 = vpop.f32.mrb[132].mxu0 }
0x1026   :  { %v4180_v40 = vadd.f32 %v9223_v57, %v4040_v43  ;;  %v4171_v53 = vpop.f32.mrb[133].mxu0 }
0x1027   :  { %v4172_v46 = vadd.f32 %v4171_v53, %v4040_v43  ;;  %v9224_v2 = vpop.f32.mrb[134].mxu0 }
0x1028   :  { %v4183_v45 = vadd.f32 %v9224_v2, %v4040_v43  ;;  %v4174_v63 = vpop.f32.mrb[135].mxu0  ;;  %v12223_v12 = vadd.f32 %v4180_v40, %v12157_v6  ;;  %v9786_v2 = vld [vmem:[#allocation11 + $0xf4] ss:$12 sps:$4 sm:$0xff]  }
0x1029   :  { %v4175_v26 = vadd.f32 %v4174_v63, %v4040_v43  ;;  %v12215_v62 = vadd.f32 %v4172_v46, %v12145_v59  ;;  %v9779_v59 = vld [vmem:[#allocation11 + $0xc4] ss:$12 sps:$4 sm:$0xff]  }
0x102a   :  { %v12227_v5 = vadd.f32 %v4183_v45, %v12160_v50  ;;  %4621 = vmatprep.subr.bf16.mxu1 %v9779_v59  ;;  %v12275_v45 = vld [vmem:[#allocation11 + $0xe0] ss:$12 sps:$4 sm:$0xff]   ;;  %v12286_v59 = vld [vmem:[#allocation11 + $0xf8] ss:$12 sps:$4 sm:$0xff]  }
0x102b   :  { %4226 = vadd.xlane.f32.xlu0 %v12215_v62  ;;  %v12219_v56 = vadd.f32 %v4175_v26, %v12148_v4  ;;  %4622 = vmatpush1.bf16.msra.mxu1 %v9777_v31  ;;  %v9780_v4 = vld [vmem:[#allocation11 + $0xd8] ss:$12 sps:$4 sm:$0xff]  }
0x102c   :  { %4623 = vmatprep.subr.bf16.mxu1 %v9782_v36  ;;  %9227 = vmatprep.subr.bf16.mxu0 %v12275_v45  ;;  %v9790_v31 = vld [vmem:[#allocation11 + $0x10c] ss:$12 sps:$4 sm:$0xff]   ;;  %v9788_v36 = vld [vmem:[#allocation11 + $0x108] ss:$12 sps:$4 sm:$0xff]  }
0x102d   :  { %4228 = vadd.xlane.f32.xlu1 %v12219_v56  ;;  %9228 = vmatpush3.bf16.msra.mxu0 %v12275_v45 }
0x102e   :  { %9229 = vmatprep.subr.bf16.mxu0 %v12286_v59 }
0x102f   :  { %4230 = vadd.xlane.f32.xlu0 %v12223_v12  ;;  %4624 = vmatpush1.bf16.msra.mxu1 %v9780_v4 }
0x1030   :  { %4625 = vmatprep.subr.bf16.mxu1 %v9786_v2 }
0x1031   :  { %4232 = vadd.xlane.f32.xlu1 %v12227_v5  ;;  %9230 = vmatpush3.bf16.msra.mxu0 %v12286_v59 }
0x108a   :  { %v4203_v6 = vpop.xlane.xlu0 %4202 }
0x108b   :  { %v4234_v43 = vmul.f32 0.02, %v4203_v6 }
0x108c   :  { %v4205_v50 = vpop.xlane.xlu1 %4204 }
0x108d   :  { %v4250_v29 = vsub.f32 %v12167_v24, %v4234_v43  ;;  %v4235_v20 = vmul.f32 0.02, %v4205_v50  ;;  %v9794_v43 = vld [vmem:[#allocation11 + $0x124] ss:$12 sps:$4 sm:$0xff]  }
0x108e   :  { %v4207_v14 = vpop.xlane.xlu0 %4206  ;;  %v12290_v50 = vld [vmem:[#allocation11 + $0x110] ss:$12 sps:$4 sm:$0xff]  }
0x108f   :  { %v4251_v3 = vsub.f32 %v12171_v54, %v4235_v20  ;;  %v4236_v13 = vmul.f32 0.02, %v4207_v14  ;;  %v12237_v18 = vmul.f32 %v11957_v9, %v4250_v29  ;;  %v9792_v20 = vld [vmem:[#allocation11 + $0x120] ss:$12 sps:$4 sm:$0xff]   ;;  %9231 = vmatprep.subr.bf16.mxu0 %v12290_v50 }
0x1090   :  { %v4209_v42 = vpop.xlane.xlu1 %4208  ;;  %9232 = vmatpush3.bf16.msra.mxu0 %v12290_v50 }
0x1091   :  { %v4252_v49 = vsub.f32 %v12175_v21, %v4236_v13  ;;  %v4237_v39 = vmul.f32 0.02, %v4209_v42  ;;  %v4282_v61 = vmul.f32 %v12237_v18, %v12237_v18  ;;  %v12243_v32 = vmul.f32 %v11957_v9, %v4251_v3 }
0x1093   :  { %v4253_v24 = vsub.f32 %v12179_v27, %v4237_v39  ;;  %4298 = vadd.xlane.f32.xlu0 %v4282_v61  ;;  %v4283_v54 = vmul.f32 %v12243_v32, %v12243_v32  ;;  %v12249_v17 = vmul.f32 %v11957_v9, %v4252_v49  ;;  %v9798_v61 = vld [vmem:[#allocation11 + $0x13c] ss:$12 sps:$4 sm:$0xff]  }
0x1095   :  { %4300 = vadd.xlane.f32.xlu1 %v4283_v54  ;;  %v4284_v21 = vmul.f32 %v12249_v17, %v12249_v17  ;;  %v12254_v19 = vmul.f32 %v11957_v9, %v4253_v24  ;;  %v12299_v24 = vld [vmem:[#allocation11 + $0x128] ss:$12 sps:$4 sm:$0xff]  }
0x1096   :  { %9233 = vmatprep.subr.bf16.mxu0 %v12299_v24 }
0x1097   :  { %4302 = vadd.xlane.f32.xlu0 %v4284_v21  ;;  %v4285_v28 = vmul.f32 %v12254_v19, %v12254_v19  ;;  %v9796_v21 = vld [vmem:[#allocation11 + $0x138] ss:$12 sps:$4 sm:$0xff]   ;;  %9234 = vmatpush3.bf16.msra.mxu0 %v12299_v24 }
0x1098   :  { %v4211_v34 = vpop.xlane.xlu0 %4210 }
0x1099   :  { %v4238_v27 = vmul.f32 0.02, %v4211_v34  ;;  %4304 = vadd.xlane.f32.xlu1 %v4285_v28 }
0x109a   :  { %v4213_v35 = vpop.xlane.xlu1 %4212 }
0x109b   :  { %v4254_v48 = vsub.f32 %v12183_v38, %v4238_v27  ;;  %v4239_v55 = vmul.f32 0.02, %v4213_v35 }
0x109c   :  { %v4215_v15 = vpop.xlane.xlu0 %4214 }
0x109d   :  { %v4255_v52 = vsub.f32 %v12187_v33, %v4239_v55  ;;  %v4240_v41 = vmul.f32 0.02, %v4215_v15  ;;  %v12261_v11 = vmul.f32 %v11957_v9, %v4254_v48  ;;  %v12315_v55 = vld [vmem:[#allocation11 + $0x140] ss:$12 sps:$4 sm:$0xff]   ;;  %v9800_v15 = vld [vmem:[#allocation11 + $0x150] ss:$12 sps:$4 sm:$0xff]  }
0x109e   :  { %v4217_v25 = vpop.xlane.xlu1 %4216  ;;  %9235 = vmatprep.subr.bf16.mxu0 %v12315_v55 }
0x109f   :  { %v4256_v10 = vsub.f32 %v12191_v51, %v4240_v41  ;;  %v4241_v57 = vmul.f32 0.02, %v4217_v25  ;;  %v4286_v40 = vmul.f32 %v12261_v11, %v12261_v11  ;;  %v12267_v53 = vmul.f32 %v11957_v9, %v4255_v52  ;;  %v9784_v51 = vld [vmem:[#allocation11 + $0xf0] ss:$12 sps:$4 sm:$0xff]   ;;  %9236 = vmatpush3.bf16.msra.mxu0 %v12315_v55  ;;  %v9806_v25 = vld [vmem:[#allocation11 + $0x16c] ss:$12 sps:$4 sm:$0xff]  }
0x10a0   :  { %4626 = vmatpush1.bf16.msra.mxu1 %v9784_v51 }
0x10a1   :  { %v4257_v38 = vsub.f32 %v12195_v1, %v4241_v57  ;;  %4306 = vadd.xlane.f32.xlu0 %v4286_v40  ;;  %v4287_v33 = vmul.f32 %v12267_v53, %v12267_v53  ;;  %v12273_v46 = vmul.f32 %v11957_v9, %v4256_v10  ;;  %4627 = vmatprep.subr.bf16.mxu1 %v9790_v31  ;;  %v12326_v10 = vld [vmem:[#allocation11 + $0x158] ss:$12 sps:$4 sm:$0xff]   ;;  %v9804_v57 = vld [vmem:[#allocation11 + $0x168] ss:$12 sps:$4 sm:$0xff]  }
0x10a2   :  { %9237 = vmatprep.subr.bf16.mxu0 %v12326_v10 }
0x10a3   :  { %4308 = vadd.xlane.f32.xlu1 %v4287_v33  ;;  %v4288_v63 = vmul.f32 %v12273_v46, %v12273_v46  ;;  %v12280_v26 = vmul.f32 %v11957_v9, %v4257_v38  ;;  %9238 = vmatpush3.bf16.msra.mxu0 %v12326_v10  ;;  %v12330_v33 = vld [vmem:[#allocation11 + $0x170] ss:$12 sps:$4 sm:$0xff]  }
0x10a4   :  { %4628 = vmatpush1.bf16.msra.mxu1 %v9788_v36  ;;  %9239 = vmatprep.subr.bf16.mxu0 %v12330_v33 }
0x10a5   :  { %4310 = vadd.xlane.f32.xlu0 %v4288_v63  ;;  %v4289_v1 = vmul.f32 %v12280_v26, %v12280_v26  ;;  %4629 = vmatprep.subr.bf16.mxu1 %v9794_v43 }
0x10a7   :  { %4312 = vadd.xlane.f32.xlu1 %v4289_v1  ;;  %9240 = vmatpush3.bf16.msra.mxu0 %v12330_v33 }
0x10a8   :  { %v4219_v4 = vpop.xlane.xlu0 %4218  ;;  %4630 = vmatpush1.bf16.msra.mxu1 %v9792_v20  ;;  %9257 = vmatprep.subr.bf16.mxu0 %v11538_v60 }
0x10a9   :  { %v4242_v6 = vmul.f32 0.02, %v4219_v4  ;;  %4631 = vmatprep.subr.bf16.mxu1 %v9798_v61 }
0x10aa   :  { %v4221_v29 = vpop.xlane.xlu1 %4220 }
0x10ab   :  { %v4258_v14 = vsub.f32 %v12199_v47, %v4242_v6  ;;  %v4243_v3 = vmul.f32 0.02, %v4221_v29 }
0x10ac   :  { %v4223_v13 = vpop.xlane.xlu0 %4222  ;;  %4632 = vmatpush1.bf16.msra.mxu1 %v9796_v21 }
0x10ad   :  { %v4259_v42 = vsub.f32 %v12203_v44, %v4243_v3  ;;  %v4244_v49 = vmul.f32 0.02, %v4223_v13  ;;  %v12296_v39 = vmul.f32 %v11957_v9, %v4258_v14 }
0x10ae   :  { %v4225_v54 = vpop.xlane.xlu1 %4224 }
0x10af   :  { %v4260_v47 = vsub.f32 %v12207_v58, %v4244_v49  ;;  %v4245_v28 = vmul.f32 0.02, %v4225_v54  ;;  %v4290_v34 = vmul.f32 %v12296_v39, %v12296_v39  ;;  %v12305_v27 = vmul.f32 %v11957_v9, %v4259_v42  ;;  %v9802_v58 = vld [vmem:[#allocation11 + $0x154] ss:$12 sps:$4 sm:$0xff]  }
0x10b0   :  { %4633 = vmatprep.subr.bf16.mxu1 %v9802_v58 }
0x10b1   :  { %v4261_v44 = vsub.f32 %v12211_v16, %v4245_v28  ;;  %4314 = vadd.xlane.f32.xlu0 %v4290_v34  ;;  %v4291_v35 = vmul.f32 %v12305_v27, %v12305_v27  ;;  %v12312_v48 = vmul.f32 %v11957_v9, %v4260_v47  ;;  %4634 = vmatpush1.bf16.msra.mxu1 %v9800_v15 }
0x10b2   :  { %4635 = vmatprep.subr.bf16.mxu1 %v9806_v25  ;;  %v12365_v25 = vsub.s32 4, %v11062_v7 }
0x10b3   :  { %4316 = vadd.xlane.f32.xlu1 %v4291_v35  ;;  %v4292_v52 = vmul.f32 %v12312_v48, %v12312_v48  ;;  %v12320_v41 = vmul.f32 %v11957_v9, %v4261_v44 }
0x10b4   :  { %14139 = vst [vmem:[#allocation21_spill] sm:$0xff] %v12365_v25 }
0x10b5   :  { %4318 = vadd.xlane.f32.xlu0 %v4292_v52  ;;  %v4293_v16 = vmul.f32 %v12320_v41, %v12320_v41  ;;  %4636 = vmatpush1.bf16.msra.mxu1 %v9804_v57  ;;  %v14138_v52 = vld [vmem:[#allocation46_spill] sm:$0xff] }
0x10b6   :  { %9585 = vmatprep.subr.bf16.mxu1 %v12230_v30 }
0x10b7   :  { %4320 = vadd.xlane.f32.xlu1 %v4293_v16  ;;  %v12362_v16 = vrot.slane %v12058_v22, %v14138_v52 }
0x10b8   :  { %v4227_v40 = vpop.xlane.xlu0 %4226 }
0x10b9   :  { %v4246_v38 = vmul.f32 0.02, %v4227_v40 }
0x10ba   :  { %v4229_v2 = vpop.xlane.xlu1 %4228 }
0x10bb   :  { %v4262_v51 = vsub.f32 %v12215_v62, %v4246_v38  ;;  %v4247_v63 = vmul.f32 0.02, %v4229_v2 }
0x10bc   :  { %v4231_v1 = vpop.xlane.xlu0 %4230 }
0x10bd   :  { %v4263_v31 = vsub.f32 %v12219_v56, %v4247_v63  ;;  %v4248_v36 = vmul.f32 0.02, %v4231_v1  ;;  %v12337_v4 = vmul.f32 %v11957_v9, %v4262_v51 }
0x10be   :  { %v4233_v6 = vpop.xlane.xlu1 %4232 }
0x10bf   :  { %v4264_v43 = vsub.f32 %v12223_v12, %v4248_v36  ;;  %v4249_v29 = vmul.f32 0.02, %v4233_v6  ;;  %v4294_v62 = vmul.f32 %v12337_v4, %v12337_v4  ;;  %v12345_v20 = vmul.f32 %v11957_v9, %v4263_v31 }
0x10c0   :  { %v12370_v36 = vrot.slane %v12058_v22, %v12365_v25 }
0x10c1   :  { %v4265_v56 = vsub.f32 %v12227_v5, %v4249_v29  ;;  %4322 = vadd.xlane.f32.xlu0 %v4294_v62  ;;  %v4295_v14 = vmul.f32 %v12345_v20, %v12345_v20  ;;  %v12351_v3 = vmul.f32 %v11957_v9, %v4264_v43 }
0x10c3   :  { %4324 = vadd.xlane.f32.xlu1 %v4295_v14  ;;  %v4296_v12 = vmul.f32 %v12351_v3, %v12351_v3  ;;  %v12356_v13 = vmul.f32 %v11957_v9, %v4265_v56 }
0x10c5   :  { %4326 = vadd.xlane.f32.xlu0 %v4296_v12  ;;  %v4297_v42 = vmul.f32 %v12356_v13, %v12356_v13 }
0x10c7   :  { %4328 = vadd.xlane.f32.xlu1 %v4297_v42 }
0x1120   :  { %v4299_v5 = vpop.xlane.xlu0 %4298 }
0x1121   :  { %v4330_v49 = vmul.f32 0.02, %v4299_v5 }
0x1122   :  { %v4301_v61 = vpop.xlane.xlu1 %4300 }
0x1123   :  { %v4346_v54 = vadd.f32 1e-05, %v4330_v49  ;;  %v4331_v21 = vmul.f32 0.02, %v4301_v61 }
0x1124   :  { %v4303_v47 = vpop.xlane.xlu0 %4302 }
0x1125   :  { %10113 = vrsqrt.f32 %v4346_v54  ;;  %v4347_v28 = vadd.f32 1e-05, %v4331_v21  ;;  %v4332_v34 = vmul.f32 0.02, %v4303_v47 }
0x1126   :  { %v4305_v44 = vpop.xlane.xlu1 %4304 }
0x1127   :  { %10115 = vrsqrt.f32 %v4347_v28  ;;  %v4348_v35 = vadd.f32 1e-05, %v4332_v34  ;;  %v4333_v58 = vmul.f32 0.02, %v4305_v44 }
0x1129   :  { %10117 = vrsqrt.f32 %v4348_v35  ;;  %v4349_v15 = vadd.f32 1e-05, %v4333_v58 }
0x112b   :  { %10119 = vrsqrt.f32 %v4349_v15 }
0x112e   :  { %v4307_v57 = vpop.xlane.xlu0 %4306 }
0x112f   :  { %v10114_v40 = vpop.eup %10113  ;;  %v4334_v38 = vmul.f32 0.02, %v4307_v57 }
0x1130   :  { %v4309_v2 = vpop.xlane.xlu1 %4308  ;;  %v4378_v51 = vmul.f32 %v10114_v40, %v12237_v18 }
0x1131   :  { %v10116_v63 = vpop.eup %10115  ;;  %v4350_v1 = vadd.f32 1e-05, %v4334_v38  ;;  %v4335_v31 = vmul.f32 0.02, %v4309_v2 }
0x1132   :  { %v4311_v6 = vpop.xlane.xlu0 %4310  ;;  %v4379_v43 = vmul.f32 %v10116_v63, %v12243_v32  ;;  %v4398_v29 = vmul.f32 %v12362_v16, %v4378_v51 }
0x1133   :  { %v10118_v7 = vpop.eup %10117  ;;  %10121 = vrsqrt.f32 %v4350_v1  ;;  %v4351_v62 = vadd.f32 1e-05, %v4335_v31  ;;  %v4336_v56 = vmul.f32 0.02, %v4311_v6 }
0x1134   :  { %v4380_v14 = vmul.f32 %v10118_v7, %v12249_v17  ;;  %v4313_v12 = vpop.xlane.xlu1 %4312  ;;  %v4399_v18 = vmul.f32 %v12362_v16, %v4379_v43  ;;  %v12379_v32 = vadd.f32 %v12370_v36, %v4398_v29 }
0x1135   :  { %v10120_v42 = vpop.eup %10119  ;;  %10123 = vrsqrt.f32 %v4351_v62  ;;  %v4352_v5 = vadd.f32 1e-05, %v4336_v56  ;;  %v4337_v49 = vmul.f32 0.02, %v4313_v12 }
0x1136   :  { %v4400_v22 = vmul.f32 %v12362_v16, %v4380_v14  ;;  %v4381_v61 = vmul.f32 %v10120_v42, %v12254_v19  ;;  %v12382_v54 = vadd.f32 %v12370_v36, %v4399_v18 }
0x1137   :  { %10125 = vrsqrt.f32 %v4352_v5  ;;  %v4353_v21 = vadd.f32 1e-05, %v4337_v49 }
0x1138   :  { %v4401_v17 = vmul.f32 %v12362_v16, %v4381_v61  ;;  %v4434_v47 = vpack.c.bf16 %v12382_v54, %v12379_v32  ;;  %v12388_v28 = vadd.f32 %v12370_v36, %v4400_v22 }
0x1139   :  { %10127 = vrsqrt.f32 %v4353_v21 }
0x113a   :  { %4654 = vmatmul.mubr.bf16.vlgmr.msra.gmra.mrb[120].mxu1 %v4434_v47  ;;  %9241 = vmatprep.mubr.bf16.mxu0 %v4434_v47  ;;  %v12391_v19 = vadd.f32 %v12370_v36, %v4401_v17 }
0x113b   :  { %4663 = vmatprep.mubr.bf16.mxu1 %v14111_v0  ;;  %9593 = vmatpush3.bf16.msra.mxu1 %v12230_v30 }
0x113c   :  { %v4435_v34 = vpack.c.bf16 %v12391_v19, %v12388_v28  ;;  %9586 = vmatprep.subr.bf16.mxu1 %v12275_v45 }
0x113d   :  { %v10122_v44 = vpop.eup %10121 }
0x113e   :  { %v4315_v35 = vpop.xlane.xlu0 %4314  ;;  %9242 = vmatmul.mubr.bf16.vlgmr.msra.gmra.mrb[136].mxu0 %v4435_v34  ;;  %v4382_v58 = vmul.f32 %v10122_v44, %v12261_v11 }
0x113f   :  { %v10124_v15 = vpop.eup %10123  ;;  %v4338_v57 = vmul.f32 0.02, %v4315_v35  ;;  %9594 = vmatpush3.bf16.msra.mxu1 %v12275_v45 }
0x1140   :  { %v4317_v40 = vpop.xlane.xlu1 %4316  ;;  %v4383_v38 = vmul.f32 %v10124_v15, %v12267_v53  ;;  %v4402_v2 = vmul.f32 %v12362_v16, %v4382_v58  ;;  %9587 = vmatprep.subr.bf16.mxu1 %v12286_v59 }
0x1141   :  { %v10126_v30 = vpop.eup %10125  ;;  %v4354_v51 = vadd.f32 1e-05, %v4338_v57  ;;  %v4339_v63 = vmul.f32 0.02, %v4317_v40 }
0x1142   :  { %v4319_v1 = vpop.xlane.xlu0 %4318  ;;  %4664 = vmatmul.mubr.bf16.gmra.mrb[124].mxu1 %v4435_v34  ;;  %v4403_v31 = vmul.f32 %v12362_v16, %v4383_v38  ;;  %v4384_v11 = vmul.f32 %v10126_v30, %v12273_v46  ;;  %v12408_v29 = vadd.f32 %v12370_v36, %v4402_v2 }
0x1143   :  { %v10128_v6 = vpop.eup %10127  ;;  %10129 = vrsqrt.f32 %v4354_v51  ;;  %v4355_v43 = vadd.f32 1e-05, %v4339_v63  ;;  %v4340_v45 = vmul.f32 0.02, %v4319_v1  ;;  %4673 = vmatprep.mubr.bf16.mxu1 %v14111_v0  ;;  %9595 = vmatpush3.bf16.msra.mxu1 %v12286_v59 }
0x1144   :  { %v4321_v53 = vpop.xlane.xlu1 %4320  ;;  %v12411_v7 = vadd.f32 %v12370_v36, %v4403_v31  ;;  %v4385_v62 = vmul.f32 %v10128_v6, %v12280_v26  ;;  %v4404_v56 = vmul.f32 %v12362_v16, %v4384_v11  ;;  %9588 = vmatprep.subr.bf16.mxu1 %v12290_v50 }
0x1145   :  { %10131 = vrsqrt.f32 %v4355_v43  ;;  %v4356_v46 = vadd.f32 1e-05, %v4340_v45  ;;  %v4341_v14 = vmul.f32 0.02, %v4321_v53 }
0x1146   :  { %v4436_v12 = vpack.c.bf16 %v12411_v7, %v12408_v29  ;;  %v4405_v59 = vmul.f32 %v12362_v16, %v4385_v62  ;;  %v12421_v42 = vadd.f32 %v12370_v36, %v4404_v56 }
0x1147   :  { %v4357_v18 = vadd.f32 1e-05, %v4341_v14  ;;  %9596 = vmatpush3.bf16.msra.mxu1 %v12290_v50  ;;  %10133 = vrsqrt.f32 %v4356_v46 }
0x1148   :  { %9245 = vmatprep.mubr.bf16.mxu0 %v4436_v12  ;;  %v12424_v26 = vadd.f32 %v12370_v36, %v4405_v59  ;;  %9589 = vmatprep.subr.bf16.mxu1 %v12299_v24 }
0x1149   :  { %10135 = vrsqrt.f32 %v4357_v18 }
0x114a   :  { %4674 = vmatmul.mubr.bf16.gmra.mrb[128].mxu1 %v4436_v12  ;;  %v4437_v5 = vpack.c.bf16 %v12424_v26, %v12421_v42 }
0x114b   :  { %4683 = vmatprep.mubr.bf16.mxu1 %v14111_v0  ;;  %9597 = vmatpush3.bf16.msra.mxu1 %v12299_v24 }
0x114c   :  { %9246 = vmatmul.mubr.bf16.gmra.mrb[140].mxu0 %v4437_v5  ;;  %9590 = vmatprep.subr.bf16.mxu1 %v12315_v55 }
0x114d   :  { %v10130_v50 = vpop.eup %10129  ;;  %9259 = vmatprep.mubr.msk.bf16.mxu0 %vm10670_vm0, %v11538_v60 }
0x114e   :  { %v4323_v49 = vpop.xlane.xlu0 %4322  ;;  %v4386_v22 = vmul.f32 %v10130_v50, %v12296_v39 }
0x114f   :  { %v10132_v61 = vpop.eup %10131  ;;  %v4342_v21 = vmul.f32 0.02, %v4323_v49  ;;  %9598 = vmatpush3.bf16.msra.mxu1 %v12315_v55 }
0x1150   :  { %v4325_v17 = vpop.xlane.xlu1 %4324  ;;  %v4387_v47 = vmul.f32 %v10132_v61, %v12305_v27  ;;  %9591 = vmatprep.subr.bf16.mxu1 %v12326_v10  ;;  %v4406_v58 = vmul.f32 %v12362_v16, %v4386_v22 }
0x1151   :  { %v4358_v24 = vadd.f32 1e-05, %v4342_v21  ;;  %v4343_v34 = vmul.f32 0.02, %v4325_v17  ;;  %v10134_v44 = vpop.eup %10133 }
0x1152   :  { %v4327_v35 = vpop.xlane.xlu0 %4326  ;;  %4684 = vmatmul.mubr.bf16.gmra.mrb[132].mxu1 %v4437_v5  ;;  %v4407_v15 = vmul.f32 %v12362_v16, %v4387_v47  ;;  %v12448_v51 = vadd.f32 %v12370_v36, %v4406_v58  ;;  %v4388_v63 = vmul.f32 %v10134_v44, %v12312_v48 }
0x1153   :  { %v10136_v57 = vpop.eup %10135  ;;  %10137 = vrsqrt.f32 %v4358_v24  ;;  %v4359_v39 = vadd.f32 1e-05, %v4343_v34  ;;  %v4344_v40 = vmul.f32 0.02, %v4327_v35  ;;  %4693 = vmatprep.mubr.bf16.mxu1 %v14111_v0  ;;  %9599 = vmatpush3.bf16.msra.mxu1 %v12326_v10 }
0x1154   :  { %v4329_v27 = vpop.xlane.xlu1 %4328  ;;  %v12443_v55 = vadd.f32 %v12370_v36, %v4407_v15  ;;  %v4389_v38 = vmul.f32 %v10136_v57, %v12320_v41  ;;  %9592 = vmatprep.subr.bf16.mxu1 %v12330_v33  ;;  %v4408_v41 = vmul.f32 %v12362_v16, %v4388_v63 }
0x1155   :  { %10139 = vrsqrt.f32 %v4359_v39  ;;  %v4360_v2 = vadd.f32 1e-05, %v4344_v40  ;;  %v4345_v30 = vmul.f32 0.02, %v4329_v27 }
0x1156   :  { %v4438_v10 = vpack.c.bf16 %v12443_v55, %v12448_v51  ;;  %v4409_v31 = vmul.f32 %v12362_v16, %v4389_v38 }
0x1157   :  { %v4361_v1 = vadd.f32 1e-05, %v4345_v30  ;;  %9600 = vmatpush3.bf16.msra.mxu1 %v12330_v33  ;;  %10141 = vrsqrt.f32 %v4360_v2  ;;  %v12462_v33 = vadd.f32 %v12370_v36, %v4408_v41 }
0x1158   :  { %9263 = vmatprep.subr.bf16.mxu1 %v11538_v60  ;;  %v12459_v11 = vadd.f32 %v12370_v36, %v4409_v31 }
0x1159   :  { %10143 = vrsqrt.f32 %v4361_v1 }
0x115a   :  { %4694 = vmatmul.mubr.bf16.gmra.mrb[136].mxu1 %v4438_v10  ;;  %v4439_v45 = vpack.c.bf16 %v12459_v11, %v12462_v33 }
0x115b   :  { %4703 = vmatprep.mubr.bf16.mxu1 %v14111_v0 }
0x115d   :  { %v10138_v48 = vpop.eup %10137 }
0x115e   :  { %v4390_v6 = vmul.f32 %v10138_v48, %v12337_v4 }
0x115f   :  { %v10140_v43 = vpop.eup %10139 }
0x1160   :  { %v4391_v53 = vmul.f32 %v10140_v43, %v12345_v20  ;;  %v4410_v56 = vmul.f32 %v12362_v16, %v4390_v6 }
0x1161   :  { %v10142_v62 = vpop.eup %10141 }
0x1162   :  { %4704 = vmatmul.mubr.bf16.gmra.mrb[140].mxu1 %v4439_v45  ;;  %v4411_v46 = vmul.f32 %v12362_v16, %v4391_v53  ;;  %v12476_v59 = vadd.f32 %v12370_v36, %v4410_v56  ;;  %v4392_v18 = vmul.f32 %v10142_v62, %v12351_v3  ;;  %v8752_v3 = vld [vmem:[%s14066_s6 + $0x3] sm:$0x7] }
0x1163   :  { %v10144_v14 = vpop.eup %10143  ;;  %4713 = vmatprep.mubr.bf16.mxu1 %v14111_v0  ;;  %v12507_v35 = vrot.slane %v8752_v3, %v14136_v8 }
0x1164   :  { %v12472_v12 = vadd.f32 %v12370_v36, %v4411_v46  ;;  %v4393_v4 = vmul.f32 %v10144_v14, %v12356_v13  ;;  %v4412_v50 = vmul.f32 %v12362_v16, %v4392_v18 }
0x1166   :  { %v4440_v20 = vpack.c.bf16 %v12472_v12, %v12476_v59  ;;  %v4413_v5 = vmul.f32 %v12362_v16, %v4393_v4  ;;  %v12488_v13 = vadd.f32 %v12370_v36, %v4412_v50  ;;  %v12498_v16 = vrot.slane %v8752_v3, %v14134_v37 }
0x1168   :  { %v12485_v49 = vadd.f32 %v12370_v36, %v4413_v5  ;;  %v12501_v36 = vrot.slane %v8752_v3, %v14135_v23 }
0x116a   :  { %4714 = vmatmul.mubr.bf16.gmra.mrb[144].mxu1 %v4440_v20  ;;  %v4441_v22 = vpack.c.bf16 %v12485_v49, %v12488_v13 }
0x116b   :  { %4723 = vmatprep.mubr.bf16.mxu1 %v14111_v0 }
0x1172   :  { %4724 = vmatmul.mubr.bf16.gmra.mrb[148].mxu1 %v4441_v22 }
0x1173   :  { %9249 = vmatprep.mubr.bf16.mxu1 %v4438_v10 }
0x117a   :  { %9250 = vmatmul.mubr.bf16.vlgmr.msra.gmra.mrb[152].mxu1 %v4439_v45 }
0x117b   :  { %9253 = vmatprep.mubr.bf16.mxu1 %v4440_v20 }
0x1182   :  { %9254 = vmatmul.mubr.bf16.gmra.mrb[156].mxu1 %v4441_v22 }
0x1183   :  { %9265 = vmatprep.mubr.msk.bf16.mxu1 %vm10670_vm0, %v11538_v60 }
0x120d   :  { %v4655_v61 = vpop.f32.mrb[120].mxu1 }
0x120e   :  { %v4657_v21 = vpop.f32.mrb[121].mxu1  ;;  %v4656_v24 = vadd.f32 %v4655_v61, %v12501_v36 }
0x120f   :  { %v4658_v17 = vadd.f32 %v4657_v21, %v12498_v16  ;;  %v4659_v47 = vpop.f32.mrb[122].mxu1 }
0x1210   :  { %v4660_v34 = vadd.f32 %v4659_v47, %v12501_v36  ;;  %v4661_v44 = vpop.f32.mrb[123].mxu1 }
0x1211   :  { %v4662_v58 = vadd.f32 %v4661_v44, %v12498_v16  ;;  %v9243_v15 = vpop.f32.mrb[136].mxu0 }
0x1212   :  { %v4831_v57 = vpack.c.bf16 %v4660_v34, %v4656_v24  ;;  %v4768_v39 = vpop.f32.mrb[137].mxu0  ;;  %v12511_v38 = vadd.f32 %v9243_v15, %v12507_v35 }
0x1213   :  { %v4839_v40 = vpack.c.bf16 %v4662_v58, %v4658_v17  ;;  %v9244_v27 = vpop.f32.mrb[138].mxu0  ;;  %v12517_v63 = vadd.f32 %v4768_v39, %v12507_v35 }
0x1214   :  { %v12514_v2 = vadd.f32 %v9244_v27, %v12507_v35  ;;  %v4771_v30 = vpop.f32.mrb[139].mxu0 }
0x1215   :  { %v12520_v1 = vadd.f32 %v4771_v30, %v12507_v35  ;;  %v4665_v10 = vpop.f32.mrb[124].mxu1  ;;  %9258 = vmatpush3.bf16.xpose.msra.mxu0 %v4839_v40  ;;  %v10448_v40 = vld [vmem:[#allocation6 + $0x70] sm:$0xff] }
0x1216   :  { %v4848_v31 = vpack.c.bf16 %v12514_v2, %v12511_v38  ;;  %v4667_v41 = vpop.f32.mrb[125].mxu1  ;;  %9269 = vmatprep.subr.bf16.mxu0 %v11538_v60  ;;  %v4666_v45 = vadd.f32 %v4665_v10, %v12501_v36  ;;  %v10444_v2 = vld [vmem:[#allocation6 + $0x50] sm:$0xff] }
0x1217   :  { %v4847_v48 = vpack.c.bf16 %v12520_v1, %v12517_v63  ;;  %v4668_v6 = vadd.f32 %v4667_v41, %v12498_v16  ;;  %v4669_v43 = vpop.f32.mrb[126].mxu1  ;;  %v10446_v1 = vld [vmem:[#allocation6 + $0x60] sm:$0xff] }
0x1218   :  { %v4670_v53 = vadd.f32 %v4669_v43, %v12501_v36  ;;  %v4671_v62 = vpop.f32.mrb[127].mxu1 }
0x1219   :  { %v4672_v56 = vadd.f32 %v4671_v62, %v12498_v16 }
0x121a   :  { %v4832_v46 = vpack.c.bf16 %v4670_v53, %v4666_v45 }
0x121b   :  { %v4840_v14 = vpack.c.bf16 %v4672_v56, %v4668_v6 }
0x121c   :  { %9260 = vmatmul.mubr.bf16.vlgmr.msra.gmra.mrb[144].mxu0 %v4831_v57 }
0x121d   :  { %v4675_v4 = vpop.f32.mrb[128].mxu1  ;;  %9264 = vmatpush3.bf16.xpose.msra.mxu1 %v4840_v14  ;;  %9271 = vmatprep.mubr.msk.bf16.mxu0 %vm10670_vm0, %v11538_v60 }
0x121e   :  { %v4677_v18 = vpop.f32.mrb[129].mxu1  ;;  %9275 = vmatprep.subr.bf16.mxu1 %v11538_v60  ;;  %v4676_v22 = vadd.f32 %v4675_v4, %v12501_v36 }
0x121f   :  { %v4678_v20 = vadd.f32 %v4677_v18, %v12498_v16  ;;  %v4679_v5 = vpop.f32.mrb[130].mxu1  ;;  %v9247_v50 = vpop.f32.mrb[140].mxu0 }
0x1220   :  { %v4680_v3 = vadd.f32 %v4679_v5, %v12501_v36  ;;  %v4681_v61 = vpop.f32.mrb[131].mxu1  ;;  %v4784_v21 = vpop.f32.mrb[141].mxu0  ;;  %v12539_v34 = vadd.f32 %v9247_v50, %v12507_v35 }
0x1221   :  { %v4682_v17 = vadd.f32 %v4681_v61, %v12498_v16  ;;  %v9248_v47 = vpop.f32.mrb[142].mxu0  ;;  %v12545_v57 = vadd.f32 %v4784_v21, %v12507_v35 }
0x1222   :  { %v4833_v24 = vpack.c.bf16 %v4680_v3, %v4676_v22  ;;  %v12542_v44 = vadd.f32 %v9248_v47, %v12507_v35  ;;  %v4787_v58 = vpop.f32.mrb[143].mxu0 }
0x1223   :  { %v4841_v15 = vpack.c.bf16 %v4682_v17, %v4678_v20  ;;  %v12548_v39 = vadd.f32 %v4787_v58, %v12507_v35 }
0x1224   :  { %9266 = vmatmul.mubr.bf16.vlgmr.msra.gmra.mrb[160].mxu1 %v4832_v46 }
0x1225   :  { %v4685_v30 = vpop.f32.mrb[132].mxu1  ;;  %9270 = vmatpush3.bf16.xpose.msra.mxu0 %v4841_v15  ;;  %9277 = vmatprep.mubr.msk.bf16.mxu1 %vm10670_vm0, %v11538_v60 }
0x1226   :  { %v4687_v10 = vpop.f32.mrb[133].mxu1  ;;  %9281 = vmatprep.subr.bf16.mxu0 %v11538_v60  ;;  %v4686_v43 = vadd.f32 %v4685_v30, %v12501_v36 }
0x1227   :  { %v4688_v41 = vadd.f32 %v4687_v10, %v12498_v16  ;;  %v4689_v6 = vpop.f32.mrb[134].mxu1 }
0x1228   :  { %v4690_v45 = vadd.f32 %v4689_v6, %v12501_v36  ;;  %v4691_v53 = vpop.f32.mrb[135].mxu1 }
0x1229   :  { %v4692_v62 = vadd.f32 %v4691_v53, %v12498_v16 }
0x122a   :  { %v4834_v56 = vpack.c.bf16 %v4690_v45, %v4686_v43 }
0x122b   :  { %v4842_v46 = vpack.c.bf16 %v4692_v62, %v4688_v41 }
0x122c   :  { %9272 = vmatmul.mubr.bf16.vlgmr.msra.gmra.mrb[148].mxu0 %v4833_v24 }
0x122d   :  { %v4695_v14 = vpop.f32.mrb[136].mxu1  ;;  %9276 = vmatpush3.bf16.xpose.msra.mxu1 %v4842_v46  ;;  %9283 = vmatprep.mubr.msk.bf16.mxu0 %vm10670_vm0, %v11538_v60 }
0x122e   :  { %v4697_v4 = vpop.f32.mrb[137].mxu1  ;;  %9287 = vmatprep.subr.bf16.mxu1 %v11538_v60  ;;  %v4696_v5 = vadd.f32 %v4695_v14, %v12501_v36 }
0x122f   :  { %v4698_v18 = vadd.f32 %v4697_v4, %v12498_v16  ;;  %v4699_v20 = vpop.f32.mrb[138].mxu1 }
0x1230   :  { %v4700_v50 = vadd.f32 %v4699_v20, %v12501_v36  ;;  %v4701_v22 = vpop.f32.mrb[139].mxu1 }
0x1231   :  { %v4702_v3 = vadd.f32 %v4701_v22, %v12498_v16 }
0x1232   :  { %v4835_v61 = vpack.c.bf16 %v4700_v50, %v4696_v5 }
0x1233   :  { %v4843_v21 = vpack.c.bf16 %v4702_v3, %v4698_v18 }
0x1234   :  { %9278 = vmatmul.mubr.bf16.vlgmr.msra.gmra.mrb[164].mxu1 %v4834_v56 }
0x1235   :  { %v4705_v17 = vpop.f32.mrb[140].mxu1  ;;  %9282 = vmatpush3.bf16.xpose.msra.mxu0 %v4843_v21  ;;  %9289 = vmatprep.mubr.msk.bf16.mxu1 %vm10670_vm0, %v11538_v60 }
0x1236   :  { %v4707_v47 = vpop.f32.mrb[141].mxu1  ;;  %9293 = vmatprep.subr.bf16.mxu0 %v11538_v60  ;;  %v4706_v15 = vadd.f32 %v4705_v17, %v12501_v36 }
0x1237   :  { %v4708_v24 = vadd.f32 %v4707_v47, %v12498_v16  ;;  %v4709_v58 = vpop.f32.mrb[142].mxu1 }
0x1238   :  { %v4710_v30 = vadd.f32 %v4709_v58, %v12501_v36  ;;  %v4711_v10 = vpop.f32.mrb[143].mxu1 }
0x1239   :  { %v4712_v41 = vadd.f32 %v4711_v10, %v12498_v16 }
0x123a   :  { %v4836_v6 = vpack.c.bf16 %v4710_v30, %v4706_v15 }
0x123b   :  { %v4844_v43 = vpack.c.bf16 %v4712_v41, %v4708_v24 }
0x123c   :  { %9284 = vmatmul.mubr.bf16.vlgmr.msra.gmra.mrb[152].mxu0 %v4835_v61 }
0x123d   :  { %v4715_v45 = vpop.f32.mrb[144].mxu1  ;;  %9288 = vmatpush3.bf16.xpose.msra.mxu1 %v4844_v43  ;;  %9295 = vmatprep.mubr.msk.bf16.mxu0 %vm10670_vm0, %v11538_v60 }
0x123e   :  { %v4717_v53 = vpop.f32.mrb[145].mxu1  ;;  %9299 = vmatprep.subr.bf16.mxu1 %v11538_v60  ;;  %v4716_v46 = vadd.f32 %v4715_v45, %v12501_v36 }
0x123f   :  { %v4718_v62 = vadd.f32 %v4717_v53, %v12498_v16  ;;  %v4719_v56 = vpop.f32.mrb[146].mxu1 }
0x1240   :  { %v4720_v14 = vadd.f32 %v4719_v56, %v12501_v36  ;;  %v4721_v4 = vpop.f32.mrb[147].mxu1 }
0x1241   :  { %v4722_v18 = vadd.f32 %v4721_v4, %v12498_v16 }
0x1242   :  { %v4837_v20 = vpack.c.bf16 %v4720_v14, %v4716_v46 }
0x1243   :  { %v4845_v5 = vpack.c.bf16 %v4722_v18, %v4718_v62 }
0x1244   :  { %9290 = vmatmul.mubr.bf16.vlgmr.msra.gmra.mrb[168].mxu1 %v4836_v6 }
0x1245   :  { %v4725_v50 = vpop.f32.mrb[148].mxu1  ;;  %9294 = vmatpush3.bf16.xpose.msra.mxu0 %v4845_v5  ;;  %9301 = vmatprep.mubr.msk.bf16.mxu1 %vm10670_vm0, %v11538_v60 }
0x1246   :  { %v4727_v22 = vpop.f32.mrb[149].mxu1  ;;  %9305 = vmatprep.subr.bf16.mxu0 %v11538_v60  ;;  %v4726_v21 = vadd.f32 %v4725_v50, %v12501_v36 }
0x1247   :  { %v4728_v3 = vadd.f32 %v4727_v22, %v12498_v16  ;;  %v4729_v61 = vpop.f32.mrb[150].mxu1 }
0x1248   :  { %v4730_v17 = vadd.f32 %v4729_v61, %v12501_v36  ;;  %v4731_v47 = vpop.f32.mrb[151].mxu1  ;;  %v10434_v61 = vld [vmem:[#allocation6] sm:$0xff] }
0x1249   :  { %v4732_v24 = vadd.f32 %v4731_v47, %v12498_v16 }
0x124a   :  { %v4838_v58 = vpack.c.bf16 %v4730_v17, %v4726_v21 }
0x124b   :  { %v4846_v15 = vpack.c.bf16 %v4732_v24, %v4728_v3 }
0x124c   :  { %9296 = vmatmul.mubr.bf16.vlgmr.msra.gmra.mrb[156].mxu0 %v4837_v20 }
0x124d   :  { %v9251_v30 = vpop.f32.mrb[152].mxu1  ;;  %9300 = vmatpush3.bf16.xpose.msra.mxu1 %v4846_v15  ;;  %9306 = vmatpush3.bf16.msra.mxu0 %v4847_v48 }
0x124e   :  { %v4800_v10 = vpop.f32.mrb[153].mxu1  ;;  %9311 = vmatprep.subr.bf16.mxu1 %v11538_v60  ;;  %9307 = vmatprep.mubr.msk.bf16.mxu0 %vm10670_vm0, %v11538_v60  ;;  %v12597_v16 = vadd.f32 %v9251_v30, %v12507_v35 }
0x124f   :  { %v9252_v41 = vpop.f32.mrb[154].mxu1  ;;  %9317 = vmatprep.subr.bf16.mxu0 %v11538_v60  ;;  %v12603_v43 = vadd.f32 %v4800_v10, %v12507_v35 }
0x1250   :  { %v12600_v36 = vadd.f32 %v9252_v41, %v12507_v35  ;;  %v4803_v6 = vpop.f32.mrb[155].mxu1  ;;  %v10436_v41 = vld [vmem:[#allocation6 + $0x10] sm:$0xff] }
0x1251   :  { %v12606_v63 = vadd.f32 %v4803_v6, %v12507_v35 }
0x1254   :  { %9302 = vmatmul.mubr.bf16.vlgmr.msra.gmra.mrb[172].mxu1 %v4838_v58 }
0x1255   :  { %v9255_v45 = vpop.f32.mrb[156].mxu1  ;;  %9312 = vmatpush3.bf16.msra.mxu1 %v4848_v31  ;;  %9313 = vmatprep.mubr.msk.bf16.mxu1 %vm10670_vm0, %v11538_v60 }
0x1256   :  { %v4816_v53 = vpop.f32.mrb[157].mxu1  ;;  %9323 = vmatprep.subr.bf16.mxu1 %v11538_v60  ;;  %v12619_v56 = vadd.f32 %v9255_v45, %v12507_v35 }
0x1257   :  { %v9256_v62 = vpop.f32.mrb[158].mxu1  ;;  %v12625_v4 = vadd.f32 %v4816_v53, %v12507_v35 }
0x1258   :  { %v12622_v46 = vadd.f32 %v9256_v62, %v12507_v35  ;;  %v4819_v14 = vpop.f32.mrb[159].mxu1  ;;  %v10437_v62 = vld [vmem:[#allocation6 + $0x18] sm:$0xff] }
0x1259   :  { %v12628_v38 = vadd.f32 %v4819_v14, %v12507_v35  ;;  %v10435_v35 = vld [vmem:[#allocation6 + $0x8] sm:$0xff] }
0x12ef   :  { %v4889_v18 = vpop.f32.mrb[144].mxu0 }
0x12f0   :  { %v5183_v20 = vmul.f32 0.14142136, %v4889_v18  ;;  %v9261_v5 = vpop.f32.mrb[145].mxu0 }
0x12f1   :  { %v4892_v50 = vpop.f32.mrb[146].mxu0 }
0x12f2   :  { %v5184_v22 = vmul.f32 0.14142136, %v4892_v50  ;;  %v9262_v3 = vpop.f32.mrb[147].mxu0  ;;  %v12634_v21 = vadd.f32 %v10434_v61, %v5183_v20  ;;  %v10438_v61 = vld [vmem:[#allocation6 + $0x20] sm:$0xff] }
0x12f4   :  { %v5215_v17 = vsel %vm3227_vm1, %v12634_v21, -inf  ;;  %v12638_v47 = vadd.f32 %v10435_v35, %v5184_v22 }
0x12f5   :  { %5216 = vmax.xlane.f32.xlu0 %v5215_v17 }
0x12f6   :  { %v5218_v24 = vsel %vm3227_vm1, %v12638_v47, -inf }
0x12f7   :  { %v4930_v58 = vpop.f32.mrb[160].mxu1  ;;  %5219 = vmax.xlane.f32.xlu1 %v5218_v24 }
0x12f8   :  { %v5185_v15 = vmul.f32 0.14142136, %v4930_v58  ;;  %v9267_v30 = vpop.f32.mrb[161].mxu1  ;;  %v10439_v58 = vld [vmem:[#allocation6 + $0x28] sm:$0xff] }
0x12f9   :  { %v4933_v10 = vpop.f32.mrb[162].mxu1 }
0x12fa   :  { %v12642_v6 = vadd.f32 %v10436_v41, %v5185_v15  ;;  %v5186_v45 = vmul.f32 0.14142136, %v4933_v10  ;;  %v9268_v53 = vpop.f32.mrb[163].mxu1 }
0x12fc   :  { %v12644_v14 = vadd.f32 %v10437_v62, %v5186_v45  ;;  %v5221_v18 = vsel %vm3227_vm1, %v12642_v6, -inf }
0x12fd   :  { %5222 = vmax.xlane.f32.xlu0 %v5221_v18  ;;  %v10440_v18 = vld [vmem:[#allocation6 + $0x30] sm:$0xff] }
0x12fe   :  { %v5224_v20 = vsel %vm3227_vm1, %v12644_v14, -inf }
0x12ff   :  { %5225 = vmax.xlane.f32.xlu1 %v5224_v20  ;;  %v4971_v5 = vpop.f32.mrb[148].mxu0 }
0x1300   :  { %v5187_v50 = vmul.f32 0.14142136, %v4971_v5  ;;  %v9273_v22 = vpop.f32.mrb[149].mxu0 }
0x1301   :  { %v4974_v3 = vpop.f32.mrb[150].mxu0  ;;  %v10441_v22 = vld [vmem:[#allocation6 + $0x38] sm:$0xff] }
0x1302   :  { %v12650_v17 = vadd.f32 %v10438_v61, %v5187_v50  ;;  %v5188_v35 = vmul.f32 0.14142136, %v4974_v3  ;;  %v9274_v24 = vpop.f32.mrb[151].mxu0 }
0x1304   :  { %v12652_v15 = vadd.f32 %v10439_v58, %v5188_v35  ;;  %v5227_v30 = vsel %vm3227_vm1, %v12650_v17, -inf }
0x1305   :  { %5228 = vmax.xlane.f32.xlu0 %v5227_v30 }
0x1306   :  { %v5230_v10 = vsel %vm3227_vm1, %v12652_v15, -inf }
0x1307   :  { %v5012_v41 = vpop.f32.mrb[164].mxu1  ;;  %5231 = vmax.xlane.f32.xlu1 %v5230_v10 }
0x1308   :  { %v5189_v45 = vmul.f32 0.14142136, %v5012_v41  ;;  %v9279_v53 = vpop.f32.mrb[165].mxu1  ;;  %v10442_v41 = vld [vmem:[#allocation6 + $0x40] sm:$0xff] }
0x1309   :  { %v5015_v62 = vpop.f32.mrb[166].mxu1 }
0x130a   :  { %v12658_v20 = vadd.f32 %v10440_v18, %v5189_v45  ;;  %v5190_v5 = vmul.f32 0.14142136, %v5015_v62  ;;  %v9280_v50 = vpop.f32.mrb[167].mxu1  ;;  %v10443_v18 = vld [vmem:[#allocation6 + $0x48] sm:$0xff] }
0x130c   :  { %v12660_v3 = vadd.f32 %v10441_v22, %v5190_v5  ;;  %v5233_v61 = vsel %vm3227_vm1, %v12658_v20, -inf }
0x130d   :  { %5234 = vmax.xlane.f32.xlu0 %v5233_v61 }
0x130e   :  { %v5236_v35 = vsel %vm3227_vm1, %v12660_v3, -inf }
0x130f   :  { %5237 = vmax.xlane.f32.xlu1 %v5236_v35  ;;  %v5053_v24 = vpop.f32.mrb[152].mxu0 }
0x1310   :  { %v5191_v58 = vmul.f32 0.14142136, %v5053_v24  ;;  %v9285_v30 = vpop.f32.mrb[153].mxu0 }
0x1311   :  { %v5056_v10 = vpop.f32.mrb[154].mxu0 }
0x1312   :  { %v12666_v45 = vadd.f32 %v10442_v41, %v5191_v58  ;;  %v5192_v53 = vmul.f32 0.14142136, %v5056_v10  ;;  %v9286_v62 = vpop.f32.mrb[155].mxu0 }
0x1313   :  { %v10445_v62 = vld [vmem:[#allocation6 + $0x58] sm:$0xff] }
0x1314   :  { %v12668_v5 = vadd.f32 %v10443_v18, %v5192_v53  ;;  %v5239_v50 = vsel %vm3227_vm1, %v12666_v45, -inf }
0x1315   :  { %5240 = vmax.xlane.f32.xlu0 %v5239_v50 }
0x1316   :  { %v5242_v22 = vsel %vm3227_vm1, %v12668_v5, -inf }
0x1317   :  { %v5094_v61 = vpop.f32.mrb[168].mxu1  ;;  %5243 = vmax.xlane.f32.xlu1 %v5242_v22 }
0x1318   :  { %v5193_v35 = vmul.f32 0.14142136, %v5094_v61  ;;  %v9291_v24 = vpop.f32.mrb[169].mxu1 }
0x1319   :  { %v5097_v30 = vpop.f32.mrb[170].mxu1 }
0x131a   :  { %v12674_v58 = vadd.f32 %v10444_v2, %v5193_v35  ;;  %v5194_v10 = vmul.f32 0.14142136, %v5097_v30  ;;  %v9292_v41 = vpop.f32.mrb[171].mxu1 }
0x131b   :  { %v10447_v41 = vld [vmem:[#allocation6 + $0x68] sm:$0xff] }
0x131c   :  { %v12676_v53 = vadd.f32 %v10445_v62, %v5194_v10  ;;  %v5245_v18 = vsel %vm3227_vm1, %v12674_v58, -inf }
0x131d   :  { %5246 = vmax.xlane.f32.xlu0 %v5245_v18 }
0x131e   :  { %v5248_v50 = vsel %vm3227_vm1, %v12676_v53, -inf }
0x131f   :  { %5249 = vmax.xlane.f32.xlu1 %v5248_v50  ;;  %v5135_v22 = vpop.f32.mrb[156].mxu0 }
0x1320   :  { %v5195_v61 = vmul.f32 0.14142136, %v5135_v22  ;;  %v9297_v24 = vpop.f32.mrb[157].mxu0 }
0x1321   :  { %v5138_v31 = vpop.f32.mrb[158].mxu0 }
0x1322   :  { %v12682_v2 = vadd.f32 %v10446_v1, %v5195_v61  ;;  %v5196_v35 = vmul.f32 0.14142136, %v5138_v31  ;;  %v9298_v30 = vpop.f32.mrb[159].mxu0 }
0x1323   :  { %v10449_v30 = vld [vmem:[#allocation6 + $0x78] sm:$0xff] }
0x1324   :  { %v12684_v10 = vadd.f32 %v10447_v41, %v5196_v35  ;;  %v5251_v62 = vsel %vm3227_vm1, %v12682_v2, -inf }
0x1325   :  { %5252 = vmax.xlane.f32.xlu0 %v5251_v62 }
0x1326   :  { %v5254_v18 = vsel %vm3227_vm1, %v12684_v10, -inf }
0x1327   :  { %v5176_v50 = vpop.f32.mrb[172].mxu1  ;;  %5255 = vmax.xlane.f32.xlu1 %v5254_v18 }
0x1328   :  { %v5197_v22 = vmul.f32 0.14142136, %v5176_v50  ;;  %v9303_v24 = vpop.f32.mrb[173].mxu1 }
0x1329   :  { %v5179_v48 = vpop.f32.mrb[174].mxu1 }
0x132a   :  { %v12690_v1 = vadd.f32 %v10448_v40, %v5197_v22  ;;  %v5198_v31 = vmul.f32 0.14142136, %v5179_v48  ;;  %v9304_v61 = vpop.f32.mrb[175].mxu1 }
0x132c   :  { %v12692_v35 = vadd.f32 %v10449_v30, %v5198_v31  ;;  %v5257_v41 = vsel %vm3227_vm1, %v12690_v1, -inf }
0x132d   :  { %5258 = vmax.xlane.f32.xlu0 %v5257_v41 }
0x132e   :  { %v5260_v62 = vsel %vm3227_vm1, %v12692_v35, -inf }
0x132f   :  { %5261 = vmax.xlane.f32.xlu1 %v5260_v62 }
0x1382   :  { %v5217_v18 = vpop.xlane.xlu0 %5216 }
0x1383   :  { %v5263_v50 = vsub.f32 %v12634_v21, %v5217_v18 }
0x1384   :  { %v5220_v24 = vpop.xlane.xlu1 %5219 }
0x1385   :  { %v5279_v27 = vmul.f32 1.442695, %v5263_v50  ;;  %v5264_v40 = vsub.f32 %v12638_v47, %v5220_v24 }
0x1387   :  { %10145 = vpow2.f32 %v5279_v27  ;;  %v5281_v48 = vmul.f32 1.442695, %v5264_v40 }
0x1389   :  { %10147 = vpow2.f32 %v5281_v48 }
0x138a   :  { %v5223_v22 = vpop.xlane.xlu0 %5222 }
0x138b   :  { %v5265_v31 = vsub.f32 %v12642_v6, %v5223_v22 }
0x138c   :  { %v5226_v61 = vpop.xlane.xlu1 %5225 }
0x138d   :  { %v5283_v30 = vmul.f32 1.442695, %v5265_v31  ;;  %v5266_v41 = vsub.f32 %v12644_v14, %v5226_v61 }
0x138f   :  { %10149 = vpow2.f32 %v5283_v30  ;;  %v5285_v25 = vmul.f32 1.442695, %v5266_v41 }
0x1391   :  { %v12702_v62 = vpop.eup %10145  ;;  %10151 = vpow2.f32 %v5285_v25 }
0x1392   :  { %v5229_v21 = vpop.xlane.xlu0 %5228  ;;  %v5311_v18 = vsel %vm3227_vm1, %v12702_v62, 0.0 }
0x1393   :  { %v12706_v47 = vpop.eup %10147  ;;  %v5267_v27 = vsub.f32 %v12650_v17, %v5229_v21  ;;  %5312 = vadd.xlane.f32.xlu0 %v5311_v18 }
0x1394   :  { %v5232_v50 = vpop.xlane.xlu1 %5231  ;;  %v5314_v6 = vsel %vm3227_vm1, %v12706_v47, 0.0 }
0x1395   :  { %v5287_v24 = vmul.f32 1.442695, %v5267_v27  ;;  %v5268_v14 = vsub.f32 %v12652_v15, %v5232_v50  ;;  %5315 = vadd.xlane.f32.xlu1 %v5314_v6 }
0x1397   :  { %10153 = vpow2.f32 %v5287_v24  ;;  %v5289_v40 = vmul.f32 1.442695, %v5268_v14 }
0x1399   :  { %v12712_v25 = vpop.eup %10149  ;;  %10155 = vpow2.f32 %v5289_v40 }
0x139a   :  { %v5235_v48 = vpop.xlane.xlu0 %5234  ;;  %v5317_v22 = vsel %vm3227_vm1, %v12712_v25, 0.0 }
0x139b   :  { %v12716_v31 = vpop.eup %10151  ;;  %v5269_v17 = vsub.f32 %v12658_v20, %v5235_v48  ;;  %5318 = vadd.xlane.f32.xlu0 %v5317_v22 }
0x139c   :  { %v5238_v61 = vpop.xlane.xlu1 %5237  ;;  %v5320_v30 = vsel %vm3227_vm1, %v12716_v31, 0.0 }
0x139d   :  { %v5291_v15 = vmul.f32 1.442695, %v5269_v17  ;;  %v5270_v41 = vsub.f32 %v12660_v3, %v5238_v61  ;;  %5321 = vadd.xlane.f32.xlu1 %v5320_v30 }
0x139f   :  { %10157 = vpow2.f32 %v5291_v15  ;;  %v5293_v21 = vmul.f32 1.442695, %v5270_v41 }
0x13a1   :  { %v12722_v18 = vpop.eup %10153  ;;  %10159 = vpow2.f32 %v5293_v21 }
0x13a2   :  { %v5241_v27 = vpop.xlane.xlu0 %5240  ;;  %v5323_v50 = vsel %vm3227_vm1, %v12722_v18, 0.0 }
0x13a3   :  { %v12726_v6 = vpop.eup %10155  ;;  %v5271_v20 = vsub.f32 %v12666_v45, %v5241_v27  ;;  %5324 = vadd.xlane.f32.xlu0 %v5323_v50 }
0x13a4   :  { %v5244_v24 = vpop.xlane.xlu1 %5243  ;;  %v5326_v14 = vsel %vm3227_vm1, %v12726_v6, 0.0 }
0x13a5   :  { %v5295_v3 = vmul.f32 1.442695, %v5271_v20  ;;  %v5272_v40 = vsub.f32 %v12668_v5, %v5244_v24  ;;  %5327 = vadd.xlane.f32.xlu1 %v5326_v14 }
0x13a7   :  { %10161 = vpow2.f32 %v5295_v3  ;;  %v5297_v48 = vmul.f32 1.442695, %v5272_v40 }
0x13a9   :  { %v12732_v22 = vpop.eup %10157  ;;  %10163 = vpow2.f32 %v5297_v48 }
0x13aa   :  { %v5247_v17 = vpop.xlane.xlu0 %5246  ;;  %v5329_v61 = vsel %vm3227_vm1, %v12732_v22, 0.0 }
0x13ab   :  { %v12736_v30 = vpop.eup %10159  ;;  %v5273_v45 = vsub.f32 %v12674_v58, %v5247_v17  ;;  %5330 = vadd.xlane.f32.xlu0 %v5329_v61 }
0x13ac   :  { %v5250_v15 = vpop.xlane.xlu1 %5249  ;;  %v5332_v41 = vsel %vm3227_vm1, %v12736_v30, 0.0 }
0x13ad   :  { %v5299_v5 = vmul.f32 1.442695, %v5273_v45  ;;  %v5274_v21 = vsub.f32 %v12676_v53, %v5250_v15  ;;  %5333 = vadd.xlane.f32.xlu1 %v5332_v41 }
0x13af   :  { %10165 = vpow2.f32 %v5299_v5  ;;  %v5301_v27 = vmul.f32 1.442695, %v5274_v21 }
0x13b1   :  { %v12742_v50 = vpop.eup %10161  ;;  %10167 = vpow2.f32 %v5301_v27 }
0x13b2   :  { %v5253_v20 = vpop.xlane.xlu0 %5252  ;;  %v5335_v24 = vsel %vm3227_vm1, %v12742_v50, 0.0 }
0x13b3   :  { %v12746_v14 = vpop.eup %10163  ;;  %v5275_v58 = vsub.f32 %v12682_v2, %v5253_v20  ;;  %5336 = vadd.xlane.f32.xlu0 %v5335_v24 }
0x13b4   :  { %v5256_v3 = vpop.xlane.xlu1 %5255  ;;  %v5338_v40 = vsel %vm3227_vm1, %v12746_v14, 0.0 }
0x13b5   :  { %v5303_v53 = vmul.f32 1.442695, %v5275_v58  ;;  %v5276_v48 = vsub.f32 %v12684_v10, %v5256_v3  ;;  %5339 = vadd.xlane.f32.xlu1 %v5338_v40 }
0x13b7   :  { %10169 = vpow2.f32 %v5303_v53  ;;  %v5305_v17 = vmul.f32 1.442695, %v5276_v48 }
0x13b9   :  { %v12752_v61 = vpop.eup %10165  ;;  %10171 = vpow2.f32 %v5305_v17 }
0x13ba   :  { %v5259_v45 = vpop.xlane.xlu0 %5258  ;;  %v5341_v15 = vsel %vm3227_vm1, %v12752_v61, 0.0 }
0x13bb   :  { %v12756_v41 = vpop.eup %10167  ;;  %v5277_v2 = vsub.f32 %v12690_v1, %v5259_v45  ;;  %5342 = vadd.xlane.f32.xlu0 %v5341_v15 }
0x13bc   :  { %v5262_v5 = vpop.xlane.xlu1 %5261  ;;  %v5344_v21 = vsel %vm3227_vm1, %v12756_v41, 0.0 }
0x13bd   :  { %v5307_v10 = vmul.f32 1.442695, %v5277_v2  ;;  %v5278_v27 = vsub.f32 %v12692_v35, %v5262_v5  ;;  %5345 = vadd.xlane.f32.xlu1 %v5344_v21 }
0x13bf   :  { %10173 = vpow2.f32 %v5307_v10  ;;  %v5309_v20 = vmul.f32 1.442695, %v5278_v27 }
0x13c1   :  { %v12762_v24 = vpop.eup %10169  ;;  %10175 = vpow2.f32 %v5309_v20 }
0x13c2   :  { %v5347_v58 = vsel %vm3227_vm1, %v12762_v24, 0.0 }
0x13c3   :  { %v12766_v3 = vpop.eup %10171  ;;  %5348 = vadd.xlane.f32.xlu0 %v5347_v58 }
0x13c4   :  { %v5350_v1 = vsel %vm3227_vm1, %v12766_v3, 0.0 }
0x13c5   :  { %5351 = vadd.xlane.f32.xlu1 %v5350_v1 }
0x13c9   :  { %v12770_v40 = vpop.eup %10173 }
0x13ca   :  { %v5353_v35 = vsel %vm3227_vm1, %v12770_v40, 0.0 }
0x13cb   :  { %v12774_v53 = vpop.eup %10175  ;;  %5354 = vadd.xlane.f32.xlu0 %v5353_v35 }
0x13cc   :  { %v5356_v48 = vsel %vm3227_vm1, %v12774_v53, 0.0 }
0x13cd   :  { %5357 = vadd.xlane.f32.xlu1 %v5356_v48  ;;  %v14140_v48 = vpack.c.bf16 %v12548_v39, %v12545_v57  ;;  %v14141_v57 = vpack.c.bf16 %v12542_v44, %v12539_v34  ;;  %v14142_v34 = vpack.c.bf16 %v12606_v63, %v12603_v43  ;;  %v14143_v43 = vpack.c.bf16 %v12600_v36, %v12597_v16 }
0x13ce   :  { %v14144_v16 = vpack.c.bf16 %v12628_v38, %v12625_v4  ;;  %v14145_v4 = vpack.c.bf16 %v12622_v46, %v12619_v56 }
0x1420   :  { %v5313_v17 = vpop.xlane.xlu0 %5312 }
0x1421   :  { %10177 = vrcp.f32 %v5313_v17 }
0x1422   :  { %v5316_v45 = vpop.xlane.xlu1 %5315 }
0x1423   :  { %10179 = vrcp.f32 %v5316_v45 }
0x1428   :  { %v5319_v15 = vpop.xlane.xlu0 %5318 }
0x1429   :  { %10181 = vrcp.f32 %v5319_v15 }
0x142a   :  { %v5322_v2 = vpop.xlane.xlu1 %5321 }
0x142b   :  { %v10178_v5 = vpop.eup %10177  ;;  %10183 = vrcp.f32 %v5322_v2 }
0x142c   :  { %v5375_v10 = vmul.f32 %v10178_v5, %v12702_v62 }
0x142d   :  { %v10180_v21 = vpop.eup %10179 }
0x142e   :  { %v5376_v27 = vmul.f32 %v10180_v21, %v12706_v47 }
0x1430   :  { %v5325_v20 = vpop.xlane.xlu0 %5324  ;;  %v5391_v58 = vpack.c.bf16 %v5376_v27, %v5375_v10 }
0x1431   :  { %10185 = vrcp.f32 %v5325_v20 }
0x1432   :  { %9308 = vmatmul.mubr.msk.bf16.vlgmr.msra.gmra.mrb[160].mxu0 %vm3227_vm1, %v5391_v58  ;;  %v5328_v1 = vpop.xlane.xlu1 %5327 }
0x1433   :  { %v10182_v35 = vpop.eup %10181  ;;  %9318 = vmatpush3.bf16.msra.mxu0 %v14140_v48  ;;  %10187 = vrcp.f32 %v5328_v1  ;;  %9319 = vmatprep.mubr.msk.bf16.mxu0 %vm10670_vm0, %v11538_v60 }
0x1434   :  { %9329 = vmatprep.subr.bf16.mxu0 %v11538_v60  ;;  %v5377_v47 = vmul.f32 %v10182_v35, %v12712_v25 }
0x1435   :  { %v10184_v62 = vpop.eup %10183 }
0x1436   :  { %v5378_v17 = vmul.f32 %v10184_v62, %v12716_v31 }
0x1438   :  { %v5331_v45 = vpop.xlane.xlu0 %5330  ;;  %v5392_v15 = vpack.c.bf16 %v5378_v17, %v5377_v47 }
0x1439   :  { %10189 = vrcp.f32 %v5331_v45 }
0x143a   :  { %9314 = vmatmul.mubr.msk.bf16.vlgmr.msra.gmra.mrb[176].mxu1 %vm3227_vm1, %v5392_v15  ;;  %v5334_v2 = vpop.xlane.xlu1 %5333 }
0x143b   :  { %v10186_v5 = vpop.eup %10185  ;;  %9324 = vmatpush3.bf16.msra.mxu1 %v14141_v57  ;;  %10191 = vrcp.f32 %v5334_v2  ;;  %9325 = vmatprep.mubr.msk.bf16.mxu1 %vm10670_vm0, %v11538_v60 }
0x143c   :  { %9335 = vmatprep.subr.bf16.mxu1 %v11538_v60  ;;  %v5379_v25 = vmul.f32 %v10186_v5, %v12722_v18 }
0x143d   :  { %v10188_v39 = vpop.eup %10187 }
0x143e   :  { %v5380_v31 = vmul.f32 %v10188_v39, %v12726_v6 }
0x1440   :  { %v5337_v21 = vpop.xlane.xlu0 %5336  ;;  %v5393_v10 = vpack.c.bf16 %v5380_v31, %v5379_v25 }
0x1441   :  { %10193 = vrcp.f32 %v5337_v21 }
0x1442   :  { %9320 = vmatmul.mubr.msk.bf16.vlgmr.msra.gmra.mrb[164].mxu0 %vm3227_vm1, %v5393_v10  ;;  %v5340_v27 = vpop.xlane.xlu1 %5339 }
0x1443   :  { %v10190_v20 = vpop.eup %10189  ;;  %9330 = vmatpush3.bf16.msra.mxu0 %v14142_v34  ;;  %10195 = vrcp.f32 %v5340_v27  ;;  %9331 = vmatprep.mubr.msk.bf16.mxu0 %vm10670_vm0, %v11538_v60 }
0x1444   :  { %9341 = vmatprep.subr.bf16.mxu0 %v11538_v60  ;;  %v5381_v18 = vmul.f32 %v10190_v20, %v12732_v22 }
0x1445   :  { %v10192_v44 = vpop.eup %10191 }
0x1446   :  { %v5382_v6 = vmul.f32 %v10192_v44, %v12736_v30 }
0x1448   :  { %v5343_v58 = vpop.xlane.xlu0 %5342  ;;  %v5394_v1 = vpack.c.bf16 %v5382_v6, %v5381_v18 }
0x1449   :  { %10197 = vrcp.f32 %v5343_v58 }
0x144a   :  { %9326 = vmatmul.mubr.msk.bf16.vlgmr.msra.gmra.mrb[180].mxu1 %vm3227_vm1, %v5394_v1  ;;  %v5346_v35 = vpop.xlane.xlu1 %5345 }
0x144b   :  { %v10194_v48 = vpop.eup %10193  ;;  %9336 = vmatpush3.bf16.msra.mxu1 %v14143_v43  ;;  %10199 = vrcp.f32 %v5346_v35  ;;  %9337 = vmatprep.mubr.msk.bf16.mxu1 %vm10670_vm0, %v11538_v60 }
0x144c   :  { %9347 = vmatprep.subr.bf16.mxu1 %v11538_v60  ;;  %v5383_v22 = vmul.f32 %v10194_v48, %v12742_v50 }
0x144d   :  { %v10196_v63 = vpop.eup %10195 }
0x144e   :  { %v5384_v30 = vmul.f32 %v10196_v63, %v12746_v14 }
0x1450   :  { %v5349_v62 = vpop.xlane.xlu0 %5348  ;;  %v5395_v47 = vpack.c.bf16 %v5384_v30, %v5383_v22 }
0x1451   :  { %10201 = vrcp.f32 %v5349_v62 }
0x1452   :  { %9332 = vmatmul.mubr.msk.bf16.vlgmr.msra.gmra.mrb[168].mxu0 %vm3227_vm1, %v5395_v47  ;;  %v5352_v17 = vpop.xlane.xlu1 %5351 }
0x1453   :  { %v10198_v45 = vpop.eup %10197  ;;  %9342 = vmatpush3.bf16.msra.mxu0 %v14144_v16  ;;  %10203 = vrcp.f32 %v5352_v17  ;;  %9343 = vmatprep.mubr.msk.bf16.mxu0 %vm10670_vm0, %v11538_v60 }
0x1454   :  { %v5385_v50 = vmul.f32 %v10198_v45, %v12752_v61 }
0x1455   :  { %v10200_v36 = vpop.eup %10199 }
0x1456   :  { %v5386_v14 = vmul.f32 %v10200_v36, %v12756_v41 }
0x1458   :  { %v5355_v15 = vpop.xlane.xlu0 %5354  ;;  %v5396_v2 = vpack.c.bf16 %v5386_v14, %v5385_v50 }
0x1459   :  { %10205 = vrcp.f32 %v5355_v15 }
0x145a   :  { %9338 = vmatmul.mubr.msk.bf16.vlgmr.msra.gmra.mrb[184].mxu1 %vm3227_vm1, %v5396_v2  ;;  %v5358_v5 = vpop.xlane.xlu1 %5357 }
0x145b   :  { %v10202_v57 = vpop.eup %10201  ;;  %9348 = vmatpush3.bf16.msra.mxu1 %v14145_v4  ;;  %10207 = vrcp.f32 %v5358_v5  ;;  %9349 = vmatprep.mubr.msk.bf16.mxu1 %vm10670_vm0, %v11538_v60 }
0x145c   :  { %v5387_v61 = vmul.f32 %v10202_v57, %v12762_v24 }
0x145d   :  { %v10204_v38 = vpop.eup %10203 }
0x145e   :  { %v5388_v41 = vmul.f32 %v10204_v38, %v12766_v3 }
0x1460   :  { %v5397_v39 = vpack.c.bf16 %v5388_v41, %v5387_v61 }
0x1462   :  { %9344 = vmatmul.mubr.msk.bf16.vlgmr.msra.gmra.mrb[172].mxu0 %vm3227_vm1, %v5397_v39 }
0x1463   :  { %v10206_v25 = vpop.eup %10205 }
0x1464   :  { %v5389_v21 = vmul.f32 %v10206_v25, %v12770_v40 }
0x1465   :  { %v10208_v31 = vpop.eup %10207 }
0x1466   :  { %v5390_v10 = vmul.f32 %v10208_v31, %v12774_v53 }
0x1468   :  { %v5398_v56 = vpack.c.bf16 %v5390_v10, %v5389_v21 }
0x146a   :  { %9350 = vmatmul.mubr.msk.bf16.vlgmr.msra.gmra.mrb[188].mxu1 %vm3227_vm1, %v5398_v56 }
0x146b   :  { %6642 = vmatprep.mubr.bf16.mxu1 %v14111_v0 }
0x1505   :  { %v5436_v46 = vpop.f32.mrb[160].mxu0 }
0x1506   :  { %v12838_v27 = vadd.f32 %v5436_v46, %v12379_v32  ;;  %v9309_v24 = vpop.f32.mrb[161].mxu0 }
0x1507   :  { %v5439_v3 = vpop.f32.mrb[162].mxu0 }
0x1508   :  { %v12841_v20 = vadd.f32 %v5439_v3, %v12382_v54  ;;  %5769 = vadd.xlane.f32.xlu0 %v12838_v27  ;;  %v9310_v34 = vpop.f32.mrb[163].mxu0 }
0x150a   :  { %5771 = vadd.xlane.f32.xlu1 %v12841_v20 }
0x150d   :  { %v5480_v40 = vpop.f32.mrb[176].mxu1 }
0x150e   :  { %v12846_v53 = vadd.f32 %v5480_v40, %v12388_v28  ;;  %v9315_v44 = vpop.f32.mrb[177].mxu1 }
0x150f   :  { %v5483_v18 = vpop.f32.mrb[178].mxu1 }
0x1510   :  { %v12849_v6 = vadd.f32 %v5483_v18, %v12391_v19  ;;  %v9316_v32 = vpop.f32.mrb[179].mxu1  ;;  %5773 = vadd.xlane.f32.xlu0 %v12846_v53 }
0x1512   :  { %5775 = vadd.xlane.f32.xlu1 %v12849_v6 }
0x1515   :  { %v5524_v54 = vpop.f32.mrb[164].mxu0 }
0x1516   :  { %v12854_v58 = vadd.f32 %v5524_v54, %v12408_v29  ;;  %v9321_v1 = vpop.f32.mrb[165].mxu0 }
0x1517   :  { %v5527_v35 = vpop.f32.mrb[166].mxu0 }
0x1518   :  { %v12857_v48 = vadd.f32 %v5527_v35, %v12411_v7  ;;  %5777 = vadd.xlane.f32.xlu0 %v12854_v58  ;;  %v9322_v28 = vpop.f32.mrb[167].mxu0 }
0x151a   :  { %5779 = vadd.xlane.f32.xlu1 %v12857_v48 }
0x151d   :  { %v5568_v19 = vpop.f32.mrb[180].mxu1 }
0x151e   :  { %v12862_v43 = vadd.f32 %v5568_v19, %v12421_v42  ;;  %v9327_v63 = vpop.f32.mrb[181].mxu1 }
0x151f   :  { %v5571_v22 = vpop.f32.mrb[182].mxu1 }
0x1520   :  { %v12865_v30 = vadd.f32 %v5571_v22, %v12424_v26  ;;  %v9328_v29 = vpop.f32.mrb[183].mxu1  ;;  %5781 = vadd.xlane.f32.xlu0 %v12862_v43 }
0x1522   :  { %5783 = vadd.xlane.f32.xlu1 %v12865_v30 }
0x1525   :  { %v5612_v7 = vpop.f32.mrb[168].mxu0 }
0x1526   :  { %v12870_v62 = vadd.f32 %v5612_v7, %v12448_v51  ;;  %v9333_v47 = vpop.f32.mrb[169].mxu0  ;;  %v9809_v7 = vld [vmem:[#allocation12 + $0x40] sm:$0xff]  }
0x1527   :  { %v5615_v17 = vpop.f32.mrb[170].mxu0  ;;  %9353 = vmatprep.subr.bf16.mxu0 %v9809_v7 }
0x1528   :  { %v12873_v45 = vadd.f32 %v5615_v17, %v12443_v55  ;;  %5785 = vadd.xlane.f32.xlu0 %v12870_v62  ;;  %v9334_v42 = vpop.f32.mrb[171].mxu0  ;;  %9354 = vmatpush3.bf16.msra.mxu0 %v9809_v7 }
0x152a   :  { %5787 = vadd.xlane.f32.xlu1 %v12873_v45 }
0x152d   :  { %v5656_v26 = vpop.f32.mrb[184].mxu1 }
0x152e   :  { %v12878_v16 = vadd.f32 %v5656_v26, %v12462_v33  ;;  %v9339_v36 = vpop.f32.mrb[185].mxu1 }
0x152f   :  { %v5659_v50 = vpop.f32.mrb[186].mxu1 }
0x1530   :  { %v12881_v14 = vadd.f32 %v5659_v50, %v12459_v11  ;;  %v9340_v51 = vpop.f32.mrb[187].mxu1  ;;  %5789 = vadd.xlane.f32.xlu0 %v12878_v16 }
0x1532   :  { %5791 = vadd.xlane.f32.xlu1 %v12881_v14 }
0x1535   :  { %v5700_v55 = vpop.f32.mrb[172].mxu0 }
0x1536   :  { %v12886_v15 = vadd.f32 %v5700_v55, %v12476_v59  ;;  %v9345_v2 = vpop.f32.mrb[173].mxu0 }
0x1537   :  { %v5703_v5 = vpop.f32.mrb[174].mxu0 }
0x1538   :  { %v12889_v57 = vadd.f32 %v5703_v5, %v12472_v12  ;;  %5793 = vadd.xlane.f32.xlu0 %v12886_v15  ;;  %v9346_v33 = vpop.f32.mrb[175].mxu0  ;;  %v9811_v5 = vld [vmem:[#allocation12 + $0x50] sm:$0xff]  }
0x153a   :  { %5795 = vadd.xlane.f32.xlu1 %v12889_v57 }
0x153d   :  { %v5744_v11 = vpop.f32.mrb[188].mxu1 }
0x153e   :  { %v12894_v4 = vadd.f32 %v5744_v11, %v12488_v13  ;;  %v9351_v38 = vpop.f32.mrb[189].mxu1 }
0x153f   :  { %v5747_v61 = vpop.f32.mrb[190].mxu1 }
0x1540   :  { %v12897_v41 = vadd.f32 %v5747_v61, %v12485_v49  ;;  %v9352_v59 = vpop.f32.mrb[191].mxu1  ;;  %5797 = vadd.xlane.f32.xlu0 %v12894_v4 }
0x1541   :  { %v9812_v59 = vld [vmem:[#allocation12 + $0x58] sm:$0xff]  }
0x1542   :  { %5799 = vadd.xlane.f32.xlu1 %v12897_v41 }
0x1595   :  { %v5770_v12 = vpop.xlane.xlu0 %5769 }
0x1596   :  { %v5801_v39 = vmul.f32 0.02, %v5770_v12 }
0x1597   :  { %v5772_v25 = vpop.xlane.xlu1 %5771 }
0x1598   :  { %v5817_v31 = vsub.f32 %v12838_v27, %v5801_v39  ;;  %v5802_v21 = vmul.f32 0.02, %v5772_v25 }
0x159a   :  { %v12903_v10 = vmul.f32 %v11957_v9, %v5817_v31  ;;  %v5818_v13 = vsub.f32 %v12841_v20, %v5802_v21  ;;  %v9813_v21 = vld [vmem:[#allocation12 + $0x60] sm:$0xff]  }
0x159c   :  { %v12907_v56 = vmul.f32 %v11957_v9, %v5818_v13  ;;  %v5849_v49 = vmul.f32 %v12903_v10, %v12903_v10 }
0x159d   :  { %v5774_v46 = vpop.xlane.xlu0 %5773 }
0x159e   :  { %v5803_v24 = vmul.f32 0.02, %v5774_v46  ;;  %5865 = vadd.xlane.f32.xlu0 %v5849_v49  ;;  %v5850_v3 = vmul.f32 %v12907_v56, %v12907_v56 }
0x159f   :  { %v5776_v34 = vpop.xlane.xlu1 %5775 }
0x15a0   :  { %v5819_v27 = vsub.f32 %v12846_v53, %v5803_v24  ;;  %v5804_v40 = vmul.f32 0.02, %v5776_v34  ;;  %5867 = vadd.xlane.f32.xlu1 %v5850_v3  ;;  %v9814_v3 = vld [vmem:[#allocation12 + $0x68] sm:$0xff]  }
0x15a2   :  { %v12915_v44 = vmul.f32 %v11957_v9, %v5819_v27  ;;  %v5820_v20 = vsub.f32 %v12849_v6, %v5804_v40 }
0x15a4   :  { %v12919_v18 = vmul.f32 %v11957_v9, %v5820_v20  ;;  %v5851_v32 = vmul.f32 %v12915_v44, %v12915_v44 }
0x15a5   :  { %v5778_v54 = vpop.xlane.xlu0 %5777 }
0x15a6   :  { %v5805_v1 = vmul.f32 0.02, %v5778_v54  ;;  %5869 = vadd.xlane.f32.xlu0 %v5851_v32  ;;  %v5852_v35 = vmul.f32 %v12919_v18, %v12919_v18  ;;  %v9815_v32 = vld [vmem:[#allocation12 + $0x70] sm:$0xff]  }
0x15a7   :  { %v5780_v53 = vpop.xlane.xlu1 %5779 }
0x15a8   :  { %v5821_v28 = vsub.f32 %v12854_v58, %v5805_v1  ;;  %v5806_v19 = vmul.f32 0.02, %v5780_v53  ;;  %5871 = vadd.xlane.f32.xlu1 %v5852_v35 }
0x15aa   :  { %v12927_v63 = vmul.f32 %v11957_v9, %v5821_v28  ;;  %v5822_v6 = vsub.f32 %v12857_v48, %v5806_v19  ;;  %v9810_v48 = vld [vmem:[#allocation12 + $0x48] sm:$0xff]   ;;  %v9816_v28 = vld [vmem:[#allocation12 + $0x78] sm:$0xff]  }
0x15ab   :  { %9355 = vmatprep.subr.bf16.mxu0 %v9810_v48 }
0x15ac   :  { %v12931_v22 = vmul.f32 %v11957_v9, %v5822_v6  ;;  %v5853_v29 = vmul.f32 %v12927_v63, %v12927_v63  ;;  %9356 = vmatpush3.bf16.msra.mxu0 %v9810_v48 }
0x15ad   :  { %v5782_v47 = vpop.xlane.xlu0 %5781  ;;  %9357 = vmatprep.subr.bf16.mxu0 %v9811_v5 }
0x15ae   :  { %v5807_v17 = vmul.f32 0.02, %v5782_v47  ;;  %5873 = vadd.xlane.f32.xlu0 %v5853_v29  ;;  %v5854_v58 = vmul.f32 %v12931_v22, %v12931_v22 }
0x15af   :  { %v5784_v42 = vpop.xlane.xlu1 %5783 }
0x15b0   :  { %v5823_v26 = vsub.f32 %v12862_v43, %v5807_v17  ;;  %v5808_v36 = vmul.f32 0.02, %v5784_v42  ;;  %5875 = vadd.xlane.f32.xlu1 %v5854_v58  ;;  %9358 = vmatpush3.bf16.msra.mxu0 %v9811_v5 }
0x15b1   :  { %9359 = vmatprep.subr.bf16.mxu0 %v9812_v59 }
0x15b2   :  { %v12939_v50 = vmul.f32 %v11957_v9, %v5823_v26  ;;  %v5824_v51 = vsub.f32 %v12865_v30, %v5808_v36 }
0x15b4   :  { %v12943_v55 = vmul.f32 %v11957_v9, %v5824_v51  ;;  %v5855_v2 = vmul.f32 %v12939_v50, %v12939_v50  ;;  %9360 = vmatpush3.bf16.msra.mxu0 %v9812_v59  ;;  %v13000_v59 = vld [vmem:[%s14068_s8 + $0x8] sm:$0x1f] }
0x15b5   :  { %v5786_v33 = vpop.xlane.xlu0 %5785  ;;  %9361 = vmatprep.subr.bf16.mxu0 %v9813_v21 }
0x15b6   :  { %v5809_v11 = vmul.f32 0.02, %v5786_v33  ;;  %5877 = vadd.xlane.f32.xlu0 %v5855_v2  ;;  %v5856_v43 = vmul.f32 %v12943_v55, %v12943_v55 }
0x15b7   :  { %v5788_v38 = vpop.xlane.xlu1 %5787 }
0x15b8   :  { %v5825_v30 = vsub.f32 %v12870_v62, %v5809_v11  ;;  %v5810_v61 = vmul.f32 0.02, %v5788_v38  ;;  %5879 = vadd.xlane.f32.xlu1 %v5856_v43  ;;  %9362 = vmatpush3.bf16.msra.mxu0 %v9813_v21 }
0x15b9   :  { %9363 = vmatprep.subr.bf16.mxu0 %v9814_v3 }
0x15ba   :  { %v12951_v12 = vmul.f32 %v11957_v9, %v5825_v30  ;;  %v5826_v39 = vsub.f32 %v12873_v45, %v5810_v61 }
0x15bc   :  { %v12955_v25 = vmul.f32 %v11957_v9, %v5826_v39  ;;  %v5857_v31 = vmul.f32 %v12951_v12, %v12951_v12  ;;  %9364 = vmatpush3.bf16.msra.mxu0 %v9814_v3  ;;  %v13009_v3 = vrot.slane %v13000_v59, %v14136_v8 }
0x15bd   :  { %v5790_v13 = vpop.xlane.xlu0 %5789  ;;  %9365 = vmatprep.subr.bf16.mxu0 %v9815_v32 }
0x15be   :  { %v5811_v49 = vmul.f32 0.02, %v5790_v13  ;;  %5881 = vadd.xlane.f32.xlu0 %v5857_v31  ;;  %v5858_v62 = vmul.f32 %v12955_v25, %v12955_v25  ;;  %v13004_v13 = vrot.slane %v13000_v59, %v14134_v37 }
0x15bf   :  { %v5792_v46 = vpop.xlane.xlu1 %5791 }
0x15c0   :  { %v5827_v45 = vsub.f32 %v12878_v16, %v5811_v49  ;;  %v5812_v24 = vmul.f32 0.02, %v5792_v46  ;;  %5883 = vadd.xlane.f32.xlu1 %v5858_v62  ;;  %9366 = vmatpush3.bf16.msra.mxu0 %v9815_v32 }
0x15c1   :  { %9367 = vmatprep.subr.bf16.mxu0 %v9816_v28 }
0x15c2   :  { %v12963_v34 = vmul.f32 %v11957_v9, %v5827_v45  ;;  %v5828_v27 = vsub.f32 %v12881_v14, %v5812_v24 }
0x15c4   :  { %v12967_v40 = vmul.f32 %v11957_v9, %v5828_v27  ;;  %v5859_v20 = vmul.f32 %v12963_v34, %v12963_v34  ;;  %9368 = vmatpush3.bf16.msra.mxu0 %v9816_v28 }
0x15c5   :  { %v5794_v54 = vpop.xlane.xlu0 %5793 }
0x15c6   :  { %v5813_v1 = vmul.f32 0.02, %v5794_v54  ;;  %5885 = vadd.xlane.f32.xlu0 %v5859_v20  ;;  %v5860_v16 = vmul.f32 %v12967_v40, %v12967_v40 }
0x15c7   :  { %v5796_v35 = vpop.xlane.xlu1 %5795 }
0x15c8   :  { %v5829_v14 = vsub.f32 %v12886_v15, %v5813_v1  ;;  %v5814_v53 = vmul.f32 0.02, %v5796_v35  ;;  %5887 = vadd.xlane.f32.xlu1 %v5860_v16 }
0x15ca   :  { %v12975_v19 = vmul.f32 %v11957_v9, %v5829_v14  ;;  %v5830_v6 = vsub.f32 %v12889_v57, %v5814_v53 }
0x15cc   :  { %v12979_v29 = vmul.f32 %v11957_v9, %v5830_v6  ;;  %v5861_v7 = vmul.f32 %v12975_v19, %v12975_v19 }
0x15cd   :  { %v5798_v47 = vpop.xlane.xlu0 %5797 }
0x15ce   :  { %v5815_v17 = vmul.f32 0.02, %v5798_v47  ;;  %5889 = vadd.xlane.f32.xlu0 %v5861_v7  ;;  %v5862_v15 = vmul.f32 %v12979_v29, %v12979_v29 }
0x15cf   :  { %v5800_v58 = vpop.xlane.xlu1 %5799 }
0x15d0   :  { %v5831_v42 = vsub.f32 %v12894_v4, %v5815_v17  ;;  %v5816_v26 = vmul.f32 0.02, %v5800_v58  ;;  %5891 = vadd.xlane.f32.xlu1 %v5862_v15 }
0x15d2   :  { %v12987_v57 = vmul.f32 %v11957_v9, %v5831_v42  ;;  %v5832_v36 = vsub.f32 %v12897_v41, %v5816_v26 }
0x15d4   :  { %v12991_v48 = vmul.f32 %v11957_v9, %v5832_v36  ;;  %v5863_v51 = vmul.f32 %v12987_v57, %v12987_v57 }
0x15d6   :  { %5893 = vadd.xlane.f32.xlu0 %v5863_v51  ;;  %v5864_v2 = vmul.f32 %v12991_v48, %v12991_v48 }
0x15d8   :  { %5895 = vadd.xlane.f32.xlu1 %v5864_v2 }
0x162b   :  { %v5866_v5 = vpop.xlane.xlu0 %5865 }
0x162c   :  { %v5897_v4 = vmul.f32 0.02, %v5866_v5 }
0x162d   :  { %v5868_v33 = vpop.xlane.xlu1 %5867 }
0x162e   :  { %v5913_v11 = vadd.f32 1e-05, %v5897_v4  ;;  %v5898_v43 = vmul.f32 0.02, %v5868_v33 }
0x1630   :  { %10209 = vrsqrt.f32 %v5913_v11  ;;  %v5914_v38 = vadd.f32 1e-05, %v5898_v43 }
0x1632   :  { %10211 = vrsqrt.f32 %v5914_v38 }
0x1633   :  { %v5870_v41 = vpop.xlane.xlu0 %5869 }
0x1634   :  { %v5899_v30 = vmul.f32 0.02, %v5870_v41 }
0x1635   :  { %v5872_v61 = vpop.xlane.xlu1 %5871 }
0x1636   :  { %v5915_v39 = vadd.f32 1e-05, %v5899_v30  ;;  %v5900_v31 = vmul.f32 0.02, %v5872_v61 }
0x1638   :  { %10213 = vrsqrt.f32 %v5915_v39  ;;  %v5916_v21 = vadd.f32 1e-05, %v5900_v31 }
0x163a   :  { %v10210_v49 = vpop.eup %10209  ;;  %10215 = vrsqrt.f32 %v5916_v21 }
0x163b   :  { %v5874_v62 = vpop.xlane.xlu0 %5873  ;;  %v5945_v46 = vmul.f32 %v10210_v49, %v12903_v10 }
0x163c   :  { %v10212_v45 = vpop.eup %10211  ;;  %v5901_v24 = vmul.f32 0.02, %v5874_v62 }
0x163d   :  { %v5876_v27 = vpop.xlane.xlu1 %5875  ;;  %v5946_v20 = vmul.f32 %v10212_v45, %v12907_v56  ;;  %v5965_v32 = vmul.f32 %v13004_v13, %v5945_v46 }
0x163e   :  { %v5917_v54 = vadd.f32 1e-05, %v5901_v24  ;;  %v5902_v1 = vmul.f32 0.02, %v5876_v27 }
0x163f   :  { %v5966_v16 = vmul.f32 %v13004_v13, %v5946_v20  ;;  %v13015_v14 = vadd.f32 %v13009_v3, %v5965_v32 }
0x1640   :  { %10217 = vrsqrt.f32 %v5917_v54  ;;  %v5918_v35 = vadd.f32 1e-05, %v5902_v1 }
0x1641   :  { %v13018_v10 = vadd.f32 %v13009_v3, %v5966_v16 }
0x1642   :  { %v10214_v53 = vpop.eup %10213  ;;  %10219 = vrsqrt.f32 %v5918_v35 }
0x1643   :  { %v5878_v28 = vpop.xlane.xlu0 %5877  ;;  %v6001_v56 = vpack.c.bf16 %v13018_v10, %v13015_v14  ;;  %v5947_v6 = vmul.f32 %v10214_v53, %v12915_v44 }
0x1644   :  { %v10216_v7 = vpop.eup %10215  ;;  %v5903_v47 = vmul.f32 0.02, %v5878_v28 }
0x1645   :  { %9369 = vmatprep.mubr.bf16.mxu0 %v6001_v56  ;;  %v5880_v17 = vpop.xlane.xlu1 %5879  ;;  %v5948_v15 = vmul.f32 %v10216_v7, %v12919_v18  ;;  %v5967_v58 = vmul.f32 %v13004_v13, %v5947_v6 }
0x1646   :  { %v5919_v42 = vadd.f32 1e-05, %v5903_v47  ;;  %v5904_v26 = vmul.f32 0.02, %v5880_v17 }
0x1647   :  { %v5968_v36 = vmul.f32 %v13004_v13, %v5948_v15  ;;  %v13027_v2 = vadd.f32 %v13009_v3, %v5967_v58 }
0x1648   :  { %10221 = vrsqrt.f32 %v5919_v42  ;;  %v5920_v51 = vadd.f32 1e-05, %v5904_v26 }
0x1649   :  { %v13030_v5 = vadd.f32 %v13009_v3, %v5968_v36 }
0x164a   :  { %v10218_v44 = vpop.eup %10217  ;;  %10223 = vrsqrt.f32 %v5920_v51 }
0x164b   :  { %v5882_v4 = vpop.xlane.xlu0 %5881  ;;  %v6002_v18 = vpack.c.bf16 %v13030_v5, %v13027_v2  ;;  %v5949_v33 = vmul.f32 %v10218_v44, %v12927_v63 }
0x164c   :  { %v10220_v11 = vpop.eup %10219  ;;  %v5905_v43 = vmul.f32 0.02, %v5882_v4 }
0x164d   :  { %9370 = vmatmul.mubr.bf16.vlgmr.msra.gmra.mrb[176].mxu0 %v6002_v18  ;;  %v5884_v38 = vpop.xlane.xlu1 %5883  ;;  %v5950_v41 = vmul.f32 %v10220_v11, %v12931_v22  ;;  %v5969_v30 = vmul.f32 %v13004_v13, %v5949_v33 }
0x164e   :  { %v5921_v61 = vadd.f32 1e-05, %v5905_v43  ;;  %v5906_v39 = vmul.f32 0.02, %v5884_v38 }
0x164f   :  { %v5970_v31 = vmul.f32 %v13004_v13, %v5950_v41  ;;  %v13039_v49 = vadd.f32 %v13009_v3, %v5969_v30 }
0x1650   :  { %10225 = vrsqrt.f32 %v5921_v61  ;;  %v5922_v21 = vadd.f32 1e-05, %v5906_v39 }
0x1651   :  { %v13042_v62 = vadd.f32 %v13009_v3, %v5970_v31 }
0x1652   :  { %v10222_v63 = vpop.eup %10221  ;;  %10227 = vrsqrt.f32 %v5922_v21 }
0x1653   :  { %v5886_v46 = vpop.xlane.xlu0 %5885  ;;  %v6003_v22 = vpack.c.bf16 %v13042_v62, %v13039_v49  ;;  %v5951_v45 = vmul.f32 %v10222_v63, %v12939_v50 }
0x1654   :  { %v10224_v24 = vpop.eup %10223  ;;  %v5907_v27 = vmul.f32 0.02, %v5886_v46 }
0x1655   :  { %9373 = vmatprep.mubr.bf16.mxu0 %v6003_v22  ;;  %v5888_v20 = vpop.xlane.xlu1 %5887  ;;  %v5952_v32 = vmul.f32 %v10224_v24, %v12943_v55  ;;  %v5971_v54 = vmul.f32 %v13004_v13, %v5951_v45 }
0x1656   :  { %v5923_v1 = vadd.f32 1e-05, %v5907_v27  ;;  %v5908_v16 = vmul.f32 0.02, %v5888_v20 }
0x1657   :  { %v5972_v35 = vmul.f32 %v13004_v13, %v5952_v32  ;;  %v13051_v28 = vadd.f32 %v13009_v3, %v5971_v54 }
0x1658   :  { %10229 = vrsqrt.f32 %v5923_v1  ;;  %v5924_v53 = vadd.f32 1e-05, %v5908_v16 }
0x1659   :  { %v13054_v56 = vadd.f32 %v13009_v3, %v5972_v35 }
0x165a   :  { %v10226_v50 = vpop.eup %10225  ;;  %10231 = vrsqrt.f32 %v5924_v53 }
0x165b   :  { %v5890_v6 = vpop.xlane.xlu0 %5889  ;;  %v6004_v55 = vpack.c.bf16 %v13054_v56, %v13051_v28  ;;  %v5953_v7 = vmul.f32 %v10226_v50, %v12951_v12 }
0x165c   :  { %v10228_v47 = vpop.eup %10227  ;;  %v5909_v17 = vmul.f32 0.02, %v5890_v6 }
0x165d   :  { %9374 = vmatmul.mubr.bf16.gmra.mrb[180].mxu0 %v6004_v55  ;;  %v5892_v15 = vpop.xlane.xlu1 %5891  ;;  %v5954_v58 = vmul.f32 %v10228_v47, %v12955_v25  ;;  %v5973_v42 = vmul.f32 %v13004_v13, %v5953_v7 }
0x165e   :  { %v5925_v26 = vadd.f32 1e-05, %v5909_v17  ;;  %v5910_v36 = vmul.f32 0.02, %v5892_v15 }
0x165f   :  { %v5974_v51 = vmul.f32 %v13004_v13, %v5954_v58  ;;  %v13063_v4 = vadd.f32 %v13009_v3, %v5973_v42 }
0x1660   :  { %10233 = vrsqrt.f32 %v5925_v26  ;;  %v5926_v44 = vadd.f32 1e-05, %v5910_v36 }
0x1661   :  { %v13066_v18 = vadd.f32 %v13009_v3, %v5974_v51 }
0x1662   :  { %v10230_v12 = vpop.eup %10229  ;;  %10235 = vrsqrt.f32 %v5926_v44 }
0x1663   :  { %v5894_v33 = vpop.xlane.xlu0 %5893  ;;  %v6005_v25 = vpack.c.bf16 %v13066_v18, %v13063_v4  ;;  %v5955_v11 = vmul.f32 %v10230_v12, %v12963_v34 }
0x1664   :  { %v10232_v43 = vpop.eup %10231  ;;  %v5911_v38 = vmul.f32 0.02, %v5894_v33 }
0x1665   :  { %9377 = vmatprep.mubr.bf16.mxu0 %v6005_v25  ;;  %v5896_v41 = vpop.xlane.xlu1 %5895  ;;  %v5956_v30 = vmul.f32 %v10232_v43, %v12967_v40  ;;  %v5975_v61 = vmul.f32 %v13004_v13, %v5955_v11 }
0x1666   :  { %v5927_v39 = vadd.f32 1e-05, %v5911_v38  ;;  %v5912_v31 = vmul.f32 0.02, %v5896_v41 }
0x1667   :  { %v5976_v21 = vmul.f32 %v13004_v13, %v5956_v30  ;;  %v13075_v46 = vadd.f32 %v13009_v3, %v5975_v61 }
0x1668   :  { %10237 = vrsqrt.f32 %v5927_v39  ;;  %v5928_v63 = vadd.f32 1e-05, %v5912_v31 }
0x1669   :  { %v13078_v22 = vadd.f32 %v13009_v3, %v5976_v21 }
0x166a   :  { %v10234_v34 = vpop.eup %10233  ;;  %10239 = vrsqrt.f32 %v5928_v63 }
0x166b   :  { %v6006_v45 = vpack.c.bf16 %v13078_v22, %v13075_v46  ;;  %v5957_v40 = vmul.f32 %v10234_v34, %v12975_v19 }
0x166c   :  { %v10236_v24 = vpop.eup %10235 }
0x166d   :  { %9378 = vmatmul.mubr.bf16.gmra.mrb[184].mxu0 %v6006_v45  ;;  %v5958_v27 = vmul.f32 %v10236_v24, %v12979_v29  ;;  %v5977_v20 = vmul.f32 %v13004_v13, %v5957_v40 }
0x166f   :  { %v5978_v32 = vmul.f32 %v13004_v13, %v5958_v27  ;;  %v13087_v54 = vadd.f32 %v13009_v3, %v5977_v20 }
0x1671   :  { %v13090_v1 = vadd.f32 %v13009_v3, %v5978_v32 }
0x1672   :  { %v10238_v16 = vpop.eup %10237 }
0x1673   :  { %v6007_v35 = vpack.c.bf16 %v13090_v1, %v13087_v54  ;;  %v5959_v19 = vmul.f32 %v10238_v16, %v12987_v57  ;;  %v6029_v57 = vrot.slane %v13000_v59, %v14135_v23 }
0x1674   :  { %v10240_v53 = vpop.eup %10239 }
0x1675   :  { %9381 = vmatprep.mubr.bf16.mxu0 %v6007_v35  ;;  %v5960_v29 = vmul.f32 %v10240_v53, %v12991_v48  ;;  %v5979_v50 = vmul.f32 %v13004_v13, %v5959_v19 }
0x1677   :  { %v5980_v6 = vmul.f32 %v13004_v13, %v5960_v29  ;;  %v13099_v55 = vadd.f32 %v13009_v3, %v5979_v50  ;;  %v9819_v50 = vld [vmem:[#allocation11 + $0x184] ss:$12 sps:$4 sm:$0xff]  }
0x1678   :  { %6610 = vmatprep.subr.bf16.mxu1 %v9819_v50  ;;  %v9831_v50 = vld [vmem:[#allocation11 + $0x1b8] ss:$12 sps:$4 sm:$0xff]  }
0x1679   :  { %v13102_v7 = vadd.f32 %v13009_v3, %v5980_v6  ;;  %v9822_v6 = vld [vmem:[#allocation11 + $0x19c] ss:$12 sps:$4 sm:$0xff]  }
0x167b   :  { %v6008_v47 = vpack.c.bf16 %v13102_v7, %v13099_v55 }
0x167d   :  { %9382 = vmatmul.mubr.bf16.gmra.mrb[188].mxu0 %v6008_v47  ;;  %v9823_v47 = vld [vmem:[#allocation11 + $0x188] ss:$12 sps:$4 sm:$0xff]  }
0x167e   :  { %9385 = vmatprep.subr.bf16.mxu0 %v9823_v47 }
0x167f   :  { %9386 = vmatpush3.bf16.msra.mxu0 %v9823_v47  ;;  %v9834_v47 = vld [vmem:[#allocation11 + $0x1e4] ss:$12 sps:$4 sm:$0xff]  }
0x1720   :  { %v9371_v17 = vpop.f32.mrb[176].mxu0 }
0x1721   :  { %v6121_v15 = vadd.f32 %v9371_v17, %v6029_v57  ;;  %v6112_v48 = vpop.f32.mrb[177].mxu0 }
0x1722   :  { %v6113_v58 = vadd.f32 %v6112_v48, %v6029_v57  ;;  %v9372_v42 = vpop.f32.mrb[178].mxu0 }
0x1723   :  { %v6124_v26 = vadd.f32 %v9372_v42, %v6029_v57  ;;  %v6115_v13 = vpop.f32.mrb[179].mxu0  ;;  %v13116_v44 = vadd.f32 %v6121_v15, %v13027_v2 }
0x1724   :  { %v13109_v36 = vadd.f32 %v6113_v58, %v13015_v14  ;;  %v6116_v51 = vadd.f32 %v6115_v13, %v6029_v57 }
0x1725   :  { %v13120_v12 = vadd.f32 %v6124_v26, %v13030_v5 }
0x1726   :  { %v13112_v3 = vadd.f32 %v6116_v51, %v13018_v10  ;;  %6191 = vadd.xlane.f32.xlu0 %v13109_v36 }
0x1728   :  { %6193 = vadd.xlane.f32.xlu1 %v13112_v3 }
0x172a   :  { %6195 = vadd.xlane.f32.xlu0 %v13116_v44 }
0x172c   :  { %6197 = vadd.xlane.f32.xlu1 %v13120_v12 }
0x1730   :  { %v9375_v14 = vpop.f32.mrb[180].mxu0 }
0x1731   :  { %v6137_v33 = vadd.f32 %v9375_v14, %v6029_v57  ;;  %v6128_v25 = vpop.f32.mrb[181].mxu0 }
0x1732   :  { %v6129_v11 = vadd.f32 %v6128_v25, %v6029_v57  ;;  %v9376_v10 = vpop.f32.mrb[182].mxu0 }
0x1733   :  { %v6140_v43 = vadd.f32 %v9376_v10, %v6029_v57  ;;  %v6131_v38 = vpop.f32.mrb[183].mxu0  ;;  %v13132_v5 = vadd.f32 %v6137_v33, %v13051_v28 }
0x1734   :  { %v13125_v41 = vadd.f32 %v6129_v11, %v13039_v49  ;;  %v6132_v2 = vadd.f32 %v6131_v38, %v6029_v57 }
0x1735   :  { %v13136_v61 = vadd.f32 %v6140_v43, %v13054_v56 }
0x1736   :  { %v13128_v30 = vadd.f32 %v6132_v2, %v13042_v62  ;;  %6199 = vadd.xlane.f32.xlu0 %v13125_v41 }
0x1738   :  { %6201 = vadd.xlane.f32.xlu1 %v13128_v30 }
0x173a   :  { %6203 = vadd.xlane.f32.xlu0 %v13132_v5 }
0x173c   :  { %6205 = vadd.xlane.f32.xlu1 %v13136_v61 }
0x1740   :  { %v9379_v49 = vpop.f32.mrb[184].mxu0 }
0x1741   :  { %v6153_v39 = vadd.f32 %v9379_v49, %v6029_v57  ;;  %v6144_v31 = vpop.f32.mrb[185].mxu0 }
0x1742   :  { %v6145_v21 = vadd.f32 %v6144_v31, %v6029_v57  ;;  %v9380_v62 = vpop.f32.mrb[186].mxu0 }
0x1743   :  { %v6156_v63 = vadd.f32 %v9380_v62, %v6029_v57  ;;  %v6147_v34 = vpop.f32.mrb[187].mxu0  ;;  %v13148_v56 = vadd.f32 %v6153_v39, %v13075_v46 }
0x1744   :  { %v13141_v45 = vadd.f32 %v6145_v21, %v13063_v4  ;;  %v6148_v28 = vadd.f32 %v6147_v34, %v6029_v57 }
0x1745   :  { %v13152_v24 = vadd.f32 %v6156_v63, %v13078_v22 }
0x1746   :  { %v13144_v40 = vadd.f32 %v6148_v28, %v13066_v18  ;;  %6207 = vadd.xlane.f32.xlu0 %v13141_v45 }
0x1748   :  { %6209 = vadd.xlane.f32.xlu1 %v13144_v40 }
0x174a   :  { %6211 = vadd.xlane.f32.xlu0 %v13148_v56 }
0x174c   :  { %6213 = vadd.xlane.f32.xlu1 %v13152_v24 }
0x1750   :  { %v9383_v4 = vpop.f32.mrb[188].mxu0 }
0x1751   :  { %v6169_v27 = vadd.f32 %v9383_v4, %v6029_v57  ;;  %v6160_v20 = vpop.f32.mrb[189].mxu0 }
0x1752   :  { %v6161_v32 = vadd.f32 %v6160_v20, %v6029_v57  ;;  %v9384_v18 = vpop.f32.mrb[190].mxu0 }
0x1753   :  { %v6172_v16 = vadd.f32 %v9384_v18, %v6029_v57  ;;  %v6163_v35 = vpop.f32.mrb[191].mxu0  ;;  %v13164_v22 = vadd.f32 %v6169_v27, %v13099_v55  ;;  %v9824_v18 = vld [vmem:[#allocation11 + $0x1b0] ss:$12 sps:$4 sm:$0xff]  }
0x1754   :  { %v13157_v19 = vadd.f32 %v6161_v32, %v13087_v54  ;;  %v6164_v46 = vadd.f32 %v6163_v35, %v6029_v57  ;;  %v9817_v54 = vld [vmem:[#allocation11 + $0x180] ss:$12 sps:$4 sm:$0xff]  }
0x1755   :  { %v13168_v29 = vadd.f32 %v6172_v16, %v13102_v7  ;;  %6611 = vmatpush1.bf16.msra.mxu1 %v9817_v54  ;;  %v9826_v32 = vld [vmem:[#allocation11 + $0x1b4] ss:$12 sps:$4 sm:$0xff]   ;;  %v9830_v54 = vld [vmem:[#allocation11 + $0x1cc] ss:$12 sps:$4 sm:$0xff]  }
0x1756   :  { %v13160_v53 = vadd.f32 %v6164_v46, %v13090_v1  ;;  %6215 = vadd.xlane.f32.xlu0 %v13157_v19  ;;  %v9820_v1 = vld [vmem:[#allocation11 + $0x198] ss:$12 sps:$4 sm:$0xff]   ;;  %6612 = vmatprep.subr.bf16.mxu1 %v9822_v6  ;;  %v9828_v6 = vld [vmem:[#allocation11 + $0x1c8] ss:$12 sps:$4 sm:$0xff]  }
0x1758   :  { %6217 = vadd.xlane.f32.xlu1 %v13160_v53 }
0x1759   :  { %6613 = vmatpush1.bf16.msra.mxu1 %v9820_v1  ;;  %v9835_v1 = vld [vmem:[#allocation11 + $0x1d0] ss:$12 sps:$4 sm:$0xff]  }
0x175a   :  { %6219 = vadd.xlane.f32.xlu0 %v13164_v22  ;;  %6614 = vmatprep.subr.bf16.mxu1 %v9826_v32 }
0x175c   :  { %6221 = vadd.xlane.f32.xlu1 %v13168_v29 }
0x175d   :  { %6615 = vmatpush1.bf16.msra.mxu1 %v9824_v18 }
0x175e   :  { %6616 = vmatprep.subr.bf16.mxu1 %v9830_v54 }
0x1761   :  { %6617 = vmatpush1.bf16.msra.mxu1 %v9828_v6 }
0x1762   :  { %6618 = vmatprep.subr.bf16.mxu1 %v9834_v47 }
0x17b3   :  { %v6192_v55 = vpop.xlane.xlu0 %6191 }
0x17b4   :  { %v6223_v57 = vmul.f32 0.02, %v6192_v55 }
0x17b5   :  { %v6194_v17 = vpop.xlane.xlu1 %6193 }
0x17b6   :  { %v6239_v7 = vsub.f32 %v13109_v36, %v6223_v57  ;;  %v6224_v15 = vmul.f32 0.02, %v6194_v17  ;;  %v9832_v57 = vld [vmem:[#allocation11 + $0x1e0] ss:$12 sps:$4 sm:$0xff]  }
0x17b7   :  { %v6196_v48 = vpop.xlane.xlu0 %6195  ;;  %6619 = vmatpush1.bf16.msra.mxu1 %v9832_v57 }
0x17b8   :  { %v13174_v58 = vmul.f32 %v11957_v9, %v6239_v7  ;;  %v6240_v42 = vsub.f32 %v13112_v3, %v6224_v15  ;;  %v6225_v26 = vmul.f32 0.02, %v6196_v48 }
0x17b9   :  { %v6198_v13 = vpop.xlane.xlu1 %6197 }
0x17ba   :  { %v13178_v51 = vmul.f32 %v11957_v9, %v6240_v42  ;;  %v6241_v14 = vsub.f32 %v13116_v44, %v6225_v26  ;;  %v6226_v33 = vmul.f32 0.02, %v6198_v13  ;;  %v6271_v25 = vmul.f32 %v13174_v58, %v13174_v58  ;;  %v9838_v42 = vld [vmem:[#allocation11 + $0x1fc] ss:$12 sps:$4 sm:$0xff]  }
0x17bb   :  { %v9839_v26 = vld [vmem:[#allocation11 + $0x1e8] ss:$12 sps:$4 sm:$0xff]   ;;  %6620 = vmatprep.subr.bf16.mxu1 %v9838_v42 }
0x17bc   :  { %v13184_v36 = vmul.f32 %v11957_v9, %v6241_v14  ;;  %v6242_v11 = vsub.f32 %v13120_v12, %v6226_v33  ;;  %6287 = vadd.xlane.f32.xlu0 %v6271_v25  ;;  %v6272_v3 = vmul.f32 %v13178_v51, %v13178_v51  ;;  %v9836_v14 = vld [vmem:[#allocation11 + $0x1f8] ss:$12 sps:$4 sm:$0xff]  }
0x17bd   :  { %6621 = vmatpush1.bf16.msra.mxu1 %v9836_v14 }
0x17be   :  { %v13190_v10 = vmul.f32 %v11957_v9, %v6242_v11  ;;  %6289 = vadd.xlane.f32.xlu1 %v6272_v3  ;;  %v6273_v44 = vmul.f32 %v13184_v36, %v13184_v36 }
0x17c0   :  { %6291 = vadd.xlane.f32.xlu0 %v6273_v44  ;;  %v6274_v43 = vmul.f32 %v13190_v10, %v13190_v10 }
0x17c2   :  { %6293 = vadd.xlane.f32.xlu1 %v6274_v43 }
0x17c3   :  { %v6200_v38 = vpop.xlane.xlu0 %6199 }
0x17c4   :  { %v6227_v2 = vmul.f32 0.02, %v6200_v38 }
0x17c5   :  { %v6202_v49 = vpop.xlane.xlu1 %6201 }
0x17c6   :  { %v6243_v12 = vsub.f32 %v13125_v41, %v6227_v2  ;;  %v6228_v39 = vmul.f32 0.02, %v6202_v49  ;;  %v9827_v41 = vld [vmem:[#allocation11 + $0x1a0] ss:$12 sps:$4 sm:$0xff]  }
0x17c7   :  { %v6204_v31 = vpop.xlane.xlu0 %6203  ;;  %9387 = vmatprep.subr.bf16.mxu0 %v9827_v41  ;;  %v9842_v2 = vld [vmem:[#allocation11 + $0x214] ss:$12 sps:$4 sm:$0xff]  }
0x17c8   :  { %v13198_v21 = vmul.f32 %v11957_v9, %v6243_v12  ;;  %v6244_v62 = vsub.f32 %v13128_v30, %v6228_v39  ;;  %v6229_v63 = vmul.f32 0.02, %v6204_v31  ;;  %9388 = vmatpush3.bf16.msra.mxu0 %v9827_v41  ;;  %v9843_v49 = vld [vmem:[#allocation11 + $0x200] ss:$12 sps:$4 sm:$0xff]   ;;  %v9840_v12 = vld [vmem:[#allocation11 + $0x210] ss:$12 sps:$4 sm:$0xff]   ;;  %6622 = vmatprep.subr.bf16.mxu1 %v9842_v2 }
0x17c9   :  { %v6206_v34 = vpop.xlane.xlu1 %6205  ;;  %9389 = vmatprep.subr.bf16.mxu0 %v9831_v50  ;;  %6623 = vmatpush1.bf16.msra.mxu1 %v9840_v12 }
0x17ca   :  { %v13202_v28 = vmul.f32 %v11957_v9, %v6244_v62  ;;  %v6245_v4 = vsub.f32 %v13132_v5, %v6229_v63  ;;  %v6230_v27 = vmul.f32 0.02, %v6206_v34  ;;  %v6275_v20 = vmul.f32 %v13198_v21, %v13198_v21  ;;  %v9846_v63 = vld [vmem:[#allocation11 + $0x22c] ss:$12 sps:$4 sm:$0xff]  }
0x17cb   :  { %v9847_v34 = vld [vmem:[#allocation11 + $0x218] ss:$12 sps:$4 sm:$0xff]   ;;  %6624 = vmatprep.subr.bf16.mxu1 %v9846_v63 }
0x17cc   :  { %v13208_v16 = vmul.f32 %v11957_v9, %v6245_v4  ;;  %v6246_v35 = vsub.f32 %v13136_v61, %v6230_v27  ;;  %6295 = vadd.xlane.f32.xlu0 %v6275_v20  ;;  %v6276_v30 = vmul.f32 %v13202_v28, %v13202_v28  ;;  %9390 = vmatpush3.bf16.msra.mxu0 %v9831_v50  ;;  %v9844_v4 = vld [vmem:[#allocation11 + $0x228] ss:$12 sps:$4 sm:$0xff]   ;;  %v9848_v27 = vld [vmem:[#allocation11 + $0x230] ss:$12 sps:$4 sm:$0xff]  }
0x17cd   :  { %9391 = vmatprep.subr.bf16.mxu0 %v9835_v1  ;;  %6625 = vmatpush1.bf16.msra.mxu1 %v9844_v4 }
0x17ce   :  { %v13214_v5 = vmul.f32 %v11957_v9, %v6246_v35  ;;  %6297 = vadd.xlane.f32.xlu1 %v6276_v30  ;;  %v6277_v46 = vmul.f32 %v13208_v16, %v13208_v16  ;;  %9423 = vmatprep.subr.bf16.mxu1 %v11538_v60 }
0x17d0   :  { %6299 = vadd.xlane.f32.xlu0 %v6277_v46  ;;  %v6278_v61 = vmul.f32 %v13214_v5, %v13214_v5  ;;  %9392 = vmatpush3.bf16.msra.mxu0 %v9835_v1 }
0x17d1   :  { %9393 = vmatprep.subr.bf16.mxu0 %v9839_v26 }
0x17d2   :  { %6301 = vadd.xlane.f32.xlu1 %v6278_v61 }
0x17d3   :  { %v6208_v55 = vpop.xlane.xlu0 %6207 }
0x17d4   :  { %v6231_v17 = vmul.f32 0.02, %v6208_v55  ;;  %9394 = vmatpush3.bf16.msra.mxu0 %v9839_v26 }
0x17d5   :  { %v6210_v7 = vpop.xlane.xlu1 %6209  ;;  %9395 = vmatprep.subr.bf16.mxu0 %v9843_v49 }
0x17d6   :  { %v6247_v15 = vsub.f32 %v13141_v45, %v6231_v17  ;;  %v6232_v48 = vmul.f32 0.02, %v6210_v7 }
0x17d7   :  { %v6212_v13 = vpop.xlane.xlu0 %6211 }
0x17d8   :  { %v13222_v33 = vmul.f32 %v11957_v9, %v6247_v15  ;;  %v6248_v25 = vsub.f32 %v13144_v40, %v6232_v48  ;;  %v6233_v11 = vmul.f32 0.02, %v6212_v13  ;;  %9396 = vmatpush3.bf16.msra.mxu0 %v9843_v49 }
0x17d9   :  { %v6214_v3 = vpop.xlane.xlu1 %6213  ;;  %9397 = vmatprep.subr.bf16.mxu0 %v9847_v34 }
0x17da   :  { %v13226_v44 = vmul.f32 %v11957_v9, %v6248_v25  ;;  %v6249_v45 = vsub.f32 %v13148_v56, %v6233_v11  ;;  %v6234_v43 = vmul.f32 0.02, %v6214_v3  ;;  %v6279_v38 = vmul.f32 %v13222_v33, %v13222_v33 }
0x17dc   :  { %v13232_v40 = vmul.f32 %v11957_v9, %v6249_v45  ;;  %v6250_v39 = vsub.f32 %v13152_v24, %v6234_v43  ;;  %6303 = vadd.xlane.f32.xlu0 %v6279_v38  ;;  %v6280_v31 = vmul.f32 %v13226_v44, %v13226_v44  ;;  %9398 = vmatpush3.bf16.msra.mxu0 %v9847_v34 }
0x17dd   :  { %9399 = vmatprep.subr.bf16.mxu0 %v9848_v27  ;;  %v13272_v38 = vrot.slane %v13000_v59, %v14138_v52 }
0x17de   :  { %v13238_v56 = vmul.f32 %v11957_v9, %v6250_v39  ;;  %6305 = vadd.xlane.f32.xlu1 %v6280_v31  ;;  %v6281_v62 = vmul.f32 %v13232_v40, %v13232_v40 }
0x17e0   :  { %6307 = vadd.xlane.f32.xlu0 %v6281_v62  ;;  %v6282_v24 = vmul.f32 %v13238_v56, %v13238_v56  ;;  %9400 = vmatpush3.bf16.msra.mxu0 %v9848_v27  ;;  %v14146_v62 = vld [vmem:[#allocation21_spill] sm:$0xff] }
0x17e1   :  { %9417 = vmatprep.subr.bf16.mxu0 %v11538_v60  ;;  %v13277_v63 = vrot.slane %v13000_v59, %v14146_v62 }
0x17e2   :  { %6309 = vadd.xlane.f32.xlu1 %v6282_v24 }
0x17e3   :  { %v6216_v20 = vpop.xlane.xlu0 %6215 }
0x17e4   :  { %v6235_v32 = vmul.f32 0.02, %v6216_v20 }
0x17e5   :  { %v6218_v41 = vpop.xlane.xlu1 %6217 }
0x17e6   :  { %v6251_v18 = vsub.f32 %v13157_v19, %v6235_v32  ;;  %v6236_v35 = vmul.f32 0.02, %v6218_v41 }
0x17e7   :  { %v6220_v30 = vpop.xlane.xlu0 %6219 }
0x17e8   :  { %v13248_v46 = vmul.f32 %v11957_v9, %v6251_v18  ;;  %v6252_v54 = vsub.f32 %v13160_v53, %v6236_v35  ;;  %v6237_v50 = vmul.f32 0.02, %v6220_v30 }
0x17e9   :  { %v6222_v6 = vpop.xlane.xlu1 %6221 }
0x17ea   :  { %v13252_v61 = vmul.f32 %v11957_v9, %v6252_v54  ;;  %v6253_v47 = vsub.f32 %v13164_v22, %v6237_v50  ;;  %v6238_v1 = vmul.f32 0.02, %v6222_v6  ;;  %v6283_v19 = vmul.f32 %v13248_v46, %v13248_v46 }
0x17ec   :  { %v13258_v55 = vmul.f32 %v11957_v9, %v6253_v47  ;;  %v6254_v57 = vsub.f32 %v13168_v29, %v6238_v1  ;;  %6311 = vadd.xlane.f32.xlu0 %v6283_v19  ;;  %v6284_v53 = vmul.f32 %v13252_v61, %v13252_v61 }
0x17ee   :  { %v13264_v17 = vmul.f32 %v11957_v9, %v6254_v57  ;;  %6313 = vadd.xlane.f32.xlu1 %v6284_v53  ;;  %v6285_v22 = vmul.f32 %v13258_v55, %v13258_v55 }
0x17f0   :  { %6315 = vadd.xlane.f32.xlu0 %v6285_v22  ;;  %v6286_v7 = vmul.f32 %v13264_v17, %v13264_v17 }
0x17f2   :  { %6317 = vadd.xlane.f32.xlu1 %v6286_v7 }
0x1849   :  { %v6288_v15 = vpop.xlane.xlu0 %6287 }
0x184a   :  { %v6319_v48 = vmul.f32 0.02, %v6288_v15 }
0x184b   :  { %v6290_v42 = vpop.xlane.xlu1 %6289 }
0x184c   :  { %v6335_v29 = vadd.f32 1e-05, %v6319_v48  ;;  %v6320_v26 = vmul.f32 0.02, %v6290_v42 }
0x184d   :  { %v6292_v13 = vpop.xlane.xlu0 %6291 }
0x184e   :  { %10241 = vrsqrt.f32 %v6335_v29  ;;  %v6336_v14 = vadd.f32 1e-05, %v6320_v26  ;;  %v6321_v25 = vmul.f32 0.02, %v6292_v13 }
0x184f   :  { %v6294_v11 = vpop.xlane.xlu1 %6293 }
0x1850   :  { %10243 = vrsqrt.f32 %v6336_v14  ;;  %v6337_v3 = vadd.f32 1e-05, %v6321_v25  ;;  %v6322_v45 = vmul.f32 0.02, %v6294_v11 }
0x1852   :  { %10245 = vrsqrt.f32 %v6337_v3  ;;  %v6338_v43 = vadd.f32 1e-05, %v6322_v45 }
0x1854   :  { %10247 = vrsqrt.f32 %v6338_v43 }
0x1858   :  { %v10242_v2 = vpop.eup %10241 }
0x1859   :  { %v6367_v49 = vmul.f32 %v10242_v2, %v13174_v58  ;;  %v6296_v12 = vpop.xlane.xlu0 %6295 }
0x185a   :  { %v10244_v39 = vpop.eup %10243  ;;  %v6323_v31 = vmul.f32 0.02, %v6296_v12 }
0x185b   :  { %v6368_v34 = vmul.f32 %v10244_v39, %v13178_v51  ;;  %v6298_v4 = vpop.xlane.xlu1 %6297  ;;  %v6387_v24 = vmul.f32 %v13272_v38, %v6367_v49 }
0x185c   :  { %v10246_v27 = vpop.eup %10245  ;;  %v6339_v20 = vadd.f32 1e-05, %v6323_v31  ;;  %v6324_v32 = vmul.f32 0.02, %v6298_v4 }
0x185d   :  { %v6369_v41 = vmul.f32 %v10246_v27, %v13184_v36  ;;  %v6300_v18 = vpop.xlane.xlu0 %6299  ;;  %v6388_v58 = vmul.f32 %v13272_v38, %v6368_v34  ;;  %v13286_v6 = vadd.f32 %v13277_v63, %v6387_v24 }
0x185e   :  { %v10248_v35 = vpop.eup %10247  ;;  %10249 = vrsqrt.f32 %v6339_v20  ;;  %v6340_v30 = vadd.f32 1e-05, %v6324_v32  ;;  %v6325_v54 = vmul.f32 0.02, %v6300_v18 }
0x185f   :  { %v6389_v59 = vmul.f32 %v13272_v38, %v6369_v41  ;;  %v6370_v50 = vmul.f32 %v10248_v35, %v13190_v10  ;;  %v6302_v51 = vpop.xlane.xlu1 %6301  ;;  %v13289_v47 = vadd.f32 %v13277_v63, %v6388_v58 }
0x1860   :  { %10251 = vrsqrt.f32 %v6340_v30  ;;  %v6341_v36 = vadd.f32 1e-05, %v6325_v54  ;;  %v6326_v1 = vmul.f32 0.02, %v6302_v51 }
0x1861   :  { %v6390_v19 = vmul.f32 %v13272_v38, %v6370_v50  ;;  %v6423_v57 = vpack.c.bf16 %v13289_v47, %v13286_v6  ;;  %v13295_v10 = vadd.f32 %v13277_v63, %v6389_v59 }
0x1862   :  { %10253 = vrsqrt.f32 %v6341_v36  ;;  %v6342_v53 = vadd.f32 1e-05, %v6326_v1 }
0x1863   :  { %6643 = vmatmul.mubr.bf16.vlgmr.msra.gmra.mrb[192].mxu1 %v6423_v57  ;;  %9401 = vmatprep.mubr.bf16.mxu0 %v6423_v57  ;;  %v13298_v22 = vadd.f32 %v13277_v63, %v6390_v19 }
0x1864   :  { %10255 = vrsqrt.f32 %v6342_v53  ;;  %6652 = vmatprep.mubr.bf16.mxu1 %v14111_v0 }
0x1865   :  { %v6424_v7 = vpack.c.bf16 %v13298_v22, %v13295_v10 }
0x1867   :  { %9402 = vmatmul.mubr.bf16.vlgmr.msra.gmra.mrb[192].mxu0 %v6424_v7 }
0x1868   :  { %v10250_v15 = vpop.eup %10249 }
0x1869   :  { %v6304_v48 = vpop.xlane.xlu0 %6303  ;;  %v6371_v42 = vmul.f32 %v10250_v15, %v13198_v21 }
0x186a   :  { %v10252_v29 = vpop.eup %10251  ;;  %v6327_v26 = vmul.f32 0.02, %v6304_v48 }
0x186b   :  { %v6306_v13 = vpop.xlane.xlu1 %6305  ;;  %6653 = vmatmul.mubr.bf16.gmra.mrb[196].mxu1 %v6424_v7  ;;  %v6372_v14 = vmul.f32 %v10252_v29, %v13202_v28  ;;  %v6391_v25 = vmul.f32 %v13272_v38, %v6371_v42 }
0x186c   :  { %v10254_v11 = vpop.eup %10253  ;;  %v6343_v3 = vadd.f32 1e-05, %v6327_v26  ;;  %v6328_v45 = vmul.f32 0.02, %v6306_v13  ;;  %6662 = vmatprep.mubr.bf16.mxu1 %v14111_v0 }
0x186d   :  { %v6308_v43 = vpop.xlane.xlu0 %6307  ;;  %v6392_v2 = vmul.f32 %v13272_v38, %v6372_v14  ;;  %v6373_v49 = vmul.f32 %v10254_v11, %v13208_v16  ;;  %v13310_v34 = vadd.f32 %v13277_v63, %v6391_v25 }
0x186e   :  { %v10256_v12 = vpop.eup %10255  ;;  %10257 = vrsqrt.f32 %v6343_v3  ;;  %v6344_v21 = vadd.f32 1e-05, %v6328_v45  ;;  %v6329_v39 = vmul.f32 0.02, %v6308_v43 }
0x186f   :  { %v6310_v31 = vpop.xlane.xlu1 %6309  ;;  %v13313_v28 = vadd.f32 %v13277_v63, %v6392_v2  ;;  %v6374_v4 = vmul.f32 %v10256_v12, %v13214_v5  ;;  %v6393_v24 = vmul.f32 %v13272_v38, %v6373_v49 }
0x1870   :  { %10259 = vrsqrt.f32 %v6344_v21  ;;  %v6345_v27 = vadd.f32 1e-05, %v6329_v39  ;;  %v6330_v20 = vmul.f32 0.02, %v6310_v31 }
0x1871   :  { %v6425_v16 = vpack.c.bf16 %v13313_v28, %v13310_v34  ;;  %v6394_v32 = vmul.f32 %v13272_v38, %v6374_v4  ;;  %v13321_v18 = vadd.f32 %v13277_v63, %v6393_v24 }
0x1872   :  { %10261 = vrsqrt.f32 %v6345_v27  ;;  %v6346_v41 = vadd.f32 1e-05, %v6330_v20 }
0x1873   :  { %6663 = vmatmul.mubr.bf16.gmra.mrb[200].mxu1 %v6425_v16  ;;  %9405 = vmatprep.mubr.bf16.mxu0 %v6425_v16  ;;  %v13324_v58 = vadd.f32 %v13277_v63, %v6394_v32 }
0x1874   :  { %10263 = vrsqrt.f32 %v6346_v41  ;;  %6672 = vmatprep.mubr.bf16.mxu1 %v14111_v0 }
0x1875   :  { %v6426_v5 = vpack.c.bf16 %v13324_v58, %v13321_v18 }
0x1877   :  { %9406 = vmatmul.mubr.bf16.gmra.mrb[196].mxu0 %v6426_v5 }
0x1878   :  { %v10258_v35 = vpop.eup %10257 }
0x1879   :  { %v6312_v30 = vpop.xlane.xlu0 %6311  ;;  %v6375_v54 = vmul.f32 %v10258_v35, %v13222_v33 }
0x187a   :  { %v10260_v59 = vpop.eup %10259  ;;  %v6331_v50 = vmul.f32 0.02, %v6312_v30 }
0x187b   :  { %v6314_v51 = vpop.xlane.xlu1 %6313  ;;  %6673 = vmatmul.mubr.bf16.gmra.mrb[204].mxu1 %v6426_v5  ;;  %v6376_v36 = vmul.f32 %v10260_v59, %v13226_v44  ;;  %v6395_v1 = vmul.f32 %v13272_v38, %v6375_v54 }
0x187c   :  { %v10262_v19 = vpop.eup %10261  ;;  %v6347_v57 = vadd.f32 1e-05, %v6331_v50  ;;  %v6332_v53 = vmul.f32 0.02, %v6314_v51  ;;  %6682 = vmatprep.mubr.bf16.mxu1 %v14111_v0 }
0x187d   :  { %v6316_v7 = vpop.xlane.xlu0 %6315  ;;  %v6396_v15 = vmul.f32 %v13272_v38, %v6376_v36  ;;  %v6377_v48 = vmul.f32 %v10262_v19, %v13232_v40  ;;  %v13336_v13 = vadd.f32 %v13277_v63, %v6395_v1 }
0x187e   :  { %v10264_v42 = vpop.eup %10263  ;;  %10265 = vrsqrt.f32 %v6347_v57  ;;  %v6348_v33 = vadd.f32 1e-05, %v6332_v53  ;;  %v6333_v29 = vmul.f32 0.02, %v6316_v7 }
0x187f   :  { %v6318_v26 = vpop.xlane.xlu1 %6317  ;;  %v13339_v44 = vadd.f32 %v13277_v63, %v6396_v15  ;;  %v6378_v14 = vmul.f32 %v10264_v42, %v13238_v56  ;;  %v6397_v25 = vmul.f32 %v13272_v38, %v6377_v48 }
0x1880   :  { %10267 = vrsqrt.f32 %v6348_v33  ;;  %v6349_v11 = vadd.f32 1e-05, %v6333_v29  ;;  %v6334_v3 = vmul.f32 0.02, %v6318_v26 }
0x1881   :  { %v6427_v40 = vpack.c.bf16 %v13339_v44, %v13336_v13  ;;  %v6398_v45 = vmul.f32 %v13272_v38, %v6378_v14  ;;  %v13347_v2 = vadd.f32 %v13277_v63, %v6397_v25 }
0x1882   :  { %10269 = vrsqrt.f32 %v6349_v11  ;;  %v6350_v43 = vadd.f32 1e-05, %v6334_v3 }
0x1883   :  { %6683 = vmatmul.mubr.bf16.gmra.mrb[208].mxu1 %v6427_v40  ;;  %9409 = vmatprep.mubr.bf16.mxu0 %v6427_v40  ;;  %v13350_v49 = vadd.f32 %v13277_v63, %v6398_v45 }
0x1884   :  { %10271 = vrsqrt.f32 %v6350_v43  ;;  %6692 = vmatprep.mubr.bf16.mxu1 %v14111_v0 }
0x1885   :  { %v6428_v56 = vpack.c.bf16 %v13350_v49, %v13347_v2 }
0x1887   :  { %9410 = vmatmul.mubr.bf16.gmra.mrb[200].mxu0 %v6428_v56 }
0x1888   :  { %v10266_v12 = vpop.eup %10265 }
0x1889   :  { %v6379_v21 = vmul.f32 %v10266_v12, %v13248_v46 }
0x188a   :  { %v10268_v39 = vpop.eup %10267 }
0x188b   :  { %6693 = vmatmul.mubr.bf16.gmra.mrb[212].mxu1 %v6428_v56  ;;  %v6380_v31 = vmul.f32 %v10268_v39, %v13252_v61  ;;  %v6399_v4 = vmul.f32 %v13272_v38, %v6379_v21 }
0x188c   :  { %v10270_v24 = vpop.eup %10269  ;;  %6702 = vmatprep.mubr.bf16.mxu1 %v14111_v0 }
0x188d   :  { %v6400_v27 = vmul.f32 %v13272_v38, %v6380_v31  ;;  %v6381_v20 = vmul.f32 %v10270_v24, %v13258_v55  ;;  %v13362_v32 = vadd.f32 %v13277_v63, %v6399_v4 }
0x188e   :  { %v10272_v16 = vpop.eup %10271 }
0x188f   :  { %v13365_v41 = vadd.f32 %v13277_v63, %v6400_v27  ;;  %v6382_v46 = vmul.f32 %v10272_v16, %v13264_v17  ;;  %v6401_v61 = vmul.f32 %v13272_v38, %v6381_v20 }
0x1891   :  { %v6429_v5 = vpack.c.bf16 %v13365_v41, %v13362_v32  ;;  %v6402_v35 = vmul.f32 %v13272_v38, %v6382_v46  ;;  %v13373_v55 = vadd.f32 %v13277_v63, %v6401_v61  ;;  %v8794_v38 = vld [vmem:[%s14066_s6 + $0x6] sm:$0x7] }
0x1892   :  { %v13398_v57 = vrot.slane %v8794_v38, %v14136_v8 }
0x1893   :  { %6703 = vmatmul.mubr.bf16.gmra.mrb[216].mxu1 %v6429_v5  ;;  %9413 = vmatprep.mubr.bf16.mxu0 %v6429_v5  ;;  %v13376_v30 = vadd.f32 %v13277_v63, %v6402_v35  ;;  %v13389_v63 = vrot.slane %v8794_v38, %v14134_v37 }
0x1894   :  { %6712 = vmatprep.mubr.bf16.mxu1 %v14111_v0  ;;  %v13392_v0 = vrot.slane %v8794_v38, %v14135_v23 }
0x1895   :  { %v6430_v17 = vpack.c.bf16 %v13376_v30, %v13373_v55 }
0x1897   :  { %9414 = vmatmul.mubr.bf16.gmra.mrb[204].mxu0 %v6430_v17 }
0x1898   :  { %9419 = vmatprep.mubr.msk.bf16.mxu0 %vm10670_vm0, %v11538_v60 }
0x189b   :  { %6713 = vmatmul.mubr.bf16.gmra.mrb[220].mxu1 %v6430_v17 }
0x189c   :  { %9425 = vmatprep.mubr.msk.bf16.mxu1 %vm10670_vm0, %v11538_v60 }
0x1936   :  { %v6644_v54 = vpop.f32.mrb[192].mxu1 }
0x1937   :  { %v6646_v59 = vpop.f32.mrb[193].mxu1  ;;  %v6645_v36 = vadd.f32 %v6644_v54, %v13392_v0 }
0x1938   :  { %v6647_v50 = vadd.f32 %v6646_v59, %v13389_v63  ;;  %v6648_v51 = vpop.f32.mrb[194].mxu1 }
0x1939   :  { %v6649_v1 = vadd.f32 %v6648_v51, %v13392_v0  ;;  %v6650_v19 = vpop.f32.mrb[195].mxu1 }
0x193a   :  { %v6651_v53 = vadd.f32 %v6650_v19, %v13389_v63  ;;  %v9403_v7 = vpop.f32.mrb[192].mxu0 }
0x193b   :  { %v6820_v15 = vpack.c.bf16 %v6649_v1, %v6645_v36  ;;  %v6757_v48 = vpop.f32.mrb[193].mxu0  ;;  %v13402_v29 = vadd.f32 %v9403_v7, %v13398_v57 }
0x193c   :  { %v6828_v42 = vpack.c.bf16 %v6651_v53, %v6647_v50  ;;  %v9404_v33 = vpop.f32.mrb[194].mxu0  ;;  %v13408_v25 = vadd.f32 %v6757_v48, %v13398_v57 }
0x193d   :  { %v13405_v26 = vadd.f32 %v9404_v33, %v13398_v57  ;;  %v6760_v14 = vpop.f32.mrb[195].mxu0 }
0x193e   :  { %v13411_v11 = vadd.f32 %v6760_v14, %v13398_v57  ;;  %v6654_v3 = vpop.f32.mrb[196].mxu1  ;;  %9418 = vmatpush3.bf16.xpose.msra.mxu0 %v6828_v42 }
0x193f   :  { %v6837_v40 = vpack.c.bf16 %v13405_v26, %v13402_v29  ;;  %v6656_v45 = vpop.f32.mrb[197].mxu1  ;;  %9429 = vmatprep.subr.bf16.mxu0 %v11538_v60  ;;  %v6655_v21 = vadd.f32 %v6654_v3, %v13392_v0 }
0x1940   :  { %v6836_v43 = vpack.c.bf16 %v13411_v11, %v13408_v25  ;;  %v6657_v56 = vadd.f32 %v6656_v45, %v13389_v63  ;;  %v6658_v12 = vpop.f32.mrb[198].mxu1 }
0x1941   :  { %v6659_v39 = vadd.f32 %v6658_v12, %v13392_v0  ;;  %v6660_v31 = vpop.f32.mrb[199].mxu1 }
0x1942   :  { %v6661_v4 = vadd.f32 %v6660_v31, %v13389_v63 }
0x1943   :  { %v6821_v24 = vpack.c.bf16 %v6659_v39, %v6655_v21 }
0x1944   :  { %v6829_v27 = vpack.c.bf16 %v6661_v4, %v6657_v56 }
0x1945   :  { %9420 = vmatmul.mubr.bf16.vlgmr.msra.gmra.mrb[208].mxu0 %v6820_v15 }
0x1946   :  { %v6664_v20 = vpop.f32.mrb[200].mxu1  ;;  %9424 = vmatpush3.bf16.xpose.msra.mxu1 %v6829_v27  ;;  %9431 = vmatprep.mubr.msk.bf16.mxu0 %vm10670_vm0, %v11538_v60 }
0x1947   :  { %v6666_v16 = vpop.f32.mrb[201].mxu1  ;;  %9435 = vmatprep.subr.bf16.mxu1 %v11538_v60  ;;  %v6665_v5 = vadd.f32 %v6664_v20, %v13392_v0 }
0x1948   :  { %v6667_v46 = vadd.f32 %v6666_v16, %v13389_v63  ;;  %v6668_v61 = vpop.f32.mrb[202].mxu1 }
0x1949   :  { %v6669_v35 = vadd.f32 %v6668_v61, %v13392_v0  ;;  %v6670_v17 = vpop.f32.mrb[203].mxu1 }
0x194a   :  { %v6671_v38 = vadd.f32 %v6670_v17, %v13389_v63  ;;  %v9407_v54 = vpop.f32.mrb[196].mxu0 }
0x194b   :  { %v6822_v59 = vpack.c.bf16 %v6669_v35, %v6665_v5  ;;  %v13430_v50 = vadd.f32 %v9407_v54, %v13398_v57  ;;  %v6773_v51 = vpop.f32.mrb[197].mxu0 }
0x194c   :  { %v6830_v36 = vpack.c.bf16 %v6671_v38, %v6667_v46  ;;  %v13433_v1 = vadd.f32 %v6773_v51, %v13398_v57  ;;  %v9408_v19 = vpop.f32.mrb[198].mxu0 }
0x194d   :  { %v13436_v53 = vadd.f32 %v9408_v19, %v13398_v57  ;;  %v6776_v7 = vpop.f32.mrb[199].mxu0  ;;  %9426 = vmatmul.mubr.bf16.vlgmr.msra.gmra.mrb[224].mxu1 %v6821_v24 }
0x194e   :  { %v13439_v15 = vadd.f32 %v6776_v7, %v13398_v57  ;;  %v6674_v48 = vpop.f32.mrb[204].mxu1  ;;  %9430 = vmatpush3.bf16.xpose.msra.mxu0 %v6830_v36  ;;  %9437 = vmatprep.mubr.msk.bf16.mxu1 %vm10670_vm0, %v11538_v60 }
0x194f   :  { %v6676_v33 = vpop.f32.mrb[205].mxu1  ;;  %9441 = vmatprep.subr.bf16.mxu0 %v11538_v60  ;;  %v6675_v56 = vadd.f32 %v6674_v48, %v13392_v0 }
0x1950   :  { %v6677_v3 = vadd.f32 %v6676_v33, %v13389_v63  ;;  %v6678_v45 = vpop.f32.mrb[206].mxu1 }
0x1951   :  { %v6679_v12 = vadd.f32 %v6678_v45, %v13392_v0  ;;  %v6680_v21 = vpop.f32.mrb[207].mxu1 }
0x1952   :  { %v6681_v39 = vadd.f32 %v6680_v21, %v13389_v63 }
0x1953   :  { %v6823_v31 = vpack.c.bf16 %v6679_v12, %v6675_v56  ;;  %v10464_v12 = vld [vmem:[#allocation6 + $0x70] sm:$0xff] }
0x1954   :  { %v6831_v4 = vpack.c.bf16 %v6681_v39, %v6677_v3 }
0x1955   :  { %9432 = vmatmul.mubr.bf16.vlgmr.msra.gmra.mrb[212].mxu0 %v6822_v59 }
0x1956   :  { %v6684_v24 = vpop.f32.mrb[208].mxu1  ;;  %9436 = vmatpush3.bf16.xpose.msra.mxu1 %v6831_v4  ;;  %9443 = vmatprep.mubr.msk.bf16.mxu0 %vm10670_vm0, %v11538_v60 }
0x1957   :  { %v6686_v27 = vpop.f32.mrb[209].mxu1  ;;  %9447 = vmatprep.subr.bf16.mxu1 %v11538_v60  ;;  %v6685_v46 = vadd.f32 %v6684_v24, %v13392_v0 }
0x1958   :  { %v6687_v20 = vadd.f32 %v6686_v27, %v13389_v63  ;;  %v6688_v16 = vpop.f32.mrb[210].mxu1 }
0x1959   :  { %v6689_v61 = vadd.f32 %v6688_v16, %v13392_v0  ;;  %v6690_v5 = vpop.f32.mrb[211].mxu1 }
0x195a   :  { %v6691_v35 = vadd.f32 %v6690_v5, %v13389_v63  ;;  %v9411_v17 = vpop.f32.mrb[200].mxu0 }
0x195b   :  { %v6824_v38 = vpack.c.bf16 %v6689_v61, %v6685_v46  ;;  %v13460_v54 = vadd.f32 %v9411_v17, %v13398_v57  ;;  %v6789_v59 = vpop.f32.mrb[201].mxu0 }
0x195c   :  { %v6832_v51 = vpack.c.bf16 %v6691_v35, %v6687_v20  ;;  %v13463_v36 = vadd.f32 %v6789_v59, %v13398_v57  ;;  %v9412_v19 = vpop.f32.mrb[202].mxu0 }
0x195d   :  { %v13466_v7 = vadd.f32 %v9412_v19, %v13398_v57  ;;  %v6792_v48 = vpop.f32.mrb[203].mxu0  ;;  %9438 = vmatmul.mubr.bf16.vlgmr.msra.gmra.mrb[228].mxu1 %v6823_v31 }
0x195e   :  { %v13469_v33 = vadd.f32 %v6792_v48, %v13398_v57  ;;  %v6694_v3 = vpop.f32.mrb[212].mxu1  ;;  %9442 = vmatpush3.bf16.xpose.msra.mxu0 %v6832_v51  ;;  %9449 = vmatprep.mubr.msk.bf16.mxu1 %vm10670_vm0, %v11538_v60 }
0x195f   :  { %v6696_v56 = vpop.f32.mrb[213].mxu1  ;;  %9453 = vmatprep.subr.bf16.mxu0 %v11538_v60  ;;  %v6695_v31 = vadd.f32 %v6694_v3, %v13392_v0 }
0x1960   :  { %v6697_v21 = vadd.f32 %v6696_v56, %v13389_v63  ;;  %v6698_v39 = vpop.f32.mrb[214].mxu1 }
0x1961   :  { %v6699_v4 = vadd.f32 %v6698_v39, %v13392_v0  ;;  %v6700_v24 = vpop.f32.mrb[215].mxu1 }
0x1962   :  { %v6701_v27 = vadd.f32 %v6700_v24, %v13389_v63 }
0x1963   :  { %v6825_v20 = vpack.c.bf16 %v6699_v4, %v6695_v31 }
0x1964   :  { %v6833_v16 = vpack.c.bf16 %v6701_v27, %v6697_v21 }
0x1965   :  { %9444 = vmatmul.mubr.bf16.vlgmr.msra.gmra.mrb[216].mxu0 %v6824_v38 }
0x1966   :  { %v6704_v46 = vpop.f32.mrb[216].mxu1  ;;  %9448 = vmatpush3.bf16.xpose.msra.mxu1 %v6833_v16  ;;  %9455 = vmatprep.mubr.msk.bf16.mxu0 %vm10670_vm0, %v11538_v60 }
0x1967   :  { %v6706_v61 = vpop.f32.mrb[217].mxu1  ;;  %9459 = vmatprep.subr.bf16.mxu1 %v11538_v60  ;;  %v6705_v17 = vadd.f32 %v6704_v46, %v13392_v0 }
0x1968   :  { %v6707_v5 = vadd.f32 %v6706_v61, %v13389_v63  ;;  %v6708_v35 = vpop.f32.mrb[218].mxu1 }
0x1969   :  { %v6709_v59 = vadd.f32 %v6708_v35, %v13392_v0  ;;  %v6710_v51 = vpop.f32.mrb[219].mxu1 }
0x196a   :  { %v6711_v19 = vadd.f32 %v6710_v51, %v13389_v63  ;;  %v9415_v48 = vpop.f32.mrb[204].mxu0 }
0x196b   :  { %v6826_v38 = vpack.c.bf16 %v6709_v59, %v6705_v17  ;;  %v13490_v3 = vadd.f32 %v9415_v48, %v13398_v57  ;;  %v6805_v56 = vpop.f32.mrb[205].mxu0 }
0x196c   :  { %v6834_v21 = vpack.c.bf16 %v6711_v19, %v6707_v5  ;;  %v13493_v39 = vadd.f32 %v6805_v56, %v13398_v57  ;;  %v9416_v31 = vpop.f32.mrb[206].mxu0  ;;  %v10462_v5 = vld [vmem:[#allocation6 + $0x60] sm:$0xff] }
0x196d   :  { %v13496_v4 = vadd.f32 %v9416_v31, %v13398_v57  ;;  %v6808_v24 = vpop.f32.mrb[207].mxu0  ;;  %9450 = vmatmul.mubr.bf16.vlgmr.msra.gmra.mrb[232].mxu1 %v6825_v20  ;;  %v10451_v31 = vld [vmem:[#allocation6 + $0x8] sm:$0xff] }
0x196e   :  { %v13499_v27 = vadd.f32 %v6808_v24, %v13398_v57  ;;  %v6714_v16 = vpop.f32.mrb[220].mxu1  ;;  %9454 = vmatpush3.bf16.xpose.msra.mxu0 %v6834_v21  ;;  %9461 = vmatprep.mubr.msk.bf16.mxu1 %vm10670_vm0, %v11538_v60 }
0x196f   :  { %v6716_v61 = vpop.f32.mrb[221].mxu1  ;;  %9465 = vmatprep.subr.bf16.mxu0 %v11538_v60  ;;  %v6715_v57 = vadd.f32 %v6714_v16, %v13392_v0 }
0x1970   :  { %v6717_v35 = vadd.f32 %v6716_v61, %v13389_v63  ;;  %v6718_v20 = vpop.f32.mrb[222].mxu1 }
0x1971   :  { %v6719_v17 = vadd.f32 %v6718_v20, %v13392_v0  ;;  %v6720_v59 = vpop.f32.mrb[223].mxu1  ;;  %v10452_v20 = vld [vmem:[#allocation6 + $0x10] sm:$0xff] }
0x1972   :  { %v6721_v51 = vadd.f32 %v6720_v59, %v13389_v63 }
0x1973   :  { %v6827_v19 = vpack.c.bf16 %v6719_v17, %v6715_v57 }
0x1974   :  { %v6835_v48 = vpack.c.bf16 %v6721_v51, %v6717_v35  ;;  %v10453_v51 = vld [vmem:[#allocation6 + $0x18] sm:$0xff] }
0x1975   :  { %9456 = vmatmul.mubr.bf16.vlgmr.msra.gmra.mrb[220].mxu0 %v6826_v38 }
0x1976   :  { %9460 = vmatpush3.bf16.xpose.msra.mxu1 %v6835_v48  ;;  %9466 = vmatpush3.bf16.msra.mxu0 %v6836_v43  ;;  %v10450_v43 = vld [vmem:[#allocation6] sm:$0xff] }
0x1977   :  { %9471 = vmatprep.subr.bf16.mxu1 %v11538_v60  ;;  %9467 = vmatprep.mubr.msk.bf16.mxu0 %vm10670_vm0, %v11538_v60 }
0x1978   :  { %9477 = vmatprep.subr.bf16.mxu0 %v11538_v60 }
0x197d   :  { %9462 = vmatmul.mubr.bf16.vlgmr.msra.gmra.mrb[236].mxu1 %v6827_v19 }
0x197e   :  { %9472 = vmatpush3.bf16.msra.mxu1 %v6837_v40  ;;  %9473 = vmatprep.mubr.msk.bf16.mxu1 %vm10670_vm0, %v11538_v60 }
0x197f   :  { %9483 = vmatprep.subr.bf16.mxu1 %v11538_v60 }
0x1a18   :  { %v6878_v63 = vpop.f32.mrb[208].mxu0 }
0x1a19   :  { %v7172_v0 = vmul.f32 0.14142136, %v6878_v63  ;;  %v9421_v25 = vpop.f32.mrb[209].mxu0 }
0x1a1a   :  { %v6881_v11 = vpop.f32.mrb[210].mxu0 }
0x1a1b   :  { %v13525_v38 = vadd.f32 %v10450_v43, %v7172_v0  ;;  %v7173_v56 = vmul.f32 0.14142136, %v6881_v11  ;;  %v9422_v21 = vpop.f32.mrb[211].mxu0 }
0x1a1d   :  { %v13527_v24 = vadd.f32 %v10451_v31, %v7173_v56  ;;  %v7204_v29 = vsel %vm3227_vm1, %v13525_v38, -inf  ;;  %v10454_v56 = vld [vmem:[#allocation6 + $0x20] sm:$0xff] }
0x1a1e   :  { %7205 = vmax.xlane.f32.xlu0 %v7204_v29 }
0x1a1f   :  { %v7207_v26 = vsel %vm3227_vm1, %v13527_v24, -inf }
0x1a20   :  { %7208 = vmax.xlane.f32.xlu1 %v7207_v26  ;;  %v6919_v40 = vpop.f32.mrb[224].mxu1  ;;  %v10455_v26 = vld [vmem:[#allocation6 + $0x28] sm:$0xff] }
0x1a21   :  { %v7174_v16 = vmul.f32 0.14142136, %v6919_v40  ;;  %v9427_v61 = vpop.f32.mrb[225].mxu1 }
0x1a22   :  { %v6922_v35 = vpop.f32.mrb[226].mxu1 }
0x1a23   :  { %v13533_v57 = vadd.f32 %v10452_v20, %v7174_v16  ;;  %v7175_v17 = vmul.f32 0.14142136, %v6922_v35  ;;  %v9428_v59 = vpop.f32.mrb[227].mxu1 }
0x1a25   :  { %v13535_v19 = vadd.f32 %v10453_v51, %v7175_v17  ;;  %v7210_v48 = vsel %vm3227_vm1, %v13533_v57, -inf  ;;  %v10456_v51 = vld [vmem:[#allocation6 + $0x30] sm:$0xff] }
0x1a26   :  { %7211 = vmax.xlane.f32.xlu0 %v7210_v48 }
0x1a27   :  { %v7213_v63 = vsel %vm3227_vm1, %v13535_v19, -inf }
0x1a28   :  { %v6960_v0 = vpop.f32.mrb[212].mxu0  ;;  %7214 = vmax.xlane.f32.xlu1 %v7213_v63 }
0x1a29   :  { %v7176_v25 = vmul.f32 0.14142136, %v6960_v0  ;;  %v9433_v11 = vpop.f32.mrb[213].mxu0 }
0x1a2a   :  { %v6963_v43 = vpop.f32.mrb[214].mxu0 }
0x1a2b   :  { %v13541_v21 = vadd.f32 %v10454_v56, %v7176_v25  ;;  %v7177_v31 = vmul.f32 0.14142136, %v6963_v43  ;;  %v9434_v29 = vpop.f32.mrb[215].mxu0  ;;  %v10457_v25 = vld [vmem:[#allocation6 + $0x38] sm:$0xff] }
0x1a2d   :  { %v13543_v40 = vadd.f32 %v10455_v26, %v7177_v31  ;;  %v7216_v16 = vsel %vm3227_vm1, %v13541_v21, -inf }
0x1a2e   :  { %7217 = vmax.xlane.f32.xlu0 %v7216_v16 }
0x1a2f   :  { %v7219_v61 = vsel %vm3227_vm1, %v13543_v40, -inf }
0x1a30   :  { %7220 = vmax.xlane.f32.xlu1 %v7219_v61  ;;  %v7001_v35 = vpop.f32.mrb[228].mxu1  ;;  %v10458_v61 = vld [vmem:[#allocation6 + $0x40] sm:$0xff] }
0x1a31   :  { %v7178_v20 = vmul.f32 0.14142136, %v7001_v35  ;;  %v9439_v17 = vpop.f32.mrb[229].mxu1 }
0x1a32   :  { %v7004_v59 = vpop.f32.mrb[230].mxu1 }
0x1a33   :  { %v13549_v48 = vadd.f32 %v10456_v51, %v7178_v20  ;;  %v7179_v63 = vmul.f32 0.14142136, %v7004_v59  ;;  %v9440_v0 = vpop.f32.mrb[231].mxu1  ;;  %v10459_v59 = vld [vmem:[#allocation6 + $0x48] sm:$0xff] }
0x1a35   :  { %v13551_v11 = vadd.f32 %v10457_v25, %v7179_v63  ;;  %v7222_v43 = vsel %vm3227_vm1, %v13549_v48, -inf }
0x1a36   :  { %7223 = vmax.xlane.f32.xlu0 %v7222_v43 }
0x1a37   :  { %v7225_v56 = vsel %vm3227_vm1, %v13551_v11, -inf }
0x1a38   :  { %v7042_v31 = vpop.f32.mrb[216].mxu0  ;;  %7226 = vmax.xlane.f32.xlu1 %v7225_v56 }
0x1a39   :  { %v7180_v29 = vmul.f32 0.14142136, %v7042_v31  ;;  %v9445_v26 = vpop.f32.mrb[217].mxu0 }
0x1a3a   :  { %v7045_v16 = vpop.f32.mrb[218].mxu0  ;;  %v10460_v26 = vld [vmem:[#allocation6 + $0x50] sm:$0xff] }
0x1a3b   :  { %v13557_v35 = vadd.f32 %v10458_v61, %v7180_v29  ;;  %v7181_v20 = vmul.f32 0.14142136, %v7045_v16  ;;  %v9446_v17 = vpop.f32.mrb[219].mxu0 }
0x1a3c   :  { %v10461_v17 = vld [vmem:[#allocation6 + $0x58] sm:$0xff] }
0x1a3d   :  { %v13559_v51 = vadd.f32 %v10459_v59, %v7181_v20  ;;  %v7228_v63 = vsel %vm3227_vm1, %v13557_v35, -inf }
0x1a3e   :  { %7229 = vmax.xlane.f32.xlu0 %v7228_v63 }
0x1a3f   :  { %v7231_v0 = vsel %vm3227_vm1, %v13559_v51, -inf }
0x1a40   :  { %7232 = vmax.xlane.f32.xlu1 %v7231_v0  ;;  %v7083_v25 = vpop.f32.mrb[232].mxu1 }
0x1a41   :  { %v7182_v43 = vmul.f32 0.14142136, %v7083_v25  ;;  %v9451_v56 = vpop.f32.mrb[233].mxu1 }
0x1a42   :  { %v7086_v31 = vpop.f32.mrb[234].mxu1 }
0x1a43   :  { %v13565_v29 = vadd.f32 %v10460_v26, %v7182_v43  ;;  %v7183_v16 = vmul.f32 0.14142136, %v7086_v31  ;;  %v9452_v61 = vpop.f32.mrb[235].mxu1 }
0x1a44   :  { %v10463_v61 = vld [vmem:[#allocation6 + $0x68] sm:$0xff] }
0x1a45   :  { %v13567_v20 = vadd.f32 %v10461_v17, %v7183_v16  ;;  %v7234_v59 = vsel %vm3227_vm1, %v13565_v29, -inf }
0x1a46   :  { %7235 = vmax.xlane.f32.xlu0 %v7234_v59 }
0x1a47   :  { %v7237_v63 = vsel %vm3227_vm1, %v13567_v20, -inf }
0x1a48   :  { %v7124_v0 = vpop.f32.mrb[220].mxu0  ;;  %7238 = vmax.xlane.f32.xlu1 %v7237_v63 }
0x1a49   :  { %v7184_v25 = vmul.f32 0.14142136, %v7124_v0  ;;  %v9457_v56 = vpop.f32.mrb[221].mxu0 }
0x1a4a   :  { %v7127_v46 = vpop.f32.mrb[222].mxu0 }
0x1a4b   :  { %v13573_v43 = vadd.f32 %v10462_v5, %v7184_v25  ;;  %v7185_v31 = vmul.f32 0.14142136, %v7127_v46  ;;  %v9458_v26 = vpop.f32.mrb[223].mxu0 }
0x1a4c   :  { %v10465_v26 = vld [vmem:[#allocation6 + $0x78] sm:$0xff] }
0x1a4d   :  { %v13575_v16 = vadd.f32 %v10463_v61, %v7185_v31  ;;  %v7240_v17 = vsel %vm3227_vm1, %v13573_v43, -inf }
0x1a4e   :  { %7241 = vmax.xlane.f32.xlu0 %v7240_v17 }
0x1a4f   :  { %v7243_v59 = vsel %vm3227_vm1, %v13575_v16, -inf }
0x1a50   :  { %7244 = vmax.xlane.f32.xlu1 %v7243_v59  ;;  %v7165_v63 = vpop.f32.mrb[236].mxu1 }
0x1a51   :  { %v7186_v0 = vmul.f32 0.14142136, %v7165_v63  ;;  %v9463_v56 = vpop.f32.mrb[237].mxu1 }
0x1a52   :  { %v7168_v45 = vpop.f32.mrb[238].mxu1 }
0x1a53   :  { %v13581_v5 = vadd.f32 %v10464_v12, %v7186_v0  ;;  %v7187_v46 = vmul.f32 0.14142136, %v7168_v45  ;;  %v9464_v25 = vpop.f32.mrb[239].mxu1 }
0x1a55   :  { %v13583_v31 = vadd.f32 %v10465_v26, %v7187_v46  ;;  %v7246_v61 = vsel %vm3227_vm1, %v13581_v5, -inf }
0x1a56   :  { %7247 = vmax.xlane.f32.xlu0 %v7246_v61 }
0x1a57   :  { %v7249_v17 = vsel %vm3227_vm1, %v13583_v31, -inf }
0x1a58   :  { %7250 = vmax.xlane.f32.xlu1 %v7249_v17 }
0x1aab   :  { %v7206_v59 = vpop.xlane.xlu0 %7205 }
0x1aac   :  { %v7252_v63 = vsub.f32 %v13525_v38, %v7206_v59 }
0x1aad   :  { %v7209_v56 = vpop.xlane.xlu1 %7208 }
0x1aae   :  { %v7268_v42 = vmul.f32 1.442695, %v7252_v63  ;;  %v7253_v12 = vsub.f32 %v13527_v24, %v7209_v56 }
0x1ab0   :  { %10273 = vpow2.f32 %v7268_v42  ;;  %v7270_v45 = vmul.f32 1.442695, %v7253_v12 }
0x1ab2   :  { %10275 = vpow2.f32 %v7270_v45 }
0x1ab3   :  { %v7212_v0 = vpop.xlane.xlu0 %7211 }
0x1ab4   :  { %v7254_v46 = vsub.f32 %v13533_v57, %v7212_v0 }
0x1ab5   :  { %v7215_v25 = vpop.xlane.xlu1 %7214 }
0x1ab6   :  { %v7272_v26 = vmul.f32 1.442695, %v7254_v46  ;;  %v7255_v61 = vsub.f32 %v13535_v19, %v7215_v25 }
0x1ab8   :  { %10277 = vpow2.f32 %v7272_v26  ;;  %v7274_v14 = vmul.f32 1.442695, %v7255_v61 }
0x1aba   :  { %v13593_v17 = vpop.eup %10273  ;;  %10279 = vpow2.f32 %v7274_v14 }
0x1abb   :  { %v7218_v38 = vpop.xlane.xlu0 %7217  ;;  %v7300_v59 = vsel %vm3227_vm1, %v13593_v17, 0.0 }
0x1abc   :  { %v13597_v24 = vpop.eup %10275  ;;  %v7256_v42 = vsub.f32 %v13541_v21, %v7218_v38  ;;  %7301 = vadd.xlane.f32.xlu0 %v7300_v59 }
0x1abd   :  { %v7221_v63 = vpop.xlane.xlu1 %7220  ;;  %v7303_v57 = vsel %vm3227_vm1, %v13597_v24, 0.0 }
0x1abe   :  { %v7276_v56 = vmul.f32 1.442695, %v7256_v42  ;;  %v7257_v19 = vsub.f32 %v13543_v40, %v7221_v63  ;;  %7304 = vadd.xlane.f32.xlu1 %v7303_v57 }
0x1ac0   :  { %10281 = vpow2.f32 %v7276_v56  ;;  %v7278_v12 = vmul.f32 1.442695, %v7257_v19 }
0x1ac2   :  { %v13603_v14 = vpop.eup %10277  ;;  %10283 = vpow2.f32 %v7278_v12 }
0x1ac3   :  { %v7224_v45 = vpop.xlane.xlu0 %7223  ;;  %v7306_v0 = vsel %vm3227_vm1, %v13603_v14, 0.0 }
0x1ac4   :  { %v13607_v46 = vpop.eup %10279  ;;  %v7258_v21 = vsub.f32 %v13549_v48, %v7224_v45  ;;  %7307 = vadd.xlane.f32.xlu0 %v7306_v0 }
0x1ac5   :  { %v7227_v25 = vpop.xlane.xlu1 %7226  ;;  %v7309_v26 = vsel %vm3227_vm1, %v13607_v46, 0.0 }
0x1ac6   :  { %v7280_v40 = vmul.f32 1.442695, %v7258_v21  ;;  %v7259_v61 = vsub.f32 %v13551_v11, %v7227_v25  ;;  %7310 = vadd.xlane.f32.xlu1 %v7309_v26 }
0x1ac8   :  { %10285 = vpow2.f32 %v7280_v40  ;;  %v7282_v38 = vmul.f32 1.442695, %v7259_v61 }
0x1aca   :  { %v13613_v59 = vpop.eup %10281  ;;  %10287 = vpow2.f32 %v7282_v38 }
0x1acb   :  { %v7230_v42 = vpop.xlane.xlu0 %7229  ;;  %v7312_v63 = vsel %vm3227_vm1, %v13613_v59, 0.0 }
0x1acc   :  { %v13617_v57 = vpop.eup %10283  ;;  %v7260_v48 = vsub.f32 %v13557_v35, %v7230_v42  ;;  %7313 = vadd.xlane.f32.xlu0 %v7312_v63 }
0x1acd   :  { %v7233_v56 = vpop.xlane.xlu1 %7232  ;;  %v7315_v19 = vsel %vm3227_vm1, %v13617_v57, 0.0 }
0x1ace   :  { %v7284_v11 = vmul.f32 1.442695, %v7260_v48  ;;  %v7261_v12 = vsub.f32 %v13559_v51, %v7233_v56  ;;  %7316 = vadd.xlane.f32.xlu1 %v7315_v19 }
0x1ad0   :  { %10289 = vpow2.f32 %v7284_v11  ;;  %v7286_v45 = vmul.f32 1.442695, %v7261_v12 }
0x1ad2   :  { %v13623_v0 = vpop.eup %10285  ;;  %10291 = vpow2.f32 %v7286_v45 }
0x1ad3   :  { %v7236_v21 = vpop.xlane.xlu0 %7235  ;;  %v7318_v25 = vsel %vm3227_vm1, %v13623_v0, 0.0 }
0x1ad4   :  { %v13627_v26 = vpop.eup %10287  ;;  %v7262_v35 = vsub.f32 %v13565_v29, %v7236_v21  ;;  %7319 = vadd.xlane.f32.xlu0 %v7318_v25 }
0x1ad5   :  { %v7239_v40 = vpop.xlane.xlu1 %7238  ;;  %v7321_v61 = vsel %vm3227_vm1, %v13627_v26, 0.0 }
0x1ad6   :  { %v7288_v51 = vmul.f32 1.442695, %v7262_v35  ;;  %v7263_v38 = vsub.f32 %v13567_v20, %v7239_v40  ;;  %7322 = vadd.xlane.f32.xlu1 %v7321_v61 }
0x1ad8   :  { %10293 = vpow2.f32 %v7288_v51  ;;  %v7290_v42 = vmul.f32 1.442695, %v7263_v38 }
0x1ada   :  { %v13633_v63 = vpop.eup %10289  ;;  %10295 = vpow2.f32 %v7290_v42 }
0x1adb   :  { %v7242_v48 = vpop.xlane.xlu0 %7241  ;;  %v7324_v56 = vsel %vm3227_vm1, %v13633_v63, 0.0 }
0x1adc   :  { %v13637_v19 = vpop.eup %10291  ;;  %v7264_v29 = vsub.f32 %v13573_v43, %v7242_v48  ;;  %7325 = vadd.xlane.f32.xlu0 %v7324_v56 }
0x1add   :  { %v7245_v11 = vpop.xlane.xlu1 %7244  ;;  %v7327_v12 = vsel %vm3227_vm1, %v13637_v19, 0.0 }
0x1ade   :  { %v7292_v20 = vmul.f32 1.442695, %v7264_v29  ;;  %v7265_v45 = vsub.f32 %v13575_v16, %v7245_v11  ;;  %7328 = vadd.xlane.f32.xlu1 %v7327_v12 }
0x1ae0   :  { %10297 = vpow2.f32 %v7292_v20  ;;  %v7294_v21 = vmul.f32 1.442695, %v7265_v45 }
0x1ae2   :  { %v13643_v25 = vpop.eup %10293  ;;  %10299 = vpow2.f32 %v7294_v21 }
0x1ae3   :  { %v7248_v35 = vpop.xlane.xlu0 %7247  ;;  %v7330_v40 = vsel %vm3227_vm1, %v13643_v25, 0.0 }
0x1ae4   :  { %v13647_v61 = vpop.eup %10295  ;;  %v7266_v43 = vsub.f32 %v13581_v5, %v7248_v35  ;;  %7331 = vadd.xlane.f32.xlu0 %v7330_v40 }
0x1ae5   :  { %v7251_v51 = vpop.xlane.xlu1 %7250  ;;  %v7333_v38 = vsel %vm3227_vm1, %v13647_v61, 0.0 }
0x1ae6   :  { %v7296_v16 = vmul.f32 1.442695, %v7266_v43  ;;  %v7267_v42 = vsub.f32 %v13583_v31, %v7251_v51  ;;  %7334 = vadd.xlane.f32.xlu1 %v7333_v38 }
0x1ae8   :  { %10301 = vpow2.f32 %v7296_v16  ;;  %v7298_v48 = vmul.f32 1.442695, %v7267_v42 }
0x1aea   :  { %v13653_v56 = vpop.eup %10297  ;;  %10303 = vpow2.f32 %v7298_v48 }
0x1aeb   :  { %v7336_v29 = vsel %vm3227_vm1, %v13653_v56, 0.0 }
0x1aec   :  { %v13657_v11 = vpop.eup %10299  ;;  %7337 = vadd.xlane.f32.xlu0 %v7336_v29 }
0x1aed   :  { %v7339_v5 = vsel %vm3227_vm1, %v13657_v11, 0.0 }
0x1aee   :  { %7340 = vadd.xlane.f32.xlu1 %v7339_v5 }
0x1af2   :  { %v13661_v12 = vpop.eup %10301 }
0x1af3   :  { %v7342_v31 = vsel %vm3227_vm1, %v13661_v12, 0.0 }
0x1af4   :  { %v13665_v20 = vpop.eup %10303  ;;  %7343 = vadd.xlane.f32.xlu0 %v7342_v31 }
0x1af5   :  { %v7345_v45 = vsel %vm3227_vm1, %v13665_v20, 0.0 }
0x1af6   :  { %7346 = vadd.xlane.f32.xlu1 %v7345_v45  ;;  %v14147_v45 = vpack.c.bf16 %v13439_v15, %v13433_v1  ;;  %v14148_v1 = vpack.c.bf16 %v13436_v53, %v13430_v50  ;;  %v14149_v50 = vpack.c.bf16 %v13469_v33, %v13463_v36  ;;  %v14150_v36 = vpack.c.bf16 %v13466_v7, %v13460_v54 }
0x1af7   :  { %v14151_v54 = vpack.c.bf16 %v13499_v27, %v13493_v39  ;;  %v14152_v39 = vpack.c.bf16 %v13496_v4, %v13490_v3 }
0x1b49   :  { %v7302_v21 = vpop.xlane.xlu0 %7301 }
0x1b4a   :  { %10305 = vrcp.f32 %v7302_v21 }
0x1b4b   :  { %v7305_v35 = vpop.xlane.xlu1 %7304 }
0x1b4c   :  { %10307 = vrcp.f32 %v7305_v35 }
0x1b51   :  { %v7308_v40 = vpop.xlane.xlu0 %7307 }
0x1b52   :  { %10309 = vrcp.f32 %v7308_v40 }
0x1b53   :  { %v7311_v43 = vpop.xlane.xlu1 %7310 }
0x1b54   :  { %v10306_v51 = vpop.eup %10305  ;;  %10311 = vrcp.f32 %v7311_v43 }
0x1b55   :  { %v7364_v16 = vmul.f32 %v10306_v51, %v13593_v17 }
0x1b56   :  { %v10308_v38 = vpop.eup %10307 }
0x1b57   :  { %v7365_v42 = vmul.f32 %v10308_v38, %v13597_v24 }
0x1b59   :  { %v7314_v48 = vpop.xlane.xlu0 %7313  ;;  %v7380_v29 = vpack.c.bf16 %v7365_v42, %v7364_v16 }
0x1b5a   :  { %10313 = vrcp.f32 %v7314_v48 }
0x1b5b   :  { %9468 = vmatmul.mubr.msk.bf16.vlgmr.msra.gmra.mrb[224].mxu0 %vm3227_vm1, %v7380_v29  ;;  %v7317_v5 = vpop.xlane.xlu1 %7316 }
0x1b5c   :  { %v10310_v31 = vpop.eup %10309  ;;  %9478 = vmatpush3.bf16.msra.mxu0 %v14147_v45  ;;  %10315 = vrcp.f32 %v7317_v5  ;;  %9479 = vmatprep.mubr.msk.bf16.mxu0 %vm10670_vm0, %v11538_v60 }
0x1b5d   :  { %9489 = vmatprep.subr.bf16.mxu0 %v11538_v60  ;;  %v7366_v24 = vmul.f32 %v10310_v31, %v13603_v14 }
0x1b5e   :  { %v10312_v17 = vpop.eup %10311 }
0x1b5f   :  { %v7367_v21 = vmul.f32 %v10312_v17, %v13607_v46 }
0x1b61   :  { %v7320_v35 = vpop.xlane.xlu0 %7319  ;;  %v7381_v40 = vpack.c.bf16 %v7367_v21, %v7366_v24 }
0x1b62   :  { %10317 = vrcp.f32 %v7320_v35 }
0x1b63   :  { %9474 = vmatmul.mubr.msk.bf16.vlgmr.msra.gmra.mrb[240].mxu1 %vm3227_vm1, %v7381_v40  ;;  %v7323_v43 = vpop.xlane.xlu1 %7322 }
0x1b64   :  { %v10314_v51 = vpop.eup %10313  ;;  %9484 = vmatpush3.bf16.msra.mxu1 %v14148_v1  ;;  %10319 = vrcp.f32 %v7323_v43  ;;  %9485 = vmatprep.mubr.msk.bf16.mxu1 %vm10670_vm0, %v11538_v60 }
0x1b65   :  { %9495 = vmatprep.subr.bf16.mxu1 %v11538_v60  ;;  %v7368_v14 = vmul.f32 %v10314_v51, %v13613_v59 }
0x1b66   :  { %v10316_v15 = vpop.eup %10315 }
0x1b67   :  { %v7369_v46 = vmul.f32 %v10316_v15, %v13617_v57 }
0x1b69   :  { %v7326_v38 = vpop.xlane.xlu0 %7325  ;;  %v7382_v16 = vpack.c.bf16 %v7369_v46, %v7368_v14 }
0x1b6a   :  { %10321 = vrcp.f32 %v7326_v38 }
0x1b6b   :  { %9480 = vmatmul.mubr.msk.bf16.vlgmr.msra.gmra.mrb[228].mxu0 %vm3227_vm1, %v7382_v16  ;;  %v7329_v42 = vpop.xlane.xlu1 %7328 }
0x1b6c   :  { %v10318_v48 = vpop.eup %10317  ;;  %9490 = vmatpush3.bf16.msra.mxu0 %v14149_v50  ;;  %10323 = vrcp.f32 %v7329_v42  ;;  %9491 = vmatprep.mubr.msk.bf16.mxu0 %vm10670_vm0, %v11538_v60 }
0x1b6d   :  { %9501 = vmatprep.subr.bf16.mxu0 %v11538_v60  ;;  %v7370_v59 = vmul.f32 %v10318_v48, %v13623_v0 }
0x1b6e   :  { %v10320_v53 = vpop.eup %10319 }
0x1b6f   :  { %v7371_v57 = vmul.f32 %v10320_v53, %v13627_v26 }
0x1b71   :  { %v7332_v29 = vpop.xlane.xlu0 %7331  ;;  %v7383_v5 = vpack.c.bf16 %v7371_v57, %v7370_v59 }
0x1b72   :  { %10325 = vrcp.f32 %v7332_v29 }
0x1b73   :  { %9486 = vmatmul.mubr.msk.bf16.vlgmr.msra.gmra.mrb[244].mxu1 %vm3227_vm1, %v7383_v5  ;;  %v7335_v31 = vpop.xlane.xlu1 %7334 }
0x1b74   :  { %v10322_v45 = vpop.eup %10321  ;;  %9496 = vmatpush3.bf16.msra.mxu1 %v14150_v36  ;;  %10327 = vrcp.f32 %v7335_v31  ;;  %9497 = vmatprep.mubr.msk.bf16.mxu1 %vm10670_vm0, %v11538_v60 }
0x1b75   :  { %9507 = vmatprep.subr.bf16.mxu1 %v11538_v60  ;;  %v7372_v0 = vmul.f32 %v10322_v45, %v13633_v63 }
0x1b76   :  { %v10324_v33 = vpop.eup %10323 }
0x1b77   :  { %v7373_v26 = vmul.f32 %v10324_v33, %v13637_v19 }
0x1b79   :  { %v7338_v17 = vpop.xlane.xlu0 %7337  ;;  %v7384_v24 = vpack.c.bf16 %v7373_v26, %v7372_v0 }
0x1b7a   :  { %10329 = vrcp.f32 %v7338_v17 }
0x1b7b   :  { %9492 = vmatmul.mubr.msk.bf16.vlgmr.msra.gmra.mrb[232].mxu0 %vm3227_vm1, %v7384_v24  ;;  %v7341_v21 = vpop.xlane.xlu1 %7340 }
0x1b7c   :  { %v10326_v35 = vpop.eup %10325  ;;  %9502 = vmatpush3.bf16.msra.mxu0 %v14151_v54  ;;  %10331 = vrcp.f32 %v7341_v21  ;;  %9503 = vmatprep.mubr.msk.bf16.mxu0 %vm10670_vm0, %v11538_v60 }
0x1b7d   :  { %v7374_v63 = vmul.f32 %v10326_v35, %v13643_v25 }
0x1b7e   :  { %v10328_v7 = vpop.eup %10327 }
0x1b7f   :  { %v7375_v19 = vmul.f32 %v10328_v7, %v13647_v61 }
0x1b81   :  { %v7344_v40 = vpop.xlane.xlu0 %7343  ;;  %v7385_v43 = vpack.c.bf16 %v7375_v19, %v7374_v63 }
0x1b82   :  { %10333 = vrcp.f32 %v7344_v40 }
0x1b83   :  { %9498 = vmatmul.mubr.msk.bf16.vlgmr.msra.gmra.mrb[248].mxu1 %vm3227_vm1, %v7385_v43  ;;  %v7347_v51 = vpop.xlane.xlu1 %7346 }
0x1b84   :  { %v10330_v1 = vpop.eup %10329  ;;  %9508 = vmatpush3.bf16.msra.mxu1 %v14152_v39  ;;  %10335 = vrcp.f32 %v7347_v51  ;;  %9509 = vmatprep.mubr.msk.bf16.mxu1 %vm10670_vm0, %v11538_v60 }
0x1b85   :  { %9545 = vmatprep.subr.bf16.mxu1 %v11538_v60  ;;  %v7376_v25 = vmul.f32 %v10330_v1, %v13653_v56 }
0x1b86   :  { %v10332_v27 = vpop.eup %10331 }
0x1b87   :  { %v7377_v61 = vmul.f32 %v10332_v27, %v13657_v11 }
0x1b89   :  { %v7386_v15 = vpack.c.bf16 %v7377_v61, %v7376_v25 }
0x1b8b   :  { %9504 = vmatmul.mubr.msk.bf16.vlgmr.msra.gmra.mrb[236].mxu0 %vm3227_vm1, %v7386_v15 }
0x1b8c   :  { %v10334_v14 = vpop.eup %10333 }
0x1b8d   :  { %v7378_v38 = vmul.f32 %v10334_v14, %v13661_v12 }
0x1b8e   :  { %v10336_v46 = vpop.eup %10335 }
0x1b8f   :  { %v7379_v3 = vmul.f32 %v10336_v46, %v13665_v20 }
0x1b91   :  { %v7387_v4 = vpack.c.bf16 %v7379_v3, %v7378_v38 }
0x1b93   :  { %9510 = vmatmul.mubr.msk.bf16.vlgmr.msra.gmra.mrb[252].mxu1 %vm3227_vm1, %v7387_v4 }
0x1b94   :  { %9561 = vmatprep.mubr.msk.bf16.mxu1 %vm10670_vm0, %v11538_v60 }
0x1c2e   :  { %v7425_v16 = vpop.f32.mrb[224].mxu0 }
0x1c2f   :  { %v13731_v56 = vadd.f32 %v7425_v16, %v13286_v6  ;;  %v9469_v11 = vpop.f32.mrb[225].mxu0 }
0x1c30   :  { %v7428_v42 = vpop.f32.mrb[226].mxu0 }
0x1c31   :  { %v13734_v48 = vadd.f32 %v7428_v42, %v13289_v47  ;;  %7758 = vadd.xlane.f32.xlu0 %v13731_v56  ;;  %v9470_v12 = vpop.f32.mrb[227].mxu0 }
0x1c33   :  { %7760 = vadd.xlane.f32.xlu1 %v13734_v48 }
0x1c36   :  { %v7469_v20 = vpop.f32.mrb[240].mxu1 }
0x1c37   :  { %v13739_v50 = vadd.f32 %v7469_v20, %v13295_v10  ;;  %v9475_v53 = vpop.f32.mrb[241].mxu1 }
0x1c38   :  { %v7472_v59 = vpop.f32.mrb[242].mxu1 }
0x1c39   :  { %v13742_v57 = vadd.f32 %v7472_v59, %v13298_v22  ;;  %7762 = vadd.xlane.f32.xlu0 %v13739_v50  ;;  %v9476_v6 = vpop.f32.mrb[243].mxu1 }
0x1c3b   :  { %7764 = vadd.xlane.f32.xlu1 %v13742_v57 }
0x1c3e   :  { %v7513_v47 = vpop.f32.mrb[228].mxu0 }
0x1c3f   :  { %v13747_v29 = vadd.f32 %v7513_v47, %v13310_v34  ;;  %v9481_v5 = vpop.f32.mrb[229].mxu0 }
0x1c40   :  { %v7516_v31 = vpop.f32.mrb[230].mxu0 }
0x1c41   :  { %v13750_v45 = vadd.f32 %v7516_v31, %v13313_v28  ;;  %v9482_v10 = vpop.f32.mrb[231].mxu0  ;;  %7766 = vadd.xlane.f32.xlu0 %v13747_v29 }
0x1c43   :  { %7768 = vadd.xlane.f32.xlu1 %v13750_v45 }
0x1c46   :  { %v7557_v22 = vpop.f32.mrb[244].mxu1 }
0x1c47   :  { %v13755_v36 = vadd.f32 %v7557_v22, %v13321_v18  ;;  %v9487_v33 = vpop.f32.mrb[245].mxu1 }
0x1c48   :  { %v7560_v0 = vpop.f32.mrb[246].mxu1 }
0x1c49   :  { %v13758_v26 = vadd.f32 %v7560_v0, %v13324_v58  ;;  %7770 = vadd.xlane.f32.xlu0 %v13755_v36  ;;  %v9488_v34 = vpop.f32.mrb[247].mxu1 }
0x1c4b   :  { %7772 = vadd.xlane.f32.xlu1 %v13758_v26 }
0x1c4e   :  { %v7601_v28 = vpop.f32.mrb[232].mxu0 }
0x1c4f   :  { %v13763_v17 = vadd.f32 %v7601_v28, %v13336_v13  ;;  %v9493_v24 = vpop.f32.mrb[233].mxu0  ;;  %v9849_v28 = vld [vmem:[#allocation12 + $0x80] sm:$0xff]  }
0x1c50   :  { %v7604_v21 = vpop.f32.mrb[234].mxu0  ;;  %9513 = vmatprep.subr.bf16.mxu0 %v9849_v28 }
0x1c51   :  { %v13766_v35 = vadd.f32 %v7604_v21, %v13339_v44  ;;  %v9494_v18 = vpop.f32.mrb[235].mxu0  ;;  %7774 = vadd.xlane.f32.xlu0 %v13763_v17  ;;  %9514 = vmatpush3.bf16.msra.mxu0 %v9849_v28 }
0x1c53   :  { %7776 = vadd.xlane.f32.xlu1 %v13766_v35 }
0x1c56   :  { %v7645_v58 = vpop.f32.mrb[248].mxu1 }
0x1c57   :  { %v13771_v54 = vadd.f32 %v7645_v58, %v13347_v2  ;;  %v9499_v7 = vpop.f32.mrb[249].mxu1 }
0x1c58   :  { %v7648_v63 = vpop.f32.mrb[250].mxu1 }
0x1c59   :  { %v13774_v19 = vadd.f32 %v7648_v63, %v13350_v49  ;;  %7778 = vadd.xlane.f32.xlu0 %v13771_v54  ;;  %v9500_v13 = vpop.f32.mrb[251].mxu1 }
0x1c5b   :  { %7780 = vadd.xlane.f32.xlu1 %v13774_v19 }
0x1c5e   :  { %v7689_v44 = vpop.f32.mrb[236].mxu0 }
0x1c5f   :  { %v13779_v40 = vadd.f32 %v7689_v44, %v13362_v32  ;;  %v9505_v43 = vpop.f32.mrb[237].mxu0 }
0x1c60   :  { %v7692_v51 = vpop.f32.mrb[238].mxu0 }
0x1c61   :  { %v13782_v1 = vadd.f32 %v7692_v51, %v13365_v41  ;;  %v9506_v2 = vpop.f32.mrb[239].mxu0  ;;  %7782 = vadd.xlane.f32.xlu0 %v13779_v40  ;;  %v9851_v51 = vld [vmem:[#allocation12 + $0x90] sm:$0xff]  }
0x1c63   :  { %7784 = vadd.xlane.f32.xlu1 %v13782_v1 }
0x1c66   :  { %v7733_v49 = vpop.f32.mrb[252].mxu1 }
0x1c67   :  { %v13787_v39 = vadd.f32 %v7733_v49, %v13373_v55  ;;  %v9511_v27 = vpop.f32.mrb[253].mxu1 }
0x1c68   :  { %v7736_v25 = vpop.f32.mrb[254].mxu1 }
0x1c69   :  { %v13790_v61 = vadd.f32 %v7736_v25, %v13376_v30  ;;  %7786 = vadd.xlane.f32.xlu0 %v13787_v39  ;;  %v9512_v32 = vpop.f32.mrb[255].mxu1 }
0x1c6a   :  { %v9852_v32 = vld [vmem:[#allocation12 + $0x98] sm:$0xff]  }
0x1c6b   :  { %7788 = vadd.xlane.f32.xlu1 %v13790_v61 }
0x1cbe   :  { %v7759_v41 = vpop.xlane.xlu0 %7758 }
0x1cbf   :  { %v7790_v15 = vmul.f32 0.02, %v7759_v41 }
0x1cc0   :  { %v7761_v14 = vpop.xlane.xlu1 %7760 }
0x1cc1   :  { %v7806_v46 = vsub.f32 %v13731_v56, %v7790_v15  ;;  %v7791_v38 = vmul.f32 0.02, %v7761_v14 }
0x1cc3   :  { %v13796_v3 = vmul.f32 %v11957_v9, %v7806_v46  ;;  %v7807_v55 = vsub.f32 %v13734_v48, %v7791_v38  ;;  %v9853_v38 = vld [vmem:[#allocation12 + $0xa0] sm:$0xff]  }
0x1cc5   :  { %v13800_v4 = vmul.f32 %v11957_v9, %v7807_v55  ;;  %v7838_v30 = vmul.f32 %v13796_v3, %v13796_v3 }
0x1cc6   :  { %v7763_v16 = vpop.xlane.xlu0 %7762 }
0x1cc7   :  { %v7792_v11 = vmul.f32 0.02, %v7763_v16  ;;  %7854 = vadd.xlane.f32.xlu0 %v7838_v30  ;;  %v7839_v42 = vmul.f32 %v13800_v4, %v13800_v4 }
0x1cc8   :  { %v7765_v12 = vpop.xlane.xlu1 %7764 }
0x1cc9   :  { %v7808_v56 = vsub.f32 %v13739_v50, %v7792_v11  ;;  %v7793_v20 = vmul.f32 0.02, %v7765_v12  ;;  %7856 = vadd.xlane.f32.xlu1 %v7839_v42  ;;  %v9854_v42 = vld [vmem:[#allocation12 + $0xa8] sm:$0xff]  }
0x1ccb   :  { %v13808_v53 = vmul.f32 %v11957_v9, %v7808_v56  ;;  %v7809_v48 = vsub.f32 %v13742_v57, %v7793_v20 }
0x1ccd   :  { %v13812_v59 = vmul.f32 %v11957_v9, %v7809_v48  ;;  %v7840_v6 = vmul.f32 %v13808_v53, %v13808_v53 }
0x1cce   :  { %v7767_v47 = vpop.xlane.xlu0 %7766 }
0x1ccf   :  { %v7794_v5 = vmul.f32 0.02, %v7767_v47  ;;  %7858 = vadd.xlane.f32.xlu0 %v7840_v6  ;;  %v7841_v31 = vmul.f32 %v13812_v59, %v13812_v59  ;;  %v9855_v6 = vld [vmem:[#allocation12 + $0xb0] sm:$0xff]  }
0x1cd0   :  { %v7769_v50 = vpop.xlane.xlu1 %7768 }
0x1cd1   :  { %v7810_v10 = vsub.f32 %v13747_v29, %v7794_v5  ;;  %v7795_v22 = vmul.f32 0.02, %v7769_v50  ;;  %7860 = vadd.xlane.f32.xlu1 %v7841_v31 }
0x1cd3   :  { %v13820_v33 = vmul.f32 %v11957_v9, %v7810_v10  ;;  %v7811_v57 = vsub.f32 %v13750_v45, %v7795_v22  ;;  %v9850_v45 = vld [vmem:[#allocation12 + $0x88] sm:$0xff]   ;;  %v9856_v10 = vld [vmem:[#allocation12 + $0xb8] sm:$0xff]  }
0x1cd4   :  { %9515 = vmatprep.subr.bf16.mxu0 %v9850_v45 }
0x1cd5   :  { %v13824_v0 = vmul.f32 %v11957_v9, %v7811_v57  ;;  %v7842_v34 = vmul.f32 %v13820_v33, %v13820_v33  ;;  %9516 = vmatpush3.bf16.msra.mxu0 %v9850_v45 }
0x1cd6   :  { %v7771_v24 = vpop.xlane.xlu0 %7770  ;;  %9517 = vmatprep.subr.bf16.mxu0 %v9851_v51 }
0x1cd7   :  { %v7796_v21 = vmul.f32 0.02, %v7771_v24  ;;  %7862 = vadd.xlane.f32.xlu0 %v7842_v34  ;;  %v7843_v29 = vmul.f32 %v13824_v0, %v13824_v0 }
0x1cd8   :  { %v7773_v18 = vpop.xlane.xlu1 %7772 }
0x1cd9   :  { %v7812_v58 = vsub.f32 %v13755_v36, %v7796_v21  ;;  %v7797_v7 = vmul.f32 0.02, %v7773_v18  ;;  %7864 = vadd.xlane.f32.xlu1 %v7843_v29  ;;  %9518 = vmatpush3.bf16.msra.mxu0 %v9851_v51 }
0x1cda   :  { %9519 = vmatprep.subr.bf16.mxu0 %v9852_v32 }
0x1cdb   :  { %v13832_v63 = vmul.f32 %v11957_v9, %v7812_v58  ;;  %v7813_v13 = vsub.f32 %v13758_v26, %v7797_v7 }
0x1cdd   :  { %v13836_v44 = vmul.f32 %v11957_v9, %v7813_v13  ;;  %v7844_v43 = vmul.f32 %v13832_v63, %v13832_v63  ;;  %9520 = vmatpush3.bf16.msra.mxu0 %v9852_v32  ;;  %v13894_v32 = vld [vmem:[%s14068_s8 + $0x10] sm:$0x1f] }
0x1cde   :  { %v7775_v2 = vpop.xlane.xlu0 %7774  ;;  %9521 = vmatprep.subr.bf16.mxu0 %v9853_v38 }
0x1cdf   :  { %v7798_v49 = vmul.f32 0.02, %v7775_v2  ;;  %7866 = vadd.xlane.f32.xlu0 %v7844_v43  ;;  %v7845_v36 = vmul.f32 %v13836_v44, %v13836_v44 }
0x1ce0   :  { %v7777_v27 = vpop.xlane.xlu1 %7776 }
0x1ce1   :  { %v7814_v26 = vsub.f32 %v13763_v17, %v7798_v49  ;;  %v7799_v25 = vmul.f32 0.02, %v7777_v27  ;;  %7868 = vadd.xlane.f32.xlu1 %v7845_v36  ;;  %9522 = vmatpush3.bf16.msra.mxu0 %v9853_v38 }
0x1ce2   :  { %9523 = vmatprep.subr.bf16.mxu0 %v9854_v42 }
0x1ce3   :  { %v13844_v41 = vmul.f32 %v11957_v9, %v7814_v26  ;;  %v7815_v15 = vsub.f32 %v13766_v35, %v7799_v25 }
0x1ce5   :  { %v13848_v14 = vmul.f32 %v11957_v9, %v7815_v15  ;;  %v7846_v46 = vmul.f32 %v13844_v41, %v13844_v41  ;;  %9524 = vmatpush3.bf16.msra.mxu0 %v9854_v42  ;;  %v13903_v42 = vrot.slane %v13894_v32, %v14136_v8 }
0x1ce6   :  { %v7779_v55 = vpop.xlane.xlu0 %7778  ;;  %9525 = vmatprep.subr.bf16.mxu0 %v9855_v6 }
0x1ce7   :  { %v7800_v30 = vmul.f32 0.02, %v7779_v55  ;;  %7870 = vadd.xlane.f32.xlu0 %v7846_v46  ;;  %v7847_v17 = vmul.f32 %v13848_v14, %v13848_v14  ;;  %v13898_v55 = vrot.slane %v13894_v32, %v14134_v37 }
0x1ce8   :  { %v7781_v16 = vpop.xlane.xlu1 %7780 }
0x1ce9   :  { %v7816_v35 = vsub.f32 %v13771_v54, %v7800_v30  ;;  %v7801_v11 = vmul.f32 0.02, %v7781_v16  ;;  %7872 = vadd.xlane.f32.xlu1 %v7847_v17  ;;  %9526 = vmatpush3.bf16.msra.mxu0 %v9855_v6 }
0x1cea   :  { %9527 = vmatprep.subr.bf16.mxu0 %v9856_v10 }
0x1ceb   :  { %v13856_v12 = vmul.f32 %v11957_v9, %v7816_v35  ;;  %v7817_v56 = vsub.f32 %v13774_v19, %v7801_v11 }
0x1ced   :  { %v13860_v20 = vmul.f32 %v11957_v9, %v7817_v56  ;;  %v7848_v48 = vmul.f32 %v13856_v12, %v13856_v12  ;;  %9528 = vmatpush3.bf16.msra.mxu0 %v9856_v10 }
0x1cee   :  { %v7783_v47 = vpop.xlane.xlu0 %7782  ;;  %9565 = vmatprep.subr.bf16.mxu0 %v11538_v60 }
0x1cef   :  { %v7802_v5 = vmul.f32 0.02, %v7783_v47  ;;  %7874 = vadd.xlane.f32.xlu0 %v7848_v48  ;;  %v7849_v54 = vmul.f32 %v13860_v20, %v13860_v20 }
0x1cf0   :  { %v7785_v31 = vpop.xlane.xlu1 %7784 }
0x1cf1   :  { %v7818_v19 = vsub.f32 %v13779_v40, %v7802_v5  ;;  %v7803_v50 = vmul.f32 0.02, %v7785_v31  ;;  %7876 = vadd.xlane.f32.xlu1 %v7849_v54 }
0x1cf3   :  { %v13868_v22 = vmul.f32 %v11957_v9, %v7818_v19  ;;  %v7819_v57 = vsub.f32 %v13782_v1, %v7803_v50 }
0x1cf5   :  { %v13872_v34 = vmul.f32 %v11957_v9, %v7819_v57  ;;  %v7850_v28 = vmul.f32 %v13868_v22, %v13868_v22 }
0x1cf6   :  { %v7787_v24 = vpop.xlane.xlu0 %7786 }
0x1cf7   :  { %v7804_v40 = vmul.f32 0.02, %v7787_v24  ;;  %7878 = vadd.xlane.f32.xlu0 %v7850_v28  ;;  %v7851_v21 = vmul.f32 %v13872_v34, %v13872_v34 }
0x1cf8   :  { %v7789_v29 = vpop.xlane.xlu1 %7788 }
0x1cf9   :  { %v7820_v18 = vsub.f32 %v13787_v39, %v7804_v40  ;;  %v7805_v1 = vmul.f32 0.02, %v7789_v29  ;;  %7880 = vadd.xlane.f32.xlu1 %v7851_v21 }
0x1cfb   :  { %v13881_v58 = vmul.f32 %v11957_v9, %v7820_v18  ;;  %v7821_v7 = vsub.f32 %v13790_v61, %v7805_v1 }
0x1cfd   :  { %v13885_v45 = vmul.f32 %v11957_v9, %v7821_v7  ;;  %v7852_v13 = vmul.f32 %v13881_v58, %v13881_v58 }
0x1cff   :  { %7882 = vadd.xlane.f32.xlu0 %v7852_v13  ;;  %v7853_v43 = vmul.f32 %v13885_v45, %v13885_v45 }
0x1d01   :  { %7884 = vadd.xlane.f32.xlu1 %v7853_v43 }
0x1d54   :  { %v7855_v51 = vpop.xlane.xlu0 %7854 }
0x1d55   :  { %v7886_v39 = vmul.f32 0.02, %v7855_v51 }
0x1d56   :  { %v7857_v2 = vpop.xlane.xlu1 %7856 }
0x1d57   :  { %v7902_v49 = vadd.f32 1e-05, %v7886_v39  ;;  %v7887_v36 = vmul.f32 0.02, %v7857_v2 }
0x1d59   :  { %10337 = vrsqrt.f32 %v7902_v49  ;;  %v7903_v27 = vadd.f32 1e-05, %v7887_v36 }
0x1d5b   :  { %10339 = vrsqrt.f32 %v7903_v27 }
0x1d5c   :  { %v7859_v61 = vpop.xlane.xlu0 %7858 }
0x1d5d   :  { %v7888_v26 = vmul.f32 0.02, %v7859_v61 }
0x1d5e   :  { %v7861_v25 = vpop.xlane.xlu1 %7860 }
0x1d5f   :  { %v7904_v15 = vadd.f32 1e-05, %v7888_v26  ;;  %v7889_v46 = vmul.f32 0.02, %v7861_v25 }
0x1d61   :  { %10341 = vrsqrt.f32 %v7904_v15  ;;  %v7905_v38 = vadd.f32 1e-05, %v7889_v46 }
0x1d63   :  { %v10338_v30 = vpop.eup %10337  ;;  %10343 = vrsqrt.f32 %v7905_v38 }
0x1d64   :  { %v7863_v17 = vpop.xlane.xlu0 %7862  ;;  %v7934_v16 = vmul.f32 %v10338_v30, %v13796_v3 }
0x1d65   :  { %v10340_v35 = vpop.eup %10339  ;;  %v7890_v11 = vmul.f32 0.02, %v7863_v17 }
0x1d66   :  { %v7865_v56 = vpop.xlane.xlu1 %7864  ;;  %v7935_v48 = vmul.f32 %v10340_v35, %v13800_v4  ;;  %v7954_v6 = vmul.f32 %v13898_v55, %v7934_v16 }
0x1d67   :  { %v7906_v47 = vadd.f32 1e-05, %v7890_v11  ;;  %v7891_v5 = vmul.f32 0.02, %v7865_v56 }
0x1d68   :  { %v7955_v37 = vmul.f32 %v13898_v55, %v7935_v48  ;;  %v13909_v31 = vadd.f32 %v13903_v42, %v7954_v6 }
0x1d69   :  { %10345 = vrsqrt.f32 %v7906_v47  ;;  %v7907_v54 = vadd.f32 1e-05, %v7891_v5 }
0x1d6a   :  { %v7975_v3 = vadd.f32 %v13903_v42, %v7955_v37 }
0x1d6b   :  { %v10342_v19 = vpop.eup %10341  ;;  %10347 = vrsqrt.f32 %v7907_v54 }
0x1d6c   :  { %v7936_v8 = vmul.f32 %v10342_v19, %v13808_v53  ;;  %v7867_v50 = vpop.xlane.xlu0 %7866  ;;  %v7990_v4 = vpack.c.bf16 %v7975_v3, %v13909_v31 }
0x1d6d   :  { %v10344_v10 = vpop.eup %10343  ;;  %v7892_v57 = vmul.f32 0.02, %v7867_v50 }
0x1d6e   :  { %v7937_v28 = vmul.f32 %v10344_v10, %v13812_v59  ;;  %9529 = vmatprep.mubr.bf16.mxu0 %v7990_v4  ;;  %v7869_v24 = vpop.xlane.xlu1 %7868  ;;  %v7956_v40 = vmul.f32 %v13898_v55, %v7936_v8 }
0x1d6f   :  { %v7908_v21 = vadd.f32 1e-05, %v7892_v57  ;;  %v7893_v29 = vmul.f32 0.02, %v7869_v24 }
0x1d70   :  { %v7957_v18 = vmul.f32 %v13898_v55, %v7937_v28  ;;  %v13918_v7 = vadd.f32 %v13903_v42, %v7956_v40 }
0x1d71   :  { %10349 = vrsqrt.f32 %v7908_v21  ;;  %v7909_v1 = vadd.f32 1e-05, %v7893_v29 }
0x1d72   :  { %v7977_v53 = vadd.f32 %v13903_v42, %v7957_v18 }
0x1d73   :  { %v10346_v13 = vpop.eup %10345  ;;  %10351 = vrsqrt.f32 %v7909_v1 }
0x1d74   :  { %v7871_v43 = vpop.xlane.xlu0 %7870  ;;  %v7991_v59 = vpack.c.bf16 %v7977_v53, %v13918_v7  ;;  %v7938_v51 = vmul.f32 %v10346_v13, %v13820_v33 }
0x1d75   :  { %v10348_v39 = vpop.eup %10347  ;;  %v7894_v2 = vmul.f32 0.02, %v7871_v43 }
0x1d76   :  { %9530 = vmatmul.mubr.bf16.vlgmr.msra.gmra.mrb[240].mxu0 %v7991_v59  ;;  %v7873_v49 = vpop.xlane.xlu1 %7872  ;;  %v7939_v36 = vmul.f32 %v10348_v39, %v13824_v0  ;;  %v7958_v27 = vmul.f32 %v13898_v55, %v7938_v51 }
0x1d77   :  { %v7910_v61 = vadd.f32 1e-05, %v7894_v2  ;;  %v7895_v26 = vmul.f32 0.02, %v7873_v49 }
0x1d78   :  { %v7959_v25 = vmul.f32 %v13898_v55, %v7939_v36  ;;  %v13927_v46 = vadd.f32 %v13903_v42, %v7958_v27 }
0x1d79   :  { %10353 = vrsqrt.f32 %v7910_v61  ;;  %v7911_v15 = vadd.f32 1e-05, %v7895_v26 }
0x1d7a   :  { %v7979_v38 = vadd.f32 %v13903_v42, %v7959_v25 }
0x1d7b   :  { %v10350_v33 = vpop.eup %10349  ;;  %10355 = vrsqrt.f32 %v7911_v15 }
0x1d7c   :  { %v7875_v30 = vpop.xlane.xlu0 %7874  ;;  %v7992_v17 = vpack.c.bf16 %v7979_v38, %v13927_v46  ;;  %v7940_v0 = vmul.f32 %v10350_v33, %v13832_v63 }
0x1d7d   :  { %v10352_v16 = vpop.eup %10351  ;;  %v7896_v35 = vmul.f32 0.02, %v7875_v30 }
0x1d7e   :  { %9533 = vmatprep.mubr.bf16.mxu0 %v7992_v17  ;;  %v7877_v11 = vpop.xlane.xlu1 %7876  ;;  %v7941_v56 = vmul.f32 %v10352_v16, %v13836_v44  ;;  %v7960_v48 = vmul.f32 %v13898_v55, %v7940_v0 }
0x1d7f   :  { %v7912_v6 = vadd.f32 1e-05, %v7896_v35  ;;  %v7897_v47 = vmul.f32 0.02, %v7877_v11 }
0x1d80   :  { %v7961_v5 = vmul.f32 %v13898_v55, %v7941_v56  ;;  %v13936_v54 = vadd.f32 %v13903_v42, %v7960_v48 }
0x1d81   :  { %10357 = vrsqrt.f32 %v7912_v6  ;;  %v7913_v37 = vadd.f32 1e-05, %v7897_v47 }
0x1d82   :  { %v7981_v3 = vadd.f32 %v13903_v42, %v7961_v5 }
0x1d83   :  { %v10354_v63 = vpop.eup %10353  ;;  %10359 = vrsqrt.f32 %v7913_v37 }
0x1d84   :  { %v7879_v19 = vpop.xlane.xlu0 %7878  ;;  %v7993_v8 = vpack.c.bf16 %v7981_v3, %v13936_v54  ;;  %v7942_v44 = vmul.f32 %v10354_v63, %v13844_v41 }
0x1d85   :  { %v10356_v50 = vpop.eup %10355  ;;  %v7898_v4 = vmul.f32 0.02, %v7879_v19 }
0x1d86   :  { %9534 = vmatmul.mubr.bf16.gmra.mrb[244].mxu0 %v7993_v8  ;;  %v7881_v10 = vpop.xlane.xlu1 %7880  ;;  %v7943_v57 = vmul.f32 %v10356_v50, %v13848_v14  ;;  %v7962_v28 = vmul.f32 %v13898_v55, %v7942_v44 }
0x1d87   :  { %v7914_v24 = vadd.f32 1e-05, %v7898_v4  ;;  %v7899_v40 = vmul.f32 0.02, %v7881_v10 }
0x1d88   :  { %v7963_v21 = vmul.f32 %v13898_v55, %v7943_v57  ;;  %v13945_v18 = vadd.f32 %v13903_v42, %v7962_v28 }
0x1d89   :  { %10361 = vrsqrt.f32 %v7914_v24  ;;  %v7915_v29 = vadd.f32 1e-05, %v7899_v40 }
0x1d8a   :  { %v7983_v1 = vadd.f32 %v13903_v42, %v7963_v21 }
0x1d8b   :  { %v10358_v41 = vpop.eup %10357  ;;  %10363 = vrsqrt.f32 %v7915_v29 }
0x1d8c   :  { %v7883_v53 = vpop.xlane.xlu0 %7882  ;;  %v7994_v13 = vpack.c.bf16 %v7983_v1, %v13945_v18  ;;  %v7944_v14 = vmul.f32 %v10358_v41, %v13856_v12 }
0x1d8d   :  { %v10360_v43 = vpop.eup %10359  ;;  %v7900_v59 = vmul.f32 0.02, %v7883_v53 }
0x1d8e   :  { %9537 = vmatprep.mubr.bf16.mxu0 %v7994_v13  ;;  %v7885_v51 = vpop.xlane.xlu1 %7884  ;;  %v7945_v39 = vmul.f32 %v10360_v43, %v13860_v20  ;;  %v7964_v2 = vmul.f32 %v13898_v55, %v7944_v14 }
0x1d8f   :  { %v7916_v49 = vadd.f32 1e-05, %v7900_v59  ;;  %v7901_v36 = vmul.f32 0.02, %v7885_v51 }
0x1d90   :  { %v7965_v27 = vmul.f32 %v13898_v55, %v7945_v39  ;;  %v7984_v26 = vadd.f32 %v13903_v42, %v7964_v2 }
0x1d91   :  { %10365 = vrsqrt.f32 %v7916_v49  ;;  %v7917_v61 = vadd.f32 1e-05, %v7901_v36 }
0x1d92   :  { %v7985_v25 = vadd.f32 %v13903_v42, %v7965_v27 }
0x1d93   :  { %v10362_v15 = vpop.eup %10361  ;;  %10367 = vrsqrt.f32 %v7917_v61 }
0x1d94   :  { %v7995_v12 = vpack.c.bf16 %v7985_v25, %v7984_v26  ;;  %v7946_v38 = vmul.f32 %v10362_v15, %v13868_v22 }
0x1d95   :  { %v10364_v33 = vpop.eup %10363 }
0x1d96   :  { %9538 = vmatmul.mubr.bf16.gmra.mrb[248].mxu0 %v7995_v12  ;;  %v7947_v20 = vmul.f32 %v10364_v33, %v13872_v34  ;;  %v7966_v30 = vmul.f32 %v13898_v55, %v7946_v38 }
0x1d98   :  { %v7967_v17 = vmul.f32 %v13898_v55, %v7947_v20  ;;  %v7986_v0 = vadd.f32 %v13903_v42, %v7966_v30 }
0x1d9a   :  { %v7987_v16 = vadd.f32 %v13903_v42, %v7967_v17 }
0x1d9b   :  { %v10366_v35 = vpop.eup %10365 }
0x1d9c   :  { %v7996_v11 = vpack.c.bf16 %v7987_v16, %v7986_v0  ;;  %v7948_v56 = vmul.f32 %v10366_v35, %v13881_v58  ;;  %v8018_v58 = vrot.slane %v13894_v32, %v14135_v23 }
0x1d9d   :  { %v10368_v48 = vpop.eup %10367 }
0x1d9e   :  { %9541 = vmatprep.mubr.bf16.mxu0 %v7996_v11  ;;  %v7949_v22 = vmul.f32 %v10368_v48, %v13885_v45  ;;  %v7968_v6 = vmul.f32 %v13898_v55, %v7948_v56 }
0x1da0   :  { %v7969_v34 = vmul.f32 %v13898_v55, %v7949_v22  ;;  %v7988_v47 = vadd.f32 %v13903_v42, %v7968_v6 }
0x1da2   :  { %v7989_v5 = vadd.f32 %v13903_v42, %v7969_v34 }
0x1da4   :  { %v7997_v37 = vpack.c.bf16 %v7989_v5, %v7988_v47 }
0x1da6   :  { %9542 = vmatmul.mubr.bf16.gmra.mrb[252].mxu0 %v7997_v37 }
0x1da7   :  { %9581 = vmatprep.mubr.msk.bf16.mxu0 %vm10670_vm0, %v11538_v60 }
0x1e49   :  { %v9531_v3 = vpop.f32.mrb[240].mxu0 }
0x1e4a   :  { %v8109_v63 = vadd.f32 %v9531_v3, %v8018_v58  ;;  %v8101_v19 = vpop.f32.mrb[241].mxu0 }
0x1e4b   :  { %v9532_v45 = vpop.f32.mrb[242].mxu0  ;;  %v8102_v44 = vadd.f32 %v8101_v19, %v8018_v58 }
0x1e4c   :  { %v8157_v8 = vadd.f32 %v8109_v63, %v13918_v7  ;;  %v8104_v55 = vpop.f32.mrb[243].mxu0 }
0x1e4d   :  { %v8156_v50 = vadd.f32 %v8102_v44, %v13909_v31 }
0x1e4e   :  { %8166 = vadd.xlane.f32.xlu0 %v8157_v8 }
0x1e52   :  { %8164 = vadd.xlane.f32.xlu0 %v8156_v50 }
0x1e59   :  { %v9535_v42 = vpop.f32.mrb[244].mxu0 }
0x1e5a   :  { %v8123_v4 = vadd.f32 %v9535_v42, %v8018_v58  ;;  %v8115_v10 = vpop.f32.mrb[245].mxu0 }
0x1e5b   :  { %v9536_v57 = vpop.f32.mrb[246].mxu0  ;;  %v8116_v24 = vadd.f32 %v8115_v10, %v8018_v58 }
0x1e5c   :  { %v8159_v28 = vadd.f32 %v8123_v4, %v13936_v54  ;;  %v8118_v23 = vpop.f32.mrb[247].mxu0 }
0x1e5d   :  { %v8158_v40 = vadd.f32 %v8116_v24, %v13927_v46  ;;  %v9857_v24 = vld [vmem:[#allocation14] sm:$0xff]   ;;  %v9858_v23 = vld [vmem:[#allocation14 + $0x8] sm:$0xff]  }
0x1e5e   :  { %8170 = vadd.xlane.f32.xlu1 %v8159_v28  ;;  %9546 = vmatpush3.bf16.msra.mxu1 %v9857_v24 }
0x1e5f   :  { %9547 = vmatprep.subr.bf16.mxu1 %v11538_v60 }
0x1e62   :  { %8168 = vadd.xlane.f32.xlu1 %v8158_v40  ;;  %9548 = vmatpush3.bf16.msra.mxu1 %v9858_v23 }
0x1e63   :  { %9549 = vmatprep.subr.bf16.mxu1 %v11538_v60 }
0x1e69   :  { %v9539_v21 = vpop.f32.mrb[248].mxu0 }
0x1e6a   :  { %v8137_v7 = vadd.f32 %v9539_v21, %v8018_v58  ;;  %v8129_v29 = vpop.f32.mrb[249].mxu0  ;;  %v9861_v21 = vld [vmem:[#allocation14 + $0x20] sm:$0xff]  }
0x1e6b   :  { %v8130_v1 = vadd.f32 %v8129_v29, %v8018_v58  ;;  %v9540_v41 = vpop.f32.mrb[250].mxu0  ;;  %v9863_v29 = vld [vmem:[#allocation14 + $0x30] sm:$0xff]  }
0x1e6c   :  { %v8161_v53 = vadd.f32 %v8137_v7, %v7984_v26  ;;  %v8132_v31 = vpop.f32.mrb[251].mxu0  ;;  %v9862_v7 = vld [vmem:[#allocation14 + $0x28] sm:$0xff]   ;;  %v9865_v41 = vld [vmem:[#allocation14 + $0x40] sm:$0xff]  }
0x1e6d   :  { %v8160_v13 = vadd.f32 %v8130_v1, %v13945_v18  ;;  %v9864_v1 = vld [vmem:[#allocation14 + $0x38] sm:$0xff]   ;;  %9566 = vmatpush3.bf16.msra.mxu0 %v9865_v41  ;;  %v9867_v31 = vld [vmem:[#allocation14 + $0x50] sm:$0xff]  }
0x1e6e   :  { %8174 = vadd.xlane.f32.xlu1 %v8161_v53  ;;  %9567 = vmatprep.subr.bf16.mxu0 %v11538_v60 }
0x1e6f   :  { %8172 = vadd.xlane.f32.xlu0 %v8160_v13 }
0x1e79   :  { %v9543_v14 = vpop.f32.mrb[252].mxu0 }
0x1e7a   :  { %v8151_v43 = vadd.f32 %v9543_v14, %v8018_v58  ;;  %v8143_v54 = vpop.f32.mrb[253].mxu0  ;;  %v9869_v14 = vld [vmem:[#allocation14 + $0x60] sm:$0xff]  }
0x1e7b   :  { %v8144_v59 = vadd.f32 %v8143_v54, %v8018_v58  ;;  %v9544_v51 = vpop.f32.mrb[254].mxu0 }
0x1e7c   :  { %v8163_v39 = vadd.f32 %v8151_v43, %v7988_v47  ;;  %v8146_v2 = vpop.f32.mrb[255].mxu0  ;;  %v9870_v43 = vld [vmem:[#allocation14 + $0x68] sm:$0xff]  }
0x1e7d   :  { %v8162_v46 = vadd.f32 %v8144_v59, %v7986_v0 }
0x1e7e   :  { %8178 = vadd.xlane.f32.xlu1 %v8163_v39 }
0x1e7f   :  { %8176 = vadd.xlane.f32.xlu0 %v8162_v46 }
0x1edb   :  { %v8167_v49 = vpop.xlane.xlu0 %8166 }
0x1edc   :  { %v8181_v36 = vmul.f32 0.02, %v8167_v49 }
0x1ede   :  { %v8189_v27 = vsub.f32 %v8157_v8, %v8181_v36 }
0x1edf   :  { %v8165_v61 = vpop.xlane.xlu0 %8164 }
0x1ee0   :  { %v13977_v26 = vmul.f32 %v11957_v9, %v8189_v27  ;;  %v8180_v18 = vmul.f32 0.02, %v8165_v61 }
0x1ee2   :  { %v8188_v25 = vsub.f32 %v8156_v50, %v8180_v18  ;;  %v8205_v15 = vmul.f32 %v13977_v26, %v13977_v26 }
0x1ee4   :  { %v13982_v12 = vmul.f32 %v11957_v9, %v8188_v25  ;;  %8214 = vadd.xlane.f32.xlu0 %v8205_v15 }
0x1ee6   :  { %v8204_v38 = vmul.f32 %v13982_v12, %v13982_v12 }
0x1ee8   :  { %8212 = vadd.xlane.f32.xlu0 %v8204_v38 }
0x1eeb   :  { %v8171_v33 = vpop.xlane.xlu1 %8170 }
0x1eec   :  { %v8183_v20 = vmul.f32 0.02, %v8171_v33 }
0x1eee   :  { %v8191_v30 = vsub.f32 %v8159_v28, %v8183_v20 }
0x1eef   :  { %v8169_v17 = vpop.xlane.xlu1 %8168 }
0x1ef0   :  { %v13987_v0 = vmul.f32 %v11957_v9, %v8191_v30  ;;  %v8182_v16 = vmul.f32 0.02, %v8169_v17 }
0x1ef2   :  { %v8190_v35 = vsub.f32 %v8158_v40, %v8182_v16  ;;  %v8207_v11 = vmul.f32 %v13987_v0, %v13987_v0  ;;  %v9859_v40 = vld [vmem:[#allocation14 + $0x10] sm:$0xff]  }
0x1ef3   :  { %9550 = vmatpush3.bf16.msra.mxu1 %v9859_v40 }
0x1ef4   :  { %v13992_v56 = vmul.f32 %v11957_v9, %v8190_v35  ;;  %8218 = vadd.xlane.f32.xlu1 %v8207_v11  ;;  %9551 = vmatprep.subr.bf16.mxu1 %v11538_v60 }
0x1ef6   :  { %v8206_v48 = vmul.f32 %v13992_v56, %v13992_v56 }
0x1ef8   :  { %8216 = vadd.xlane.f32.xlu1 %v8206_v48 }
0x1efb   :  { %v8175_v22 = vpop.xlane.xlu1 %8174 }
0x1efc   :  { %v8185_v6 = vmul.f32 0.02, %v8175_v22  ;;  %v8173_v34 = vpop.xlane.xlu0 %8172  ;;  %v8263_v22 = vrot.slane %v13894_v32, %v14138_v52 }
0x1efd   :  { %v8184_v47 = vmul.f32 0.02, %v8173_v34 }
0x1efe   :  { %v8193_v5 = vsub.f32 %v8161_v53, %v8185_v6  ;;  %v9866_v53 = vld [vmem:[#allocation14 + $0x48] sm:$0xff]  }
0x1eff   :  { %v8192_v37 = vsub.f32 %v8160_v13, %v8184_v47  ;;  %9568 = vmatpush3.bf16.msra.mxu0 %v9866_v53  ;;  %v9868_v13 = vld [vmem:[#allocation14 + $0x58] sm:$0xff]  }
0x1f00   :  { %v13997_v58 = vmul.f32 %v11957_v9, %v8193_v5  ;;  %9569 = vmatprep.subr.bf16.mxu0 %v11538_v60 }
0x1f01   :  { %v14000_v3 = vmul.f32 %v11957_v9, %v8192_v37 }
0x1f02   :  { %v8209_v63 = vmul.f32 %v13997_v58, %v13997_v58 }
0x1f03   :  { %v8208_v19 = vmul.f32 %v14000_v3, %v14000_v3  ;;  %9570 = vmatpush3.bf16.msra.mxu0 %v9867_v31 }
0x1f04   :  { %8222 = vadd.xlane.f32.xlu1 %v8209_v63  ;;  %9571 = vmatprep.subr.bf16.mxu0 %v11538_v60 }
0x1f05   :  { %8220 = vadd.xlane.f32.xlu0 %v8208_v19 }
0x1f07   :  { %9572 = vmatpush3.bf16.msra.mxu0 %v9868_v13 }
0x1f08   :  { %9573 = vmatprep.subr.bf16.mxu0 %v11538_v60 }
0x1f0b   :  { %v8179_v45 = vpop.xlane.xlu1 %8178  ;;  %9574 = vmatpush3.bf16.msra.mxu0 %v9869_v14 }
0x1f0c   :  { %v8187_v8 = vmul.f32 0.02, %v8179_v45  ;;  %v8177_v44 = vpop.xlane.xlu0 %8176  ;;  %9575 = vmatprep.subr.bf16.mxu0 %v11538_v60 }
0x1f0d   :  { %v8186_v55 = vmul.f32 0.02, %v8177_v44  ;;  %v8275_v44 = vrot.slane %v13894_v32, %v14146_v62 }
0x1f0e   :  { %v8195_v50 = vsub.f32 %v8163_v39, %v8187_v8 }
0x1f0f   :  { %v8194_v42 = vsub.f32 %v8162_v46, %v8186_v55  ;;  %9576 = vmatpush3.bf16.msra.mxu0 %v9870_v43 }
0x1f10   :  { %v14007_v4 = vmul.f32 %v11957_v9, %v8195_v50  ;;  %9577 = vmatprep.subr.bf16.mxu0 %v11538_v60 }
0x1f11   :  { %v14010_v10 = vmul.f32 %v11957_v9, %v8194_v42  ;;  %v9860_v9 = vld [vmem:[#allocation14 + $0x18] sm:$0xff]  }
0x1f12   :  { %v8211_v57 = vmul.f32 %v14007_v4, %v14007_v4  ;;  %9552 = vmatpush3.bf16.msra.mxu1 %v9860_v9 }
0x1f13   :  { %v8210_v28 = vmul.f32 %v14010_v10, %v14010_v10  ;;  %9553 = vmatprep.subr.bf16.mxu1 %v11538_v60 }
0x1f14   :  { %8226 = vadd.xlane.f32.xlu1 %v8211_v57 }
0x1f15   :  { %8224 = vadd.xlane.f32.xlu0 %v8210_v28 }
0x1f16   :  { %9554 = vmatpush3.bf16.msra.mxu1 %v9861_v21 }
0x1f17   :  { %9555 = vmatprep.subr.bf16.mxu1 %v11538_v60 }
0x1f1a   :  { %9556 = vmatpush3.bf16.msra.mxu1 %v9862_v7 }
0x1f1b   :  { %9557 = vmatprep.subr.bf16.mxu1 %v11538_v60 }
0x1f1e   :  { %9558 = vmatpush3.bf16.msra.mxu1 %v9863_v29 }
0x1f1f   :  { %9559 = vmatprep.subr.bf16.mxu1 %v11538_v60 }
0x1f22   :  { %9560 = vmatpush3.bf16.msra.mxu1 %v9864_v1 }
0x1f71   :  { %v8215_v59 = vpop.xlane.xlu0 %8214 }
0x1f72   :  { %v8229_v46 = vmul.f32 0.02, %v8215_v59 }
0x1f74   :  { %v8237_v27 = vadd.f32 1e-05, %v8229_v46 }
0x1f75   :  { %v8213_v39 = vpop.xlane.xlu0 %8212 }
0x1f76   :  { %v8228_v49 = vmul.f32 0.02, %v8213_v39 }
0x1f78   :  { %v8236_v18 = vadd.f32 1e-05, %v8228_v49 }
0x1f81   :  { %v8219_v54 = vpop.xlane.xlu1 %8218 }
0x1f82   :  { %v8231_v61 = vmul.f32 0.02, %v8219_v54 }
0x1f84   :  { %v8239_v15 = vadd.f32 1e-05, %v8231_v61 }
0x1f85   :  { %v8217_v51 = vpop.xlane.xlu1 %8216 }
0x1f86   :  { %v8230_v2 = vmul.f32 0.02, %v8217_v51 }
0x1f88   :  { %v8238_v36 = vadd.f32 1e-05, %v8230_v2 }
0x1f8a   :  { %10369 = vrsqrt.f32 %v8238_v36 }
0x1f8b   :  { %10371 = vrsqrt.f32 %v8237_v27 }
0x1f8c   :  { %10373 = vrsqrt.f32 %v8236_v18 }
0x1f8d   :  { %10375 = vrsqrt.f32 %v8239_v15 }
0x1f91   :  { %v8223_v25 = vpop.xlane.xlu1 %8222 }
0x1f92   :  { %v8233_v38 = vmul.f32 0.02, %v8223_v25  ;;  %v8221_v33 = vpop.xlane.xlu0 %8220 }
0x1f93   :  { %v8232_v20 = vmul.f32 0.02, %v8221_v33 }
0x1f94   :  { %v8241_v17 = vadd.f32 1e-05, %v8233_v38  ;;  %v10370_v16 = vpop.eup %10369 }
0x1f95   :  { %v8240_v30 = vadd.f32 1e-05, %v8232_v20  ;;  %v10372_v35 = vpop.eup %10371  ;;  %v8254_v48 = vmul.f32 %v10370_v16, %v13992_v56 }
0x1f96   :  { %v10374_v11 = vpop.eup %10373  ;;  %v8253_v6 = vmul.f32 %v10372_v35, %v13977_v26 }
0x1f97   :  { %10377 = vrsqrt.f32 %v8240_v30  ;;  %v10376_v34 = vpop.eup %10375  ;;  %v8252_v5 = vmul.f32 %v10374_v11, %v13982_v12  ;;  %v8266_v63 = vmul.f32 %v8263_v22, %v8254_v48 }
0x1f98   :  { %10379 = vrsqrt.f32 %v8241_v17  ;;  %v8265_v55 = vmul.f32 %v8263_v22, %v8253_v6  ;;  %v8255_v56 = vmul.f32 %v10376_v34, %v13987_v0 }
0x1f99   :  { %v8264_v26 = vmul.f32 %v8263_v22, %v8252_v5  ;;  %v8278_v28 = vadd.f32 %v8275_v44, %v8266_v63  ;;  %v9871_v5 = vld [vmem:[#allocation14 + $0x70] sm:$0xff]   ;;  %v8836_v63 = vld [vmem:[%s14070_s10] ss:$0 sm:$0xff] }
0x1f9a   :  { %v8277_v12 = vadd.f32 %v8275_v44, %v8265_v55  ;;  %v8267_v23 = vmul.f32 %v8263_v22, %v8255_v56  ;;  %9578 = vmatpush3.bf16.msra.mxu0 %v9871_v5 }
0x1f9b   :  { %v8276_v40 = vadd.f32 %v8275_v44, %v8264_v26  ;;  %v8286_v9 = vpack.c.bf16 %v8278_v28, %v8278_v28  ;;  %9579 = vmatprep.subr.bf16.mxu0 %v11538_v60 }
0x1f9c   :  { %v8285_v62 = vpack.c.bf16 %v8277_v12, %v8277_v12  ;;  %v8279_v32 = vadd.f32 %v8275_v44, %v8267_v23 }
0x1f9d   :  { %v8284_v0 = vpack.c.bf16 %v8276_v40, %v8276_v40  ;;  %v8325_v29 = vunpack.c.l.b16 %v8286_v9 }
0x1f9e   :  { %v8324_v41 = vunpack.c.l.b16 %v8285_v62  ;;  %v8287_v53 = vpack.c.bf16 %v8279_v32, %v8279_v32 }
0x1f9f   :  { %v8323_v43 = vunpack.c.l.b16 %v8284_v0 }
0x1fa0   :  { %v8331_v39 = vrot.slane %v8324_v41, 7  ;;  %v8326_v2 = vunpack.c.l.b16 %v8287_v53 }
0x1fa1   :  { %v10378_v47 = vpop.eup %10377  ;;  %v8227_v37 = vpop.xlane.xlu1 %8226 }
0x1fa2   :  { %v8256_v19 = vmul.f32 %v10378_v47, %v14000_v3  ;;  %v8235_v45 = vmul.f32 0.02, %v8227_v37  ;;  %v8225_v8 = vpop.xlane.xlu0 %8224  ;;  %v10380_v52 = vpop.eup %10379  ;;  %v8333_v27 = vsel %vm8332_vm3, %v8331_v39, %v8323_v43  ;;  %v8337_v38 = vrot.slane %v8326_v2, 5  ;;  %v9872_v37 = vld [vmem:[#allocation14 + $0x78] sm:$0xff]  }
0x1fa3   :  { %v8234_v50 = vmul.f32 0.02, %v8225_v8  ;;  %v8257_v3 = vmul.f32 %v10380_v52, %v13997_v58  ;;  %v8334_v58 = vrot.slane %v8325_v29, 6  ;;  %9580 = vmatpush3.bf16.msra.mxu0 %v9872_v37  ;;  %v8846_v52 = vld [vmem:[%s14070_s10 + $0x1] ss:$0 sm:$0xff] }
0x1fa4   :  { %v8243_v42 = vadd.f32 1e-05, %v8235_v45  ;;  %v8268_v24 = vmul.f32 %v8263_v22, %v8256_v19 }
0x1fa5   :  { %v8242_v57 = vadd.f32 1e-05, %v8234_v50  ;;  %v8269_v7 = vmul.f32 %v8263_v22, %v8257_v3  ;;  %v8336_v18 = vsel %vm8335_vm4, %v8334_v58, %v8333_v27 }
0x1fa6   :  { %10381 = vrsqrt.f32 %v8243_v42  ;;  %v8280_v21 = vadd.f32 %v8275_v44, %v8268_v24  ;;  %v8339_v30 = vsel %vm8338_vm5, %v8337_v38, %v8336_v18 }
0x1fa7   :  { %10383 = vrsqrt.f32 %v8242_v57  ;;  %v8281_v31 = vadd.f32 %v8275_v44, %v8269_v7 }
0x1fa8   :  { %v8288_v1 = vpack.c.bf16 %v8280_v21, %v8280_v21 }
0x1fa9   :  { %v8289_v46 = vpack.c.bf16 %v8281_v31, %v8281_v31 }
0x1faa   :  { %v8327_v59 = vunpack.c.l.b16 %v8288_v1 }
0x1fab   :  { %v8328_v33 = vunpack.c.l.b16 %v8289_v46 }
0x1fac   :  { %v8340_v25 = vrot.slane %v8327_v59, 4 }
0x1fad   :  { %v8343_v35 = vrot.slane %v8328_v33, 3 }
0x1fae   :  { %v8342_v16 = vsel %vm8341_vm6, %v8340_v25, %v8339_v30 }
0x1fb0   :  { %v10382_v13 = vpop.eup %10381 }
0x1fb1   :  { %v10384_v14 = vpop.eup %10383  ;;  %v8259_v54 = vmul.f32 %v10382_v13, %v14007_v4 }
0x1fb2   :  { %v8258_v51 = vmul.f32 %v10384_v14, %v14010_v10 }
0x1fb3   :  { %v8271_v49 = vmul.f32 %v8263_v22, %v8259_v54 }
0x1fb4   :  { %v8270_v36 = vmul.f32 %v8263_v22, %v8258_v51  ;;  %v8345_v22 = vsel %vm8344_vm7, %v8343_v35, %v8342_v16 }
0x1fb5   :  { %v8283_v61 = vadd.f32 %v8275_v44, %v8271_v49 }
0x1fb6   :  { %v8282_v15 = vadd.f32 %v8275_v44, %v8270_v36 }
0x1fb7   :  { %v8291_v4 = vpack.c.bf16 %v8283_v61, %v8283_v61 }
0x1fb8   :  { %v8290_v20 = vpack.c.bf16 %v8282_v15, %v8282_v15 }
0x1fb9   :  { %v8330_v17 = vunpack.c.l.b16 %v8291_v4 }
0x1fba   :  { %v8329_v10 = vunpack.c.l.b16 %v8290_v20 }
0x1fbb   :  { %v8349_v48 = vrot.slane %v8330_v17, 1 }
0x1fbc   :  { %v8346_v11 = vrot.slane %v8329_v10, 2 }
0x1fbe   :  { %v8348_v6 = vsel %vm8347_vm8, %v8346_v11, %v8345_v22 }
0x1fbf   :  { %v8351_v34 = vsel %vm8350_vm9, %v8349_v48, %v8348_v6 }
0x1fc0   :  { %v8352_v47 = vpack.c.b16 %v8351_v34, %v8351_v34 }
0x1fc2   :  { %9562 = vmatmul.mubr.bf16.vlgmr.msra.gmra.mrb[0].mxu1 %v8352_v47 }
0x2095   :  { %v8436_v19 = vpop.f32.mrb[0].mxu1 }
0x2096   :  { %v8437_v45 = vadd.f32 %v8836_v63, %v8436_v19  ;;  %v9563_v8 = vpop.f32.mrb[1].mxu1 }
0x2097   :  { %v8439_v44 = vpop.f32.mrb[2].mxu1 }
0x2098   :  { %v8442_v55 = vmax.f32 %v8437_v45, 0.0  ;;  %v9564_v56 = vpop.f32.mrb[3].mxu1 }
0x209a   :  { %v8443_v50 = vpack.c.bf16 %v8442_v55, %v8442_v55 }
0x209c   :  { %9582 = vmatmul.mubr.bf16.vlgmr.msra.gmra.mrb[0].mxu0 %v8443_v50 }
0x216f   :  { %v8551_v60 = vpop.f32.mrb[0].mxu0 }
0x2170   :  { %v8552_v42 = vadd.f32 %v8846_v52, %v8551_v60  ;;  %v9583_v26 = vpop.f32.mrb[1].mxu0 }
0x2171   :  { %v8554_v57 = vpop.f32.mrb[2].mxu0 }
0x2172   :  { %8557 = vst [vmem:[#allocation15] sm:$0xff] %v8552_v42  ;;  %v9584_v28 = vpop.f32.mrb[3].mxu0 }
0x2173   :  { %10631 = shalt.err (!%p10628_p4)
}
0x2174   :  { %s10632_s10 = scalar_lea.hbm %s14071_s11, 128 }
0x2175   :  { %p10633_p5 = scmp.ne.s32.totalorder %s14071_s11, %s10632_s10  ;;  %p10636_p6 = scmp.lt.u32.totalorder %s10632_s10, %s14071_s11 }
0x2177   :  { %p10638_p7 = pnand %p10636_p6, %p10633_p5 }
0x2179   :  { %10641 = shalt.err (!%p10638_p7)
}
0x217a   :  { %8567 = dma.vmem_to_hbm [thread:$0]  %s8565_s22, 128, %s14071_s11, [#allocation5]  }
0x217b   :  { %10650 = dma.done.wait [#allocation5], 128  }
0x217c   :  { %10651 = vsyncadd [#allocation5], 4294967168 }
0x217d   :  { %8571 = vsyncpa [#allocation4], 1 }
0x217e   :  { %8572 = vsyncpa [#allocation7], 1 }
0x217f   :  { %8573 = vsyncpa [#allocation10], 1 }
0x2180   :  { %8574 = vsyncpa [#allocation13], 1 }
0x2181   :  { %8575 = vsyncpa [#allocation5], 1 }

</bundles_post_ra>
